<compile_context>
chip_gen: v7x
topology: tpu7x:2x2x1
jax: 0.10.0
libtpu: 0.0.40
codegen_flags: <defaults>
</compile_context>

<pallas_src>
import functools

import jax
import jax.numpy as jnp
from jax import lax
from jax.experimental import pallas as pl
from jax.experimental.pallas import tpu as pltpu


def _conv3x3_im2col(pad_ref, w_ref, b_ref, H, W):
    """3x3 'same' conv on an already-padded (H+2, W+2, Cin) f32 ref.

    Builds the (H*W, 9*Cin) im2col patch matrix (tap order: dy-major, dx, ci),
    casts it to bf16 and does ONE MXU matmul with the pre-reshaped
    (9*Cin, Cout) bf16 weights, accumulating in f32.  Returns (H*W, Cout) f32
    with the bias added (no activation).
    """
    cin = pad_ref.shape[-1]
    taps = []
    for dy in range(3):
        for dx in range(3):
            taps.append(pad_ref[dy:dy + H, dx:dx + W, :])           # (H, W, Cin) f32
    patches = jnp.concatenate(taps, axis=-1)                         # (H, W, 9*Cin)
    patches = patches.reshape(H * W, 9 * cin).astype(jnp.bfloat16)
    y = jnp.dot(patches, w_ref[...], preferred_element_type=jnp.float32)
    return y + b_ref[...]                                            # (H*W, Cout) f32


def _unet_kernel(x_ref, w1_ref, b1_ref, w2_ref, b2_ref, w3_ref, b3_ref,
                 w4_ref, b4_ref, o_ref, a1_ref, a2_ref, a3_ref, *, H, W):
    # x_ref : (H+2, W+2, 3)  f32   spatially padded input, one batch element
    # w1_ref: (9, 3, 64)     f32   per-tap weights for layer 1
    # w{2,3,4}_ref: (9*Cin, Cout) bf16 im2col weights (layer-4 Cout padded to 128)
    # b*_ref: (1, Cout)      f32
    # o_ref : (H, W, 128)    f32   lane-dense output slab (channel 0 is the result)
    # a*_ref: (H+2, W+2, C)  f32   VMEM-resident padded activations

    # Zero the padded activation scratches (only the 1-px border actually needs
    # to be zero; the interiors are overwritten below).
    a1_ref[...] = jnp.zeros_like(a1_ref)
    a2_ref[...] = jnp.zeros_like(a2_ref)
    a3_ref[...] = jnp.zeros_like(a3_ref)

    # ---- layer 1: 3 -> 64, ReLU.  Tiny; per-tap f32, acc initialized from bias.
    c1 = a1_ref.shape[-1]
    cin0 = x_ref.shape[-1]
    acc = jnp.broadcast_to(b1_ref[...], (H * W, c1))
    for tap in range(9):
        dy, dx = divmod(tap, 3)
        patch = x_ref[dy:dy + H, dx:dx + W, :].reshape(H * W, cin0)
        acc = acc + jnp.dot(patch, w1_ref[tap],
                            preferred_element_type=jnp.float32)
    a1_ref[1:H + 1, 1:W + 1, :] = jnp.maximum(acc, 0.0).reshape(H, W, c1)

    # ---- layer 2: 64 -> 128, ReLU (single bf16 im2col matmul, K = 576) -------
    y2 = _conv3x3_im2col(a1_ref, w2_ref, b2_ref, H, W)
    a2_ref[1:H + 1, 1:W + 1, :] = (
        jnp.maximum(y2, 0.0).reshape(H, W, a2_ref.shape[-1]))

    # ---- layer 3: 128 -> 64, ReLU (K = 1152) ---------------------------------
    y3 = _conv3x3_im2col(a2_ref, w3_ref, b3_ref, H, W)
    a3_ref[1:H + 1, 1:W + 1, :] = (
        jnp.maximum(y3, 0.0).reshape(H, W, a3_ref.shape[-1]))

    # ---- layer 4: 64 -> 1, Sigmoid.  Cout zero-padded to 128 so the matmul and
    # the HBM store stay lane-dense; wrapper keeps channel 0 only. -------------
    y4 = jax.nn.sigmoid(_conv3x3_im2col(a3_ref, w4_ref, b4_ref, H, W))
    o_ref[...] = y4.reshape(H, W, o_ref.shape[-1])


def simple_unet_forward(x_nchw, params):
    """x_nchw: (N, 3, H, W) f32.
    params: [(w, b)] x 4 in PyTorch layout (w: (Cout, Cin, 3, 3), b: (Cout,))."""
    (w1, b1), (w2, b2), (w3, b3), (w4, b4) = params
    N, C, H, W = x_nchw.shape
    co_pad = 128                       # lane-dense padding for the 1-channel output

    # NCHW -> NHWC + a single spatial pad of the tiny 3-channel input.
    x = jnp.transpose(x_nchw, (0, 2, 3, 1))
    x_pad = jnp.pad(x, ((0, 0), (1, 1), (1, 1), (0, 0)))

    def im2col_w(w):                   # (Cout, Cin, 3, 3) -> (9*Cin, Cout), rows (dy,dx,ci)
        return jnp.transpose(w, (2, 3, 1, 0)).reshape(9 * w.shape[1], w.shape[0])

    w1_k = jnp.transpose(w1, (2, 3, 1, 0)).reshape(9, C, w1.shape[0])       # f32
    w2_k = im2col_w(w2).astype(jnp.bfloat16)
    w3_k = im2col_w(w3).astype(jnp.bfloat16)
    w4_k = jnp.pad(im2col_w(w4), ((0, 0), (0, co_pad - w4.shape[0]))).astype(jnp.bfloat16)
    b1_k = b1.reshape(1, -1)
    b2_k = b2.reshape(1, -1)
    b3_k = b3.reshape(1, -1)
    b4_k = jnp.pad(b4, (0, co_pad - b4.shape[0])).reshape(1, -1)

    c1, c2, c3 = w1.shape[0], w2.shape[0], w3.shape[0]

    kernel = functools.partial(_unet_kernel, H=H, W=W)
    out = pl.pallas_call(
        kernel,
        out_shape=jax.ShapeDtypeStruct((N, H, W, co_pad), jnp.float32),
        grid=(N,),
        in_specs=[
            pl.BlockSpec((None, H + 2, W + 2, C), lambda n: (n, 0, 0, 0)),
            pl.BlockSpec((9, C, c1), lambda n: (0, 0, 0)),
            pl.BlockSpec((1, c1), lambda n: (0, 0)),
            pl.BlockSpec((9 * c1, c2), lambda n: (0, 0)),
            pl.BlockSpec((1, c2), lambda n: (0, 0)),
            pl.BlockSpec((9 * c2, c3), lambda n: (0, 0)),
            pl.BlockSpec((1, c3), lambda n: (0, 0)),
            pl.BlockSpec((9 * c3, co_pad), lambda n: (0, 0)),
            pl.BlockSpec((1, co_pad), lambda n: (0, 0)),
        ],
        out_specs=pl.BlockSpec((None, H, W, co_pad), lambda n: (n, 0, 0, 0)),
        scratch_shapes=[
            pltpu.VMEM((H + 2, W + 2, c1), jnp.float32),
            pltpu.VMEM((H + 2, W + 2, c2), jnp.float32),
            pltpu.VMEM((H + 2, W + 2, c3), jnp.float32),
        ],
        compiler_params=pltpu.CompilerParams(
            dimension_semantics=("parallel",)),
    )(x_pad, w1_k, b1_k, w2_k, b2_k, w3_k, b3_k, w4_k, b4_k)

    # Keep the real channel and go back to NCHW: (N, 1, H, W).
    return jnp.transpose(out[..., :1], (0, 3, 1, 2))


def _reference_forward(x_nchw, params):
    # Pure-JAX f32 reference (lax.conv) for silent correctness checking.
    acts = ("relu", "relu", "relu", "sigmoid")
    x = x_nchw
    for (w, b), act in zip(params, acts):
        x = lax.conv_general_dilated(
            x, w, window_strides=(1, 1), padding="SAME",
            dimension_numbers=("NCHW", "OIHW", "NCHW"))
        x = x + b.reshape(1, -1, 1, 1)
        x = jnp.maximum(x, 0.0) if act == "relu" else jax.nn.sigmoid(x)
    return x


def init_conv_params(key, cin, cout):
    """Deterministic PyTorch-style kaiming-uniform init for a 3x3 conv (OIHW)."""
    kw, kb = jax.random.split(key)
    bound = 1.0 / jnp.sqrt(cin * 9)
    w = jax.random.uniform(kw, (cout, cin, 3, 3), jnp.float32, -bound, bound)
    b = jax.random.uniform(kb, (cout,), jnp.float32, -bound, bound)
    return w, b


if __name__ == "__main__":
    key = jax.random.PRNGKey(0)
    k_in, k1, k2, k3, k4 = jax.random.split(key, 5)

    N, C, H, W = 2, 3, 16, 16
    x = jax.random.normal(k_in, (N, C, H, W), jnp.float32)
    layer_defs = [(3, 64, k1), (64, 128, k2), (128, 64, k3), (64, 1, k4)]
    params = [init_conv_params(kk, ci, co) for ci, co, kk in layer_defs]

    fwd = jax.jit(simple_unet_forward)
    out = jax.block_until_ready(fwd(x, params))

    ref = jax.block_until_ready(_reference_forward(x, params))
    assert out.shape == (N, 1, H, W)
    err = float(jnp.max(jnp.abs(out - ref)))
    # bf16 MXU operands with f32 accumulation => small, bounded deviation.
    assert jnp.allclose(out, ref, atol=2e-2, rtol=2e-2), f"max abs err {err}"

    print("KERNEL_OK")
</pallas_src>

<mosaic_0001>
module attributes {stable_mosaic.version = 11 : i64} {
  func.func @_unet_kernel(%arg0: i32, %arg1: memref<1x18x18x3xf32, #tpu.memory_space<vmem>>, %arg2: memref<9x3x64xf32, #tpu.memory_space<vmem>>, %arg3: memref<1x64xf32, #tpu.memory_space<vmem>>, %arg4: memref<576x128xbf16, #tpu.memory_space<vmem>>, %arg5: memref<1x128xf32, #tpu.memory_space<vmem>>, %arg6: memref<1152x64xbf16, #tpu.memory_space<vmem>>, %arg7: memref<1x64xf32, #tpu.memory_space<vmem>>, %arg8: memref<576x128xbf16, #tpu.memory_space<vmem>>, %arg9: memref<1x128xf32, #tpu.memory_space<vmem>>, %arg10: memref<1x16x16x128xf32, #tpu.memory_space<vmem>>, %arg11: memref<18x18x64xf32, #tpu.memory_space<vmem>>, %arg12: memref<18x18x128xf32, #tpu.memory_space<vmem>>, %arg13: memref<18x18x64xf32, #tpu.memory_space<vmem>>) attributes {dimension_semantics = [#tpu.dimension_semantics<parallel>], iteration_bounds = array<i64: 2>, scalar_prefetch = 0 : i64, scratch_operands = 3 : i64, tpu.core_type = #tpu.core_type<tc>, window_params = [{transform_indices = @transform_0, window_bounds = array<i64: 1, 18, 18, 3>}, {pipeline_mode = #tpu.pipeline_mode<synchronous>, transform_indices = @transform_1, window_bounds = array<i64: 9, 3, 64>}, {pipeline_mode = #tpu.pipeline_mode<synchronous>, transform_indices = @transform_2, window_bounds = array<i64: 1, 64>}, {pipeline_mode = #tpu.pipeline_mode<synchronous>, transform_indices = @transform_3, window_bounds = array<i64: 576, 128>}, {pipeline_mode = #tpu.pipeline_mode<synchronous>, transform_indices = @transform_4, window_bounds = array<i64: 1, 128>}, {pipeline_mode = #tpu.pipeline_mode<synchronous>, transform_indices = @transform_5, window_bounds = array<i64: 1152, 64>}, {pipeline_mode = #tpu.pipeline_mode<synchronous>, transform_indices = @transform_6, window_bounds = array<i64: 1, 64>}, {pipeline_mode = #tpu.pipeline_mode<synchronous>, transform_indices = @transform_7, window_bounds = array<i64: 576, 128>}, {pipeline_mode = #tpu.pipeline_mode<synchronous>, transform_indices = @transform_8, window_bounds = array<i64: 1, 128>}, {transform_indices = @transform_9, window_bounds = array<i64: 1, 16, 16, 128>}]} {
    %cst = arith.constant 0.000000e+00 : f32
    %0 = vector.broadcast %cst : f32 to vector<18x18x64xf32>
    %c0 = arith.constant 0 : index
    %c0_0 = arith.constant 0 : index
    %c0_1 = arith.constant 0 : index
    %1 = vector.load %arg11[%c0, %c0_0, %c0_1] : memref<18x18x64xf32, #tpu.memory_space<vmem>>, vector<18x18x64xf32>
    tpu.vector_store %arg11[%c0, %c0_0, %c0_1], %0 {strides = array<i32>} : memref<18x18x64xf32, #tpu.memory_space<vmem>>, vector<18x18x64xf32>,
    %cst_2 = arith.constant 0.000000e+00 : f32
    %2 = vector.broadcast %cst_2 : f32 to vector<18x18x128xf32>
    %c0_3 = arith.constant 0 : index
    %c0_4 = arith.constant 0 : index
    %c0_5 = arith.constant 0 : index
    %3 = vector.load %arg12[%c0_3, %c0_4, %c0_5] : memref<18x18x128xf32, #tpu.memory_space<vmem>>, vector<18x18x128xf32>
    tpu.vector_store %arg12[%c0_3, %c0_4, %c0_5], %2 {strides = array<i32>} : memref<18x18x128xf32, #tpu.memory_space<vmem>>, vector<18x18x128xf32>,
    %cst_6 = arith.constant 0.000000e+00 : f32
    %4 = vector.broadcast %cst_6 : f32 to vector<18x18x64xf32>
    %c0_7 = arith.constant 0 : index
    %c0_8 = arith.constant 0 : index
    %c0_9 = arith.constant 0 : index
    %5 = vector.load %arg13[%c0_7, %c0_8, %c0_9] : memref<18x18x64xf32, #tpu.memory_space<vmem>>, vector<18x18x64xf32>
    tpu.vector_store %arg13[%c0_7, %c0_8, %c0_9], %4 {strides = array<i32>} : memref<18x18x64xf32, #tpu.memory_space<vmem>>, vector<18x18x64xf32>,
    %c0_10 = arith.constant 0 : index
    %c0_11 = arith.constant 0 : index
    %6 = vector.load %arg3[%c0_10, %c0_11] : memref<1x64xf32, #tpu.memory_space<vmem>>, vector<1x64xf32>
    %7 = vector.shape_cast %6 : vector<1x64xf32> to vector<1x64xf32>
    %8 = vector.broadcast %7 : vector<1x64xf32> to vector<256x64xf32>
    %c0_12 = arith.constant 0 : index
    %c0_13 = arith.constant 0 : index
    %c0_14 = arith.constant 0 : index
    %c0_15 = arith.constant 0 : index
    %9 = vector.load %arg1[%c0_12, %c0_13, %c0_14, %c0_15] : memref<1x18x18x3xf32, #tpu.memory_space<vmem>>, vector<1x16x16x3xf32>
    %10 = vector.shape_cast %9 : vector<1x16x16x3xf32> to vector<16x16x3xf32>
    %11 = vector.shape_cast %10 : vector<16x16x3xf32> to vector<256x3xf32>
    %c0_16 = arith.constant 0 : index
    %c0_17 = arith.constant 0 : index
    %c0_18 = arith.constant 0 : index
    %12 = vector.load %arg2[%c0_16, %c0_17, %c0_18] : memref<9x3x64xf32, #tpu.memory_space<vmem>>, vector<1x3x64xf32>
    %13 = vector.shape_cast %12 : vector<1x3x64xf32> to vector<3x64xf32>
    %cst_19 = arith.constant dense<0.000000e+00> : vector<256x64xf32>
    %14 = tpu.matmul %11, %13, %cst_19 {dimension_numbers = #tpu.dot_dimension_numbers<[1], [0], [0], [1], [0, 0, 1, 1], [], []>} : vector<256x3xf32>, vector<3x64xf32>, vector<256x64xf32> -> vector<256x64xf32>
    %15 = arith.addf %8, %14 : vector<256x64xf32>
    %c0_20 = arith.constant 0 : index
    %c0_21 = arith.constant 0 : index
    %c1 = arith.constant 1 : index
    %c0_22 = arith.constant 0 : index
    %16 = vector.load %arg1[%c0_20, %c0_21, %c1, %c0_22] : memref<1x18x18x3xf32, #tpu.memory_space<vmem>>, vector<1x16x16x3xf32>
    %17 = vector.shape_cast %16 : vector<1x16x16x3xf32> to vector<16x16x3xf32>
    %18 = vector.shape_cast %17 : vector<16x16x3xf32> to vector<256x3xf32>
    %c1_23 = arith.constant 1 : index
    %c0_24 = arith.constant 0 : index
    %c0_25 = arith.constant 0 : index
    %19 = vector.load %arg2[%c1_23, %c0_24, %c0_25] : memref<9x3x64xf32, #tpu.memory_space<vmem>>, vector<1x3x64xf32>
    %20 = vector.shape_cast %19 : vector<1x3x64xf32> to vector<3x64xf32>
    %cst_26 = arith.constant dense<0.000000e+00> : vector<256x64xf32>
    %21 = tpu.matmul %18, %20, %cst_26 {dimension_numbers = #tpu.dot_dimension_numbers<[1], [0], [0], [1], [0, 0, 1, 1], [], []>} : vector<256x3xf32>, vector<3x64xf32>, vector<256x64xf32> -> vector<256x64xf32>
    %22 = arith.addf %15, %21 : vector<256x64xf32>
    %c0_27 = arith.constant 0 : index
    %c0_28 = arith.constant 0 : index
    %c2 = arith.constant 2 : index
    %c0_29 = arith.constant 0 : index
    %23 = vector.load %arg1[%c0_27, %c0_28, %c2, %c0_29] : memref<1x18x18x3xf32, #tpu.memory_space<vmem>>, vector<1x16x16x3xf32>
    %24 = vector.shape_cast %23 : vector<1x16x16x3xf32> to vector<16x16x3xf32>
    %25 = vector.shape_cast %24 : vector<16x16x3xf32> to vector<256x3xf32>
    %c2_30 = arith.constant 2 : index
    %c0_31 = arith.constant 0 : index
    %c0_32 = arith.constant 0 : index
    %26 = vector.load %arg2[%c2_30, %c0_31, %c0_32] : memref<9x3x64xf32, #tpu.memory_space<vmem>>, vector<1x3x64xf32>
    %27 = vector.shape_cast %26 : vector<1x3x64xf32> to vector<3x64xf32>
    %cst_33 = arith.constant dense<0.000000e+00> : vector<256x64xf32>
    %28 = tpu.matmul %25, %27, %cst_33 {dimension_numbers = #tpu.dot_dimension_numbers<[1], [0], [0], [1], [0, 0, 1, 1], [], []>} : vector<256x3xf32>, vector<3x64xf32>, vector<256x64xf32> -> vector<256x64xf32>
    %29 = arith.addf %22, %28 : vector<256x64xf32>
    %c0_34 = arith.constant 0 : index
    %c1_35 = arith.constant 1 : index
    %c0_36 = arith.constant 0 : index
    %c0_37 = arith.constant 0 : index
    %30 = vector.load %arg1[%c0_34, %c1_35, %c0_36, %c0_37] : memref<1x18x18x3xf32, #tpu.memory_space<vmem>>, vector<1x16x16x3xf32>
    %31 = vector.shape_cast %30 : vector<1x16x16x3xf32> to vector<16x16x3xf32>
    %32 = vector.shape_cast %31 : vector<16x16x3xf32> to vector<256x3xf32>
    %c3 = arith.constant 3 : index
    %c0_38 = arith.constant 0 : index
    %c0_39 = arith.constant 0 : index
    %33 = vector.load %arg2[%c3, %c0_38, %c0_39] : memref<9x3x64xf32, #tpu.memory_space<vmem>>, vector<1x3x64xf32>
    %34 = vector.shape_cast %33 : vector<1x3x64xf32> to vector<3x64xf32>
    %cst_40 = arith.constant dense<0.000000e+00> : vector<256x64xf32>
    %35 = tpu.matmul %32, %34, %cst_40 {dimension_numbers = #tpu.dot_dimension_numbers<[1], [0], [0], [1], [0, 0, 1, 1], [], []>} : vector<256x3xf32>, vector<3x64xf32>, vector<256x64xf32> -> vector<256x64xf32>
    %36 = arith.addf %29, %35 : vector<256x64xf32>
    %c0_41 = arith.constant 0 : index
    %c1_42 = arith.constant 1 : index
    %c1_43 = arith.constant 1 : index
    %c0_44 = arith.constant 0 : index
    %37 = vector.load %arg1[%c0_41, %c1_42, %c1_43, %c0_44] : memref<1x18x18x3xf32, #tpu.memory_space<vmem>>, vector<1x16x16x3xf32>
    %38 = vector.shape_cast %37 : vector<1x16x16x3xf32> to vector<16x16x3xf32>
    %39 = vector.shape_cast %38 : vector<16x16x3xf32> to vector<256x3xf32>
    %c4 = arith.constant 4 : index
    %c0_45 = arith.constant 0 : index
    %c0_46 = arith.constant 0 : index
    %40 = vector.load %arg2[%c4, %c0_45, %c0_46] : memref<9x3x64xf32, #tpu.memory_space<vmem>>, vector<1x3x64xf32>
    %41 = vector.shape_cast %40 : vector<1x3x64xf32> to vector<3x64xf32>
    %cst_47 = arith.constant dense<0.000000e+00> : vector<256x64xf32>
    %42 = tpu.matmul %39, %41, %cst_47 {dimension_numbers = #tpu.dot_dimension_numbers<[1], [0], [0], [1], [0, 0, 1, 1], [], []>} : vector<256x3xf32>, vector<3x64xf32>, vector<256x64xf32> -> vector<256x64xf32>
    %43 = arith.addf %36, %42 : vector<256x64xf32>
    %c0_48 = arith.constant 0 : index
    %c1_49 = arith.constant 1 : index
    %c2_50 = arith.constant 2 : index
    %c0_51 = arith.constant 0 : index
    %44 = vector.load %arg1[%c0_48, %c1_49, %c2_50, %c0_51] : memref<1x18x18x3xf32, #tpu.memory_space<vmem>>, vector<1x16x16x3xf32>
    %45 = vector.shape_cast %44 : vector<1x16x16x3xf32> to vector<16x16x3xf32>
    %46 = vector.shape_cast %45 : vector<16x16x3xf32> to vector<256x3xf32>
    %c5 = arith.constant 5 : index
    %c0_52 = arith.constant 0 : index
    %c0_53 = arith.constant 0 : index
    %47 = vector.load %arg2[%c5, %c0_52, %c0_53] : memref<9x3x64xf32, #tpu.memory_space<vmem>>, vector<1x3x64xf32>
    %48 = vector.shape_cast %47 : vector<1x3x64xf32> to vector<3x64xf32>
    %cst_54 = arith.constant dense<0.000000e+00> : vector<256x64xf32>
    %49 = tpu.matmul %46, %48, %cst_54 {dimension_numbers = #tpu.dot_dimension_numbers<[1], [0], [0], [1], [0, 0, 1, 1], [], []>} : vector<256x3xf32>, vector<3x64xf32>, vector<256x64xf32> -> vector<256x64xf32>
    %50 = arith.addf %43, %49 : vector<256x64xf32>
    %c0_55 = arith.constant 0 : index
    %c2_56 = arith.constant 2 : index
    %c0_57 = arith.constant 0 : index
    %c0_58 = arith.constant 0 : index
    %51 = vector.load %arg1[%c0_55, %c2_56, %c0_57, %c0_58] : memref<1x18x18x3xf32, #tpu.memory_space<vmem>>, vector<1x16x16x3xf32>
    %52 = vector.shape_cast %51 : vector<1x16x16x3xf32> to vector<16x16x3xf32>
    %53 = vector.shape_cast %52 : vector<16x16x3xf32> to vector<256x3xf32>
    %c6 = arith.constant 6 : index
    %c0_59 = arith.constant 0 : index
    %c0_60 = arith.constant 0 : index
    %54 = vector.load %arg2[%c6, %c0_59, %c0_60] : memref<9x3x64xf32, #tpu.memory_space<vmem>>, vector<1x3x64xf32>
    %55 = vector.shape_cast %54 : vector<1x3x64xf32> to vector<3x64xf32>
    %cst_61 = arith.constant dense<0.000000e+00> : vector<256x64xf32>
    %56 = tpu.matmul %53, %55, %cst_61 {dimension_numbers = #tpu.dot_dimension_numbers<[1], [0], [0], [1], [0, 0, 1, 1], [], []>} : vector<256x3xf32>, vector<3x64xf32>, vector<256x64xf32> -> vector<256x64xf32>
    %57 = arith.addf %50, %56 : vector<256x64xf32>
    %c0_62 = arith.constant 0 : index
    %c2_63 = arith.constant 2 : index
    %c1_64 = arith.constant 1 : index
    %c0_65 = arith.constant 0 : index
    %58 = vector.load %arg1[%c0_62, %c2_63, %c1_64, %c0_65] : memref<1x18x18x3xf32, #tpu.memory_space<vmem>>, vector<1x16x16x3xf32>
    %59 = vector.shape_cast %58 : vector<1x16x16x3xf32> to vector<16x16x3xf32>
    %60 = vector.shape_cast %59 : vector<16x16x3xf32> to vector<256x3xf32>
    %c7 = arith.constant 7 : index
    %c0_66 = arith.constant 0 : index
    %c0_67 = arith.constant 0 : index
    %61 = vector.load %arg2[%c7, %c0_66, %c0_67] : memref<9x3x64xf32, #tpu.memory_space<vmem>>, vector<1x3x64xf32>
    %62 = vector.shape_cast %61 : vector<1x3x64xf32> to vector<3x64xf32>
    %cst_68 = arith.constant dense<0.000000e+00> : vector<256x64xf32>
    %63 = tpu.matmul %60, %62, %cst_68 {dimension_numbers = #tpu.dot_dimension_numbers<[1], [0], [0], [1], [0, 0, 1, 1], [], []>} : vector<256x3xf32>, vector<3x64xf32>, vector<256x64xf32> -> vector<256x64xf32>
    %64 = arith.addf %57, %63 : vector<256x64xf32>
    %c0_69 = arith.constant 0 : index
    %c2_70 = arith.constant 2 : index
    %c2_71 = arith.constant 2 : index
    %c0_72 = arith.constant 0 : index
    %65 = vector.load %arg1[%c0_69, %c2_70, %c2_71, %c0_72] : memref<1x18x18x3xf32, #tpu.memory_space<vmem>>, vector<1x16x16x3xf32>
    %66 = vector.shape_cast %65 : vector<1x16x16x3xf32> to vector<16x16x3xf32>
    %67 = vector.shape_cast %66 : vector<16x16x3xf32> to vector<256x3xf32>
    %c8 = arith.constant 8 : index
    %c0_73 = arith.constant 0 : index
    %c0_74 = arith.constant 0 : index
    %68 = vector.load %arg2[%c8, %c0_73, %c0_74] : memref<9x3x64xf32, #tpu.memory_space<vmem>>, vector<1x3x64xf32>
    %69 = vector.shape_cast %68 : vector<1x3x64xf32> to vector<3x64xf32>
    %cst_75 = arith.constant dense<0.000000e+00> : vector<256x64xf32>
    %70 = tpu.matmul %67, %69, %cst_75 {dimension_numbers = #tpu.dot_dimension_numbers<[1], [0], [0], [1], [0, 0, 1, 1], [], []>} : vector<256x3xf32>, vector<3x64xf32>, vector<256x64xf32> -> vector<256x64xf32>
    %71 = arith.addf %64, %70 : vector<256x64xf32>
    %cst_76 = arith.constant 0.000000e+00 : f32
    %72 = vector.broadcast %cst_76 : f32 to vector<256x64xf32>
    %73 = arith.maximumf %71, %72 : vector<256x64xf32>
    %74 = vector.shape_cast %73 : vector<256x64xf32> to vector<16x16x64xf32>
    %c1_77 = arith.constant 1 : index
    %c1_78 = arith.constant 1 : index
    %c0_79 = arith.constant 0 : index
    %75 = vector.load %arg11[%c1_77, %c1_78, %c0_79] : memref<18x18x64xf32, #tpu.memory_space<vmem>>, vector<16x16x64xf32>
    tpu.vector_store %arg11[%c1_77, %c1_78, %c0_79], %74 {strides = array<i32>} : memref<18x18x64xf32, #tpu.memory_space<vmem>>, vector<16x16x64xf32>,
    %c0_80 = arith.constant 0 : index
    %c0_81 = arith.constant 0 : index
    %c0_82 = arith.constant 0 : index
    %76 = vector.load %arg11[%c0_80, %c0_81, %c0_82] : memref<18x18x64xf32, #tpu.memory_space<vmem>>, vector<16x16x64xf32>
    %c0_83 = arith.constant 0 : index
    %c1_84 = arith.constant 1 : index
    %c0_85 = arith.constant 0 : index
    %77 = vector.load %arg11[%c0_83, %c1_84, %c0_85] : memref<18x18x64xf32, #tpu.memory_space<vmem>>, vector<16x16x64xf32>
    %c0_86 = arith.constant 0 : index
    %c2_87 = arith.constant 2 : index
    %c0_88 = arith.constant 0 : index
    %78 = vector.load %arg11[%c0_86, %c2_87, %c0_88] : memref<18x18x64xf32, #tpu.memory_space<vmem>>, vector<16x16x64xf32>
    %c1_89 = arith.constant 1 : index
    %c0_90 = arith.constant 0 : index
    %c0_91 = arith.constant 0 : index
    %79 = vector.load %arg11[%c1_89, %c0_90, %c0_91] : memref<18x18x64xf32, #tpu.memory_space<vmem>>, vector<16x16x64xf32>
    %c1_92 = arith.constant 1 : index
    %c1_93 = arith.constant 1 : index
    %c0_94 = arith.constant 0 : index
    %80 = vector.load %arg11[%c1_92, %c1_93, %c0_94] : memref<18x18x64xf32, #tpu.memory_space<vmem>>, vector<16x16x64xf32>
    %c1_95 = arith.constant 1 : index
    %c2_96 = arith.constant 2 : index
    %c0_97 = arith.constant 0 : index
    %81 = vector.load %arg11[%c1_95, %c2_96, %c0_97] : memref<18x18x64xf32, #tpu.memory_space<vmem>>, vector<16x16x64xf32>
    %c2_98 = arith.constant 2 : index
    %c0_99 = arith.constant 0 : index
    %c0_100 = arith.constant 0 : index
    %82 = vector.load %arg11[%c2_98, %c0_99, %c0_100] : memref<18x18x64xf32, #tpu.memory_space<vmem>>, vector<16x16x64xf32>
    %c2_101 = arith.constant 2 : index
    %c1_102 = arith.constant 1 : index
    %c0_103 = arith.constant 0 : index
    %83 = vector.load %arg11[%c2_101, %c1_102, %c0_103] : memref<18x18x64xf32, #tpu.memory_space<vmem>>, vector<16x16x64xf32>
    %c2_104 = arith.constant 2 : index
    %c2_105 = arith.constant 2 : index
    %c0_106 = arith.constant 0 : index
    %84 = vector.load %arg11[%c2_104, %c2_105, %c0_106] : memref<18x18x64xf32, #tpu.memory_space<vmem>>, vector<16x16x64xf32>
    %85 = tpu.concatenate %76, %77, %78, %79, %80, %81, %82, %83, %84 in 2 : vector<16x16x64xf32>, vector<16x16x64xf32>, vector<16x16x64xf32>, vector<16x16x64xf32>, vector<16x16x64xf32>, vector<16x16x64xf32>, vector<16x16x64xf32>, vector<16x16x64xf32>, vector<16x16x64xf32> -> vector<16x16x576xf32>
    %86 = vector.shape_cast %85 : vector<16x16x576xf32> to vector<256x576xf32>
    %87 = arith.truncf %86 : vector<256x576xf32> to vector<256x576xbf16>
    %c0_107 = arith.constant 0 : index
    %c0_108 = arith.constant 0 : index
    %88 = vector.load %arg4[%c0_107, %c0_108] : memref<576x128xbf16, #tpu.memory_space<vmem>>, vector<576x128xbf16>
    %cst_109 = arith.constant dense<0.000000e+00> : vector<256x128xf32>
    %89 = tpu.matmul %87, %88, %cst_109 {dimension_numbers = #tpu.dot_dimension_numbers<[1], [0], [0], [1], [0, 0, 1, 1], [], []>} : vector<256x576xbf16>, vector<576x128xbf16>, vector<256x128xf32> -> vector<256x128xf32>
    %c0_110 = arith.constant 0 : index
    %c0_111 = arith.constant 0 : index
    %90 = vector.load %arg5[%c0_110, %c0_111] : memref<1x128xf32, #tpu.memory_space<vmem>>, vector<1x128xf32>
    %91 = vector.broadcast %90 : vector<1x128xf32> to vector<256x128xf32>
    %92 = arith.addf %89, %91 : vector<256x128xf32>
    %cst_112 = arith.constant 0.000000e+00 : f32
    %93 = vector.broadcast %cst_112 : f32 to vector<256x128xf32>
    %94 = arith.maximumf %92, %93 : vector<256x128xf32>
    %95 = vector.shape_cast %94 : vector<256x128xf32> to vector<16x16x128xf32>
    %c1_113 = arith.constant 1 : index
    %c1_114 = arith.constant 1 : index
    %c0_115 = arith.constant 0 : index
    %96 = vector.load %arg12[%c1_113, %c1_114, %c0_115] : memref<18x18x128xf32, #tpu.memory_space<vmem>>, vector<16x16x128xf32>
    tpu.vector_store %arg12[%c1_113, %c1_114, %c0_115], %95 {strides = array<i32>} : memref<18x18x128xf32, #tpu.memory_space<vmem>>, vector<16x16x128xf32>,
    %c0_116 = arith.constant 0 : index
    %c0_117 = arith.constant 0 : index
    %c0_118 = arith.constant 0 : index
    %97 = vector.load %arg12[%c0_116, %c0_117, %c0_118] : memref<18x18x128xf32, #tpu.memory_space<vmem>>, vector<16x16x128xf32>
    %c0_119 = arith.constant 0 : index
    %c1_120 = arith.constant 1 : index
    %c0_121 = arith.constant 0 : index
    %98 = vector.load %arg12[%c0_119, %c1_120, %c0_121] : memref<18x18x128xf32, #tpu.memory_space<vmem>>, vector<16x16x128xf32>
    %c0_122 = arith.constant 0 : index
    %c2_123 = arith.constant 2 : index
    %c0_124 = arith.constant 0 : index
    %99 = vector.load %arg12[%c0_122, %c2_123, %c0_124] : memref<18x18x128xf32, #tpu.memory_space<vmem>>, vector<16x16x128xf32>
    %c1_125 = arith.constant 1 : index
    %c0_126 = arith.constant 0 : index
    %c0_127 = arith.constant 0 : index
    %100 = vector.load %arg12[%c1_125, %c0_126, %c0_127] : memref<18x18x128xf32, #tpu.memory_space<vmem>>, vector<16x16x128xf32>
    %c1_128 = arith.constant 1 : index
    %c1_129 = arith.constant 1 : index
    %c0_130 = arith.constant 0 : index
    %101 = vector.load %arg12[%c1_128, %c1_129, %c0_130] : memref<18x18x128xf32, #tpu.memory_space<vmem>>, vector<16x16x128xf32>
    %c1_131 = arith.constant 1 : index
    %c2_132 = arith.constant 2 : index
    %c0_133 = arith.constant 0 : index
    %102 = vector.load %arg12[%c1_131, %c2_132, %c0_133] : memref<18x18x128xf32, #tpu.memory_space<vmem>>, vector<16x16x128xf32>
    %c2_134 = arith.constant 2 : index
    %c0_135 = arith.constant 0 : index
    %c0_136 = arith.constant 0 : index
    %103 = vector.load %arg12[%c2_134, %c0_135, %c0_136] : memref<18x18x128xf32, #tpu.memory_space<vmem>>, vector<16x16x128xf32>
    %c2_137 = arith.constant 2 : index
    %c1_138 = arith.constant 1 : index
    %c0_139 = arith.constant 0 : index
    %104 = vector.load %arg12[%c2_137, %c1_138, %c0_139] : memref<18x18x128xf32, #tpu.memory_space<vmem>>, vector<16x16x128xf32>
    %c2_140 = arith.constant 2 : index
    %c2_141 = arith.constant 2 : index
    %c0_142 = arith.constant 0 : index
    %105 = vector.load %arg12[%c2_140, %c2_141, %c0_142] : memref<18x18x128xf32, #tpu.memory_space<vmem>>, vector<16x16x128xf32>
    %106 = tpu.concatenate %97, %98, %99, %100, %101, %102, %103, %104, %105 in 2 : vector<16x16x128xf32>, vector<16x16x128xf32>, vector<16x16x128xf32>, vector<16x16x128xf32>, vector<16x16x128xf32>, vector<16x16x128xf32>, vector<16x16x128xf32>, vector<16x16x128xf32>, vector<16x16x128xf32> -> vector<16x16x1152xf32>
    %107 = vector.shape_cast %106 : vector<16x16x1152xf32> to vector<256x1152xf32>
    %108 = arith.truncf %107 : vector<256x1152xf32> to vector<256x1152xbf16>
    %c0_143 = arith.constant 0 : index
    %c0_144 = arith.constant 0 : index
    %109 = vector.load %arg6[%c0_143, %c0_144] : memref<1152x64xbf16, #tpu.memory_space<vmem>>, vector<1152x64xbf16>
    %cst_145 = arith.constant dense<0.000000e+00> : vector<256x64xf32>
    %110 = tpu.matmul %108, %109, %cst_145 {dimension_numbers = #tpu.dot_dimension_numbers<[1], [0], [0], [1], [0, 0, 1, 1], [], []>} : vector<256x1152xbf16>, vector<1152x64xbf16>, vector<256x64xf32> -> vector<256x64xf32>
    %c0_146 = arith.constant 0 : index
    %c0_147 = arith.constant 0 : index
    %111 = vector.load %arg7[%c0_146, %c0_147] : memref<1x64xf32, #tpu.memory_space<vmem>>, vector<1x64xf32>
    %112 = vector.broadcast %111 : vector<1x64xf32> to vector<256x64xf32>
    %113 = arith.addf %110, %112 : vector<256x64xf32>
    %cst_148 = arith.constant 0.000000e+00 : f32
    %114 = vector.broadcast %cst_148 : f32 to vector<256x64xf32>
    %115 = arith.maximumf %113, %114 : vector<256x64xf32>
    %116 = vector.shape_cast %115 : vector<256x64xf32> to vector<16x16x64xf32>
    %c1_149 = arith.constant 1 : index
    %c1_150 = arith.constant 1 : index
    %c0_151 = arith.constant 0 : index
    %117 = vector.load %arg13[%c1_149, %c1_150, %c0_151] : memref<18x18x64xf32, #tpu.memory_space<vmem>>, vector<16x16x64xf32>
    tpu.vector_store %arg13[%c1_149, %c1_150, %c0_151], %116 {strides = array<i32>} : memref<18x18x64xf32, #tpu.memory_space<vmem>>, vector<16x16x64xf32>,
    %c0_152 = arith.constant 0 : index
    %c0_153 = arith.constant 0 : index
    %c0_154 = arith.constant 0 : index
    %118 = vector.load %arg13[%c0_152, %c0_153, %c0_154] : memref<18x18x64xf32, #tpu.memory_space<vmem>>, vector<16x16x64xf32>
    %c0_155 = arith.constant 0 : index
    %c1_156 = arith.constant 1 : index
    %c0_157 = arith.constant 0 : index
    %119 = vector.load %arg13[%c0_155, %c1_156, %c0_157] : memref<18x18x64xf32, #tpu.memory_space<vmem>>, vector<16x16x64xf32>
    %c0_158 = arith.constant 0 : index
    %c2_159 = arith.constant 2 : index
    %c0_160 = arith.constant 0 : index
    %120 = vector.load %arg13[%c0_158, %c2_159, %c0_160] : memref<18x18x64xf32, #tpu.memory_space<vmem>>, vector<16x16x64xf32>
    %c1_161 = arith.constant 1 : index
    %c0_162 = arith.constant 0 : index
    %c0_163 = arith.constant 0 : index
    %121 = vector.load %arg13[%c1_161, %c0_162, %c0_163] : memref<18x18x64xf32, #tpu.memory_space<vmem>>, vector<16x16x64xf32>
    %c1_164 = arith.constant 1 : index
    %c1_165 = arith.constant 1 : index
    %c0_166 = arith.constant 0 : index
    %122 = vector.load %arg13[%c1_164, %c1_165, %c0_166] : memref<18x18x64xf32, #tpu.memory_space<vmem>>, vector<16x16x64xf32>
    %c1_167 = arith.constant 1 : index
    %c2_168 = arith.constant 2 : index
    %c0_169 = arith.constant 0 : index
    %123 = vector.load %arg13[%c1_167, %c2_168, %c0_169] : memref<18x18x64xf32, #tpu.memory_space<vmem>>, vector<16x16x64xf32>
    %c2_170 = arith.constant 2 : index
    %c0_171 = arith.constant 0 : index
    %c0_172 = arith.constant 0 : index
    %124 = vector.load %arg13[%c2_170, %c0_171, %c0_172] : memref<18x18x64xf32, #tpu.memory_space<vmem>>, vector<16x16x64xf32>
    %c2_173 = arith.constant 2 : index
    %c1_174 = arith.constant 1 : index
    %c0_175 = arith.constant 0 : index
    %125 = vector.load %arg13[%c2_173, %c1_174, %c0_175] : memref<18x18x64xf32, #tpu.memory_space<vmem>>, vector<16x16x64xf32>
    %c2_176 = arith.constant 2 : index
    %c2_177 = arith.constant 2 : index
    %c0_178 = arith.constant 0 : index
    %126 = vector.load %arg13[%c2_176, %c2_177, %c0_178] : memref<18x18x64xf32, #tpu.memory_space<vmem>>, vector<16x16x64xf32>
    %127 = tpu.concatenate %118, %119, %120, %121, %122, %123, %124, %125, %126 in 2 : vector<16x16x64xf32>, vector<16x16x64xf32>, vector<16x16x64xf32>, vector<16x16x64xf32>, vector<16x16x64xf32>, vector<16x16x64xf32>, vector<16x16x64xf32>, vector<16x16x64xf32>, vector<16x16x64xf32> -> vector<16x16x576xf32>
    %128 = vector.shape_cast %127 : vector<16x16x576xf32> to vector<256x576xf32>
    %129 = arith.truncf %128 : vector<256x576xf32> to vector<256x576xbf16>
    %c0_179 = arith.constant 0 : index
    %c0_180 = arith.constant 0 : index
    %130 = vector.load %arg8[%c0_179, %c0_180] : memref<576x128xbf16, #tpu.memory_space<vmem>>, vector<576x128xbf16>
    %cst_181 = arith.constant dense<0.000000e+00> : vector<256x128xf32>
    %131 = tpu.matmul %129, %130, %cst_181 {dimension_numbers = #tpu.dot_dimension_numbers<[1], [0], [0], [1], [0, 0, 1, 1], [], []>} : vector<256x576xbf16>, vector<576x128xbf16>, vector<256x128xf32> -> vector<256x128xf32>
    %c0_182 = arith.constant 0 : index
    %c0_183 = arith.constant 0 : index
    %132 = vector.load %arg9[%c0_182, %c0_183] : memref<1x128xf32, #tpu.memory_space<vmem>>, vector<1x128xf32>
    %133 = vector.broadcast %132 : vector<1x128xf32> to vector<256x128xf32>
    %134 = arith.addf %131, %133 : vector<256x128xf32>
    %135 = arith.negf %134 : vector<256x128xf32>
    %136 = math.exp %135 : vector<256x128xf32>
    %cst_184 = arith.constant 1.000000e+00 : f32
    %137 = vector.broadcast %cst_184 : f32 to vector<256x128xf32>
    %138 = arith.addf %137, %136 : vector<256x128xf32>
    %139 = arith.divf %137, %138 : vector<256x128xf32>
    %140 = vector.shape_cast %139 : vector<256x128xf32> to vector<16x16x128xf32>
    %c0_185 = arith.constant 0 : index
    %c0_186 = arith.constant 0 : index
    %c0_187 = arith.constant 0 : index
    %c0_188 = arith.constant 0 : index
    %141 = vector.load %arg10[%c0_185, %c0_186, %c0_187, %c0_188] : memref<1x16x16x128xf32, #tpu.memory_space<vmem>>, vector<1x16x16x128xf32>
    %142 = vector.shape_cast %141 : vector<1x16x16x128xf32> to vector<16x16x128xf32>
    %143 = vector.shape_cast %140 : vector<16x16x128xf32> to vector<1x16x16x128xf32>
    tpu.vector_store %arg10[%c0_185, %c0_186, %c0_187, %c0_188], %143 {strides = array<i32>} : memref<1x16x16x128xf32, #tpu.memory_space<vmem>>, vector<1x16x16x128xf32>,
    return
  }
  func.func @transform_0(%arg0: i32) -> (i32, i32, i32, i32) {
    %c0_i32 = arith.constant 0 : i32
    %c0_i32_0 = arith.constant 0 : i32
    %c0_i32_1 = arith.constant 0 : i32
    %c0_i32_2 = arith.constant 0 : i32
    return %arg0, %c0_i32, %c0_i32_0, %c0_i32_1 : i32, i32, i32, i32
  }
  func.func @transform_1(%arg0: i32) -> (i32, i32, i32) {
    %c0_i32 = arith.constant 0 : i32
    %c0_i32_0 = arith.constant 0 : i32
    %c0_i32_1 = arith.constant 0 : i32
    %c0_i32_2 = arith.constant 0 : i32
    return %c0_i32, %c0_i32_0, %c0_i32_1 : i32, i32, i32
  }
  func.func @transform_2(%arg0: i32) -> (i32, i32) {
    %c0_i32 = arith.constant 0 : i32
    %c0_i32_0 = arith.constant 0 : i32
    %c0_i32_1 = arith.constant 0 : i32
    return %c0_i32, %c0_i32_0 : i32, i32
  }
  func.func @transform_3(%arg0: i32) -> (i32, i32) {
    %c0_i32 = arith.constant 0 : i32
    %c0_i32_0 = arith.constant 0 : i32
    %c0_i32_1 = arith.constant 0 : i32
    return %c0_i32, %c0_i32_0 : i32, i32
  }
  func.func @transform_4(%arg0: i32) -> (i32, i32) {
    %c0_i32 = arith.constant 0 : i32
    %c0_i32_0 = arith.constant 0 : i32
    %c0_i32_1 = arith.constant 0 : i32
    return %c0_i32, %c0_i32_0 : i32, i32
  }
  func.func @transform_5(%arg0: i32) -> (i32, i32) {
    %c0_i32 = arith.constant 0 : i32
    %c0_i32_0 = arith.constant 0 : i32
    %c0_i32_1 = arith.constant 0 : i32
    return %c0_i32, %c0_i32_0 : i32, i32
  }
  func.func @transform_6(%arg0: i32) -> (i32, i32) {
    %c0_i32 = arith.constant 0 : i32
    %c0_i32_0 = arith.constant 0 : i32
    %c0_i32_1 = arith.constant 0 : i32
    return %c0_i32, %c0_i32_0 : i32, i32
  }
  func.func @transform_7(%arg0: i32) -> (i32, i32) {
    %c0_i32 = arith.constant 0 : i32
    %c0_i32_0 = arith.constant 0 : i32
    %c0_i32_1 = arith.constant 0 : i32
    return %c0_i32, %c0_i32_0 : i32, i32
  }
  func.func @transform_8(%arg0: i32) -> (i32, i32) {
    %c0_i32 = arith.constant 0 : i32
    %c0_i32_0 = arith.constant 0 : i32
    %c0_i32_1 = arith.constant 0 : i32
    return %c0_i32, %c0_i32_0 : i32, i32
  }
  func.func @transform_9(%arg0: i32) -> (i32, i32, i32, i32) {
    %c0_i32 = arith.constant 0 : i32
    %c0_i32_0 = arith.constant 0 : i32
    %c0_i32_1 = arith.constant 0 : i32
    %c0_i32_2 = arith.constant 0 : i32
    return %arg0, %c0_i32, %c0_i32_0, %c0_i32_1 : i32, i32, i32, i32
  }
}

</mosaic_0001>

<bundles_post_ra>
// kernel: simple_unet_forward.1
= control target key start
LH: loop header
LB: loop body
LE: loop exit
PB: predicated region body
PF: predicated region fallthrough
CT: control target
= control target key end

     0   :  { %s13855_s30 = smov 0   ;;  %s17813_s0 = inlined_call_operand.vmem [shape: f32[2,18,18,3], index: 0, kind: input, shape index: {}]   ;;  %s17814_s1 = inlined_call_operand.vmem [shape: f32[9,3,64], index: 1, kind: input, shape index: {}]   ;;  %s17815_s2 = inlined_call_operand.vmem [shape: f32[1,64], index: 2, kind: input, shape index: {}]   ;;  %s17816_s3 = inlined_call_operand.vmem [shape: bf16[576,128], index: 3, kind: input, shape index: {}]   ;;  %s17817_s4 = inlined_call_operand.vmem [shape: f32[1,128], index: 4, kind: input, shape index: {}]   ;;  %s17818_s5 = inlined_call_operand.vmem [shape: bf16[1152,64], index: 5, kind: input, shape index: {}]   ;;  %s17819_s6 = inlined_call_operand.vmem [shape: f32[1,64], index: 6, kind: input, shape index: {}]   ;;  %s17820_s7 = inlined_call_operand.vmem [shape: bf16[576,128], index: 7, kind: input, shape index: {}]   ;;  %s17821_s8 = inlined_call_operand.vmem [shape: f32[1,128], index: 8, kind: input, shape index: {}]   ;;  %s17822_s9 = inlined_call_operand.vmem [shape: f32[2,16,16,128], index: 9, kind: output, shape index: {}]  }
   0x1 LB: > { %s9983_s10 = sadd.s32 4294967295, %s13801_s30   ;;  %p9987_p0 = scmp.ge.s32.totalorder %s13801_s30, 1  ;;  %s13801_s30 = sphi %s13855_s30, %s19_s30  }
   0x2   : > { %p287_p1 = scmp.lt.s32.totalorder %s13801_s30, 3 }
   0x4   : > { %p288_p2 = pnand %p9987_p0, %p287_p1 }
   0x6   : > { %291 = sbr.rel (%p288_p2) target bundleno = 2407 (0x967), region = 56 }
   0xd   : > { %v537_v0 = vld [vmem:[%s17814_s1] sm:$0x7]  ;;  %vm635_vm0 = vcmask 1042432   ;;  %p323_p3 = scmp.lt.s32.totalorder %s9983_s10, 1  ;;  %v10025_v1 = vld [vmem:[%s17814_s1 + $0x4] sm:$0x7] }
   0xe   : > { %11960 = vmatprep.subr.msk.mxu0 %vm635_vm0, %v537_v0  ;;  %vm538_vm1 = vcmask 23552   ;;  %v13889_v5 = vld [vmem:[%s17814_s1 + $0x8] sm:$0x7]  ;;  %v14051_v38 = vld [vmem:[%s17814_s1 + $0xc] sm:$0x7]  ;;  %vm334_vm2 = vcmask 523264  }
   0xf   : > { %11961 = vmatpush3.msk.msra.mxu0 %vm635_vm0, %v537_v0  ;;  %s18016_s10 = smov (!%p323_p3, %s9983_s10), 1  ;;  %vm337_vm3 = vcmask 517120   ;;  %s13804_s12 = smov 64  }
  0x10   : > { %12010 = vmatprep.subr.msk.mxu0 %vm635_vm0, %v10025_v1  ;;  %s12834_s15 = smul.u32 432, %s18016_s10 }
  0x12   : > { %s13878_s18 = scalar_lea.vmem %s17813_s0, %s12834_s15 }
  0x13   : > { %v505_v2 = vld [vmem:[%s13878_s18] sm:$0xff]  ;;  %v506_v3 = vld [vmem:[%s13878_s18 + $0x8] sm:$0xff]  ;;  %v13883_v4 = vld [vmem:[%s13878_s18 + $0x18] sm:$0xff] }
  0x14   : > { %11962 = vmatprep.mubr.msk.f32.mxu0 %vm538_vm1, %v505_v2  ;;  %v13896_v6 = vld [vmem:[%s13878_s18 + $0x20] sm:$0xff]  ;;  %v13899_v7 = vld [vmem:[%s13878_s18 + $0x30] sm:$0xff]  ;;  %v13908_v8 = vld [vmem:[%s13878_s18 + $0x38] sm:$0xff] }
  0x15   : > { %11963 = vmatmul.mubr.msk.f32.vlgmr.msra.gmra.mrb[0].mxu0 %vm538_vm1, %v506_v3  ;;  %v13911_v9 = vld [vmem:[%s13878_s18 + $0x48] sm:$0xff]  ;;  %v13918_v10 = vld [vmem:[%s13878_s18 + $0x50] sm:$0xff]  ;;  %v13921_v11 = vld [vmem:[%s13878_s18 + $0x60] sm:$0xff] }
  0x16   : > { %12011 = vmatpush3.msk.msra.mxu0 %vm635_vm0, %v10025_v1  ;;  %11965 = vmatprep.mubr.msk.f32.mxu0 %vm538_vm1, %v13883_v4  ;;  %v13928_v12 = vld [vmem:[%s13878_s18 + $0x68] sm:$0xff]  ;;  %v13931_v13 = vld [vmem:[%s13878_s18 + $0x78] sm:$0xff]  ;;  %v13938_v14 = vld [vmem:[%s13878_s18 + $0x80] sm:$0xff] }
  0x17   : > { %12060 = vmatprep.subr.msk.mxu0 %vm635_vm0, %v13889_v5  ;;  %v13941_v15 = vld [vmem:[%s13878_s18 + $0x90] sm:$0xff]  ;;  %v13948_v16 = vld [vmem:[%s13878_s18 + $0x98] sm:$0xff]  ;;  %v13951_v17 = vld [vmem:[%s13878_s18 + $0xa8] sm:$0xff] }
  0x18   : > { %v13956_v18 = vld [vmem:[%s13878_s18 + $0xb0] sm:$0xff]  ;;  %v13961_v19 = vld [vmem:[%s13878_s18 + $0xc0] sm:$0xff]  ;;  %v13966_v20 = vld [vmem:[%s13878_s18 + $0xc8] sm:$0xff] }
  0x19   : > { %11966 = vmatmul.mubr.msk.f32.gmra.mrb[2].mxu0 %vm538_vm1, %v13896_v6  ;;  %v13971_v21 = vld [vmem:[%s13878_s18 + $0xd8] sm:$0xff]  ;;  %v13976_v22 = vld [vmem:[%s13878_s18 + $0xe0] sm:$0xff]  ;;  %v13981_v23 = vld [vmem:[%s13878_s18 + $0xf0] sm:$0xff] }
  0x1a   : > { %11968 = vmatprep.mubr.msk.f32.mxu0 %vm538_vm1, %v13899_v7  ;;  %v13986_v24 = vld [vmem:[%s13878_s18 + $0xf8] sm:$0xff]  ;;  %v13991_v25 = vld [vmem:[%s13878_s18 + $0x108] sm:$0xff]  ;;  %v13996_v26 = vld [vmem:[%s13878_s18 + $0x110] sm:$0xff] }
  0x1b   : > { %v14001_v27 = vld [vmem:[%s13878_s18 + $0x120] sm:$0xff]  ;;  %v14006_v28 = vld [vmem:[%s13878_s18 + $0x128] sm:$0xff]  ;;  %v14011_v29 = vld [vmem:[%s13878_s18 + $0x138] sm:$0xff] }
  0x1c   : > { %v14016_v30 = vld [vmem:[%s13878_s18 + $0x140] sm:$0xff]  ;;  %v14021_v31 = vld [vmem:[%s13878_s18 + $0x150] sm:$0xff]  ;;  %v14026_v32 = vld [vmem:[%s13878_s18 + $0x158] sm:$0xff] }
  0x1d   : > { %11969 = vmatmul.mubr.msk.f32.gmra.mrb[4].mxu0 %vm538_vm1, %v13908_v8  ;;  %v14031_v33 = vld [vmem:[%s13878_s18 + $0x168] sm:$0xff]  ;;  %v14036_v34 = vld [vmem:[%s13878_s18 + $0x170] sm:$0xff]  ;;  %v14046_v37 = vld [vmem:[%s13878_s18 + $0x19] sm:$0xff] }
  0x1e   : > { %11971 = vmatprep.mubr.msk.f32.mxu0 %vm538_vm1, %v13911_v9  ;;  %v896_v35 = vld [vmem:[%s13878_s18 + $0x1] sm:$0xff]  ;;  %v897_v36 = vld [vmem:[%s13878_s18 + $0x9] sm:$0xff]  ;;  %v14058_v40 = vld [vmem:[%s13878_s18 + $0x31] sm:$0xff] }
  0x1f   : > { %v14054_v39 = vld [vmem:[%s13878_s18 + $0x21] sm:$0xff]  ;;  %v14067_v41 = vld [vmem:[%s13878_s18 + $0x39] sm:$0xff]  ;;  %v14072_v42 = vld [vmem:[%s13878_s18 + $0x49] sm:$0xff] }
  0x20   : > { %v14077_v43 = vld [vmem:[%s13878_s18 + $0x51] sm:$0xff]  ;;  %v14082_v44 = vld [vmem:[%s13878_s18 + $0x61] sm:$0xff]  ;;  %v14087_v45 = vld [vmem:[%s13878_s18 + $0x69] sm:$0xff] }
  0x21   : > { %11972 = vmatmul.mubr.msk.f32.gmra.mrb[6].mxu0 %vm538_vm1, %v13918_v10  ;;  %v14092_v46 = vld [vmem:[%s13878_s18 + $0x79] sm:$0xff]  ;;  %v14097_v47 = vld [vmem:[%s13878_s18 + $0x81] sm:$0xff]  ;;  %v14102_v48 = vld [vmem:[%s13878_s18 + $0x91] sm:$0xff] }
  0x22   : > { %11974 = vmatprep.mubr.msk.f32.mxu0 %vm538_vm1, %v13921_v11  ;;  %v14107_v49 = vld [vmem:[%s13878_s18 + $0x99] sm:$0xff]  ;;  %v14112_v50 = vld [vmem:[%s13878_s18 + $0xa9] sm:$0xff]  ;;  %v14117_v51 = vld [vmem:[%s13878_s18 + $0xb1] sm:$0xff] }
  0x23   : > { %v14122_v52 = vld [vmem:[%s13878_s18 + $0xc1] sm:$0xff]  ;;  %v14127_v53 = vld [vmem:[%s13878_s18 + $0xc9] sm:$0xff]  ;;  %v14132_v54 = vld [vmem:[%s13878_s18 + $0xd9] sm:$0xff] }
  0x24   : > { %v14137_v55 = vld [vmem:[%s13878_s18 + $0xe1] sm:$0xff]  ;;  %v14142_v56 = vld [vmem:[%s13878_s18 + $0xf1] sm:$0xff]  ;;  %v14147_v57 = vld [vmem:[%s13878_s18 + $0xf9] sm:$0xff] }
  0x25   : > { %11975 = vmatmul.mubr.msk.f32.gmra.mrb[8].mxu0 %vm538_vm1, %v13928_v12  ;;  %v14152_v58 = vld [vmem:[%s13878_s18 + $0x109] sm:$0xff]  ;;  %v14157_v59 = vld [vmem:[%s13878_s18 + $0x111] sm:$0xff]  ;;  %v14162_v60 = vld [vmem:[%s13878_s18 + $0x121] sm:$0xff] }
  0x26   : > { %11977 = vmatprep.mubr.msk.f32.mxu0 %vm538_vm1, %v13931_v13  ;;  %v14167_v61 = vld [vmem:[%s13878_s18 + $0x129] sm:$0xff]  ;;  %v14172_v62 = vld [vmem:[%s13878_s18 + $0x139] sm:$0xff]  ;;  %v14177_v63 = vld [vmem:[%s13878_s18 + $0x141] sm:$0xff] }
  0x27   : > { %v14182_v0 = vld [vmem:[%s13878_s18 + $0x151] sm:$0xff]  ;;  %v14187_v1 = vld [vmem:[%s13878_s18 + $0x159] sm:$0xff]  ;;  %v14192_v2 = vld [vmem:[%s13878_s18 + $0x169] sm:$0xff] }
  0x28   : > { %17877 = vst [vmem:[#allocation5_spill] sm:$0xff] %v14187_v1  ;;  %17878 = vst [vmem:[#allocation6_spill] sm:$0xff] %v14192_v2  ;;  %v14201_v3 = vld [vmem:[%s13878_s18 + $0x171] sm:$0xff] }
  0x29   : > { %11978 = vmatmul.mubr.msk.f32.gmra.mrb[10].mxu0 %vm538_vm1, %v13938_v14  ;;  %17879 = vst [vmem:[#allocation7_spill] sm:$0xff] %v14201_v3 }
  0x2a   : > { %11980 = vmatprep.mubr.msk.f32.mxu0 %vm538_vm1, %v13941_v15 }
  0x2d   : > { %11981 = vmatmul.mubr.msk.f32.gmra.mrb[12].mxu0 %vm538_vm1, %v13948_v16 }
  0x2e   : > { %11983 = vmatprep.mubr.msk.f32.mxu0 %vm538_vm1, %v13951_v17 }
  0x31   : > { %11984 = vmatmul.mubr.msk.f32.gmra.mrb[14].mxu0 %vm538_vm1, %v13956_v18 }
  0x32   : > { %11986 = vmatprep.mubr.msk.f32.mxu0 %vm538_vm1, %v13961_v19 }
  0x35   : > { %11987 = vmatmul.mubr.msk.f32.gmra.mrb[16].mxu0 %vm538_vm1, %v13966_v20 }
  0x36   : > { %11989 = vmatprep.mubr.msk.f32.mxu0 %vm538_vm1, %v13971_v21 }
  0x39   : > { %11990 = vmatmul.mubr.msk.f32.gmra.mrb[18].mxu0 %vm538_vm1, %v13976_v22 }
  0x3a   : > { %11992 = vmatprep.mubr.msk.f32.mxu0 %vm538_vm1, %v13981_v23 }
  0x3d   : > { %11993 = vmatmul.mubr.msk.f32.gmra.mrb[20].mxu0 %vm538_vm1, %v13986_v24 }
  0x3e   : > { %11995 = vmatprep.mubr.msk.f32.mxu0 %vm538_vm1, %v13991_v25 }
  0x41   : > { %11996 = vmatmul.mubr.msk.f32.gmra.mrb[22].mxu0 %vm538_vm1, %v13996_v26 }
  0x42   : > { %11998 = vmatprep.mubr.msk.f32.mxu0 %vm538_vm1, %v14001_v27 }
  0x45   : > { %11999 = vmatmul.mubr.msk.f32.gmra.mrb[24].mxu0 %vm538_vm1, %v14006_v28 }
  0x46   : > { %12001 = vmatprep.mubr.msk.f32.mxu0 %vm538_vm1, %v14011_v29 }
  0x49   : > { %12002 = vmatmul.mubr.msk.f32.gmra.mrb[26].mxu0 %vm538_vm1, %v14016_v30 }
  0x4a   : > { %12004 = vmatprep.mubr.msk.f32.mxu0 %vm538_vm1, %v14021_v31 }
  0x4d   : > { %12005 = vmatmul.mubr.msk.f32.gmra.mrb[28].mxu0 %vm538_vm1, %v14026_v32 }
  0x4e   : > { %12007 = vmatprep.mubr.msk.f32.mxu0 %vm538_vm1, %v14031_v33 }
  0x51   : > { %12008 = vmatmul.mubr.msk.f32.gmra.mrb[30].mxu0 %vm538_vm1, %v14036_v34 }
  0x52   : > { %12012 = vmatprep.mubr.msk.f32.mxu0 %vm538_vm1, %v896_v35  ;;  %v1287_v35 = vld [vmem:[%s13878_s18 + $0xa] sm:$0xff] }
  0x55   : > { %12013 = vmatmul.mubr.msk.f32.vlgmr.msra.gmra.mrb[0].mxu0 %vm538_vm1, %v897_v36  ;;  %v14209_v36 = vld [vmem:[%s13878_s18 + $0x1a] sm:$0xff] }
  0x56   : > { %12061 = vmatpush3.msk.msra.mxu0 %vm635_vm0, %v13889_v5  ;;  %12015 = vmatprep.mubr.msk.f32.mxu0 %vm538_vm1, %v14046_v37  ;;  %v1286_v5 = vld [vmem:[%s13878_s18 + $0x2] sm:$0xff]  ;;  %17880 = vst [vmem:[#allocation8_spill] sm:$0xff] %v14209_v36 }
  0x57   : > { %12110 = vmatprep.subr.msk.mxu0 %vm635_vm0, %v14051_v38 }
  0x59   : > { %12016 = vmatmul.mubr.msk.f32.gmra.mrb[2].mxu0 %vm538_vm1, %v14054_v39 }
  0x5a   : > { %12018 = vmatprep.mubr.msk.f32.mxu0 %vm538_vm1, %v14058_v40 }
  0x5d   : > { %12019 = vmatmul.mubr.msk.f32.gmra.mrb[4].mxu0 %vm538_vm1, %v14067_v41 }
  0x5e   : > { %12021 = vmatprep.mubr.msk.f32.mxu0 %vm538_vm1, %v14072_v42 }
  0x61   : > { %12022 = vmatmul.mubr.msk.f32.gmra.mrb[6].mxu0 %vm538_vm1, %v14077_v43 }
  0x62   : > { %12024 = vmatprep.mubr.msk.f32.mxu0 %vm538_vm1, %v14082_v44 }
  0x65   : > { %12025 = vmatmul.mubr.msk.f32.gmra.mrb[8].mxu0 %vm538_vm1, %v14087_v45 }
  0x66   : > { %12027 = vmatprep.mubr.msk.f32.mxu0 %vm538_vm1, %v14092_v46 }
  0x69   : > { %12028 = vmatmul.mubr.msk.f32.gmra.mrb[10].mxu0 %vm538_vm1, %v14097_v47 }
  0x6a   : > { %12030 = vmatprep.mubr.msk.f32.mxu0 %vm538_vm1, %v14102_v48 }
  0x6d   : > { %12031 = vmatmul.mubr.msk.f32.gmra.mrb[12].mxu0 %vm538_vm1, %v14107_v49 }
  0x6e   : > { %12033 = vmatprep.mubr.msk.f32.mxu0 %vm538_vm1, %v14112_v50 }
  0x71   : > { %12034 = vmatmul.mubr.msk.f32.gmra.mrb[14].mxu0 %vm538_vm1, %v14117_v51 }
  0x72   : > { %12036 = vmatprep.mubr.msk.f32.mxu0 %vm538_vm1, %v14122_v52 }
  0x75   : > { %12037 = vmatmul.mubr.msk.f32.gmra.mrb[16].mxu0 %vm538_vm1, %v14127_v53 }
  0x76   : > { %12039 = vmatprep.mubr.msk.f32.mxu0 %vm538_vm1, %v14132_v54 }
  0x79   : > { %12040 = vmatmul.mubr.msk.f32.gmra.mrb[18].mxu0 %vm538_vm1, %v14137_v55 }
  0x7a   : > { %12042 = vmatprep.mubr.msk.f32.mxu0 %vm538_vm1, %v14142_v56 }
  0x7d   : > { %12043 = vmatmul.mubr.msk.f32.gmra.mrb[20].mxu0 %vm538_vm1, %v14147_v57 }
  0x7e   : > { %12045 = vmatprep.mubr.msk.f32.mxu0 %vm538_vm1, %v14152_v58 }
  0x81   : > { %12046 = vmatmul.mubr.msk.f32.gmra.mrb[22].mxu0 %vm538_vm1, %v14157_v59 }
  0x82   : > { %12048 = vmatprep.mubr.msk.f32.mxu0 %vm538_vm1, %v14162_v60 }
  0x85   : > { %12049 = vmatmul.mubr.msk.f32.gmra.mrb[24].mxu0 %vm538_vm1, %v14167_v61 }
  0x86   : > { %12051 = vmatprep.mubr.msk.f32.mxu0 %vm538_vm1, %v14172_v62 }
  0x89   : > { %12052 = vmatmul.mubr.msk.f32.gmra.mrb[26].mxu0 %vm538_vm1, %v14177_v63 }
  0x8a   : > { %12054 = vmatprep.mubr.msk.f32.mxu0 %vm538_vm1, %v14182_v0 }
  0x8d   : > { %12055 = vmatmul.mubr.msk.f32.gmra.mrb[28].mxu0 %vm538_vm1, %v14187_v1  ;;  %v14214_v1 = vld [vmem:[%s17814_s1 + $0x10] sm:$0x7] }
  0x8e   : > { %12057 = vmatprep.mubr.msk.f32.mxu0 %vm538_vm1, %v14192_v2  ;;  %v14247_v2 = vld [vmem:[%s13878_s18 + $0x62] sm:$0xff] }
  0x8f   : > { %17886 = vst [vmem:[#allocation14_spill] sm:$0xff] %v14247_v2 }
  0x91   : > { %12058 = vmatmul.mubr.msk.f32.gmra.mrb[30].mxu0 %vm538_vm1, %v14201_v3  ;;  %v14225_v3 = vld [vmem:[%s13878_s18 + $0x32] sm:$0xff] }
  0x92   : > { %12062 = vmatprep.mubr.msk.f32.mxu0 %vm538_vm1, %v1286_v5  ;;  %v14222_v5 = vld [vmem:[%s13878_s18 + $0x22] sm:$0xff]  ;;  %17882 = vst [vmem:[#allocation10_spill] sm:$0xff] %v14225_v3 }
  0x93   : > { %17881 = vst [vmem:[#allocation9_spill] sm:$0xff] %v14222_v5 }
  0x95   : > { %12063 = vmatmul.mubr.msk.f32.vlgmr.msra.gmra.mrb[0].mxu0 %vm538_vm1, %v1287_v35  ;;  %v14237_v35 = vld [vmem:[%s13878_s18 + $0x4a] sm:$0xff] }
  0x96   : > { %12111 = vmatpush3.msk.msra.mxu0 %vm635_vm0, %v14051_v38  ;;  %12065 = vmatprep.mubr.msk.f32.mxu0 %vm538_vm1, %v14209_v36  ;;  %v14234_v38 = vld [vmem:[%s13878_s18 + $0x3a] sm:$0xff]  ;;  %17884 = vst [vmem:[#allocation12_spill] sm:$0xff] %v14237_v35  ;;  %v14244_v36 = vld [vmem:[%s13878_s18 + $0x52] sm:$0xff] }
  0x97   : > { %12160 = vmatprep.subr.msk.mxu0 %vm635_vm0, %v14214_v1  ;;  %17883 = vst [vmem:[#allocation11_spill] sm:$0xff] %v14234_v38  ;;  %17885 = vst [vmem:[#allocation13_spill] sm:$0xff] %v14244_v36 }
  0x99   : > { %12066 = vmatmul.mubr.msk.f32.gmra.mrb[2].mxu0 %vm538_vm1, %v14222_v5  ;;  %v14257_v5 = vld [vmem:[%s13878_s18 + $0x7a] sm:$0xff] }
  0x9a   : > { %12068 = vmatprep.mubr.msk.f32.mxu0 %vm538_vm1, %v14225_v3  ;;  %v14254_v3 = vld [vmem:[%s13878_s18 + $0x6a] sm:$0xff]  ;;  %17888 = vst [vmem:[#allocation16_spill] sm:$0xff] %v14257_v5 }
  0x9b   : > { %17887 = vst [vmem:[#allocation15_spill] sm:$0xff] %v14254_v3 }
  0x9d   : > { %12069 = vmatmul.mubr.msk.f32.gmra.mrb[4].mxu0 %vm538_vm1, %v14234_v38  ;;  %v14267_v38 = vld [vmem:[%s13878_s18 + $0x92] sm:$0xff] }
  0x9e   : > { %12071 = vmatprep.mubr.msk.f32.mxu0 %vm538_vm1, %v14237_v35  ;;  %v14264_v35 = vld [vmem:[%s13878_s18 + $0x82] sm:$0xff]  ;;  %17890 = vst [vmem:[#allocation18_spill] sm:$0xff] %v14267_v38 }
  0x9f   : > { %17889 = vst [vmem:[#allocation17_spill] sm:$0xff] %v14264_v35 }
  0xa1   : > { %12072 = vmatmul.mubr.msk.f32.gmra.mrb[6].mxu0 %vm538_vm1, %v14244_v36  ;;  %v14277_v36 = vld [vmem:[%s13878_s18 + $0xaa] sm:$0xff] }
  0xa2   : > { %12074 = vmatprep.mubr.msk.f32.mxu0 %vm538_vm1, %v14247_v2  ;;  %v14274_v2 = vld [vmem:[%s13878_s18 + $0x9a] sm:$0xff]  ;;  %17892 = vst [vmem:[#allocation20_spill] sm:$0xff] %v14277_v36 }
  0xa3   : > { %17891 = vst [vmem:[#allocation19_spill] sm:$0xff] %v14274_v2 }
  0xa5   : > { %12075 = vmatmul.mubr.msk.f32.gmra.mrb[8].mxu0 %vm538_vm1, %v14254_v3  ;;  %v14287_v3 = vld [vmem:[%s13878_s18 + $0xc2] sm:$0xff] }
  0xa6   : > { %12077 = vmatprep.mubr.msk.f32.mxu0 %vm538_vm1, %v14257_v5  ;;  %v14284_v5 = vld [vmem:[%s13878_s18 + $0xb2] sm:$0xff]  ;;  %17894 = vst [vmem:[#allocation22_spill] sm:$0xff] %v14287_v3 }
  0xa7   : > { %17893 = vst [vmem:[#allocation21_spill] sm:$0xff] %v14284_v5 }
  0xa9   : > { %12078 = vmatmul.mubr.msk.f32.gmra.mrb[10].mxu0 %vm538_vm1, %v14264_v35  ;;  %v14297_v35 = vld [vmem:[%s13878_s18 + $0xda] sm:$0xff] }
  0xaa   : > { %12080 = vmatprep.mubr.msk.f32.mxu0 %vm538_vm1, %v14267_v38  ;;  %v14294_v38 = vld [vmem:[%s13878_s18 + $0xca] sm:$0xff]  ;;  %17896 = vst [vmem:[#allocation24_spill] sm:$0xff] %v14297_v35 }
  0xab   : > { %17895 = vst [vmem:[#allocation23_spill] sm:$0xff] %v14294_v38 }
  0xad   : > { %12081 = vmatmul.mubr.msk.f32.gmra.mrb[12].mxu0 %vm538_vm1, %v14274_v2  ;;  %v14307_v2 = vld [vmem:[%s13878_s18 + $0xf2] sm:$0xff] }
  0xae   : > { %12083 = vmatprep.mubr.msk.f32.mxu0 %vm538_vm1, %v14277_v36  ;;  %v14304_v36 = vld [vmem:[%s13878_s18 + $0xe2] sm:$0xff]  ;;  %17898 = vst [vmem:[#allocation26_spill] sm:$0xff] %v14307_v2 }
  0xaf   : > { %17897 = vst [vmem:[#allocation25_spill] sm:$0xff] %v14304_v36 }
  0xb1   : > { %12084 = vmatmul.mubr.msk.f32.gmra.mrb[14].mxu0 %vm538_vm1, %v14284_v5  ;;  %v14317_v5 = vld [vmem:[%s13878_s18 + $0x10a] sm:$0xff] }
  0xb2   : > { %12086 = vmatprep.mubr.msk.f32.mxu0 %vm538_vm1, %v14287_v3  ;;  %v14314_v3 = vld [vmem:[%s13878_s18 + $0xfa] sm:$0xff]  ;;  %17900 = vst [vmem:[#allocation28_spill] sm:$0xff] %v14317_v5 }
  0xb3   : > { %17899 = vst [vmem:[#allocation27_spill] sm:$0xff] %v14314_v3 }
  0xb5   : > { %12087 = vmatmul.mubr.msk.f32.gmra.mrb[16].mxu0 %vm538_vm1, %v14294_v38  ;;  %v14327_v38 = vld [vmem:[%s13878_s18 + $0x122] sm:$0xff] }
  0xb6   : > { %12089 = vmatprep.mubr.msk.f32.mxu0 %vm538_vm1, %v14297_v35  ;;  %v14324_v35 = vld [vmem:[%s13878_s18 + $0x112] sm:$0xff]  ;;  %17902 = vst [vmem:[#allocation30_spill] sm:$0xff] %v14327_v38 }
  0xb7   : > { %17901 = vst [vmem:[#allocation29_spill] sm:$0xff] %v14324_v35 }
  0xb9   : > { %12090 = vmatmul.mubr.msk.f32.gmra.mrb[18].mxu0 %vm538_vm1, %v14304_v36  ;;  %v14337_v36 = vld [vmem:[%s13878_s18 + $0x13a] sm:$0xff] }
  0xba   : > { %12092 = vmatprep.mubr.msk.f32.mxu0 %vm538_vm1, %v14307_v2  ;;  %v14334_v2 = vld [vmem:[%s13878_s18 + $0x12a] sm:$0xff]  ;;  %17903 = vst [vmem:[#allocation31_spill] sm:$0xff] %v14337_v36 }
  0xbd   : > { %12093 = vmatmul.mubr.msk.f32.gmra.mrb[20].mxu0 %vm538_vm1, %v14314_v3  ;;  %v14347_v3 = vld [vmem:[%s13878_s18 + $0x152] sm:$0xff] }
  0xbe   : > { %12095 = vmatprep.mubr.msk.f32.mxu0 %vm538_vm1, %v14317_v5  ;;  %v14344_v5 = vld [vmem:[%s13878_s18 + $0x142] sm:$0xff]  ;;  %17904 = vst [vmem:[#allocation32_spill] sm:$0xff] %v14347_v3 }
  0xc1   : > { %12096 = vmatmul.mubr.msk.f32.gmra.mrb[22].mxu0 %vm538_vm1, %v14324_v35  ;;  %v14357_v35 = vld [vmem:[%s13878_s18 + $0x16a] sm:$0xff] }
  0xc2   : > { %12098 = vmatprep.mubr.msk.f32.mxu0 %vm538_vm1, %v14327_v38  ;;  %v14354_v38 = vld [vmem:[%s13878_s18 + $0x15a] sm:$0xff] }
  0xc5   : > { %12099 = vmatmul.mubr.msk.f32.gmra.mrb[24].mxu0 %vm538_vm1, %v14334_v2 }
  0xc6   : > { %12101 = vmatprep.mubr.msk.f32.mxu0 %vm538_vm1, %v14337_v36  ;;  %v14364_v36 = vld [vmem:[%s13878_s18 + $0x172] sm:$0xff] }
  0xc9   : > { %12102 = vmatmul.mubr.msk.f32.gmra.mrb[26].mxu0 %vm538_vm1, %v14344_v5 }
  0xca   : > { %12104 = vmatprep.mubr.msk.f32.mxu0 %vm538_vm1, %v14347_v3  ;;  %v10257_v3 = vld [vmem:[%s17814_s1 + $0x14] sm:$0x7] }
  0xcd   : > { %12105 = vmatmul.mubr.msk.f32.gmra.mrb[28].mxu0 %vm538_vm1, %v14354_v38 }
  0xce   : > { %12107 = vmatprep.mubr.msk.f32.mxu0 %vm538_vm1, %v14357_v35 }
  0xd1   : > { %12108 = vmatmul.mubr.msk.f32.gmra.mrb[30].mxu0 %vm538_vm1, %v14364_v36 }
  0xd2   : > { %12112 = vmatprep.mubr.msk.f32.mxu0 %vm538_vm1, %v13883_v4  ;;  %v14433_v4 = vld [vmem:[%s13878_s18 + $0x180] sm:$0xff] }
  0xd5   : > { %12113 = vmatmul.mubr.msk.f32.vlgmr.msra.gmra.mrb[0].mxu0 %vm538_vm1, %v13896_v6  ;;  %v14440_v6 = vld [vmem:[%s13878_s18 + $0x188] sm:$0xff] }
  0xd6   : > { %12161 = vmatpush3.msk.msra.mxu0 %vm635_vm0, %v14214_v1  ;;  %12115 = vmatprep.mubr.msk.f32.mxu0 %vm538_vm1, %v13899_v7  ;;  %v10323_v7 = vld [vmem:[%s17814_s1 + $0x18] sm:$0x7]  ;;  %v13759_v1 = vld [vmem:[%s13878_s18 + $0x48] sm:$0xff] }
  0xd7   : > { %12210 = vmatprep.subr.msk.mxu0 %vm635_vm0, %v10257_v3 }
  0xd9   : > { %12116 = vmatmul.mubr.msk.f32.gmra.mrb[2].mxu0 %vm538_vm1, %v13908_v8  ;;  %v17905_v8 = vld [vmem:[#allocation5_spill] sm:$0xff] }
  0xda   : > { %12118 = vmatprep.mubr.msk.f32.mxu0 %vm538_vm1, %v13911_v9  ;;  %v17906_v9 = vld [vmem:[#allocation6_spill] sm:$0xff] }
  0xdd   : > { %12119 = vmatmul.mubr.msk.f32.gmra.mrb[4].mxu0 %vm538_vm1, %v13918_v10  ;;  %v14508_v10 = vld [vmem:[%s13878_s18 + $0x181] sm:$0xff] }
  0xde   : > { %12121 = vmatprep.mubr.msk.f32.mxu0 %vm538_vm1, %v13921_v11  ;;  %v17907_v11 = vld [vmem:[#allocation7_spill] sm:$0xff] }
  0xe1   : > { %12122 = vmatmul.mubr.msk.f32.gmra.mrb[6].mxu0 %vm538_vm1, %v13928_v12  ;;  %v14515_v12 = vld [vmem:[%s13878_s18 + $0x189] sm:$0xff] }
  0xe2   : > { %12124 = vmatprep.mubr.msk.f32.mxu0 %vm538_vm1, %v13931_v13  ;;  %v17908_v13 = vld [vmem:[#allocation8_spill] sm:$0xff] }
  0xe5   : > { %12125 = vmatmul.mubr.msk.f32.gmra.mrb[8].mxu0 %vm538_vm1, %v13938_v14  ;;  %v10389_v14 = vld [vmem:[%s17814_s1 + $0x1c] sm:$0x7] }
  0xe6   : > { %12127 = vmatprep.mubr.msk.f32.mxu0 %vm538_vm1, %v13941_v15  ;;  %v17909_v15 = vld [vmem:[#allocation9_spill] sm:$0xff] }
  0xe9   : > { %12128 = vmatmul.mubr.msk.f32.gmra.mrb[10].mxu0 %vm538_vm1, %v13948_v16  ;;  %v17910_v16 = vld [vmem:[#allocation10_spill] sm:$0xff] }
  0xea   : > { %12130 = vmatprep.mubr.msk.f32.mxu0 %vm538_vm1, %v13951_v17  ;;  %v17911_v17 = vld [vmem:[#allocation11_spill] sm:$0xff] }
  0xed   : > { %12131 = vmatmul.mubr.msk.f32.gmra.mrb[12].mxu0 %vm538_vm1, %v13956_v18  ;;  %v17912_v18 = vld [vmem:[#allocation12_spill] sm:$0xff] }
  0xee   : > { %12133 = vmatprep.mubr.msk.f32.mxu0 %vm538_vm1, %v13961_v19  ;;  %v17913_v19 = vld [vmem:[#allocation13_spill] sm:$0xff] }
  0xf1   : > { %12134 = vmatmul.mubr.msk.f32.gmra.mrb[14].mxu0 %vm538_vm1, %v13966_v20  ;;  %v17914_v20 = vld [vmem:[#allocation14_spill] sm:$0xff] }
  0xf2   : > { %12136 = vmatprep.mubr.msk.f32.mxu0 %vm538_vm1, %v13971_v21  ;;  %v17915_v21 = vld [vmem:[#allocation15_spill] sm:$0xff] }
  0xf5   : > { %12137 = vmatmul.mubr.msk.f32.gmra.mrb[16].mxu0 %vm538_vm1, %v13976_v22  ;;  %v17916_v22 = vld [vmem:[#allocation16_spill] sm:$0xff] }
  0xf6   : > { %12139 = vmatprep.mubr.msk.f32.mxu0 %vm538_vm1, %v13981_v23  ;;  %v17917_v23 = vld [vmem:[#allocation17_spill] sm:$0xff] }
  0xf9   : > { %12140 = vmatmul.mubr.msk.f32.gmra.mrb[18].mxu0 %vm538_vm1, %v13986_v24  ;;  %v17918_v24 = vld [vmem:[#allocation18_spill] sm:$0xff] }
  0xfa   : > { %12142 = vmatprep.mubr.msk.f32.mxu0 %vm538_vm1, %v13991_v25  ;;  %v17919_v25 = vld [vmem:[#allocation19_spill] sm:$0xff] }
  0xfd   : > { %12143 = vmatmul.mubr.msk.f32.gmra.mrb[20].mxu0 %vm538_vm1, %v13996_v26  ;;  %v17920_v26 = vld [vmem:[#allocation20_spill] sm:$0xff] }
  0xfe   : > { %12145 = vmatprep.mubr.msk.f32.mxu0 %vm538_vm1, %v14001_v27  ;;  %v17921_v27 = vld [vmem:[#allocation21_spill] sm:$0xff] }
 0x101   : > { %12146 = vmatmul.mubr.msk.f32.gmra.mrb[22].mxu0 %vm538_vm1, %v14006_v28 }
 0x102   : > { %12148 = vmatprep.mubr.msk.f32.mxu0 %vm538_vm1, %v14011_v29 }
 0x105   : > { %12149 = vmatmul.mubr.msk.f32.gmra.mrb[24].mxu0 %vm538_vm1, %v14016_v30 }
 0x106   : > { %12151 = vmatprep.mubr.msk.f32.mxu0 %vm538_vm1, %v14021_v31 }
 0x109   : > { %12152 = vmatmul.mubr.msk.f32.gmra.mrb[26].mxu0 %vm538_vm1, %v14026_v32 }
 0x10a   : > { %12154 = vmatprep.mubr.msk.f32.mxu0 %vm538_vm1, %v14031_v33 }
 0x10d   : > { %12155 = vmatmul.mubr.msk.f32.gmra.mrb[28].mxu0 %vm538_vm1, %v14036_v34 }
 0x10e   : > { %12157 = vmatprep.mubr.msk.f32.mxu0 %vm538_vm1, %v14433_v4 }
 0x111   : > { %12158 = vmatmul.mubr.msk.f32.gmra.mrb[30].mxu0 %vm538_vm1, %v14440_v6 }
 0x112   : > { %12162 = vmatprep.mubr.msk.f32.mxu0 %vm538_vm1, %v14046_v37  ;;  %v17922_v37 = vld [vmem:[#allocation22_spill] sm:$0xff] }
 0x115   : > { %12163 = vmatmul.mubr.msk.f32.vlgmr.msra.gmra.mrb[0].mxu0 %vm538_vm1, %v14054_v39  ;;  %v17923_v39 = vld [vmem:[#allocation23_spill] sm:$0xff] }
 0x116   : > { %12211 = vmatpush3.msk.msra.mxu0 %vm635_vm0, %v10257_v3  ;;  %12165 = vmatprep.mubr.msk.f32.mxu0 %vm538_vm1, %v14058_v40  ;;  %v13760_v3 = vld [vmem:[%s13878_s18 + $0x50] sm:$0xff] }
 0x117   : > { %12260 = vmatprep.subr.msk.mxu0 %vm635_vm0, %v10323_v7 }
 0x119   : > { %12166 = vmatmul.mubr.msk.f32.gmra.mrb[2].mxu0 %vm538_vm1, %v14067_v41  ;;  %v17924_v41 = vld [vmem:[#allocation24_spill] sm:$0xff] }
 0x11a   : > { %12168 = vmatprep.mubr.msk.f32.mxu0 %vm538_vm1, %v14072_v42  ;;  %v17925_v42 = vld [vmem:[#allocation25_spill] sm:$0xff] }
 0x11d   : > { %12169 = vmatmul.mubr.msk.f32.gmra.mrb[4].mxu0 %vm538_vm1, %v14077_v43  ;;  %v17926_v43 = vld [vmem:[#allocation26_spill] sm:$0xff] }
 0x11e   : > { %12171 = vmatprep.mubr.msk.f32.mxu0 %vm538_vm1, %v14082_v44  ;;  %v17927_v44 = vld [vmem:[#allocation27_spill] sm:$0xff] }
 0x121   : > { %12172 = vmatmul.mubr.msk.f32.gmra.mrb[6].mxu0 %vm538_vm1, %v14087_v45  ;;  %v17928_v45 = vld [vmem:[#allocation28_spill] sm:$0xff] }
 0x122   : > { %12174 = vmatprep.mubr.msk.f32.mxu0 %vm538_vm1, %v14092_v46  ;;  %v17929_v46 = vld [vmem:[#allocation29_spill] sm:$0xff] }
 0x125   : > { %12175 = vmatmul.mubr.msk.f32.gmra.mrb[8].mxu0 %vm538_vm1, %v14097_v47  ;;  %v17930_v47 = vld [vmem:[#allocation30_spill] sm:$0xff] }
 0x126   : > { %12177 = vmatprep.mubr.msk.f32.mxu0 %vm538_vm1, %v14102_v48  ;;  %v17931_v48 = vld [vmem:[#allocation31_spill] sm:$0xff] }
 0x129   : > { %12178 = vmatmul.mubr.msk.f32.gmra.mrb[10].mxu0 %vm538_vm1, %v14107_v49  ;;  %v17932_v49 = vld [vmem:[#allocation32_spill] sm:$0xff] }
 0x12a   : > { %12180 = vmatprep.mubr.msk.f32.mxu0 %vm538_vm1, %v14112_v50  ;;  %v14583_v50 = vld [vmem:[%s13878_s18 + $0x182] sm:$0xff] }
 0x12d   : > { %12181 = vmatmul.mubr.msk.f32.gmra.mrb[12].mxu0 %vm538_vm1, %v14117_v51  ;;  %v14590_v51 = vld [vmem:[%s13878_s18 + $0x18a] sm:$0xff] }
 0x12e   : > { %12183 = vmatprep.mubr.msk.f32.mxu0 %vm538_vm1, %v14122_v52  ;;  %v13757_v52 = vld [vmem:[%s13878_s18 + $0x30] sm:$0xff] }
 0x131   : > { %12184 = vmatmul.mubr.msk.f32.gmra.mrb[14].mxu0 %vm538_vm1, %v14127_v53  ;;  %v14599_v53 = vld [vmem:[%s17814_s1 + $0x20] sm:$0x7] }
 0x132   : > { %12186 = vmatprep.mubr.msk.f32.mxu0 %vm538_vm1, %v14132_v54  ;;  %v13758_v54 = vld [vmem:[%s13878_s18 + $0x38] sm:$0xff] }
 0x135   : > { %12187 = vmatmul.mubr.msk.f32.gmra.mrb[16].mxu0 %vm538_vm1, %v14137_v55 }
 0x136   : > { %12189 = vmatprep.mubr.msk.f32.mxu0 %vm538_vm1, %v14142_v56 }
 0x139   : > { %12190 = vmatmul.mubr.msk.f32.gmra.mrb[18].mxu0 %vm538_vm1, %v14147_v57 }
 0x13a   : > { %12192 = vmatprep.mubr.msk.f32.mxu0 %vm538_vm1, %v14152_v58 }
 0x13d   : > { %12193 = vmatmul.mubr.msk.f32.gmra.mrb[20].mxu0 %vm538_vm1, %v14157_v59 }
 0x13e   : > { %12195 = vmatprep.mubr.msk.f32.mxu0 %vm538_vm1, %v14162_v60 }
 0x141   : > { %12196 = vmatmul.mubr.msk.f32.gmra.mrb[22].mxu0 %vm538_vm1, %v14167_v61 }
 0x142   : > { %12198 = vmatprep.mubr.msk.f32.mxu0 %vm538_vm1, %v14172_v62 }
 0x145   : > { %12199 = vmatmul.mubr.msk.f32.gmra.mrb[24].mxu0 %vm538_vm1, %v14177_v63 }
 0x146   : > { %12201 = vmatprep.mubr.msk.f32.mxu0 %vm538_vm1, %v14182_v0 }
 0x149   : > { %12202 = vmatmul.mubr.msk.f32.gmra.mrb[26].mxu0 %vm538_vm1, %v17905_v8 }
 0x14a   : > { %12204 = vmatprep.mubr.msk.f32.mxu0 %vm538_vm1, %v17906_v9 }
 0x14d   : > { %12205 = vmatmul.mubr.msk.f32.gmra.mrb[28].mxu0 %vm538_vm1, %v17907_v11 }
 0x14e   : > { %12207 = vmatprep.mubr.msk.f32.mxu0 %vm538_vm1, %v14508_v10 }
 0x151   : > { %12208 = vmatmul.mubr.msk.f32.gmra.mrb[30].mxu0 %vm538_vm1, %v14515_v12 }
 0x152   : > { %12212 = vmatprep.mubr.msk.f32.mxu0 %vm538_vm1, %v17908_v13  ;;  %v13762_v13 = vld [vmem:[%s13878_s18 + $0x68] sm:$0xff] }
 0x155   : > { %12213 = vmatmul.mubr.msk.f32.vlgmr.msra.gmra.mrb[0].mxu0 %vm538_vm1, %v17909_v15  ;;  %v13764_v15 = vld [vmem:[%s13878_s18 + $0x80] sm:$0xff] }
 0x156   : > { %12261 = vmatpush3.msk.msra.mxu0 %vm635_vm0, %v10323_v7  ;;  %12215 = vmatprep.mubr.msk.f32.mxu0 %vm538_vm1, %v17910_v16  ;;  %v13761_v7 = vld [vmem:[%s13878_s18 + $0x60] sm:$0xff] }
 0x157   : > { %12310 = vmatprep.subr.msk.mxu0 %vm635_vm0, %v10389_v14 }
 0x159   : > { %12216 = vmatmul.mubr.msk.f32.gmra.mrb[2].mxu0 %vm538_vm1, %v17911_v17 }
 0x15a   : > { %12218 = vmatprep.mubr.msk.f32.mxu0 %vm538_vm1, %v17912_v18 }
 0x15d   : > { %12219 = vmatmul.mubr.msk.f32.gmra.mrb[4].mxu0 %vm538_vm1, %v17913_v19 }
 0x15e   : > { %12221 = vmatprep.mubr.msk.f32.mxu0 %vm538_vm1, %v17914_v20 }
 0x161   : > { %12222 = vmatmul.mubr.msk.f32.gmra.mrb[6].mxu0 %vm538_vm1, %v17915_v21 }
 0x162   : > { %12224 = vmatprep.mubr.msk.f32.mxu0 %vm538_vm1, %v17916_v22 }
 0x165   : > { %12225 = vmatmul.mubr.msk.f32.gmra.mrb[8].mxu0 %vm538_vm1, %v17917_v23 }
 0x166   : > { %12227 = vmatprep.mubr.msk.f32.mxu0 %vm538_vm1, %v17918_v24 }
 0x169   : > { %12228 = vmatmul.mubr.msk.f32.gmra.mrb[10].mxu0 %vm538_vm1, %v17919_v25 }
 0x16a   : > { %12230 = vmatprep.mubr.msk.f32.mxu0 %vm538_vm1, %v17920_v26 }
 0x16d   : > { %12231 = vmatmul.mubr.msk.f32.gmra.mrb[12].mxu0 %vm538_vm1, %v17921_v27 }
 0x16e   : > { %12233 = vmatprep.mubr.msk.f32.mxu0 %vm538_vm1, %v17922_v37 }
 0x171   : > { %12234 = vmatmul.mubr.msk.f32.gmra.mrb[14].mxu0 %vm538_vm1, %v17923_v39 }
 0x172   : > { %12236 = vmatprep.mubr.msk.f32.mxu0 %vm538_vm1, %v17924_v41 }
 0x175   : > { %12237 = vmatmul.mubr.msk.f32.gmra.mrb[16].mxu0 %vm538_vm1, %v17925_v42 }
 0x176   : > { %12239 = vmatprep.mubr.msk.f32.mxu0 %vm538_vm1, %v17926_v43 }
 0x179   : > { %12240 = vmatmul.mubr.msk.f32.gmra.mrb[18].mxu0 %vm538_vm1, %v17927_v44 }
 0x17a   : > { %12242 = vmatprep.mubr.msk.f32.mxu0 %vm538_vm1, %v17928_v45 }
 0x17d   : > { %12243 = vmatmul.mubr.msk.f32.gmra.mrb[20].mxu0 %vm538_vm1, %v17929_v46 }
 0x17e   : > { %12245 = vmatprep.mubr.msk.f32.mxu0 %vm538_vm1, %v17930_v47 }
 0x181   : > { %12246 = vmatmul.mubr.msk.f32.gmra.mrb[22].mxu0 %vm538_vm1, %v14334_v2 }
 0x182   : > { %12248 = vmatprep.mubr.msk.f32.mxu0 %vm538_vm1, %v17931_v48 }
 0x185   : > { %12249 = vmatmul.mubr.msk.f32.gmra.mrb[24].mxu0 %vm538_vm1, %v14344_v5 }
 0x186   : > { %12251 = vmatprep.mubr.msk.f32.mxu0 %vm538_vm1, %v17932_v49 }
 0x189   : > { %12252 = vmatmul.mubr.msk.f32.gmra.mrb[26].mxu0 %vm538_vm1, %v14354_v38 }
 0x18a   : > { %12254 = vmatprep.mubr.msk.f32.mxu0 %vm538_vm1, %v14357_v35 }
 0x18d   : > { %12255 = vmatmul.mubr.msk.f32.gmra.mrb[28].mxu0 %vm538_vm1, %v14364_v36 }
 0x18e   : > { %12257 = vmatprep.mubr.msk.f32.mxu0 %vm538_vm1, %v14583_v50 }
 0x191   : > { %12258 = vmatmul.mubr.msk.f32.gmra.mrb[30].mxu0 %vm538_vm1, %v14590_v51 }
 0x192   : > { %12262 = vmatprep.mubr.msk.f32.mxu0 %vm538_vm1, %v13757_v52  ;;  %v13765_v52 = vld [vmem:[%s13878_s18 + $0x90] sm:$0xff] }
 0x195   : > { %12263 = vmatmul.mubr.msk.f32.vlgmr.msra.gmra.mrb[0].mxu0 %vm538_vm1, %v13758_v54  ;;  %v13766_v54 = vld [vmem:[%s13878_s18 + $0x98] sm:$0xff] }
 0x196   : > { %12311 = vmatpush3.msk.msra.mxu0 %vm635_vm0, %v10389_v14  ;;  %12265 = vmatprep.mubr.msk.f32.mxu0 %vm538_vm1, %v13759_v1  ;;  %v13763_v14 = vld [vmem:[%s13878_s18 + $0x78] sm:$0xff]  ;;  %v13767_v1 = vld [vmem:[%s13878_s18 + $0xa8] sm:$0xff] }
 0x197   : > { %12360 = vmatprep.subr.msk.mxu0 %vm635_vm0, %v14599_v53 }
 0x199   : > { %12266 = vmatmul.mubr.msk.f32.gmra.mrb[2].mxu0 %vm538_vm1, %v13760_v3  ;;  %v13768_v3 = vld [vmem:[%s13878_s18 + $0xb0] sm:$0xff] }
 0x19a   : > { %12268 = vmatprep.mubr.msk.f32.mxu0 %vm538_vm1, %v13761_v7  ;;  %v13769_v7 = vld [vmem:[%s13878_s18 + $0xc0] sm:$0xff] }
 0x19d   : > { %12269 = vmatmul.mubr.msk.f32.gmra.mrb[4].mxu0 %vm538_vm1, %v13762_v13  ;;  %v13770_v13 = vld [vmem:[%s13878_s18 + $0xc8] sm:$0xff] }
 0x19e   : > { %12271 = vmatprep.mubr.msk.f32.mxu0 %vm538_vm1, %v13763_v14  ;;  %v13771_v14 = vld [vmem:[%s13878_s18 + $0xd8] sm:$0xff] }
 0x1a1   : > { %12272 = vmatmul.mubr.msk.f32.gmra.mrb[6].mxu0 %vm538_vm1, %v13764_v15  ;;  %v13772_v15 = vld [vmem:[%s13878_s18 + $0xe0] sm:$0xff] }
 0x1a2   : > { %12274 = vmatprep.mubr.msk.f32.mxu0 %vm538_vm1, %v13765_v52  ;;  %v13773_v52 = vld [vmem:[%s13878_s18 + $0xf0] sm:$0xff] }
 0x1a5   : > { %12275 = vmatmul.mubr.msk.f32.gmra.mrb[8].mxu0 %vm538_vm1, %v13766_v54  ;;  %v13774_v54 = vld [vmem:[%s13878_s18 + $0xf8] sm:$0xff] }
 0x1a6   : > { %12277 = vmatprep.mubr.msk.f32.mxu0 %vm538_vm1, %v13767_v1  ;;  %v13775_v1 = vld [vmem:[%s13878_s18 + $0x108] sm:$0xff] }
 0x1a9   : > { %12278 = vmatmul.mubr.msk.f32.gmra.mrb[10].mxu0 %vm538_vm1, %v13768_v3  ;;  %v13776_v3 = vld [vmem:[%s13878_s18 + $0x110] sm:$0xff] }
 0x1aa   : > { %12280 = vmatprep.mubr.msk.f32.mxu0 %vm538_vm1, %v13769_v7  ;;  %v13777_v7 = vld [vmem:[%s13878_s18 + $0x120] sm:$0xff] }
 0x1ad   : > { %12281 = vmatmul.mubr.msk.f32.gmra.mrb[12].mxu0 %vm538_vm1, %v13770_v13  ;;  %v13786_v13 = vld [vmem:[%s13878_s18 + $0x99] sm:$0xff] }
 0x1ae   : > { %12283 = vmatprep.mubr.msk.f32.mxu0 %vm538_vm1, %v13771_v14  ;;  %v13787_v14 = vld [vmem:[%s13878_s18 + $0xa9] sm:$0xff] }
 0x1b1   : > { %12284 = vmatmul.mubr.msk.f32.gmra.mrb[14].mxu0 %vm538_vm1, %v13772_v15  ;;  %v13788_v15 = vld [vmem:[%s13878_s18 + $0xb1] sm:$0xff] }
 0x1b2   : > { %12286 = vmatprep.mubr.msk.f32.mxu0 %vm538_vm1, %v13773_v52  ;;  %v13789_v52 = vld [vmem:[%s13878_s18 + $0xc1] sm:$0xff] }
 0x1b5   : > { %12287 = vmatmul.mubr.msk.f32.gmra.mrb[16].mxu0 %vm538_vm1, %v13774_v54  ;;  %v13790_v54 = vld [vmem:[%s13878_s18 + $0xc9] sm:$0xff] }
 0x1b6   : > { %12289 = vmatprep.mubr.msk.f32.mxu0 %vm538_vm1, %v13775_v1  ;;  %v13791_v1 = vld [vmem:[%s13878_s18 + $0xd9] sm:$0xff] }
 0x1b9   : > { %12290 = vmatmul.mubr.msk.f32.gmra.mrb[18].mxu0 %vm538_vm1, %v13776_v3 }
 0x1ba   : > { %12292 = vmatprep.mubr.msk.f32.mxu0 %vm538_vm1, %v13777_v7 }
 0x1bd   : > { %12293 = vmatmul.mubr.msk.f32.gmra.mrb[20].mxu0 %vm538_vm1, %v14006_v28  ;;  %v10321_v28 = vld [vmem:[%s13878_s18 + $0x198] sm:$0xff] }
 0x1be   : > { %12295 = vmatprep.mubr.msk.f32.mxu0 %vm538_vm1, %v14011_v29  ;;  %v10322_v29 = vld [vmem:[%s13878_s18 + $0x1a0] sm:$0xff] }
 0x1c1   : > { %12296 = vmatmul.mubr.msk.f32.gmra.mrb[22].mxu0 %vm538_vm1, %v14016_v30  ;;  %v13803_v30 = vmov 0.0  }
 0x1c2   : > { %12298 = vmatprep.mubr.msk.f32.mxu0 %vm538_vm1, %v14021_v31  ;;  %340 = vst.msk [vmem:[#allocation2 + $0x20] sm:$0xff] %vm334_vm2, %v13803_v30  ;;  %335 = vst.msk [vmem:[#allocation2] sm:$0xff] %vm334_vm2, %v13803_v30  ;;  %v13778_v31 = vld [vmem:[%s13878_s18 + $0x39] sm:$0xff] }
 0x1c3   : > { %341 = vst.msk [vmem:[#allocation2 + $0x28] sm:$0x3] %vm337_vm3, %v13803_v30  ;;  %338 = vst.msk [vmem:[#allocation2 + $0x10] sm:$0x3] %vm337_vm3, %v13803_v30 }
 0x1c4   : > { %336 = vst.msk [vmem:[#allocation2 + $0x8] sm:$0xff] %vm334_vm2, %v13803_v30  ;;  %339 = vst.msk [vmem:[#allocation2 + $0x18] sm:$0xff] %vm334_vm2, %v13803_v30 }
 0x1c5   : > { %12299 = vmatmul.mubr.msk.f32.gmra.mrb[24].mxu0 %vm538_vm1, %v14026_v32  ;;  %342 = vst.msk [vmem:[#allocation2 + $0x30] sm:$0xff] %vm334_vm2, %v13803_v30  ;;  %343 = vst.msk [vmem:[#allocation2 + $0x38] sm:$0xff] %vm334_vm2, %v13803_v30  ;;  %v13779_v32 = vld [vmem:[%s13878_s18 + $0x49] sm:$0xff] }
 0x1c6   : > { %12301 = vmatprep.mubr.msk.f32.mxu0 %vm538_vm1, %v14031_v33  ;;  %344 = vst.msk [vmem:[#allocation2 + $0x40] sm:$0x3] %vm337_vm3, %v13803_v30  ;;  %347 = vst.msk [vmem:[#allocation2 + $0x58] sm:$0x3] %vm337_vm3, %v13803_v30  ;;  %v13780_v33 = vld [vmem:[%s13878_s18 + $0x51] sm:$0xff] }
 0x1c7   : > { %345 = vst.msk [vmem:[#allocation2 + $0x48] sm:$0xff] %vm334_vm2, %v13803_v30  ;;  %346 = vst.msk [vmem:[#allocation2 + $0x50] sm:$0xff] %vm334_vm2, %v13803_v30 }
 0x1c8   : > { %348 = vst.msk [vmem:[#allocation2 + $0x60] sm:$0xff] %vm334_vm2, %v13803_v30  ;;  %349 = vst.msk [vmem:[#allocation2 + $0x68] sm:$0xff] %vm334_vm2, %v13803_v30 }
 0x1c9   : > { %12302 = vmatmul.mubr.msk.f32.gmra.mrb[26].mxu0 %vm538_vm1, %v14036_v34  ;;  %350 = vst.msk [vmem:[#allocation2 + $0x70] sm:$0x3] %vm337_vm3, %v13803_v30  ;;  %353 = vst.msk [vmem:[#allocation2 + $0x88] sm:$0x3] %vm337_vm3, %v13803_v30  ;;  %v13781_v34 = vld [vmem:[%s13878_s18 + $0x61] sm:$0xff] }
 0x1ca   : > { %12304 = vmatprep.mubr.msk.f32.mxu0 %vm538_vm1, %v14433_v4  ;;  %351 = vst.msk [vmem:[#allocation2 + $0x78] sm:$0xff] %vm334_vm2, %v13803_v30  ;;  %352 = vst.msk [vmem:[#allocation2 + $0x80] sm:$0xff] %vm334_vm2, %v13803_v30  ;;  %v13783_v4 = vld [vmem:[%s13878_s18 + $0x79] sm:$0xff] }
 0x1cb   : > { %354 = vst.msk [vmem:[#allocation2 + $0x90] sm:$0xff] %vm334_vm2, %v13803_v30  ;;  %355 = vst.msk [vmem:[#allocation2 + $0x98] sm:$0xff] %vm334_vm2, %v13803_v30  ;;  %v4116_v7 = vld [vmem:[#allocation2 + $0x9] sm:$0xff] }
 0x1cc   : > { %356 = vst.msk [vmem:[#allocation2 + $0xa0] sm:$0x3] %vm337_vm3, %v13803_v30  ;;  %359 = vst.msk [vmem:[#allocation2 + $0xb8] sm:$0x3] %vm337_vm3, %v13803_v30 }
 0x1cd   : > { %12305 = vmatmul.mubr.msk.f32.gmra.mrb[28].mxu0 %vm538_vm1, %v14440_v6  ;;  %357 = vst.msk [vmem:[#allocation2 + $0xa8] sm:$0xff] %vm334_vm2, %v13803_v30  ;;  %358 = vst.msk [vmem:[#allocation2 + $0xb0] sm:$0xff] %vm334_vm2, %v13803_v30  ;;  %v13784_v6 = vld [vmem:[%s13878_s18 + $0x81] sm:$0xff] }
 0x1ce   : > { %12307 = vmatprep.mubr.msk.f32.mxu0 %vm538_vm1, %v10321_v28  ;;  %360 = vst.msk [vmem:[#allocation2 + $0xc0] sm:$0xff] %vm334_vm2, %v13803_v30  ;;  %361 = vst.msk [vmem:[#allocation2 + $0xc8] sm:$0xff] %vm334_vm2, %v13803_v30 }
 0x1cf   : > { %362 = vst.msk [vmem:[#allocation2 + $0xd0] sm:$0x3] %vm337_vm3, %v13803_v30  ;;  %365 = vst.msk [vmem:[#allocation2 + $0xe8] sm:$0x3] %vm337_vm3, %v13803_v30 }
 0x1d0   : > { %363 = vst.msk [vmem:[#allocation2 + $0xd8] sm:$0xff] %vm334_vm2, %v13803_v30  ;;  %364 = vst.msk [vmem:[#allocation2 + $0xe0] sm:$0xff] %vm334_vm2, %v13803_v30 }
 0x1d1   : > { %12308 = vmatmul.mubr.msk.f32.gmra.mrb[30].mxu0 %vm538_vm1, %v10322_v29  ;;  %366 = vst.msk [vmem:[#allocation2 + $0xf0] sm:$0xff] %vm334_vm2, %v13803_v30  ;;  %367 = vst.msk [vmem:[#allocation2 + $0xf8] sm:$0xff] %vm334_vm2, %v13803_v30 }
 0x1d2   : > { %12312 = vmatprep.mubr.msk.f32.mxu0 %vm538_vm1, %v14058_v40  ;;  %368 = vst.msk [vmem:[#allocation2 + $0x100] sm:$0x3] %vm337_vm3, %v13803_v30  ;;  %371 = vst.msk [vmem:[#allocation2 + $0x118] sm:$0x3] %vm337_vm3, %v13803_v30  ;;  %v13782_v40 = vld [vmem:[%s13878_s18 + $0x69] sm:$0xff] }
 0x1d3   : > { %369 = vst.msk [vmem:[#allocation2 + $0x108] sm:$0xff] %vm334_vm2, %v13803_v30  ;;  %370 = vst.msk [vmem:[#allocation2 + $0x110] sm:$0xff] %vm334_vm2, %v13803_v30 }
 0x1d4   : > { %372 = vst.msk [vmem:[#allocation2 + $0x120] sm:$0xff] %vm334_vm2, %v13803_v30  ;;  %373 = vst.msk [vmem:[#allocation2 + $0x128] sm:$0xff] %vm334_vm2, %v13803_v30 }
 0x1d5   : > { %374 = vst.msk [vmem:[#allocation2 + $0x130] sm:$0x3] %vm337_vm3, %v13803_v30  ;;  %377 = vst.msk [vmem:[#allocation2 + $0x148] sm:$0x3] %vm337_vm3, %v13803_v30  ;;  %12313 = vmatmul.mubr.msk.f32.vlgmr.msra.gmra.mrb[0].mxu0 %vm538_vm1, %v13778_v31 }
 0x1d6   : > { %375 = vst.msk [vmem:[#allocation2 + $0x138] sm:$0xff] %vm334_vm2, %v13803_v30  ;;  %376 = vst.msk [vmem:[#allocation2 + $0x140] sm:$0xff] %vm334_vm2, %v13803_v30  ;;  %12361 = vmatpush3.msk.msra.mxu0 %vm635_vm0, %v14599_v53  ;;  %12315 = vmatprep.mubr.msk.f32.mxu0 %vm538_vm1, %v13779_v32  ;;  %v13785_v53 = vld [vmem:[%s13878_s18 + $0x91] sm:$0xff] }
 0x1d7   : > { %378 = vst.msk [vmem:[#allocation2 + $0x150] sm:$0xff] %vm334_vm2, %v13803_v30  ;;  %379 = vst.msk [vmem:[#allocation2 + $0x158] sm:$0xff] %vm334_vm2, %v13803_v30 }
 0x1d8   : > { %380 = vst.msk [vmem:[#allocation2 + $0x160] sm:$0x3] %vm337_vm3, %v13803_v30  ;;  %383 = vst.msk [vmem:[#allocation2 + $0x178] sm:$0x3] %vm337_vm3, %v13803_v30 }
 0x1d9   : > { %381 = vst.msk [vmem:[#allocation2 + $0x168] sm:$0xff] %vm334_vm2, %v13803_v30  ;;  %382 = vst.msk [vmem:[#allocation2 + $0x170] sm:$0xff] %vm334_vm2, %v13803_v30  ;;  %12316 = vmatmul.mubr.msk.f32.gmra.mrb[2].mxu0 %vm538_vm1, %v13780_v33 }
 0x1da   : > { %384 = vst.msk [vmem:[#allocation2 + $0x180] sm:$0xff] %vm334_vm2, %v13803_v30  ;;  %385 = vst.msk [vmem:[#allocation2 + $0x188] sm:$0xff] %vm334_vm2, %v13803_v30  ;;  %12318 = vmatprep.mubr.msk.f32.mxu0 %vm538_vm1, %v13781_v34 }
 0x1db   : > { %386 = vst.msk [vmem:[#allocation2 + $0x190] sm:$0x3] %vm337_vm3, %v13803_v30  ;;  %389 = vst.msk [vmem:[#allocation2 + $0x1a8] sm:$0x3] %vm337_vm3, %v13803_v30 }
 0x1dc   : > { %387 = vst.msk [vmem:[#allocation2 + $0x198] sm:$0xff] %vm334_vm2, %v13803_v30  ;;  %388 = vst.msk [vmem:[#allocation2 + $0x1a0] sm:$0xff] %vm334_vm2, %v13803_v30 }
 0x1dd   : > { %390 = vst [vmem:[#allocation3] sm:$0xff] %v13803_v30  ;;  %391 = vst [vmem:[#allocation3 + $0x8] sm:$0xff] %v13803_v30  ;;  %12319 = vmatmul.mubr.msk.f32.gmra.mrb[4].mxu0 %vm538_vm1, %v13782_v40 }
 0x1de   : > { %392 = vst [vmem:[#allocation3 + $0x10] sm:$0x3] %v13803_v30  ;;  %393 = vst [vmem:[#allocation3 + $0x18] sm:$0xff] %v13803_v30  ;;  %12321 = vmatprep.mubr.msk.f32.mxu0 %vm538_vm1, %v13783_v4 }
 0x1df   : > { %394 = vst [vmem:[#allocation3 + $0x20] sm:$0xff] %v13803_v30  ;;  %395 = vst [vmem:[#allocation3 + $0x28] sm:$0x3] %v13803_v30 }
 0x1e0   : > { %396 = vst [vmem:[#allocation3 + $0x30] sm:$0xff] %v13803_v30  ;;  %397 = vst [vmem:[#allocation3 + $0x38] sm:$0xff] %v13803_v30 }
 0x1e1   : > { %398 = vst [vmem:[#allocation3 + $0x40] sm:$0x3] %v13803_v30  ;;  %399 = vst [vmem:[#allocation3 + $0x48] sm:$0xff] %v13803_v30  ;;  %12322 = vmatmul.mubr.msk.f32.gmra.mrb[6].mxu0 %vm538_vm1, %v13784_v6 }
 0x1e2   : > { %400 = vst [vmem:[#allocation3 + $0x50] sm:$0xff] %v13803_v30  ;;  %401 = vst [vmem:[#allocation3 + $0x58] sm:$0x3] %v13803_v30  ;;  %12324 = vmatprep.mubr.msk.f32.mxu0 %vm538_vm1, %v13785_v53 }
 0x1e3   : > { %402 = vst [vmem:[#allocation3 + $0x60] sm:$0xff] %v13803_v30  ;;  %403 = vst [vmem:[#allocation3 + $0x68] sm:$0xff] %v13803_v30 }
 0x1e4   : > { %404 = vst [vmem:[#allocation3 + $0x70] sm:$0x3] %v13803_v30  ;;  %405 = vst [vmem:[#allocation3 + $0x78] sm:$0xff] %v13803_v30 }
 0x1e5   : > { %406 = vst [vmem:[#allocation3 + $0x80] sm:$0xff] %v13803_v30  ;;  %407 = vst [vmem:[#allocation3 + $0x88] sm:$0x3] %v13803_v30  ;;  %12325 = vmatmul.mubr.msk.f32.gmra.mrb[8].mxu0 %vm538_vm1, %v13786_v13 }
 0x1e6   : > { %408 = vst [vmem:[#allocation3 + $0x90] sm:$0xff] %v13803_v30  ;;  %409 = vst [vmem:[#allocation3 + $0x98] sm:$0xff] %v13803_v30  ;;  %12327 = vmatprep.mubr.msk.f32.mxu0 %vm538_vm1, %v13787_v14 }
 0x1e7   : > { %410 = vst [vmem:[#allocation3 + $0xa0] sm:$0x3] %v13803_v30  ;;  %411 = vst [vmem:[#allocation3 + $0xa8] sm:$0xff] %v13803_v30 }
 0x1e8   : > { %412 = vst [vmem:[#allocation3 + $0xb0] sm:$0xff] %v13803_v30  ;;  %413 = vst [vmem:[#allocation3 + $0xb8] sm:$0x3] %v13803_v30 }
 0x1e9   : > { %414 = vst [vmem:[#allocation3 + $0xc0] sm:$0xff] %v13803_v30  ;;  %415 = vst [vmem:[#allocation3 + $0xc8] sm:$0xff] %v13803_v30  ;;  %12328 = vmatmul.mubr.msk.f32.gmra.mrb[10].mxu0 %vm538_vm1, %v13788_v15 }
 0x1ea   : > { %416 = vst [vmem:[#allocation3 + $0xd0] sm:$0x3] %v13803_v30  ;;  %417 = vst [vmem:[#allocation3 + $0xd8] sm:$0xff] %v13803_v30  ;;  %12330 = vmatprep.mubr.msk.f32.mxu0 %vm538_vm1, %v13789_v52 }
 0x1eb   : > { %418 = vst [vmem:[#allocation3 + $0xe0] sm:$0xff] %v13803_v30  ;;  %419 = vst [vmem:[#allocation3 + $0xe8] sm:$0x3] %v13803_v30 }
 0x1ec   : > { %420 = vst [vmem:[#allocation3 + $0xf0] sm:$0xff] %v13803_v30  ;;  %421 = vst [vmem:[#allocation3 + $0xf8] sm:$0xff] %v13803_v30 }
 0x1ed   : > { %422 = vst [vmem:[#allocation3 + $0x100] sm:$0x3] %v13803_v30  ;;  %423 = vst [vmem:[#allocation3 + $0x108] sm:$0xff] %v13803_v30  ;;  %12331 = vmatmul.mubr.msk.f32.gmra.mrb[12].mxu0 %vm538_vm1, %v13790_v54 }
 0x1ee   : > { %424 = vst [vmem:[#allocation3 + $0x110] sm:$0xff] %v13803_v30  ;;  %425 = vst [vmem:[#allocation3 + $0x118] sm:$0x3] %v13803_v30  ;;  %12333 = vmatprep.mubr.msk.f32.mxu0 %vm538_vm1, %v13791_v1 }
 0x1ef   : > { %426 = vst [vmem:[#allocation3 + $0x120] sm:$0xff] %v13803_v30  ;;  %427 = vst [vmem:[#allocation3 + $0x128] sm:$0xff] %v13803_v30 }
 0x1f0   : > { %428 = vst [vmem:[#allocation3 + $0x130] sm:$0x3] %v13803_v30  ;;  %429 = vst [vmem:[#allocation3 + $0x138] sm:$0xff] %v13803_v30 }
 0x1f1   : > { %430 = vst [vmem:[#allocation3 + $0x140] sm:$0xff] %v13803_v30  ;;  %431 = vst [vmem:[#allocation3 + $0x148] sm:$0x3] %v13803_v30  ;;  %12334 = vmatmul.mubr.msk.f32.gmra.mrb[14].mxu0 %vm538_vm1, %v14137_v55  ;;  %v10387_v55 = vld [vmem:[%s13878_s18 + $0x199] sm:$0xff] }
 0x1f2   : > { %432 = vst [vmem:[#allocation3 + $0x150] sm:$0xff] %v13803_v30  ;;  %433 = vst [vmem:[#allocation3 + $0x158] sm:$0xff] %v13803_v30  ;;  %12336 = vmatprep.mubr.msk.f32.mxu0 %vm538_vm1, %v14142_v56  ;;  %v10388_v56 = vld [vmem:[%s13878_s18 + $0x1a1] sm:$0xff] }
 0x1f3   : > { %434 = vst [vmem:[#allocation3 + $0x160] sm:$0x3] %v13803_v30  ;;  %435 = vst [vmem:[#allocation3 + $0x168] sm:$0xff] %v13803_v30 }
 0x1f4   : > { %436 = vst [vmem:[#allocation3 + $0x170] sm:$0xff] %v13803_v30  ;;  %437 = vst [vmem:[#allocation3 + $0x178] sm:$0x3] %v13803_v30 }
 0x1f5   : > { %438 = vst [vmem:[#allocation3 + $0x180] sm:$0xff] %v13803_v30  ;;  %439 = vst [vmem:[#allocation3 + $0x188] sm:$0xff] %v13803_v30  ;;  %12337 = vmatmul.mubr.msk.f32.gmra.mrb[16].mxu0 %vm538_vm1, %v14147_v57  ;;  %v10453_v57 = vld [vmem:[%s13878_s18 + $0x19a] sm:$0xff] }
 0x1f6   : > { %440 = vst [vmem:[#allocation3 + $0x190] sm:$0x3] %v13803_v30  ;;  %441 = vst [vmem:[#allocation3 + $0x198] sm:$0xff] %v13803_v30  ;;  %12339 = vmatprep.mubr.msk.f32.mxu0 %vm538_vm1, %v14152_v58  ;;  %v10454_v58 = vld [vmem:[%s13878_s18 + $0x1a2] sm:$0xff]  ;;  %s10702_s18 = sshll.u32 %s18016_s10, 8 }
 0x1f7   : > { %442 = vst [vmem:[#allocation3 + $0x1a0] sm:$0xff] %v13803_v30  ;;  %443 = vst [vmem:[#allocation3 + $0x1a8] sm:$0x3] %v13803_v30  ;;  %s17743_s24 = scalar_lea.vmem %s17822_s9, %s10702_s18 }
 0x1f8   : > { %444 = vst.msk [vmem:[#allocation4] sm:$0xff] %vm334_vm2, %v13803_v30  ;;  %445 = vst.msk [vmem:[#allocation4 + $0x8] sm:$0xff] %vm334_vm2, %v13803_v30 }
 0x1f9   : > { %446 = vst.msk [vmem:[#allocation4 + $0x10] sm:$0x3] %vm337_vm3, %v13803_v30  ;;  %449 = vst.msk [vmem:[#allocation4 + $0x28] sm:$0x3] %vm337_vm3, %v13803_v30  ;;  %12340 = vmatmul.mubr.msk.f32.gmra.mrb[18].mxu0 %vm538_vm1, %v14157_v59  ;;  %v13485_v59 = vld [vmem:[%s17816_s3 + $0x40] sm:$0xff]  }
 0x1fa   : > { %447 = vst.msk [vmem:[#allocation4 + $0x18] sm:$0xff] %vm334_vm2, %v13803_v30  ;;  %448 = vst.msk [vmem:[#allocation4 + $0x20] sm:$0xff] %vm334_vm2, %v13803_v30  ;;  %12342 = vmatprep.mubr.msk.f32.mxu0 %vm538_vm1, %v14162_v60  ;;  %v13486_v60 = vld [vmem:[%s17816_s3] sm:$0xff]   ;;  %11000 = vmatprep.subr.bf16.mxu1 %v13485_v59 }
 0x1fb   : > { %450 = vst.msk [vmem:[#allocation4 + $0x30] sm:$0xff] %vm334_vm2, %v13803_v30  ;;  %451 = vst.msk [vmem:[#allocation4 + $0x38] sm:$0xff] %vm334_vm2, %v13803_v30  ;;  %11001 = vmatpush3.bf16.msra.mxu1 %v13486_v60 }
 0x1fc   : > { %452 = vst.msk [vmem:[#allocation4 + $0x40] sm:$0x3] %vm337_vm3, %v13803_v30  ;;  %455 = vst.msk [vmem:[#allocation4 + $0x58] sm:$0x3] %vm337_vm3, %v13803_v30 }
 0x1fd   : > { %453 = vst.msk [vmem:[#allocation4 + $0x48] sm:$0xff] %vm334_vm2, %v13803_v30  ;;  %454 = vst.msk [vmem:[#allocation4 + $0x50] sm:$0xff] %vm334_vm2, %v13803_v30  ;;  %12343 = vmatmul.mubr.msk.f32.gmra.mrb[20].mxu0 %vm538_vm1, %v14167_v61  ;;  %v13487_v61 = vld [vmem:[%s17816_s3 + $0x48] sm:$0xff]  }
 0x1fe   : > { %456 = vst.msk [vmem:[#allocation4 + $0x60] sm:$0xff] %vm334_vm2, %v13803_v30  ;;  %457 = vst.msk [vmem:[#allocation4 + $0x68] sm:$0xff] %vm334_vm2, %v13803_v30  ;;  %12345 = vmatprep.mubr.msk.f32.mxu0 %vm538_vm1, %v14172_v62  ;;  %v13488_v62 = vld [vmem:[%s17816_s3 + $0x8] sm:$0xff]   ;;  %11002 = vmatprep.subr.bf16.mxu1 %v13487_v61 }
 0x1ff   : > { %458 = vst.msk [vmem:[#allocation4 + $0x70] sm:$0x3] %vm337_vm3, %v13803_v30  ;;  %461 = vst.msk [vmem:[#allocation4 + $0x88] sm:$0x3] %vm337_vm3, %v13803_v30  ;;  %11003 = vmatpush3.bf16.msra.mxu1 %v13488_v62 }
 0x200   : > { %459 = vst.msk [vmem:[#allocation4 + $0x78] sm:$0xff] %vm334_vm2, %v13803_v30  ;;  %460 = vst.msk [vmem:[#allocation4 + $0x80] sm:$0xff] %vm334_vm2, %v13803_v30 }
 0x201   : > { %462 = vst.msk [vmem:[#allocation4 + $0x90] sm:$0xff] %vm334_vm2, %v13803_v30  ;;  %463 = vst.msk [vmem:[#allocation4 + $0x98] sm:$0xff] %vm334_vm2, %v13803_v30  ;;  %12346 = vmatmul.mubr.msk.f32.gmra.mrb[22].mxu0 %vm538_vm1, %v14177_v63  ;;  %v13489_v63 = vld [vmem:[%s17816_s3 + $0x50] sm:$0xff]  }
 0x202   : > { %464 = vst.msk [vmem:[#allocation4 + $0xa0] sm:$0x3] %vm337_vm3, %v13803_v30  ;;  %467 = vst.msk [vmem:[#allocation4 + $0xb8] sm:$0x3] %vm337_vm3, %v13803_v30  ;;  %12348 = vmatprep.mubr.msk.f32.mxu0 %vm538_vm1, %v14182_v0  ;;  %v13490_v0 = vld [vmem:[%s17816_s3 + $0x10] sm:$0xff]   ;;  %11004 = vmatprep.subr.bf16.mxu1 %v13489_v63 }
 0x203   : > { %465 = vst.msk [vmem:[#allocation4 + $0xa8] sm:$0xff] %vm334_vm2, %v13803_v30  ;;  %466 = vst.msk [vmem:[#allocation4 + $0xb0] sm:$0xff] %vm334_vm2, %v13803_v30  ;;  %11005 = vmatpush3.bf16.msra.mxu1 %v13490_v0 }
 0x204   : > { %468 = vst.msk [vmem:[#allocation4 + $0xc0] sm:$0xff] %vm334_vm2, %v13803_v30  ;;  %469 = vst.msk [vmem:[#allocation4 + $0xc8] sm:$0xff] %vm334_vm2, %v13803_v30 }
 0x205   : > { %470 = vst.msk [vmem:[#allocation4 + $0xd0] sm:$0x3] %vm337_vm3, %v13803_v30  ;;  %473 = vst.msk [vmem:[#allocation4 + $0xe8] sm:$0x3] %vm337_vm3, %v13803_v30  ;;  %12349 = vmatmul.mubr.msk.f32.gmra.mrb[24].mxu0 %vm538_vm1, %v17905_v8  ;;  %v13496_v8 = vld [vmem:[%s17816_s3 + $0x28] sm:$0xff]  }
 0x206   : > { %471 = vst.msk [vmem:[#allocation4 + $0xd8] sm:$0xff] %vm334_vm2, %v13803_v30  ;;  %472 = vst.msk [vmem:[#allocation4 + $0xe0] sm:$0xff] %vm334_vm2, %v13803_v30  ;;  %12351 = vmatprep.mubr.msk.f32.mxu0 %vm538_vm1, %v17906_v9  ;;  %v15105_v9 = vld [vmem:[%s17815_s2] ss:$0 sm:$0xff] }
 0x207   : > { %474 = vst.msk [vmem:[#allocation4 + $0xf0] sm:$0xff] %vm334_vm2, %v13803_v30  ;;  %475 = vst.msk [vmem:[#allocation4 + $0xf8] sm:$0xff] %vm334_vm2, %v13803_v30 }
 0x208   : > { %476 = vst.msk [vmem:[#allocation4 + $0x100] sm:$0x3] %vm337_vm3, %v13803_v30  ;;  %479 = vst.msk [vmem:[#allocation4 + $0x118] sm:$0x3] %vm337_vm3, %v13803_v30 }
 0x209   : > { %477 = vst.msk [vmem:[#allocation4 + $0x108] sm:$0xff] %vm334_vm2, %v13803_v30  ;;  %478 = vst.msk [vmem:[#allocation4 + $0x110] sm:$0xff] %vm334_vm2, %v13803_v30  ;;  %12352 = vmatmul.mubr.msk.f32.gmra.mrb[26].mxu0 %vm538_vm1, %v17907_v11 }
 0x20a   : > { %480 = vst.msk [vmem:[#allocation4 + $0x120] sm:$0xff] %vm334_vm2, %v13803_v30  ;;  %481 = vst.msk [vmem:[#allocation4 + $0x128] sm:$0xff] %vm334_vm2, %v13803_v30  ;;  %12354 = vmatprep.mubr.msk.f32.mxu0 %vm538_vm1, %v14508_v10 }
 0x20b   : > { %482 = vst.msk [vmem:[#allocation4 + $0x130] sm:$0x3] %vm337_vm3, %v13803_v30  ;;  %485 = vst.msk [vmem:[#allocation4 + $0x148] sm:$0x3] %vm337_vm3, %v13803_v30 }
 0x20c   : > { %483 = vst.msk [vmem:[#allocation4 + $0x138] sm:$0xff] %vm334_vm2, %v13803_v30  ;;  %484 = vst.msk [vmem:[#allocation4 + $0x140] sm:$0xff] %vm334_vm2, %v13803_v30 }
 0x20d   : > { %486 = vst.msk [vmem:[#allocation4 + $0x150] sm:$0xff] %vm334_vm2, %v13803_v30  ;;  %487 = vst.msk [vmem:[#allocation4 + $0x158] sm:$0xff] %vm334_vm2, %v13803_v30  ;;  %12355 = vmatmul.mubr.msk.f32.gmra.mrb[28].mxu0 %vm538_vm1, %v14515_v12 }
 0x20e   : > { %488 = vst.msk [vmem:[#allocation4 + $0x160] sm:$0x3] %vm337_vm3, %v13803_v30  ;;  %491 = vst.msk [vmem:[#allocation4 + $0x178] sm:$0x3] %vm337_vm3, %v13803_v30  ;;  %12357 = vmatprep.mubr.msk.f32.mxu0 %vm538_vm1, %v10387_v55 }
 0x20f   : > { %489 = vst.msk [vmem:[#allocation4 + $0x168] sm:$0xff] %vm334_vm2, %v13803_v30  ;;  %490 = vst.msk [vmem:[#allocation4 + $0x170] sm:$0xff] %vm334_vm2, %v13803_v30 }
 0x210   : > { %492 = vst.msk [vmem:[#allocation4 + $0x180] sm:$0xff] %vm334_vm2, %v13803_v30  ;;  %493 = vst.msk [vmem:[#allocation4 + $0x188] sm:$0xff] %vm334_vm2, %v13803_v30 }
 0x211   : > { %494 = vst.msk [vmem:[#allocation4 + $0x190] sm:$0x3] %vm337_vm3, %v13803_v30  ;;  %497 = vst.msk [vmem:[#allocation4 + $0x1a8] sm:$0x3] %vm337_vm3, %v13803_v30  ;;  %12358 = vmatmul.mubr.msk.f32.gmra.mrb[30].mxu0 %vm538_vm1, %v10388_v56 }
 0x212   : > { %495 = vst.msk [vmem:[#allocation4 + $0x198] sm:$0xff] %vm334_vm2, %v13803_v30  ;;  %496 = vst.msk [vmem:[#allocation4 + $0x1a0] sm:$0xff] %vm334_vm2, %v13803_v30  ;;  %12362 = vmatprep.mubr.msk.f32.mxu0 %vm538_vm1, %v17910_v16 }
 0x215   : > { %12363 = vmatmul.mubr.msk.f32.vlgmr.msra.gmra.mrb[0].mxu0 %vm538_vm1, %v17911_v17 }
 0x216   : > { %12365 = vmatprep.mubr.msk.f32.mxu0 %vm538_vm1, %v17912_v18  ;;  %v13497_v18 = vld [vmem:[%s17816_s3 + $0x70] sm:$0xff]  }
 0x219   : > { %12366 = vmatmul.mubr.msk.f32.gmra.mrb[2].mxu0 %vm538_vm1, %v17913_v19  ;;  %v13498_v19 = vld [vmem:[%s17816_s3 + $0x30] sm:$0xff]  }
 0x21a   : > { %12368 = vmatprep.mubr.msk.f32.mxu0 %vm538_vm1, %v17914_v20 }
 0x21d   : > { %12369 = vmatmul.mubr.msk.f32.gmra.mrb[4].mxu0 %vm538_vm1, %v17915_v21 }
 0x21e   : > { %12371 = vmatprep.mubr.msk.f32.mxu0 %vm538_vm1, %v17916_v22 }
 0x221   : > { %12372 = vmatmul.mubr.msk.f32.gmra.mrb[6].mxu0 %vm538_vm1, %v17917_v23 }
 0x222   : > { %12374 = vmatprep.mubr.msk.f32.mxu0 %vm538_vm1, %v17918_v24 }
 0x225   : > { %12375 = vmatmul.mubr.msk.f32.gmra.mrb[8].mxu0 %vm538_vm1, %v17919_v25 }
 0x226   : > { %12377 = vmatprep.mubr.msk.f32.mxu0 %vm538_vm1, %v17920_v26  ;;  %v13499_v26 = vld [vmem:[%s17816_s3 + $0x78] sm:$0xff]  }
 0x229   : > { %12378 = vmatmul.mubr.msk.f32.gmra.mrb[10].mxu0 %vm538_vm1, %v17921_v27  ;;  %v13500_v27 = vld [vmem:[%s17816_s3 + $0x38] sm:$0xff]  }
 0x22a   : > { %12380 = vmatprep.mubr.msk.f32.mxu0 %vm538_vm1, %v17922_v37 }
 0x22d   : > { %12381 = vmatmul.mubr.msk.f32.gmra.mrb[12].mxu0 %vm538_vm1, %v17923_v39 }
 0x22e   : > { %12383 = vmatprep.mubr.msk.f32.mxu0 %vm538_vm1, %v17924_v41 }
 0x231   : > { %12384 = vmatmul.mubr.msk.f32.gmra.mrb[14].mxu0 %vm538_vm1, %v17925_v42 }
 0x232   : > { %12386 = vmatprep.mubr.msk.f32.mxu0 %vm538_vm1, %v17926_v43 }
 0x235   : > { %12387 = vmatmul.mubr.msk.f32.gmra.mrb[16].mxu0 %vm538_vm1, %v17927_v44 }
 0x236   : > { %12389 = vmatprep.mubr.msk.f32.mxu0 %vm538_vm1, %v17928_v45  ;;  %v13501_v45 = vld [vmem:[%s17816_s3 + $0xc0] sm:$0xff]  }
 0x239   : > { %12390 = vmatmul.mubr.msk.f32.gmra.mrb[18].mxu0 %vm538_vm1, %v17929_v46 }
 0x23a   : > { %12392 = vmatprep.mubr.msk.f32.mxu0 %vm538_vm1, %v17930_v47 }
 0x23d   : > { %12393 = vmatmul.mubr.msk.f32.gmra.mrb[20].mxu0 %vm538_vm1, %v14334_v2  ;;  %v13491_v2 = vld [vmem:[%s17816_s3 + $0x58] sm:$0xff]  }
 0x23e   : > { %12395 = vmatprep.mubr.msk.f32.mxu0 %vm538_vm1, %v17931_v48  ;;  %11006 = vmatprep.subr.bf16.mxu1 %v13491_v2  ;;  %v4115_v48 = vld [vmem:[#allocation2 + $0x1] sm:$0xff] }
 0x23f   : > { %v12850_v33 = vpack.i.bf16 %v4116_v7, %v4115_v48 }
 0x241   : > { %12396 = vmatmul.mubr.msk.f32.gmra.mrb[22].mxu0 %vm538_vm1, %v14344_v5  ;;  %v13493_v5 = vld [vmem:[%s17816_s3 + $0x60] sm:$0xff]  }
 0x242   : > { %12398 = vmatprep.mubr.msk.f32.mxu0 %vm538_vm1, %v17932_v49 }
 0x245   : > { %12399 = vmatmul.mubr.msk.f32.gmra.mrb[24].mxu0 %vm538_vm1, %v14354_v38  ;;  %v13494_v38 = vld [vmem:[%s17816_s3 + $0x20] sm:$0xff]  }
 0x246   : > { %12401 = vmatprep.mubr.msk.f32.mxu0 %vm538_vm1, %v14357_v35  ;;  %v13495_v35 = vld [vmem:[%s17816_s3 + $0x68] sm:$0xff]  }
 0x249   : > { %12402 = vmatmul.mubr.msk.f32.gmra.mrb[26].mxu0 %vm538_vm1, %v14364_v36  ;;  %v13492_v36 = vld [vmem:[%s17816_s3 + $0x18] sm:$0xff]  }
 0x24a   : > { %12404 = vmatprep.mubr.msk.f32.mxu0 %vm538_vm1, %v14583_v50  ;;  %11007 = vmatpush3.bf16.msra.mxu1 %v13492_v36 }
 0x24b   : > { %11008 = vmatprep.subr.bf16.mxu1 %v13493_v5 }
 0x24d   : > { %12405 = vmatmul.mubr.msk.f32.gmra.mrb[28].mxu0 %vm538_vm1, %v14590_v51 }
 0x24e   : > { %12407 = vmatprep.mubr.msk.f32.mxu0 %vm538_vm1, %v10453_v57  ;;  %11009 = vmatpush3.bf16.msra.mxu1 %v13494_v38 }
 0x24f   : > { %11010 = vmatprep.subr.bf16.mxu1 %v13495_v35 }
 0x251   : > { %12408 = vmatmul.mubr.msk.f32.gmra.mrb[30].mxu0 %vm538_vm1, %v10454_v58 }
 0x252   : > { %11011 = vmatpush3.bf16.msra.mxu1 %v13496_v8 }
 0x253   : > { %11012 = vmatprep.subr.bf16.mxu1 %v13497_v18 }
 0x256   : > { %11013 = vmatpush3.bf16.msra.mxu1 %v13498_v19 }
 0x257   : > { %11014 = vmatprep.subr.bf16.mxu1 %v13499_v26 }
 0x25a   : > { %11015 = vmatpush3.bf16.msra.mxu1 %v13500_v27 }
 0x25b   : > { %11112 = vmatprep.subr.bf16.mxu1 %v13501_v45 }
 0x2e8   : > { %v12364_v10 = vpop.f32.mrb[0].mxu0 }
 0x2e9   : > { %v12546_v11 = vadd.f32 %v12364_v10, %v15105_v9  ;;  %v3827_v12 = vpop.f32.mrb[1].mxu0 }
 0x2ea   : > { %v12547_v16 = vadd.f32 %v15105_v9, %v3827_v12 }
 0x2eb   : > { %v4019_v17 = vmax.f32 %v12546_v11, 0.0 }
 0x2ec   : > { %v4018_v20 = vmax.f32 %v12547_v16, 0.0  ;;  %v12367_v21 = vpop.f32.mrb[2].mxu0 }
 0x2ed   : > { %4052 = vst.msk [vmem:[#allocation2 + $0x21] sm:$0xff] %vm334_vm2, %v4019_v17  ;;  %v12548_v22 = vadd.f32 %v12367_v21, %v15105_v9  ;;  %v3837_v23 = vpop.f32.mrb[3].mxu0 }
 0x2ee   : > { %4051 = vst.msk [vmem:[#allocation2 + $0x19] sm:$0xff] %vm334_vm2, %v4018_v20  ;;  %v12549_v24 = vadd.f32 %v15105_v9, %v3837_v23 }
 0x2ef   : > { %v4021_v25 = vmax.f32 %v12548_v22, 0.0 }
 0x2f0   : > { %v4020_v37 = vmax.f32 %v12549_v24, 0.0  ;;  %v12370_v39 = vpop.f32.mrb[4].mxu0 }
 0x2f1   : > { %4054 = vst.msk [vmem:[#allocation2 + $0x39] sm:$0xff] %vm334_vm2, %v4021_v25  ;;  %v12550_v41 = vadd.f32 %v12370_v39, %v15105_v9  ;;  %v3847_v42 = vpop.f32.mrb[5].mxu0 }
 0x2f2   : > { %4053 = vst.msk [vmem:[#allocation2 + $0x31] sm:$0xff] %vm334_vm2, %v4020_v37  ;;  %v12551_v43 = vadd.f32 %v15105_v9, %v3847_v42 }
 0x2f3   : > { %v4023_v44 = vmax.f32 %v12550_v41, 0.0 }
 0x2f4   : > { %v4022_v46 = vmax.f32 %v12551_v43, 0.0  ;;  %v12373_v47 = vpop.f32.mrb[6].mxu0  ;;  %v4118_v52 = vld [vmem:[#allocation2 + $0x21] sm:$0xff] }
 0x2f5   : > { %4056 = vst.msk [vmem:[#allocation2 + $0x51] sm:$0xff] %vm334_vm2, %v4023_v44  ;;  %v12552_v49 = vadd.f32 %v12373_v47, %v15105_v9  ;;  %v3857_v50 = vpop.f32.mrb[7].mxu0  ;;  %v15134_v51 = vld [vmem:[#allocation2 + $0x18] sm:$0xff]  ;;  %v15136_v3 = vld [vmem:[#allocation2 + $0x20] sm:$0xff] }
 0x2f6   : > { %4055 = vst.msk [vmem:[#allocation2 + $0x49] sm:$0xff] %vm334_vm2, %v4022_v46  ;;  %v12553_v28 = vadd.f32 %v15105_v9, %v3857_v50  ;;  %v12845_v29 = vpack.i.bf16 %v15136_v3, %v15134_v51  ;;  %v4117_v15 = vld [vmem:[#allocation2 + $0x19] sm:$0xff] }
 0x2f7   : > { %v4025_v30 = vmax.f32 %v12552_v49, 0.0  ;;  %v12860_v60 = vpack.i.bf16 %v4118_v52, %v4117_v15 }
 0x2f8   : > { %v4024_v31 = vmax.f32 %v12553_v28, 0.0  ;;  %12846 = vrot.lane.b32.xlu0 %v12845_v29, %s13804_s12  ;;  %v12376_v32 = vpop.f32.mrb[8].mxu0  ;;  %v4120_v0 = vld [vmem:[#allocation2 + $0x39] sm:$0xff] }
 0x2f9   : > { %4058 = vst.msk [vmem:[#allocation2 + $0x69] sm:$0xff] %vm334_vm2, %v4025_v30  ;;  %v12554_v34 = vadd.f32 %v12376_v32, %v15105_v9  ;;  %v3867_v40 = vpop.f32.mrb[9].mxu0  ;;  %v15145_v4 = vld [vmem:[#allocation2 + $0x30] sm:$0xff]  ;;  %v15147_v6 = vld [vmem:[#allocation2 + $0x38] sm:$0xff] }
 0x2fa   : > { %4057 = vst.msk [vmem:[#allocation2 + $0x61] sm:$0xff] %vm334_vm2, %v4024_v31  ;;  %v12555_v53 = vadd.f32 %v15105_v9, %v3867_v40  ;;  %v12855_v13 = vpack.i.bf16 %v15147_v6, %v15145_v4  ;;  %v4119_v63 = vld [vmem:[#allocation2 + $0x31] sm:$0xff] }
 0x2fb   : > { %v4027_v14 = vmax.f32 %v12554_v34, 0.0  ;;  %v15175_v11 = vpack.i.bf16 %v4120_v0, %v4119_v63 }
 0x2fc   : > { %v4026_v54 = vmax.f32 %v12555_v53, 0.0  ;;  %12851 = vrot.lane.b32.xlu0 %v12850_v33, %s13804_s12  ;;  %12856 = vrot.lane.b32.xlu1 %v12855_v13, %s13804_s12  ;;  %v12379_v1 = vpop.f32.mrb[10].mxu0  ;;  %v4122_v18 = vld [vmem:[#allocation2 + $0x51] sm:$0xff] }
 0x2fd   : > { %4060 = vst.msk [vmem:[#allocation2 + $0x81] sm:$0xff] %vm334_vm2, %v4027_v14  ;;  %v12556_v55 = vadd.f32 %v12379_v1, %v15105_v9  ;;  %v3877_v56 = vpop.f32.mrb[11].mxu0  ;;  %v15157_v57 = vld [vmem:[#allocation2 + $0x48] sm:$0xff]  ;;  %v15159_v58 = vld [vmem:[#allocation2 + $0x50] sm:$0xff] }
 0x2fe   : > { %4059 = vst.msk [vmem:[#allocation2 + $0x79] sm:$0xff] %vm334_vm2, %v4026_v54  ;;  %v12557_v59 = vadd.f32 %v15105_v9, %v3877_v56  ;;  %v12865_v61 = vpack.i.bf16 %v15159_v58, %v15157_v57  ;;  %v4121_v17 = vld [vmem:[#allocation2 + $0x49] sm:$0xff] }
 0x2ff   : > { %v4029_v62 = vmax.f32 %v12556_v55, 0.0  ;;  %v15186_v26 = vpack.i.bf16 %v4122_v18, %v4121_v17 }
 0x300   : > { %v4028_v2 = vmax.f32 %v12557_v59, 0.0  ;;  %12861 = vrot.lane.b32.xlu1 %v12860_v60, %s13804_s12  ;;  %12866 = vrot.lane.b32.xlu0 %v12865_v61, %s13804_s12  ;;  %v12382_v36 = vpop.f32.mrb[12].mxu0  ;;  %v4124_v41 = vld [vmem:[#allocation2 + $0x69] sm:$0xff] }
 0x301   : > { %4062 = vst.msk [vmem:[#allocation2 + $0x99] sm:$0xff] %vm334_vm2, %v4029_v62  ;;  %v12558_v5 = vadd.f32 %v12382_v36, %v15105_v9  ;;  %v3887_v38 = vpop.f32.mrb[13].mxu0  ;;  %v15169_v35 = vld [vmem:[#allocation2 + $0x60] sm:$0xff]  ;;  %v15171_v8 = vld [vmem:[#allocation2 + $0x68] sm:$0xff] }
 0x302   : > { %4061 = vst.msk [vmem:[#allocation2 + $0x91] sm:$0xff] %vm334_vm2, %v4028_v2  ;;  %v12559_v10 = vadd.f32 %v15105_v9, %v3887_v38  ;;  %v12875_v12 = vpack.i.bf16 %v15171_v8, %v15169_v35  ;;  %v4123_v39 = vld [vmem:[#allocation2 + $0x61] sm:$0xff] }
 0x303   : > { %v4031_v16 = vmax.f32 %v12558_v5, 0.0  ;;  %v15195_v49 = vpack.i.bf16 %v4124_v41, %v4123_v39 }
 0x304   : > { %v4030_v19 = vmax.f32 %v12559_v10, 0.0  ;;  %12871 = vrot.lane.b32.xlu1 %v15175_v11, %s13804_s12  ;;  %12876 = vrot.lane.b32.xlu0 %v12875_v12, %s13804_s12  ;;  %v12385_v20 = vpop.f32.mrb[14].mxu0  ;;  %v4126_v29 = vld [vmem:[#allocation2 + $0x81] sm:$0xff] }
 0x305   : > { %4064 = vst.msk [vmem:[#allocation2 + $0xb1] sm:$0xff] %vm334_vm2, %v4031_v16  ;;  %v12560_v21 = vadd.f32 %v12385_v20, %v15105_v9  ;;  %v3897_v22 = vpop.f32.mrb[15].mxu0  ;;  %v4187_v23 = vld [vmem:[#allocation2 + $0x78] sm:$0xff]  ;;  %v4188_v24 = vld [vmem:[#allocation2 + $0x80] sm:$0xff] }
 0x306   : > { %4063 = vst.msk [vmem:[#allocation2 + $0xa9] sm:$0xff] %vm334_vm2, %v4030_v19  ;;  %v12561_v25 = vadd.f32 %v15105_v9, %v3897_v22  ;;  %v12885_v27 = vpack.i.bf16 %v4188_v24, %v4187_v23  ;;  %v4125_v28 = vld [vmem:[#allocation2 + $0x79] sm:$0xff] }
 0x307   : > { %v4033_v37 = vmax.f32 %v12560_v21, 0.0  ;;  %v15204_v13 = vpack.i.bf16 %v4126_v29, %v4125_v28 }
 0x308   : > { %v4032_v42 = vmax.f32 %v12561_v25, 0.0  ;;  %12881 = vrot.lane.b32.xlu1 %v15186_v26, %s13804_s12  ;;  %12886 = vrot.lane.b32.xlu0 %v12885_v27, %s13804_s12  ;;  %v12388_v43 = vpop.f32.mrb[16].mxu0  ;;  %v4128_v54 = vld [vmem:[#allocation2 + $0x99] sm:$0xff] }
 0x309   : > { %4066 = vst.msk [vmem:[#allocation2 + $0xc9] sm:$0xff] %vm334_vm2, %v4033_v37  ;;  %v12562_v44 = vadd.f32 %v12388_v43, %v15105_v9  ;;  %v3907_v45 = vpop.f32.mrb[17].mxu0  ;;  %v4189_v46 = vld [vmem:[#allocation2 + $0x90] sm:$0xff]  ;;  %v4190_v47 = vld [vmem:[#allocation2 + $0x98] sm:$0xff] }
 0x30a   : > { %4065 = vst.msk [vmem:[#allocation2 + $0xc1] sm:$0xff] %vm334_vm2, %v4032_v42  ;;  %v12563_v48 = vadd.f32 %v15105_v9, %v3907_v45  ;;  %v12895_v50 = vpack.i.bf16 %v4190_v47, %v4189_v46  ;;  %v4127_v52 = vld [vmem:[#allocation2 + $0x91] sm:$0xff] }
 0x30b   : > { %v4035_v7 = vmax.f32 %v12562_v44, 0.0  ;;  %v15213_v63 = vpack.i.bf16 %v4128_v54, %v4127_v52 }
 0x30c   : > { %v4034_v30 = vmax.f32 %v12563_v48, 0.0  ;;  %12891 = vrot.lane.b32.xlu1 %v15195_v49, %s13804_s12  ;;  %12896 = vrot.lane.b32.xlu0 %v12895_v50, %s13804_s12  ;;  %v12391_v31 = vpop.f32.mrb[18].mxu0  ;;  %v4130_v5 = vld [vmem:[#allocation2 + $0xb1] sm:$0xff] }
 0x30d   : > { %4068 = vst.msk [vmem:[#allocation2 + $0xe1] sm:$0xff] %vm334_vm2, %v4035_v7  ;;  %v12564_v32 = vadd.f32 %v12391_v31, %v15105_v9  ;;  %v3917_v33 = vpop.f32.mrb[19].mxu0  ;;  %v4191_v34 = vld [vmem:[#allocation2 + $0xa8] sm:$0xff]  ;;  %v4192_v40 = vld [vmem:[#allocation2 + $0xb0] sm:$0xff] }
 0x30e   : > { %4067 = vst.msk [vmem:[#allocation2 + $0xd9] sm:$0xff] %vm334_vm2, %v4034_v30  ;;  %v12565_v53 = vadd.f32 %v15105_v9, %v3917_v33  ;;  %v12905_v14 = vpack.i.bf16 %v4192_v40, %v4191_v34  ;;  %v4129_v36 = vld [vmem:[#allocation2 + $0xa9] sm:$0xff] }
 0x30f   : > { %v4037_v15 = vmax.f32 %v12564_v32, 0.0  ;;  %v15222_v20 = vpack.i.bf16 %v4130_v5, %v4129_v36 }
 0x310   : > { %v4036_v1 = vmax.f32 %v12565_v53, 0.0  ;;  %12901 = vrot.lane.b32.xlu1 %v15204_v13, %s13804_s12  ;;  %12906 = vrot.lane.b32.xlu0 %v12905_v14, %s13804_s12  ;;  %v12394_v55 = vpop.f32.mrb[20].mxu0  ;;  %v4132_v24 = vld [vmem:[#allocation2 + $0xc9] sm:$0xff] }
 0x311   : > { %4070 = vst.msk [vmem:[#allocation2 + $0xf9] sm:$0xff] %vm334_vm2, %v4037_v15  ;;  %v12566_v56 = vadd.f32 %v12394_v55, %v15105_v9  ;;  %v3927_v59 = vpop.f32.mrb[21].mxu0  ;;  %v4193_v60 = vld [vmem:[#allocation2 + $0xc0] sm:$0xff]  ;;  %v4194_v61 = vld [vmem:[#allocation2 + $0xc8] sm:$0xff] }
 0x312   : > { %4069 = vst.msk [vmem:[#allocation2 + $0xf1] sm:$0xff] %vm334_vm2, %v4036_v1  ;;  %v12567_v62 = vadd.f32 %v15105_v9, %v3927_v59  ;;  %v12915_v0 = vpack.i.bf16 %v4194_v61, %v4193_v60  ;;  %v4131_v23 = vld [vmem:[#allocation2 + $0xc1] sm:$0xff] }
 0x313   : > { %v4039_v2 = vmax.f32 %v12566_v56, 0.0  ;;  %v15231_v44 = vpack.i.bf16 %v4132_v24, %v4131_v23 }
 0x314   : > { %v4038_v38 = vmax.f32 %v12567_v62, 0.0  ;;  %12911 = vrot.lane.b32.xlu1 %v15213_v63, %s13804_s12  ;;  %12916 = vrot.lane.b32.xlu0 %v12915_v0, %s13804_s12  ;;  %v12397_v10 = vpop.f32.mrb[22].mxu0  ;;  %v4134_v48 = vld [vmem:[#allocation2 + $0xe1] sm:$0xff] }
 0x315   : > { %4072 = vst.msk [vmem:[#allocation2 + $0x111] sm:$0xff] %vm334_vm2, %v4039_v2  ;;  %v12568_v12 = vadd.f32 %v12397_v10, %v15105_v9  ;;  %v3937_v16 = vpop.f32.mrb[23].mxu0  ;;  %v4195_v17 = vld [vmem:[#allocation2 + $0xd8] sm:$0xff]  ;;  %v4196_v18 = vld [vmem:[#allocation2 + $0xe0] sm:$0xff] }
 0x316   : > { %4071 = vst.msk [vmem:[#allocation2 + $0x109] sm:$0xff] %vm334_vm2, %v4038_v38  ;;  %v12569_v19 = vadd.f32 %v15105_v9, %v3937_v16  ;;  %v12925_v21 = vpack.i.bf16 %v4196_v18, %v4195_v17  ;;  %v4133_v47 = vld [vmem:[#allocation2 + $0xd9] sm:$0xff] }
 0x317   : > { %v4041_v22 = vmax.f32 %v12568_v12, 0.0  ;;  %v15240_v33 = vpack.i.bf16 %v4134_v48, %v4133_v47 }
 0x318   : > { %v4040_v25 = vmax.f32 %v12569_v19, 0.0  ;;  %12921 = vrot.lane.b32.xlu1 %v15222_v20, %s13804_s12  ;;  %12926 = vrot.lane.b32.xlu0 %v12925_v21, %s13804_s12  ;;  %v12400_v27 = vpop.f32.mrb[24].mxu0  ;;  %v4136_v14 = vld [vmem:[#allocation2 + $0xf9] sm:$0xff] }
 0x319   : > { %4074 = vst.msk [vmem:[#allocation2 + $0x129] sm:$0xff] %vm334_vm2, %v4041_v22  ;;  %v12570_v37 = vadd.f32 %v12400_v27, %v15105_v9  ;;  %v3947_v39 = vpop.f32.mrb[25].mxu0  ;;  %v4197_v41 = vld [vmem:[#allocation2 + $0xf0] sm:$0xff]  ;;  %v4198_v42 = vld [vmem:[#allocation2 + $0xf8] sm:$0xff] }
 0x31a   : > { %4073 = vst.msk [vmem:[#allocation2 + $0x121] sm:$0xff] %vm334_vm2, %v4040_v25  ;;  %v12571_v43 = vadd.f32 %v15105_v9, %v3947_v39  ;;  %v12935_v45 = vpack.i.bf16 %v4198_v42, %v4197_v41  ;;  %v4135_v53 = vld [vmem:[#allocation2 + $0xf1] sm:$0xff] }
 0x31b   : > { %v4043_v46 = vmax.f32 %v12570_v37, 0.0  ;;  %v15249_v60 = vpack.i.bf16 %v4136_v14, %v4135_v53  ;;  %v15292_v14 = vld [vmem:[#allocation2 + $0x32] sm:$0xff] }
 0x31c   : > { %v4042_v50 = vmax.f32 %v12571_v43, 0.0  ;;  %12931 = vrot.lane.b32.xlu1 %v15231_v44, %s13804_s12  ;;  %12936 = vrot.lane.b32.xlu0 %v12935_v45, %s13804_s12  ;;  %v12403_v7 = vpop.f32.mrb[26].mxu0  ;;  %v4138_v2 = vld [vmem:[#allocation2 + $0x111] sm:$0xff] }
 0x31d   : > { %4076 = vst.msk [vmem:[#allocation2 + $0x141] sm:$0xff] %vm334_vm2, %v4043_v46  ;;  %v12572_v28 = vadd.f32 %v12403_v7, %v15105_v9  ;;  %v3957_v29 = vpop.f32.mrb[27].mxu0  ;;  %v4199_v30 = vld [vmem:[#allocation2 + $0x108] sm:$0xff]  ;;  %v4200_v31 = vld [vmem:[#allocation2 + $0x110] sm:$0xff] }
 0x31e   : > { %4075 = vst.msk [vmem:[#allocation2 + $0x139] sm:$0xff] %vm334_vm2, %v4042_v50  ;;  %v12573_v32 = vadd.f32 %v15105_v9, %v3957_v29  ;;  %v12945_v34 = vpack.i.bf16 %v4200_v31, %v4199_v30  ;;  %v4137_v0 = vld [vmem:[#allocation2 + $0x109] sm:$0xff] }
 0x31f   : > { %v4045_v40 = vmax.f32 %v12572_v28, 0.0  ;;  %v15258_v18 = vpack.i.bf16 %v4138_v2, %v4137_v0  ;;  %v15330_v0 = vld [vmem:[#allocation2 + $0x9a] sm:$0xff]  ;;  %v15337_v2 = vld [vmem:[#allocation2 + $0xaa] sm:$0xff] }
 0x320   : > { %v4044_v15 = vmax.f32 %v12573_v32, 0.0  ;;  %12941 = vrot.lane.b32.xlu1 %v15240_v33, %s13804_s12  ;;  %12946 = vrot.lane.b32.xlu0 %v12945_v34, %s13804_s12  ;;  %v12406_v52 = vpop.f32.mrb[28].mxu0  ;;  %v4140_v23 = vld [vmem:[#allocation2 + $0x129] sm:$0xff]  ;;  %v15282_v34 = vld [vmem:[#allocation2 + $0x1a] sm:$0xff] }
 0x321   : > { %4078 = vst.msk [vmem:[#allocation2 + $0x159] sm:$0xff] %vm334_vm2, %v4045_v40  ;;  %v12574_v54 = vadd.f32 %v12406_v52, %v15105_v9  ;;  %v3967_v1 = vpop.f32.mrb[29].mxu0  ;;  %v4201_v55 = vld [vmem:[#allocation2 + $0x120] sm:$0xff]  ;;  %v4202_v56 = vld [vmem:[#allocation2 + $0x128] sm:$0xff] }
 0x322   : > { %4077 = vst.msk [vmem:[#allocation2 + $0x151] sm:$0xff] %vm334_vm2, %v4044_v15  ;;  %v12575_v59 = vadd.f32 %v15105_v9, %v3967_v1  ;;  %v12955_v61 = vpack.i.bf16 %v4202_v56, %v4201_v55  ;;  %v4139_v22 = vld [vmem:[#allocation2 + $0x121] sm:$0xff]  ;;  %v15303_v1 = vld [vmem:[#allocation2 + $0x52] sm:$0xff]  ;;  %v15312_v56 = vld [vmem:[#allocation2 + $0x6a] sm:$0xff] }
 0x323   : > { %v4047_v62 = vmax.f32 %v12574_v54, 0.0  ;;  %v15265_v37 = vpack.i.bf16 %v4140_v23, %v4139_v22  ;;  %v15284_v40 = vld [vmem:[#allocation2 + $0x22] sm:$0xff]  ;;  %v15294_v15 = vld [vmem:[#allocation2 + $0x3a] sm:$0xff]  ;;  %v15301_v54 = vld [vmem:[#allocation2 + $0x4a] sm:$0xff] }
 0x324   : > { %v4046_v36 = vmax.f32 %v12575_v59, 0.0  ;;  %12951 = vrot.lane.b32.xlu1 %v15249_v60, %s13804_s12  ;;  %12956 = vrot.lane.b32.xlu0 %v12955_v61, %s13804_s12  ;;  %v12409_v5 = vpop.f32.mrb[30].mxu0  ;;  %v4142_v41 = vld [vmem:[#allocation2 + $0x141] sm:$0xff]  ;;  %v13010_v53 = vpack.i.bf16 %v15284_v40, %v15282_v34  ;;  %v13020_v52 = vpack.i.bf16 %v15294_v15, %v15292_v14  ;;  %v15384_v23 = vld [vmem:[#allocation2 + $0x12a] sm:$0xff] }
 0x325   : > { %4080 = vst.msk [vmem:[#allocation2 + $0x171] sm:$0xff] %vm334_vm2, %v4047_v62  ;;  %v12576_v38 = vadd.f32 %v12409_v5, %v15105_v9  ;;  %v3977_v10 = vpop.f32.mrb[31].mxu0  ;;  %v4203_v12 = vld [vmem:[#allocation2 + $0x138] sm:$0xff]  ;;  %v4204_v16 = vld [vmem:[#allocation2 + $0x140] sm:$0xff] }
 0x326   : > { %4079 = vst.msk [vmem:[#allocation2 + $0x169] sm:$0xff] %vm334_vm2, %v4046_v36  ;;  %v12577_v17 = vadd.f32 %v15105_v9, %v3977_v10  ;;  %v12965_v19 = vpack.i.bf16 %v4204_v16, %v4203_v12  ;;  %v4141_v39 = vld [vmem:[#allocation2 + $0x139] sm:$0xff]  ;;  %v15310_v55 = vld [vmem:[#allocation2 + $0x62] sm:$0xff] }
 0x327   : > { %v4049_v21 = vmax.f32 %v12576_v38, 0.0  ;;  %v15270_v45 = vpack.i.bf16 %v4142_v41, %v4141_v39  ;;  %v15319_v59 = vld [vmem:[#allocation2 + $0x7a] sm:$0xff]  ;;  %v15321_v61 = vld [vmem:[#allocation2 + $0x82] sm:$0xff]  ;;  %v15328_v62 = vld [vmem:[#allocation2 + $0x92] sm:$0xff] }
 0x328   : > { %v4048_v24 = vmax.f32 %v12577_v17, 0.0  ;;  %12961 = vrot.lane.b32.xlu1 %v15258_v18, %s13804_s12  ;;  %12966 = vrot.lane.b32.xlu0 %v12965_v19, %s13804_s12  ;;  %v4144_v48 = vld [vmem:[#allocation2 + $0x159] sm:$0xff]  ;;  %v15346_v5 = vld [vmem:[#allocation2 + $0xc2] sm:$0xff]  ;;  %v15348_v38 = vld [vmem:[#allocation2 + $0xca] sm:$0xff] }
 0x329   : > { %4082 = vst.msk [vmem:[#allocation2 + $0x189] sm:$0xff] %vm334_vm2, %v4049_v21  ;;  %v4205_v25 = vld [vmem:[#allocation2 + $0x150] sm:$0xff]  ;;  %v4206_v27 = vld [vmem:[#allocation2 + $0x158] sm:$0xff]  ;;  %v15357_v12 = vld [vmem:[#allocation2 + $0xe2] sm:$0xff] }
 0x32a   : > { %4081 = vst.msk [vmem:[#allocation2 + $0x181] sm:$0xff] %vm334_vm2, %v4048_v24  ;;  %v12975_v9 = vpack.i.bf16 %v4206_v27, %v4205_v25  ;;  %v4143_v47 = vld [vmem:[#allocation2 + $0x151] sm:$0xff]  ;;  %v15355_v10 = vld [vmem:[#allocation2 + $0xda] sm:$0xff]  ;;  %v15382_v22 = vld [vmem:[#allocation2 + $0x122] sm:$0xff] }
 0x32b   : > { %v15275_v28 = vpack.i.bf16 %v4144_v48, %v4143_v47  ;;  %v15339_v36 = vld [vmem:[#allocation2 + $0xb2] sm:$0xff]  ;;  %v15366_v17 = vld [vmem:[#allocation2 + $0xfa] sm:$0xff]  ;;  %v15373_v19 = vld [vmem:[#allocation2 + $0x10a] sm:$0xff] }
 0x32c   : > { %12971 = vrot.lane.b32.xlu1 %v15265_v37, %s13804_s12  ;;  %12976 = vrot.lane.b32.xlu0 %v12975_v9, %s13804_s12  ;;  %v4146_v31 = vld [vmem:[#allocation2 + $0x171] sm:$0xff]  ;;  %v15391_v24 = vld [vmem:[#allocation2 + $0x13a] sm:$0xff]  ;;  %v15393_v25 = vld [vmem:[#allocation2 + $0x142] sm:$0xff] }
 0x32d   : > { %v4207_v42 = vld [vmem:[#allocation2 + $0x168] sm:$0xff]  ;;  %v4208_v43 = vld [vmem:[#allocation2 + $0x170] sm:$0xff]  ;;  %v15400_v41 = vld [vmem:[#allocation2 + $0x15a] sm:$0xff] }
 0x32e   : > { %v12985_v46 = vpack.i.bf16 %v4208_v43, %v4207_v42  ;;  %v4145_v30 = vld [vmem:[#allocation2 + $0x169] sm:$0xff]  ;;  %v15364_v16 = vld [vmem:[#allocation2 + $0xf2] sm:$0xff] }
 0x32f   : > { %v15280_v32 = vpack.i.bf16 %v4146_v31, %v4145_v30  ;;  %v15375_v21 = vld [vmem:[#allocation2 + $0x112] sm:$0xff]  ;;  %v4147_v9 = vld [vmem:[#allocation2 + $0x2] sm:$0xff]  ;;  %v4148_v39 = vld [vmem:[#allocation2 + $0xa] sm:$0xff] }
 0x330   : > { %12981 = vrot.lane.b32.xlu1 %v15270_v45, %s13804_s12  ;;  %12986 = vrot.lane.b32.xlu0 %v12985_v46, %s13804_s12  ;;  %v4337_v47 = vld [vmem:[#allocation2 + $0x189] sm:$0xff] }
 0x331   : > { %v4209_v50 = vld [vmem:[#allocation2 + $0x180] sm:$0xff]  ;;  %v4210_v7 = vld [vmem:[#allocation2 + $0x188] sm:$0xff] }
 0x332   : > { %v12995_v29 = vpack.i.bf16 %v4210_v7, %v4209_v50  ;;  %v4336_v46 = vld [vmem:[#allocation2 + $0x181] sm:$0xff] }
 0x333   : > { %v13145_v31 = vpack.i.bf16 %v4337_v47, %v4336_v46  ;;  %v13503_v47 = vld [vmem:[%s17816_s3 + $0xc8] sm:$0xff]  }
 0x334   : > { %12991 = vrot.lane.b32.xlu1 %v15275_v28, %s13804_s12  ;;  %12996 = vrot.lane.b32.xlu0 %v12995_v29, %s13804_s12 }
 0x338   : > { %13001 = vrot.lane.b32.xlu1 %v15280_v32, %s13804_s12  ;;  %13006 = vrot.lane.b32.xlu0 %v15175_v11, %s13804_s12  ;;  %v13030_v11 = vpack.i.bf16 %v15303_v1, %v15301_v54 }
 0x33c   : > { %13011 = vrot.lane.b32.xlu1 %v13010_v53, %s13804_s12  ;;  %13016 = vrot.lane.b32.xlu0 %v15186_v26, %s13804_s12  ;;  %v13040_v26 = vpack.i.bf16 %v15312_v56, %v15310_v55  ;;  %v4083_v53 = vld [vmem:[#allocation2] sm:$0xff] }
 0x340   : > { %13021 = vrot.lane.b32.xlu1 %v13020_v52, %s13804_s12  ;;  %13026 = vrot.lane.b32.xlu0 %v15195_v49, %s13804_s12  ;;  %v13050_v49 = vpack.i.bf16 %v15321_v61, %v15319_v59  ;;  %v4084_v52 = vld [vmem:[#allocation2 + $0x8] sm:$0xff] }
 0x344   : > { %13031 = vrot.lane.b32.xlu1 %v13030_v11, %s13804_s12  ;;  %13036 = vrot.lane.b32.xlu0 %v15204_v13, %s13804_s12  ;;  %v13060_v13 = vpack.i.bf16 %v15330_v0, %v15328_v62  ;;  %v15411_v11 = vld [vmem:[#allocation2 + $0x172] sm:$0xff] }
 0x348   : > { %13041 = vrot.lane.b32.xlu1 %v13040_v26, %s13804_s12  ;;  %13046 = vrot.lane.b32.xlu0 %v15213_v63, %s13804_s12  ;;  %v13070_v63 = vpack.i.bf16 %v15339_v36, %v15337_v2 }
 0x34c   : > { %13051 = vrot.lane.b32.xlu1 %v13050_v49, %s13804_s12  ;;  %13056 = vrot.lane.b32.xlu0 %v15222_v20, %s13804_s12  ;;  %v13080_v20 = vpack.i.bf16 %v15348_v38, %v15346_v5 }
 0x350   : > { %13061 = vrot.lane.b32.xlu1 %v13060_v13, %s13804_s12  ;;  %13066 = vrot.lane.b32.xlu0 %v15231_v44, %s13804_s12  ;;  %v13090_v44 = vpack.i.bf16 %v15357_v12, %v15355_v10 }
 0x354   : > { %13071 = vrot.lane.b32.xlu1 %v13070_v63, %s13804_s12  ;;  %13076 = vrot.lane.b32.xlu0 %v15240_v33, %s13804_s12  ;;  %v13100_v33 = vpack.i.bf16 %v15366_v17, %v15364_v16 }
 0x358   : > { %13081 = vrot.lane.b32.xlu1 %v13080_v20, %s13804_s12  ;;  %13086 = vrot.lane.b32.xlu0 %v15249_v60, %s13804_s12  ;;  %v13110_v60 = vpack.i.bf16 %v15375_v21, %v15373_v19  ;;  %v4338_v20 = vld [vmem:[#allocation2 + $0x199] sm:$0xff] }
 0x35c   : > { %13091 = vrot.lane.b32.xlu1 %v13090_v44, %s13804_s12  ;;  %13096 = vrot.lane.b32.xlu0 %v15258_v18, %s13804_s12  ;;  %v13120_v18 = vpack.i.bf16 %v15384_v23, %v15382_v22  ;;  %v4339_v44 = vld [vmem:[#allocation2 + $0x1a1] sm:$0xff] }
 0x360   : > { %13101 = vrot.lane.b32.xlu1 %v13100_v33, %s13804_s12  ;;  %13106 = vrot.lane.b32.xlu0 %v15265_v37, %s13804_s12  ;;  %v13130_v37 = vpack.i.bf16 %v15393_v25, %v15391_v24 }
 0x364   : > { %13111 = vrot.lane.b32.xlu1 %v13110_v60, %s13804_s12  ;;  %13116 = vrot.lane.b32.xlu0 %v15270_v45, %s13804_s12  ;;  %v15402_v45 = vld [vmem:[#allocation2 + $0x152] sm:$0xff] }
 0x365   : > { %v13140_v30 = vpack.i.bf16 %v15400_v41, %v15402_v45 }
 0x368   : > { %13121 = vrot.lane.b32.xlu1 %v13120_v18, %s13804_s12  ;;  %13126 = vrot.lane.b32.xlu0 %v15275_v28, %s13804_s12  ;;  %v13502_v18 = vld [vmem:[%s17816_s3 + $0x80] sm:$0xff]  }
 0x36a   : > { %v12847_v27 = vpop.permute.xlu0 %12846 }
 0x36b   : > { %v12849_v42 = vunpack.i.h.bf16 %v12847_v27  ;;  %v12848_v43 = vunpack.i.l.bf16 %v12847_v27 }
 0x36c   : > { %13131 = vrot.lane.b32.xlu1 %v13130_v37, %s13804_s12  ;;  %13136 = vrot.lane.b32.xlu0 %v15280_v32, %s13804_s12  ;;  %v15413_v32 = vld [vmem:[#allocation2 + $0x16a] sm:$0xff] }
 0x36d   : > { %v4916_v48 = vsel %vm334_vm2, %v4147_v9, %v12848_v43  ;;  %v4917_v50 = vsel %vm334_vm2, %v4148_v39, %v12849_v42  ;;  %v13150_v43 = vpack.i.bf16 %v15411_v11, %v15413_v32 }
 0x36e   : > { %v12852_v7 = vpop.permute.xlu0 %12851  ;;  %v12857_v28 = vpop.permute.xlu1 %12856  ;;  %v5013_v29 = vpack.c.bf16 %v4917_v50, %v4916_v48  ;;  %v13155_v48 = vpack.i.bf16 %v4339_v44, %v4338_v20 }
 0x36f   : > { %v12854_v26 = vunpack.i.h.bf16 %v12852_v7  ;;  %v12853_v49 = vunpack.i.l.bf16 %v12852_v7  ;;  %v12859_v13 = vunpack.i.h.bf16 %v12857_v28  ;;  %v12858_v63 = vunpack.i.l.bf16 %v12857_v28  ;;  %v4273_v28 = vld [vmem:[#allocation2 + $0x182] sm:$0xff] }
 0x370   : > { %5467 = vmatprep.mubr.bf16.mxu1 %v5013_v29  ;;  %13141 = vrot.lane.b32.xlu1 %v13140_v30, %s13804_s12  ;;  %v4274_v29 = vld [vmem:[#allocation2 + $0x18a] sm:$0xff] }
 0x371   : > { %13146 = vrot.lane.b32.xlu0 %v13145_v31, %s13804_s12  ;;  %v4884_v33 = vsel %vm334_vm2, %v4083_v53, %v12853_v49  ;;  %v4885_v60 = vsel %vm334_vm2, %v4084_v52, %v12854_v26  ;;  %v4918_v27 = vsel %vm334_vm2, %v15282_v34, %v12858_v63  ;;  %v4919_v37 = vsel %vm334_vm2, %v15284_v40, %v12859_v13  ;;  %v13504_v40 = vld [vmem:[%s17816_s3 + $0x88] sm:$0xff]   ;;  %v13505_v52 = vld [vmem:[%s17816_s3 + $0xd0] sm:$0xff]  }
 0x372   : > { %v12862_v9 = vpop.permute.xlu1 %12861  ;;  %v12867_v39 = vpop.permute.xlu0 %12866  ;;  %v5012_v42 = vpack.c.bf16 %v4885_v60, %v4884_v33  ;;  %v5018_v46 = vpack.c.bf16 %v4919_v37, %v4918_v27  ;;  %v13160_v53 = vpack.i.bf16 %v4274_v29, %v4273_v28 }
 0x373   : > { %v12864_v50 = vunpack.i.h.bf16 %v12862_v9  ;;  %v12863_v7 = vunpack.i.l.bf16 %v12862_v9  ;;  %v12869_v34 = vunpack.i.h.bf16 %v12867_v39  ;;  %v12868_v30 = vunpack.i.l.bf16 %v12867_v39 }
 0x374   : > { %5468 = vmatmul.mubr.bf16.vlgmr.msra.gmra.mrb[0].mxu1 %v5012_v42  ;;  %13151 = vrot.lane.b32.xlu1 %v13150_v43, %s13804_s12 }
 0x375   : > { %11113 = vmatpush3.bf16.msra.mxu1 %v13502_v18  ;;  %5475 = vmatprep.mubr.bf16.mxu1 %v5018_v46  ;;  %v4886_v13 = vsel %vm334_vm2, %v15134_v51, %v12863_v7  ;;  %v4887_v63 = vsel %vm334_vm2, %v15136_v3, %v12864_v50  ;;  %v4920_v44 = vsel %vm334_vm2, %v15292_v14, %v12868_v30  ;;  %v13506_v3 = vld [vmem:[%s17816_s3 + $0x90] sm:$0xff]   ;;  %v13509_v46 = vld [vmem:[%s17816_s3 + $0xe0] sm:$0xff]  }
 0x376   : > { %v12877_v31 = vpop.permute.xlu0 %12876  ;;  %11114 = vmatprep.subr.bf16.mxu1 %v13503_v47  ;;  %13156 = vrot.lane.b32.xlu0 %v13155_v48, %s13804_s12  ;;  %v12872_v20 = vpop.permute.xlu1 %12871  ;;  %v4921_v33 = vsel %vm334_vm2, %v15294_v15, %v12869_v34  ;;  %v5017_v27 = vpack.c.bf16 %v4887_v63, %v4886_v13  ;;  %v13507_v15 = vld [vmem:[%s17816_s3 + $0xd8] sm:$0xff]   ;;  %v13510_v7 = vld [vmem:[%s17816_s3 + $0xa0] sm:$0xff]  }
 0x377   : > { %v12879_v26 = vunpack.i.h.bf16 %v12877_v31  ;;  %v12878_v49 = vunpack.i.l.bf16 %v12877_v31  ;;  %v12874_v9 = vunpack.i.h.bf16 %v12872_v20  ;;  %v12873_v14 = vunpack.i.l.bf16 %v12872_v20 }
 0x378   : > { %13161 = vrot.lane.b32.xlu1 %v13160_v53, %s13804_s12  ;;  %v5023_v39 = vpack.c.bf16 %v4921_v33, %v4920_v44 }
 0x379   : > { %11115 = vmatpush3.bf16.msra.mxu1 %v13504_v40  ;;  %v4922_v60 = vsel %vm334_vm2, %v15301_v54, %v12878_v49  ;;  %v4923_v18 = vsel %vm334_vm2, %v15303_v1, %v12879_v26  ;;  %v13508_v1 = vld [vmem:[%s17816_s3 + $0x98] sm:$0xff]   ;;  %v4888_v42 = vsel %vm334_vm2, %v15145_v4, %v12873_v14  ;;  %v4889_v43 = vsel %vm334_vm2, %v15147_v6, %v12874_v9  ;;  %v13511_v4 = vld [vmem:[%s17816_s3 + $0xe8] sm:$0xff]  }
 0x37a   : > { %v12887_v51 = vpop.permute.xlu0 %12886  ;;  %v5028_v37 = vpack.c.bf16 %v4923_v18, %v4922_v60  ;;  %11116 = vmatprep.subr.bf16.mxu1 %v13505_v52  ;;  %v12882_v47 = vpop.permute.xlu1 %12881  ;;  %v5022_v50 = vpack.c.bf16 %v4889_v43, %v4888_v42  ;;  %v13512_v40 = vld [vmem:[%s17816_s3 + $0xa8] sm:$0xff]   ;;  %v13513_v52 = vld [vmem:[%s17816_s3 + $0xf0] sm:$0xff]   ;;  %v13515_v60 = vld [vmem:[%s17816_s3 + $0xf8] sm:$0xff]  }
 0x37b   : > { %v12884_v28 = vunpack.i.h.bf16 %v12882_v47  ;;  %v12883_v29 = vunpack.i.l.bf16 %v12882_v47  ;;  %v12889_v6 = vunpack.i.h.bf16 %v12887_v51  ;;  %v12888_v34 = vunpack.i.l.bf16 %v12887_v51  ;;  %v13516_v51 = vld [vmem:[%s17816_s3 + $0xb8] sm:$0xff]  }
 0x37c   : > { %5476 = vmatmul.mubr.bf16.gmra.mrb[4].mxu1 %v5017_v27 }
 0x37d   : > { %5483 = vmatprep.mubr.bf16.mxu1 %v5023_v39  ;;  %11117 = vmatpush3.bf16.msra.mxu1 %v13506_v3  ;;  %v4890_v31 = vsel %vm334_vm2, %v15157_v57, %v12883_v29  ;;  %v4891_v53 = vsel %vm334_vm2, %v15159_v58, %v12884_v28  ;;  %v4924_v49 = vsel %vm334_vm2, %v15310_v55, %v12888_v34  ;;  %v13514_v57 = vld [vmem:[%s17816_s3 + $0xb0] sm:$0xff]   ;;  %v15512_v3 = vld [vmem:[%s17816_s3 + $0x100] sm:$0xff]  }
 0x37e   : > { %v12897_v54 = vpop.permute.xlu0 %12896  ;;  %11118 = vmatprep.subr.bf16.mxu1 %v13507_v15  ;;  %v12892_v26 = vpop.permute.xlu1 %12891  ;;  %v4925_v13 = vsel %vm334_vm2, %v15312_v56, %v12889_v6  ;;  %v5027_v20 = vpack.c.bf16 %v4891_v53, %v4890_v31 }
 0x37f   : > { %v12894_v58 = vunpack.i.h.bf16 %v12892_v26  ;;  %v12893_v44 = vunpack.i.l.bf16 %v12892_v26  ;;  %v5033_v33 = vpack.c.bf16 %v4925_v13, %v4924_v49  ;;  %v12899_v55 = vunpack.i.h.bf16 %v12897_v54  ;;  %v15543_v26 = vld [vmem:[#allocation2 + $0x90] sm:$0xff] }
 0x380   : > { %v12898_v18 = vunpack.i.l.bf16 %v12897_v54 }
 0x381   : > { %11119 = vmatpush3.bf16.msra.mxu1 %v13508_v1  ;;  %v4892_v27 = vsel %vm334_vm2, %v15169_v35, %v12893_v44  ;;  %v4927_v39 = vsel %vm334_vm2, %v15321_v61, %v12899_v55  ;;  %v15527_v61 = vld [vmem:[#allocation2 + $0x80] sm:$0xff] }
 0x382   : > { %v15468_v48 = vpop.permute.xlu0 %12906  ;;  %11120 = vmatprep.subr.bf16.mxu1 %v13509_v46  ;;  %v12902_v9 = vpop.permute.xlu1 %12901  ;;  %v4926_v14 = vsel %vm334_vm2, %v15319_v59, %v12898_v18  ;;  %v15525_v59 = vld [vmem:[#allocation2 + $0x78] sm:$0xff] }
 0x383   : > { %v12904_v35 = vunpack.i.h.bf16 %v12902_v9  ;;  %v12903_v1 = vunpack.i.l.bf16 %v12902_v9  ;;  %v12909_v42 = vunpack.i.h.bf16 %v15468_v48  ;;  %v12908_v43 = vunpack.i.l.bf16 %v15468_v48 }
 0x384   : > { %5484 = vmatmul.mubr.bf16.gmra.mrb[8].mxu1 %v5022_v50 }
 0x385   : > { %5491 = vmatprep.mubr.bf16.mxu1 %v5028_v37  ;;  %11121 = vmatpush3.bf16.msra.mxu1 %v13510_v7  ;;  %v4893_v37 = vsel %vm334_vm2, %v15171_v8, %v12894_v58  ;;  %v5038_v8 = vpack.c.bf16 %v4927_v39, %v4926_v14  ;;  %v4894_v47 = vsel %vm334_vm2, %v15525_v59, %v12903_v1 }
 0x386   : > { %v15476_v30 = vpop.permute.xlu0 %12916  ;;  %11122 = vmatprep.subr.bf16.mxu1 %v13511_v4  ;;  %v5032_v54 = vpack.c.bf16 %v4893_v37, %v4892_v27  ;;  %v4895_v50 = vsel %vm334_vm2, %v15527_v61, %v12904_v35  ;;  %v12912_v7 = vpop.permute.xlu1 %12911  ;;  %v4928_v28 = vsel %vm334_vm2, %v15328_v62, %v12908_v43  ;;  %v4929_v48 = vsel %vm334_vm2, %v15330_v0, %v12909_v42  ;;  %v15545_v62 = vld [vmem:[#allocation2 + $0x98] sm:$0xff]  ;;  %v15561_v27 = vld [vmem:[#allocation2 + $0xa8] sm:$0xff] }
 0x387   : > { %v5037_v4 = vpack.c.bf16 %v4895_v50, %v4894_v47  ;;  %v12914_v6 = vunpack.i.h.bf16 %v12912_v7  ;;  %v12913_v34 = vunpack.i.l.bf16 %v12912_v7  ;;  %v12919_v31 = vunpack.i.h.bf16 %v15476_v30  ;;  %v15579_v50 = vld [vmem:[#allocation2 + $0xc0] sm:$0xff] }
 0x388   : > { %v12918_v53 = vunpack.i.l.bf16 %v15476_v30 }
 0x389   : > { %11123 = vmatpush3.bf16.msra.mxu1 %v13512_v40  ;;  %v5043_v40 = vpack.c.bf16 %v4929_v48, %v4928_v28  ;;  %v4896_v0 = vsel %vm334_vm2, %v15543_v26, %v12913_v34  ;;  %v4897_v49 = vsel %vm334_vm2, %v15545_v62, %v12914_v6  ;;  %v4931_v30 = vsel %vm334_vm2, %v15339_v36, %v12919_v31 }
 0x38a   : > { %v15492_v63 = vpop.permute.xlu0 %12926  ;;  %11124 = vmatprep.subr.bf16.mxu1 %v13513_v52  ;;  %v12922_v13 = vpop.permute.xlu1 %12921  ;;  %v5042_v58 = vpack.c.bf16 %v4897_v49, %v4896_v0  ;;  %v15595_v49 = vld [vmem:[#allocation2 + $0xd8] sm:$0xff] }
 0x38b   : > { %v12924_v44 = vunpack.i.h.bf16 %v12922_v13  ;;  %v12929_v55 = vunpack.i.h.bf16 %v15492_v63  ;;  %v12928_v18 = vunpack.i.l.bf16 %v15492_v63 }
 0x38c   : > { %5492 = vmatmul.mubr.bf16.gmra.mrb[12].mxu1 %v5027_v20  ;;  %v4930_v20 = vsel %vm334_vm2, %v15337_v2, %v12918_v53  ;;  %v15563_v2 = vld [vmem:[#allocation2 + $0xb0] sm:$0xff] }
 0x38d   : > { %5499 = vmatprep.mubr.bf16.mxu1 %v5033_v33  ;;  %11125 = vmatpush3.bf16.msra.mxu1 %v13514_v57  ;;  %v12923_v33 = vunpack.i.l.bf16 %v12922_v13  ;;  %v4899_v37 = vsel %vm334_vm2, %v15563_v2, %v12924_v44  ;;  %v4932_v14 = vsel %vm334_vm2, %v15346_v5, %v12928_v18  ;;  %v4933_v63 = vsel %vm334_vm2, %v15348_v38, %v12929_v55  ;;  %v15581_v5 = vld [vmem:[#allocation2 + $0xc8] sm:$0xff]  ;;  %v15597_v13 = vld [vmem:[#allocation2 + $0xe0] sm:$0xff] }
 0x38e   : > { %v15500_v56 = vpop.permute.xlu0 %12936  ;;  %11126 = vmatprep.subr.bf16.mxu1 %v13515_v60  ;;  %v5048_v60 = vpack.c.bf16 %v4931_v30, %v4930_v20  ;;  %v12932_v9 = vpop.permute.xlu1 %12931 }
 0x38f   : > { %v4898_v36 = vsel %vm334_vm2, %v15561_v27, %v12923_v33  ;;  %v12934_v35 = vunpack.i.h.bf16 %v12932_v9  ;;  %v12933_v1 = vunpack.i.l.bf16 %v12932_v9  ;;  %v12939_v42 = vunpack.i.h.bf16 %v15500_v56 }
 0x390   : > { %v12938_v43 = vunpack.i.l.bf16 %v15500_v56 }
 0x391   : > { %11127 = vmatpush3.bf16.msra.mxu1 %v13516_v51  ;;  %v4900_v38 = vsel %vm334_vm2, %v15579_v50, %v12933_v1  ;;  %v4901_v28 = vsel %vm334_vm2, %v15581_v5, %v12934_v35  ;;  %v4935_v56 = vsel %vm334_vm2, %v15357_v12, %v12939_v42  ;;  %v4104_v1 = vld [vmem:[#allocation2 + $0xf8] sm:$0xff] }
 0x392   : > { %v15518_v15 = vpop.permute.xlu0 %12946  ;;  %12410 = vmatprep.subr.bf16.mxu1 %v15512_v3  ;;  %v12942_v7 = vpop.permute.xlu1 %12941  ;;  %v4934_v48 = vsel %vm334_vm2, %v15355_v10, %v12938_v43 }
 0x393   : > { %v12943_v6 = vunpack.i.l.bf16 %v12942_v7  ;;  %v12949_v31 = vunpack.i.h.bf16 %v15518_v15  ;;  %v12948_v53 = vunpack.i.l.bf16 %v15518_v15  ;;  %v5058_v0 = vpack.c.bf16 %v4935_v56, %v4934_v48 }
 0x394   : > { %5500 = vmatmul.mubr.bf16.gmra.mrb[16].mxu1 %v5032_v54  ;;  %v5047_v54 = vpack.c.bf16 %v4899_v37, %v4898_v36 }
 0x395   : > { %5507 = vmatprep.mubr.bf16.mxu1 %v5038_v8  ;;  %v5053_v8 = vpack.c.bf16 %v4933_v63, %v4932_v14  ;;  %v4902_v12 = vsel %vm334_vm2, %v15595_v49, %v12943_v6  ;;  %v4936_v15 = vsel %vm334_vm2, %v15364_v16, %v12948_v53  ;;  %v4937_v33 = vsel %vm334_vm2, %v15366_v17, %v12949_v31 }
 0x396   : > { %v15523_v46 = vpop.permute.xlu0 %12956  ;;  %v12952_v30 = vpop.permute.xlu1 %12951  ;;  %v5063_v14 = vpack.c.bf16 %v4937_v33, %v4936_v15 }
 0x397   : > { %v12954_v36 = vunpack.i.h.bf16 %v12952_v30  ;;  %v12953_v37 = vunpack.i.l.bf16 %v12952_v30  ;;  %v12959_v16 = vunpack.i.h.bf16 %v15523_v46  ;;  %v12958_v17 = vunpack.i.l.bf16 %v15523_v46  ;;  %v4106_v30 = vld [vmem:[#allocation2 + $0x110] sm:$0xff] }
 0x399   : > { %v4938_v56 = vsel %vm334_vm2, %v15373_v19, %v12958_v17 }
 0x39a   : > { %v15537_v29 = vpop.permute.xlu0 %12966 }
 0x39b   : > { %v12969_v19 = vunpack.i.h.bf16 %v15537_v29 }
 0x39c   : > { %5508 = vmatmul.mubr.bf16.gmra.mrb[20].mxu1 %v5037_v4  ;;  %v12944_v4 = vunpack.i.h.bf16 %v12942_v7  ;;  %v4905_v7 = vsel %vm334_vm2, %v4104_v1, %v12954_v36 }
 0x39d   : > { %5515 = vmatprep.mubr.bf16.mxu1 %v5043_v40  ;;  %v5052_v40 = vpack.c.bf16 %v4901_v28, %v4900_v38  ;;  %v12962_v38 = vpop.permute.xlu1 %12961 }
 0x39e   : > { %v15541_v52 = vpop.permute.xlu0 %12976  ;;  %v4903_v20 = vsel %vm334_vm2, %v15597_v13, %v12944_v4  ;;  %v12963_v31 = vunpack.i.l.bf16 %v12962_v38 }
 0x3a2   : > { %v15555_v57 = vpop.permute.xlu0 %12986 }
 0x3a4   : > { %5516 = vmatmul.mubr.bf16.gmra.mrb[24].mxu1 %v5042_v58 }
 0x3a5   : > { %5523 = vmatprep.mubr.bf16.mxu1 %v5048_v60  ;;  %v5057_v60 = vpack.c.bf16 %v4903_v20, %v4902_v12 }
 0x3a6   : > { %v15559_v51 = vpop.permute.xlu0 %12996 }
 0x3aa   : > { %v15573_v39 = vpop.permute.xlu0 %13006 }
 0x3ac   : > { %5524 = vmatmul.mubr.bf16.gmra.mrb[28].mxu1 %v5047_v54 }
 0x3ad   : > { %5531 = vmatprep.mubr.bf16.mxu1 %v5053_v8 }
 0x3ae   : > { %v15577_v47 = vpop.permute.xlu0 %13016 }
 0x3b2   : > { %v15591_v34 = vpop.permute.xlu0 %13026 }
 0x3b4   : > { %5532 = vmatmul.mubr.bf16.gmra.mrb[32].mxu1 %v5052_v40  ;;  %v12964_v40 = vunpack.i.h.bf16 %v12962_v38 }
 0x3b5   : > { %5539 = vmatprep.mubr.bf16.mxu1 %v5058_v0 }
 0x3b6   : > { %v13037_v10 = vpop.permute.xlu0 %13036  ;;  %v4907_v33 = vsel %vm334_vm2, %v4106_v30, %v12964_v40 }
 0x3b7   : > { %v13039_v58 = vunpack.i.h.bf16 %v13037_v10  ;;  %v13038_v44 = vunpack.i.l.bf16 %v13037_v10 }
 0x3b9   : > { %v15609_v55 = vsel %vm334_vm2, %v15525_v59, %v13038_v44  ;;  %v15613_v18 = vsel %vm334_vm2, %v15527_v61, %v13039_v58  ;;  %v4103_v59 = vld [vmem:[#allocation2 + $0xf0] sm:$0xff] }
 0x3ba   : > { %v13047_v9 = vpop.permute.xlu0 %13046  ;;  %v5030_v63 = vpack.c.bf16 %v15613_v18, %v15609_v55  ;;  %v4904_v43 = vsel %vm334_vm2, %v4103_v59, %v12953_v37 }
 0x3bb   : > { %v13049_v54 = vunpack.i.h.bf16 %v13047_v9  ;;  %v13048_v35 = vunpack.i.l.bf16 %v13047_v9  ;;  %v5062_v4 = vpack.c.bf16 %v4905_v7, %v4904_v43 }
 0x3bc   : > { %5540 = vmatmul.mubr.bf16.gmra.mrb[36].mxu1 %v5057_v60  ;;  %v12972_v60 = vpop.permute.xlu1 %12971 }
 0x3bd   : > { %5547 = vmatprep.mubr.bf16.mxu1 %v5063_v14  ;;  %v15621_v61 = vsel %vm334_vm2, %v15543_v26, %v13048_v35  ;;  %v15625_v8 = vsel %vm334_vm2, %v15545_v62, %v13049_v54  ;;  %v4939_v26 = vsel %vm334_vm2, %v15375_v21, %v12959_v16  ;;  %v12968_v21 = vunpack.i.l.bf16 %v15537_v29 }
 0x3be   : > { %v13057_v42 = vpop.permute.xlu0 %13056  ;;  %v5035_v46 = vpack.c.bf16 %v15625_v8, %v15621_v61  ;;  %v5068_v0 = vpack.c.bf16 %v4939_v26, %v4938_v56  ;;  %v12974_v17 = vunpack.i.h.bf16 %v12972_v60  ;;  %v12973_v54 = vunpack.i.l.bf16 %v12972_v60 }
 0x3bf   : > { %v13059_v28 = vunpack.i.h.bf16 %v13057_v42  ;;  %v13058_v48 = vunpack.i.l.bf16 %v13057_v42  ;;  %v4940_v9 = vsel %vm334_vm2, %v15382_v22, %v12968_v21  ;;  %v12979_v22 = vunpack.i.h.bf16 %v15541_v52 }
 0x3c0   : > { %v12982_v40 = vpop.permute.xlu1 %12981  ;;  %v12989_v60 = vunpack.i.h.bf16 %v15555_v57 }
 0x3c1   : > { %v15637_v62 = vsel %vm334_vm2, %v15561_v27, %v13058_v48  ;;  %v15641_v6 = vsel %vm334_vm2, %v15563_v2, %v13059_v28  ;;  %v4105_v27 = vld [vmem:[#allocation2 + $0x108] sm:$0xff] }
 0x3c2   : > { %v13067_v53 = vpop.permute.xlu0 %13066  ;;  %v5040_v10 = vpack.c.bf16 %v15641_v6, %v15637_v62  ;;  %v4906_v15 = vsel %vm334_vm2, %v4105_v27, %v12963_v31  ;;  %v4108_v28 = vld [vmem:[#allocation2 + $0x128] sm:$0xff] }
 0x3c3   : > { %v13069_v12 = vunpack.i.h.bf16 %v13067_v53  ;;  %v13068_v20 = vunpack.i.l.bf16 %v13067_v53  ;;  %v5067_v14 = vpack.c.bf16 %v4907_v33, %v4906_v15 }
 0x3c4   : > { %5548 = vmatmul.mubr.bf16.gmra.mrb[40].mxu1 %v5062_v4  ;;  %v4909_v4 = vsel %vm334_vm2, %v4108_v28, %v12974_v17 }
 0x3c5   : > { %5555 = vmatprep.mubr.bf16.mxu1 %v5068_v0  ;;  %v15649_v2 = vsel %vm334_vm2, %v15579_v50, %v13068_v20  ;;  %v15653_v58 = vsel %vm334_vm2, %v15581_v5, %v13069_v12  ;;  %v4941_v50 = vsel %vm334_vm2, %v15384_v23, %v12969_v19  ;;  %v12978_v23 = vunpack.i.l.bf16 %v15541_v52 }
 0x3c6   : > { %v13077_v44 = vpop.permute.xlu0 %13076  ;;  %v5045_v29 = vpack.c.bf16 %v15653_v58, %v15649_v2  ;;  %v5073_v42 = vpack.c.bf16 %v4941_v50, %v4940_v9  ;;  %v12984_v12 = vunpack.i.h.bf16 %v12982_v40  ;;  %v12983_v20 = vunpack.i.l.bf16 %v12982_v40 }
 0x3c7   : > { %v13079_v36 = vunpack.i.h.bf16 %v13077_v44  ;;  %v13078_v37 = vunpack.i.l.bf16 %v13077_v44  ;;  %v4942_v0 = vsel %vm334_vm2, %v15391_v24, %v12978_v23  ;;  %v12988_v24 = vunpack.i.l.bf16 %v15555_v57  ;;  %v12992_v23 = vpop.permute.xlu1 %12991 }
 0x3c8   : > { %v12993_v40 = vunpack.i.l.bf16 %v12992_v23 }
 0x3c9   : > { %v15665_v5 = vsel %vm334_vm2, %v15595_v49, %v13078_v37  ;;  %v15669_v16 = vsel %vm334_vm2, %v15597_v13, %v13079_v36  ;;  %v4107_v49 = vld [vmem:[#allocation2 + $0x120] sm:$0xff] }
 0x3ca   : > { %v13087_v35 = vpop.permute.xlu0 %13086  ;;  %v5050_v43 = vpack.c.bf16 %v15669_v16, %v15665_v5  ;;  %v4908_v26 = vsel %vm334_vm2, %v4107_v49, %v12973_v54  ;;  %v4110_v37 = vld [vmem:[#allocation2 + $0x140] sm:$0xff] }
 0x3cb   : > { %v13089_v7 = vunpack.i.h.bf16 %v13087_v35  ;;  %v13088_v38 = vunpack.i.l.bf16 %v13087_v35  ;;  %v5072_v19 = vpack.c.bf16 %v4909_v4, %v4908_v26  ;;  %v4911_v17 = vsel %vm334_vm2, %v4110_v37, %v12984_v12 }
 0x3cc   : > { %5556 = vmatmul.mubr.bf16.gmra.mrb[44].mxu1 %v5067_v14  ;;  %v12994_v4 = vunpack.i.h.bf16 %v12992_v23 }
 0x3cd   : > { %5563 = vmatprep.mubr.bf16.mxu1 %v5073_v42  ;;  %v15676_v13 = vsel %vm334_vm2, %v4103_v59, %v13088_v38  ;;  %v15679_v48 = vsel %vm334_vm2, %v4104_v1, %v13089_v7  ;;  %v4943_v59 = vsel %vm334_vm2, %v15393_v25, %v12979_v22  ;;  %v4944_v42 = vsel %vm334_vm2, %v15402_v45, %v12988_v24 }
 0x3ce   : > { %v13097_v56 = vpop.permute.xlu0 %13096  ;;  %v5055_v52 = vpack.c.bf16 %v15679_v48, %v15676_v13  ;;  %v5078_v15 = vpack.c.bf16 %v4943_v59, %v4942_v0  ;;  %v4945_v22 = vsel %vm334_vm2, %v15400_v41, %v12989_v60  ;;  %v12998_v41 = vunpack.i.l.bf16 %v15559_v51  ;;  %v4111_v0 = vld [vmem:[#allocation2 + $0x150] sm:$0xff]  ;;  %v4112_v59 = vld [vmem:[#allocation2 + $0x158] sm:$0xff] }
 0x3cf   : > { %v13099_v31 = vunpack.i.h.bf16 %v13097_v56  ;;  %v13098_v53 = vunpack.i.l.bf16 %v13097_v56  ;;  %v5083_v56 = vpack.c.bf16 %v4945_v22, %v4944_v42  ;;  %v4912_v24 = vsel %vm334_vm2, %v4111_v0, %v12993_v40 }
 0x3d1   : > { %v15690_v1 = vsel %vm334_vm2, %v4105_v27, %v13098_v53  ;;  %v15693_v21 = vsel %vm334_vm2, %v4106_v30, %v13099_v31  ;;  %v4109_v27 = vld [vmem:[#allocation2 + $0x138] sm:$0xff]  ;;  %v12999_v53 = vunpack.i.h.bf16 %v15559_v51  ;;  %v4913_v51 = vsel %vm334_vm2, %v4112_v59, %v12994_v4 }
 0x3d2   : > { %v13107_v44 = vpop.permute.xlu0 %13106  ;;  %v5060_v33 = vpack.c.bf16 %v15693_v21, %v15690_v1  ;;  %v4910_v14 = vsel %vm334_vm2, %v4109_v27, %v12983_v20  ;;  %v4277_v4 = vld [vmem:[#allocation2 + $0x38] sm:$0xff] }
 0x3d3   : > { %v13109_v36 = vunpack.i.h.bf16 %v13107_v44  ;;  %v13108_v25 = vunpack.i.l.bf16 %v13107_v44 }
 0x3d4   : > { %5564 = vmatmul.mubr.bf16.gmra.mrb[48].mxu1 %v5072_v19 }
 0x3d5   : > { %5571 = vmatprep.mubr.bf16.mxu1 %v5078_v15  ;;  %v15700_v30 = vsel %vm334_vm2, %v4107_v49, %v13108_v25  ;;  %v15703_v9 = vsel %vm334_vm2, %v4108_v28, %v13109_v36  ;;  %v5077_v28 = vpack.c.bf16 %v4911_v17, %v4910_v14  ;;  %v13002_v36 = vpop.permute.xlu1 %13001  ;;  %v4946_v25 = vsel %vm334_vm2, %v15413_v32, %v12998_v41 }
 0x3d6   : > { %v13117_v50 = vpop.permute.xlu0 %13116  ;;  %v5065_v57 = vpack.c.bf16 %v15703_v9, %v15700_v30  ;;  %v13004_v42 = vunpack.i.h.bf16 %v13002_v36  ;;  %v13003_v22 = vunpack.i.l.bf16 %v13002_v36  ;;  %v13009_v32 = vunpack.i.h.bf16 %v15573_v39  ;;  %v4278_v36 = vld [vmem:[#allocation2 + $0x48] sm:$0xff] }
 0x3d7   : > { %v13119_v54 = vunpack.i.h.bf16 %v13117_v50  ;;  %v13118_v35 = vunpack.i.l.bf16 %v13117_v50  ;;  %v4114_v50 = vld [vmem:[#allocation2 + $0x170] sm:$0xff] }
 0x3d9   : > { %v15714_v7 = vsel %vm334_vm2, %v4109_v27, %v13118_v35  ;;  %v15717_v38 = vsel %vm334_vm2, %v4110_v37, %v13119_v54  ;;  %v4947_v27 = vsel %vm334_vm2, %v15411_v11, %v12999_v53  ;;  %v4113_v37 = vld [vmem:[#allocation2 + $0x168] sm:$0xff]  ;;  %v5082_v54 = vpack.c.bf16 %v4913_v51, %v4912_v24  ;;  %v13012_v40 = vpop.permute.xlu1 %13011 }
 0x3da   : > { %v13127_v49 = vpop.permute.xlu0 %13126  ;;  %v5070_v26 = vpack.c.bf16 %v15717_v38, %v15714_v7  ;;  %v5088_v23 = vpack.c.bf16 %v4947_v27, %v4946_v25  ;;  %v4914_v11 = vsel %vm334_vm2, %v4113_v37, %v13003_v22  ;;  %v13014_v41 = vunpack.i.h.bf16 %v13012_v40  ;;  %v4279_v25 = vld [vmem:[#allocation2 + $0x50] sm:$0xff]  ;;  %v4235_v7 = vld [vmem:[#allocation2 + $0x139] sm:$0xff]  ;;  %v4236_v38 = vld [vmem:[#allocation2 + $0x141] sm:$0xff] }
 0x3db   : > { %v13129_v31 = vunpack.i.h.bf16 %v13127_v49  ;;  %v13128_v45 = vunpack.i.l.bf16 %v13127_v49  ;;  %v13008_v49 = vunpack.i.l.bf16 %v15573_v39  ;;  %v13018_v39 = vunpack.i.l.bf16 %v15577_v47 }
 0x3dc   : > { %5572 = vmatmul.mubr.bf16.gmra.mrb[52].mxu1 %v5077_v28  ;;  %v4915_v28 = vsel %vm334_vm2, %v4114_v50, %v13004_v42 }
 0x3dd   : > { %5579 = vmatprep.mubr.bf16.mxu1 %v5083_v56  ;;  %v15724_v19 = vsel %vm334_vm2, %v4111_v0, %v13128_v45  ;;  %v15727_v12 = vsel %vm334_vm2, %v4112_v59, %v13129_v31  ;;  %v4276_v56 = vld [vmem:[#allocation2 + $0x30] sm:$0xff]  ;;  %v4981_v45 = vsel %vm334_vm2, %v4277_v4, %v13009_v32  ;;  %v5087_v53 = vpack.c.bf16 %v4915_v28, %v4914_v11  ;;  %v13022_v27 = vpop.permute.xlu1 %13021  ;;  %v4214_v28 = vld [vmem:[#allocation2 + $0x39] sm:$0xff] }
 0x3de   : > { %v13137_v20 = vpop.permute.xlu0 %13136  ;;  %v5075_v44 = vpack.c.bf16 %v15727_v12, %v15724_v19  ;;  %v4980_v31 = vsel %vm334_vm2, %v4276_v56, %v13008_v49  ;;  %v13013_v0 = vunpack.i.l.bf16 %v13012_v40  ;;  %v13024_v42 = vunpack.i.h.bf16 %v13022_v27  ;;  %v4213_v11 = vld [vmem:[#allocation2 + $0x31] sm:$0xff] }
 0x3df   : > { %v13139_v15 = vunpack.i.h.bf16 %v13137_v20  ;;  %v13138_v60 = vunpack.i.l.bf16 %v13137_v20  ;;  %v5015_v59 = vpack.c.bf16 %v4981_v45, %v4980_v31  ;;  %v13019_v20 = vunpack.i.h.bf16 %v15577_v47  ;;  %v13518_v47 = vld [vmem:[%s17816_s3 + $0x108] sm:$0xff]   ;;  %v13519_v56 = vld [vmem:[%s17816_s3 + $0x110] sm:$0xff]   ;;  %v4280_v31 = vld [vmem:[#allocation2 + $0x60] sm:$0xff] }
 0x3e0   : > { %v13023_v22 = vunpack.i.l.bf16 %v13022_v27  ;;  %v13029_v32 = vunpack.i.h.bf16 %v15591_v34  ;;  %v13028_v49 = vunpack.i.l.bf16 %v15591_v34  ;;  %v4951_v40 = vsel %vm334_vm2, %v4214_v28, %v13024_v42  ;;  %v4281_v45 = vld [vmem:[#allocation2 + $0x68] sm:$0xff] }
 0x3e1   : > { %v15738_v14 = vsel %vm334_vm2, %v4113_v37, %v13138_v60  ;;  %v15741_v17 = vsel %vm334_vm2, %v4114_v50, %v13139_v15  ;;  %v4211_v15 = vld [vmem:[#allocation2 + $0x19] sm:$0xff]  ;;  %v4212_v60 = vld [vmem:[#allocation2 + $0x21] sm:$0xff]  ;;  %v4982_v37 = vsel %vm334_vm2, %v4278_v36, %v13018_v39  ;;  %v4983_v50 = vsel %vm334_vm2, %v4279_v25, %v13019_v20 }
 0x3e2   : > { %v5080_v35 = vpack.c.bf16 %v15741_v17, %v15738_v14  ;;  %v4949_v24 = vsel %vm334_vm2, %v4212_v60, %v13014_v41  ;;  %v4948_v51 = vsel %vm334_vm2, %v4211_v15, %v13013_v0  ;;  %v4950_v4 = vsel %vm334_vm2, %v4213_v11, %v13023_v22  ;;  %v13520_v0 = vld [vmem:[%s17816_s3 + $0x118] sm:$0xff]   ;;  %v4215_v15 = vld [vmem:[#allocation2 + $0x49] sm:$0xff]  ;;  %v4220_v28 = vld [vmem:[#allocation2 + $0x81] sm:$0xff] }
 0x3e3   : > { %v4984_v34 = vsel %vm334_vm2, %v4280_v31, %v13028_v49  ;;  %v4985_v41 = vsel %vm334_vm2, %v4281_v45, %v13029_v32  ;;  %v4216_v60 = vld [vmem:[#allocation2 + $0x51] sm:$0xff]  ;;  %v4219_v11 = vld [vmem:[#allocation2 + $0x79] sm:$0xff] }
 0x3e4   : > { %5580 = vmatmul.mubr.bf16.gmra.mrb[56].mxu1 %v5082_v54  ;;  %v5014_v54 = vpack.c.bf16 %v4949_v24, %v4948_v51  ;;  %v5025_v39 = vpack.c.bf16 %v4985_v41, %v4984_v34  ;;  %v4221_v31 = vld [vmem:[#allocation2 + $0x91] sm:$0xff]  ;;  %v4222_v45 = vld [vmem:[#allocation2 + $0x99] sm:$0xff] }
 0x3e5   : > { %5587 = vmatprep.mubr.bf16.mxu1 %v5088_v23  ;;  %v5020_v23 = vpack.c.bf16 %v4983_v50, %v4982_v37  ;;  %v4217_v50 = vld [vmem:[#allocation2 + $0x61] sm:$0xff] }
 0x3ec   : > { %5588 = vmatmul.mubr.bf16.gmra.mrb[60].mxu1 %v5087_v53  ;;  %v13032_v53 = vpop.permute.xlu1 %13031 }
 0x3ed   : > { %5628 = vmatprep.mubr.bf16.mxu1 %v5015_v59  ;;  %v13034_v59 = vunpack.i.h.bf16 %v13032_v53  ;;  %v13033_v20 = vunpack.i.l.bf16 %v13032_v53 }
 0x3ef   : > { %v4952_v24 = vsel %vm334_vm2, %v4215_v15, %v13033_v20  ;;  %v4953_v51 = vsel %vm334_vm2, %v4216_v60, %v13034_v59  ;;  %v4225_v15 = vld [vmem:[#allocation2 + $0xc1] sm:$0xff]  ;;  %v4226_v60 = vld [vmem:[#allocation2 + $0xc9] sm:$0xff] }
 0x3f0   : > { %v13042_v36 = vpop.permute.xlu1 %13041  ;;  %v5024_v25 = vpack.c.bf16 %v4953_v51, %v4952_v24 }
 0x3f1   : > { %v13044_v27 = vunpack.i.h.bf16 %v13042_v36  ;;  %v13043_v37 = vunpack.i.l.bf16 %v13042_v36 }
 0x3f4   : > { %5629 = vmatmul.mubr.bf16.vlgmr.msra.gmra.mrb[64].mxu1 %v5014_v54  ;;  %v4218_v54 = vld [vmem:[#allocation2 + $0x69] sm:$0xff]  ;;  %v13052_v22 = vpop.permute.xlu1 %13051 }
 0x3f5   : > { %12411 = vmatpush3.bf16.msra.mxu1 %v15512_v3  ;;  %5636 = vmatprep.mubr.bf16.mxu1 %v5020_v23  ;;  %v5019_v3 = vpack.c.bf16 %v4951_v40, %v4950_v4  ;;  %v4955_v42 = vsel %vm334_vm2, %v4218_v54, %v13044_v27  ;;  %v13054_v32 = vunpack.i.h.bf16 %v13052_v22  ;;  %v13053_v49 = vunpack.i.l.bf16 %v13052_v22  ;;  %v4228_v27 = vld [vmem:[#allocation2 + $0xe1] sm:$0xff] }
 0x3f6   : > { %12412 = vmatprep.subr.bf16.mxu1 %v13518_v47 }
 0x3f7   : > { %v4956_v55 = vsel %vm334_vm2, %v4219_v11, %v13053_v49  ;;  %v4957_v18 = vsel %vm334_vm2, %v4220_v28, %v13054_v32  ;;  %v4231_v49 = vld [vmem:[#allocation2 + $0x109] sm:$0xff]  ;;  %v4232_v11 = vld [vmem:[#allocation2 + $0x111] sm:$0xff] }
 0x3f9   : > { %12413 = vmatpush3.bf16.msra.mxu1 %v13518_v47  ;;  %v4954_v47 = vsel %vm334_vm2, %v4217_v50, %v13043_v37 }
 0x3fa   : > { %12414 = vmatprep.subr.bf16.mxu1 %v13519_v56  ;;  %v5029_v23 = vpack.c.bf16 %v4955_v42, %v4954_v47  ;;  %v4229_v47 = vld [vmem:[#allocation2 + $0xf1] sm:$0xff]  ;;  %v4230_v42 = vld [vmem:[#allocation2 + $0xf9] sm:$0xff] }
 0x3fc   : > { %5637 = vmatmul.mubr.bf16.gmra.mrb[68].mxu1 %v5019_v3  ;;  %v4223_v3 = vld [vmem:[#allocation2 + $0xa9] sm:$0xff] }
 0x3fd   : > { %5644 = vmatprep.mubr.bf16.mxu1 %v5025_v39  ;;  %12415 = vmatpush3.bf16.msra.mxu1 %v13519_v56  ;;  %v5034_v56 = vpack.c.bf16 %v4957_v18, %v4956_v55 }
 0x3fe   : > { %12416 = vmatprep.subr.bf16.mxu1 %v13520_v0 }
 0x401   : > { %12417 = vmatpush3.bf16.msra.mxu1 %v13520_v0  ;;  %v4224_v0 = vld [vmem:[#allocation2 + $0xb1] sm:$0xff] }
 0x404   : > { %5645 = vmatmul.mubr.bf16.gmra.mrb[72].mxu1 %v5024_v25  ;;  %v4227_v25 = vld [vmem:[#allocation2 + $0xd9] sm:$0xff] }
 0x405   : > { %5652 = vmatprep.mubr.bf16.mxu1 %v5030_v63  ;;  %v13062_v63 = vpop.permute.xlu1 %13061 }
 0x406   : > { %v13064_v4 = vunpack.i.h.bf16 %v13062_v63  ;;  %v13063_v40 = vunpack.i.l.bf16 %v13062_v63  ;;  %v4233_v63 = vld [vmem:[#allocation2 + $0x121] sm:$0xff] }
 0x408   : > { %v4958_v61 = vsel %vm334_vm2, %v4221_v31, %v13063_v40  ;;  %v4959_v8 = vsel %vm334_vm2, %v4222_v45, %v13064_v4 }
 0x409   : > { %v5039_v53 = vpack.c.bf16 %v4959_v8, %v4958_v61 }
 0x40c   : > { %5653 = vmatmul.mubr.bf16.gmra.mrb[76].mxu1 %v5029_v23 }
 0x40d   : > { %5660 = vmatprep.mubr.bf16.mxu1 %v5035_v46  ;;  %v13072_v46 = vpop.permute.xlu1 %13071 }
 0x40e   : > { %v13074_v34 = vunpack.i.h.bf16 %v13072_v46  ;;  %v13073_v41 = vunpack.i.l.bf16 %v13072_v46 }
 0x410   : > { %v4960_v62 = vsel %vm334_vm2, %v4223_v3, %v13073_v41  ;;  %v4961_v6 = vsel %vm334_vm2, %v4224_v0, %v13074_v34 }
 0x411   : > { %v5044_v59 = vpack.c.bf16 %v4961_v6, %v4960_v62  ;;  %v13147_v6 = vpop.permute.xlu0 %13146 }
 0x412   : > { %v13149_v19 = vunpack.i.h.bf16 %v13147_v6  ;;  %v13148_v12 = vunpack.i.l.bf16 %v13147_v6 }
 0x414   : > { %5661 = vmatmul.mubr.bf16.gmra.mrb[80].mxu1 %v5034_v56  ;;  %v4234_v56 = vld [vmem:[#allocation2 + $0x129] sm:$0xff] }
 0x415   : > { %5668 = vmatprep.mubr.bf16.mxu1 %v5040_v10  ;;  %v13082_v10 = vpop.permute.xlu1 %13081 }
 0x416   : > { %v13084_v20 = vunpack.i.h.bf16 %v13082_v10  ;;  %v13083_v39 = vunpack.i.l.bf16 %v13082_v10 }
 0x418   : > { %v4962_v2 = vsel %vm334_vm2, %v4225_v15, %v13083_v39  ;;  %v4963_v58 = vsel %vm334_vm2, %v4226_v60, %v13084_v20 }
 0x419   : > { %v5049_v24 = vpack.c.bf16 %v4963_v58, %v4962_v2  ;;  %v4238_v58 = vld [vmem:[#allocation2 + $0x159] sm:$0xff] }
 0x41c   : > { %5669 = vmatmul.mubr.bf16.gmra.mrb[84].mxu1 %v5039_v53 }
 0x41d   : > { %5676 = vmatprep.mubr.bf16.mxu1 %v5045_v29  ;;  %v13092_v29 = vpop.permute.xlu1 %13091 }
 0x41e   : > { %v13094_v51 = vunpack.i.h.bf16 %v13092_v29  ;;  %v13093_v36 = vunpack.i.l.bf16 %v13092_v29 }
 0x420   : > { %v4964_v5 = vsel %vm334_vm2, %v4227_v25, %v13093_v36  ;;  %v4965_v16 = vsel %vm334_vm2, %v4228_v27, %v13094_v51  ;;  %v4304_v36 = vld [vmem:[#allocation2 + $0x180] sm:$0xff]  ;;  %v4305_v25 = vld [vmem:[#allocation2 + $0x188] sm:$0xff]  ;;  %v13157_v27 = vpop.permute.xlu0 %13156 }
 0x421   : > { %v5054_v37 = vpack.c.bf16 %v4965_v16, %v4964_v5 }
 0x424   : > { %5677 = vmatmul.mubr.bf16.gmra.mrb[88].mxu1 %v5044_v59 }
 0x425   : > { %5684 = vmatprep.mubr.bf16.mxu1 %v5050_v43  ;;  %v13102_v43 = vpop.permute.xlu1 %13101 }
 0x426   : > { %v13104_v50 = vunpack.i.h.bf16 %v13102_v43  ;;  %v13103_v54 = vunpack.i.l.bf16 %v13102_v43  ;;  %v5008_v43 = vsel %vm334_vm2, %v4304_v36, %v13148_v12  ;;  %v4344_v12 = vld [vmem:[#allocation2 + $0x62] sm:$0xff] }
 0x428   : > { %v4966_v13 = vsel %vm334_vm2, %v4229_v47, %v13103_v54  ;;  %v4967_v48 = vsel %vm334_vm2, %v4230_v42, %v13104_v50  ;;  %v13159_v54 = vunpack.i.h.bf16 %v13157_v27  ;;  %v13158_v47 = vunpack.i.l.bf16 %v13157_v27 }
 0x429   : > { %v5059_v22 = vpack.c.bf16 %v4967_v48, %v4966_v13 }
 0x42c   : > { %5685 = vmatmul.mubr.bf16.gmra.mrb[92].mxu1 %v5049_v24 }
 0x42d   : > { %5692 = vmatprep.mubr.bf16.mxu1 %v5055_v52  ;;  %v13112_v52 = vpop.permute.xlu1 %13111 }
 0x42e   : > { %v13114_v23 = vunpack.i.h.bf16 %v13112_v52  ;;  %v13113_v32 = vunpack.i.l.bf16 %v13112_v52 }
 0x430   : > { %v4968_v1 = vsel %vm334_vm2, %v4231_v49, %v13113_v32  ;;  %v4969_v21 = vsel %vm334_vm2, %v4232_v11, %v13114_v23  ;;  %v4307_v23 = vld [vmem:[#allocation2 + $0x1a0] sm:$0xff]  ;;  %v4239_v32 = vld [vmem:[#allocation2 + $0x169] sm:$0xff]  ;;  %v4240_v49 = vld [vmem:[#allocation2 + $0x171] sm:$0xff] }
 0x431   : > { %v5064_v28 = vpack.c.bf16 %v4969_v21, %v4968_v1  ;;  %v5011_v1 = vsel %vm334_vm2, %v4307_v23, %v13159_v54  ;;  %v4351_v23 = vld [vmem:[#allocation2 + $0xb2] sm:$0xff] }
 0x434   : > { %5693 = vmatmul.mubr.bf16.gmra.mrb[96].mxu1 %v5054_v37  ;;  %v5009_v37 = vsel %vm334_vm2, %v4305_v25, %v13149_v19 }
 0x435   : > { %5700 = vmatprep.mubr.bf16.mxu1 %v5060_v33  ;;  %v13122_v33 = vpop.permute.xlu1 %13121  ;;  %v5085_v52 = vpack.c.bf16 %v5009_v37, %v5008_v43  ;;  %v4348_v37 = vld [vmem:[#allocation2 + $0x92] sm:$0xff] }
 0x436   : > { %v13124_v55 = vunpack.i.h.bf16 %v13122_v33  ;;  %v13123_v18 = vunpack.i.l.bf16 %v13122_v33 }
 0x438   : > { %v4970_v30 = vsel %vm334_vm2, %v4233_v63, %v13123_v18  ;;  %v4971_v9 = vsel %vm334_vm2, %v4234_v56, %v13124_v55 }
 0x439   : > { %v5069_v8 = vpack.c.bf16 %v4971_v9, %v4970_v30 }
 0x43c   : > { %5701 = vmatmul.mubr.bf16.gmra.mrb[100].mxu1 %v5059_v22  ;;  %v4306_v22 = vld [vmem:[#allocation2 + $0x198] sm:$0xff] }
 0x43d   : > { %5708 = vmatprep.mubr.bf16.mxu1 %v5065_v57  ;;  %v13132_v57 = vpop.permute.xlu1 %13131  ;;  %v5010_v11 = vsel %vm334_vm2, %v4306_v22, %v13158_v47  ;;  %v4350_v22 = vld [vmem:[#allocation2 + $0xaa] sm:$0xff] }
 0x43e   : > { %v13134_v46 = vunpack.i.h.bf16 %v13132_v57  ;;  %v13133_v53 = vunpack.i.l.bf16 %v13132_v57 }
 0x440   : > { %v4972_v41 = vsel %vm334_vm2, %v4235_v7, %v13133_v53  ;;  %v4973_v3 = vsel %vm334_vm2, %v4236_v38, %v13134_v46 }
 0x441   : > { %v13142_v0 = vpop.permute.xlu1 %13141  ;;  %v5074_v39 = vpack.c.bf16 %v4973_v3, %v4972_v41  ;;  %v4341_v41 = vld [vmem:[#allocation2 + $0x3a] sm:$0xff] }
 0x442   : > { %v13144_v15 = vunpack.i.h.bf16 %v13142_v0  ;;  %v13143_v60 = vunpack.i.l.bf16 %v13142_v0 }
 0x444   : > { %5709 = vmatmul.mubr.bf16.gmra.mrb[104].mxu1 %v5064_v28  ;;  %v4975_v51 = vsel %vm334_vm2, %v4238_v58, %v13144_v15  ;;  %v4342_v15 = vld [vmem:[#allocation2 + $0x4a] sm:$0xff] }
 0x445   : > { %5716 = vmatprep.mubr.bf16.mxu1 %v5070_v26  ;;  %v13152_v5 = vpop.permute.xlu1 %13151 }
 0x446   : > { %v13154_v42 = vunpack.i.h.bf16 %v13152_v5  ;;  %v13153_v13 = vunpack.i.l.bf16 %v13152_v5  ;;  %v4346_v5 = vld [vmem:[#allocation2 + $0x7a] sm:$0xff] }
 0x447   : > { %v11016_v4 = vpop.f32.mrb[0].mxu1 }
 0x448   : > { %v11017_v40 = vpop.f32.mrb[1].mxu1  ;;  %v4976_v33 = vsel %vm334_vm2, %v4239_v32, %v13153_v13  ;;  %v4977_v28 = vsel %vm334_vm2, %v4240_v49, %v13154_v42  ;;  %v4352_v49 = vld [vmem:[#allocation2 + $0xc2] sm:$0xff] }
 0x449   : > { %v15820_v31 = vadd.f32 %v11017_v40, %v11016_v4  ;;  %v11019_v45 = vpop.f32.mrb[2].mxu1  ;;  %v13162_v55 = vpop.permute.xlu1 %13161  ;;  %v5090_v4 = vpack.c.bf16 %v5011_v1, %v5010_v11  ;;  %v5084_v9 = vpack.c.bf16 %v4977_v28, %v4976_v33  ;;  %v4353_v11 = vld [vmem:[#allocation2 + $0xca] sm:$0xff]  ;;  %v5041_v28 = vpack.c.bf16 %v4351_v23, %v4350_v22 }
 0x44a   : > { %v11020_v61 = vpop.f32.mrb[3].mxu1  ;;  %v13164_v57 = vunpack.i.h.bf16 %v13162_v55  ;;  %v13163_v40 = vunpack.i.l.bf16 %v13162_v55  ;;  %v13524_v22 = vld [vmem:[%s17818_s5 + $0x8] sm:$0xff]  }
 0x44b   : > { %v15822_v34 = vadd.f32 %v11020_v61, %v11019_v45  ;;  %v4241_v61 = vld [vmem:[#allocation2 + $0x181] sm:$0xff] }
 0x44c   : > { %5717 = vmatmul.mubr.bf16.gmra.mrb[108].mxu1 %v5069_v8  ;;  %v4242_v8 = vld [vmem:[#allocation2 + $0x189] sm:$0xff]  ;;  %v4978_v53 = vsel %vm334_vm2, %v4241_v61, %v13163_v40  ;;  %v4357_v40 = vld [vmem:[#allocation2 + $0xfa] sm:$0xff] }
 0x44d   : > { %5724 = vmatprep.mubr.bf16.mxu1 %v5075_v44  ;;  %v4237_v44 = vld [vmem:[#allocation2 + $0x151] sm:$0xff]  ;;  %v4979_v7 = vsel %vm334_vm2, %v4242_v8, %v13164_v57 }
 0x44e   : > { %v4974_v24 = vsel %vm334_vm2, %v4237_v44, %v13143_v60  ;;  %v5089_v6 = vpack.c.bf16 %v4979_v7, %v4978_v53  ;;  %v4343_v60 = vld [vmem:[#allocation2 + $0x52] sm:$0xff]  ;;  %v4345_v44 = vld [vmem:[#allocation2 + $0x6a] sm:$0xff] }
 0x44f   : > { %v11022_v26 = vpop.f32.mrb[4].mxu1  ;;  %v5026_v25 = vpack.c.bf16 %v4345_v44, %v4344_v12  ;;  %v4356_v57 = vld [vmem:[#allocation2 + $0xf2] sm:$0xff] }
 0x450   : > { %v11023_v62 = vpop.f32.mrb[5].mxu1 }
 0x451   : > { %v15829_v10 = vadd.f32 %v11023_v62, %v11022_v26  ;;  %v11025_v59 = vpop.f32.mrb[6].mxu1  ;;  %v4340_v26 = vld [vmem:[#allocation2 + $0x32] sm:$0xff] }
 0x452   : > { %v11026_v20 = vpop.f32.mrb[7].mxu1 }
 0x453   : > { %v15831_v2 = vadd.f32 %v11026_v20, %v11025_v59  ;;  %v5016_v20 = vpack.c.bf16 %v4341_v41, %v4340_v26  ;;  %v4358_v41 = vld [vmem:[#allocation2 + $0x10a] sm:$0xff] }
 0x454   : > { %5725 = vmatmul.mubr.bf16.gmra.mrb[112].mxu1 %v5074_v39 }
 0x455   : > { %5732 = vmatprep.mubr.bf16.mxu1 %v5080_v35  ;;  %v5079_v35 = vpack.c.bf16 %v4975_v51, %v4974_v24  ;;  %v5021_v51 = vpack.c.bf16 %v4343_v60, %v4342_v15  ;;  %v13521_v60 = vld [vmem:[%s17818_s5 + $0x40] sm:$0xff]  }
 0x456   : > { %11244 = vmatprep.subr.bf16.mxu1 %v13521_v60 }
 0x457   : > { %v11028_v29 = vpop.f32.mrb[8].mxu1 }
 0x458   : > { %v11029_v16 = vpop.f32.mrb[9].mxu1 }
 0x459   : > { %v15840_v50 = vadd.f32 %v11029_v16, %v11028_v29  ;;  %v11031_v14 = vpop.f32.mrb[10].mxu1  ;;  %v4347_v16 = vld [vmem:[#allocation2 + $0x82] sm:$0xff] }
 0x45a   : > { %v11032_v17 = vpop.f32.mrb[11].mxu1  ;;  %v5031_v47 = vpack.c.bf16 %v4347_v16, %v4346_v5  ;;  %v4364_v16 = vld [vmem:[#allocation2 + $0x152] sm:$0xff] }
 0x45b   : > { %v15842_v48 = vadd.f32 %v11032_v17, %v11031_v14  ;;  %v4349_v14 = vld [vmem:[#allocation2 + $0x9a] sm:$0xff] }
 0x45c   : > { %5733 = vmatmul.mubr.bf16.gmra.mrb[116].mxu1 %v5079_v35  ;;  %v5036_v13 = vpack.c.bf16 %v4349_v14, %v4348_v37 }
 0x45d   : > { %5740 = vmatprep.mubr.bf16.mxu1 %v5085_v52 }
 0x45f   : > { %v11034_v21 = vpop.f32.mrb[12].mxu1 }
 0x460   : > { %v11035_v18 = vpop.f32.mrb[13].mxu1 }
 0x461   : > { %v15848_v63 = vadd.f32 %v11035_v18, %v11034_v21  ;;  %v11037_v56 = vpop.f32.mrb[14].mxu1  ;;  %v5046_v18 = vpack.c.bf16 %v4353_v11, %v4352_v49  ;;  %v4367_v49 = vld [vmem:[#allocation2 + $0x172] sm:$0xff] }
 0x462   : > { %v11038_v30 = vpop.f32.mrb[15].mxu1 }
 0x463   : > { %v15850_v45 = vadd.f32 %v11038_v30, %v11037_v56  ;;  %v4355_v30 = vld [vmem:[#allocation2 + $0xe2] sm:$0xff] }
 0x464   : > { %5741 = vmatmul.mubr.bf16.gmra.mrb[120].mxu1 %v5084_v9 }
 0x465   : > { %5748 = vmatprep.mubr.bf16.mxu1 %v5090_v4  ;;  %v4354_v4 = vld [vmem:[#allocation2 + $0xda] sm:$0xff] }
 0x466   : > { %v5051_v53 = vpack.c.bf16 %v4355_v30, %v4354_v4 }
 0x467   : > { %v11040_v46 = vpop.f32.mrb[16].mxu1 }
 0x468   : > { %v11041_v38 = vpop.f32.mrb[17].mxu1 }
 0x469   : > { %v15854_v3 = vadd.f32 %v11041_v38, %v11040_v46  ;;  %v11043_v0 = vpop.f32.mrb[18].mxu1  ;;  %v5056_v38 = vpack.c.bf16 %v4357_v40, %v4356_v57  ;;  %v13526_v40 = vld [vmem:[%s17818_s5 + $0x10] sm:$0xff]  }
 0x46a   : > { %v11044_v62 = vpop.f32.mrb[19].mxu1 }
 0x46b   : > { %v15856_v59 = vadd.f32 %v11044_v62, %v11043_v0  ;;  %v4359_v0 = vld [vmem:[#allocation2 + $0x112] sm:$0xff] }
 0x46c   : > { %5749 = vmatmul.mubr.bf16.gmra.mrb[124].mxu1 %v5089_v6  ;;  %v4360_v6 = vld [vmem:[#allocation2 + $0x122] sm:$0xff]  ;;  %v5061_v12 = vpack.c.bf16 %v4359_v0, %v4358_v41 }
 0x46d   : > { %12418 = vmatprep.mubr.msk.bf16.mxu1 %vm334_vm2, %v5016_v20  ;;  %v4361_v20 = vld [vmem:[#allocation2 + $0x12a] sm:$0xff] }
 0x46f   : > { %v11046_v39 = vpop.f32.mrb[20].mxu1 }
 0x470   : > { %v11047_v19 = vpop.f32.mrb[21].mxu1 }
 0x471   : > { %v15859_v58 = vadd.f32 %v11047_v19, %v11046_v39  ;;  %v11049_v29 = vpop.f32.mrb[22].mxu1 }
 0x472   : > { %v11050_v24 = vpop.f32.mrb[23].mxu1 }
 0x473   : > { %v15861_v36 = vadd.f32 %v11050_v24, %v11049_v29  ;;  %v5066_v29 = vpack.c.bf16 %v4361_v20, %v4360_v6  ;;  %v13522_v24 = vld [vmem:[%s17818_s5] sm:$0xff]  }
 0x474   : > { %12419 = vmatmul.mubr.msk.bf16.vlgmr.msra.gmra.mrb[128].mxu1 %vm334_vm2, %v5021_v51 }
 0x475   : > { %12422 = vmatprep.mubr.msk.bf16.mxu1 %vm334_vm2, %v5026_v25  ;;  %11245 = vmatpush3.bf16.msra.mxu1 %v13522_v24  ;;  %v4362_v25 = vld [vmem:[#allocation2 + $0x13a] sm:$0xff] }
 0x476   : > { %v13529_v24 = vld [vmem:[%s17818_s5 + $0x60] sm:$0xff]  }
 0x477   : > { %v11052_v27 = vpop.f32.mrb[24].mxu1 }
 0x478   : > { %v11053_v43 = vpop.f32.mrb[25].mxu1 }
 0x479   : > { %v15865_v17 = vadd.f32 %v11053_v43, %v11052_v27  ;;  %v11055_v35 = vpop.f32.mrb[26].mxu1  ;;  %v4363_v27 = vld [vmem:[#allocation2 + $0x142] sm:$0xff]  ;;  %v4365_v43 = vld [vmem:[#allocation2 + $0x15a] sm:$0xff] }
 0x47a   : > { %v11056_v54 = vpop.f32.mrb[27].mxu1 }
 0x47b   : > { %v15867_v42 = vadd.f32 %v11056_v54, %v11055_v35  ;;  %v13523_v35 = vld [vmem:[%s17818_s5 + $0x48] sm:$0xff]  }
 0x47c   : > { %12423 = vmatmul.mubr.msk.bf16.gmra.mrb[132].mxu1 %vm334_vm2, %v5031_v47  ;;  %v5071_v47 = vpack.c.bf16 %v4363_v27, %v4362_v25  ;;  %11246 = vmatprep.subr.bf16.mxu1 %v13523_v35  ;;  %v13530_v27 = vld [vmem:[%s17818_s5 + $0x20] sm:$0xff]   ;;  %v13531_v35 = vld [vmem:[%s17818_s5 + $0x68] sm:$0xff]  }
 0x47d   : > { %12426 = vmatprep.mubr.msk.bf16.mxu1 %vm334_vm2, %v5036_v13  ;;  %11247 = vmatpush3.bf16.msra.mxu1 %v13524_v22  ;;  %v13533_v22 = vld [vmem:[%s17818_s5 + $0x140] sm:$0xff]  }
 0x47e   : > { %11468 = vmatprep.subr.bf16.mxu0 %v13533_v22 }
 0x47f   : > { %v11058_v52 = vpop.f32.mrb[28].mxu1 }
 0x480   : > { %v11059_v32 = vpop.f32.mrb[29].mxu1 }
 0x481   : > { %v15871_v1 = vadd.f32 %v11059_v32, %v11058_v52  ;;  %v11061_v21 = vpop.f32.mrb[30].mxu1  ;;  %v5076_v52 = vpack.c.bf16 %v4365_v43, %v4364_v16  ;;  %v4366_v32 = vld [vmem:[#allocation2 + $0x16a] sm:$0xff] }
 0x482   : > { %v11062_v33 = vpop.f32.mrb[31].mxu1  ;;  %v5081_v30 = vpack.c.bf16 %v4367_v49, %v4366_v32  ;;  %v13535_v32 = vld [vmem:[%s17818_s5 + $0x148] sm:$0xff]  }
 0x483   : > { %v15873_v55 = vadd.f32 %v11062_v33, %v11061_v21  ;;  %v4368_v21 = vld [vmem:[#allocation2 + $0x182] sm:$0xff]  ;;  %v4369_v33 = vld [vmem:[#allocation2 + $0x18a] sm:$0xff] }
 0x484   : > { %12427 = vmatmul.mubr.msk.bf16.gmra.mrb[136].mxu1 %vm334_vm2, %v5041_v28  ;;  %v5086_v57 = vpack.c.bf16 %v4369_v33, %v4368_v21 }
 0x485   : > { %12430 = vmatprep.mubr.msk.bf16.mxu1 %vm334_vm2, %v5046_v18 }
 0x487   : > { %v11064_v56 = vpop.f32.mrb[32].mxu1 }
 0x488   : > { %v11065_v9 = vpop.f32.mrb[33].mxu1 }
 0x489   : > { %v15877_v61 = vadd.f32 %v11065_v9, %v11064_v56  ;;  %v11067_v8 = vpop.f32.mrb[34].mxu1  ;;  %v13525_v56 = vld [vmem:[%s17818_s5 + $0x50] sm:$0xff]  }
 0x48a   : > { %v11068_v46 = vpop.f32.mrb[35].mxu1  ;;  %11248 = vmatprep.subr.bf16.mxu1 %v13525_v56  ;;  %v13537_v56 = vld [vmem:[%s17818_s5 + $0x70] sm:$0xff]  }
 0x48b   : > { %v15879_v7 = vadd.f32 %v11068_v46, %v11067_v8  ;;  %v4370_v8 = vld [vmem:[#allocation2 + $0x19a] sm:$0xff]  ;;  %v4371_v46 = vld [vmem:[#allocation2 + $0x1a2] sm:$0xff]  ;;  %11249 = vmatpush3.bf16.msra.mxu1 %v13526_v40  ;;  %v13539_v40 = vld [vmem:[%s17818_s5 + $0x150] sm:$0xff]  }
 0x48c   : > { %12431 = vmatmul.mubr.msk.bf16.gmra.mrb[140].mxu1 %vm334_vm2, %v5051_v53 }
 0x48d   : > { %12434 = vmatprep.mubr.msk.bf16.mxu1 %vm334_vm2, %v5056_v38 }
 0x48f   : > { %v11070_v26 = vpop.f32.mrb[36].mxu1 }
 0x490   : > { %v11071_v62 = vpop.f32.mrb[37].mxu1 }
 0x491   : > { %v15883_v39 = vadd.f32 %v11071_v62, %v11070_v26  ;;  %v11073_v15 = vpop.f32.mrb[38].mxu1  ;;  %v5091_v26 = vpack.c.bf16 %v4371_v46, %v4370_v8  ;;  %v13527_v62 = vld [vmem:[%s17818_s5 + $0x58] sm:$0xff]   ;;  %v13540_v8 = vld [vmem:[%s17818_s5 + $0x110] sm:$0xff]  }
 0x492   : > { %v11074_v19 = vpop.f32.mrb[39].mxu1  ;;  %11250 = vmatprep.subr.bf16.mxu1 %v13527_v62  ;;  %v13541_v46 = vld [vmem:[%s17818_s5 + $0x158] sm:$0xff]  }
 0x493   : > { %v15888_v44 = vadd.f32 %v11074_v19, %v11073_v15  ;;  %v13528_v15 = vld [vmem:[%s17818_s5 + $0x18] sm:$0xff]  }
 0x494   : > { %12435 = vmatmul.mubr.msk.bf16.gmra.mrb[144].mxu1 %vm334_vm2, %v5061_v12 }
 0x495   : > { %12438 = vmatprep.mubr.msk.bf16.mxu1 %vm334_vm2, %v5066_v29  ;;  %11251 = vmatpush3.bf16.msra.mxu1 %v13528_v15 }
 0x496   : > { %11252 = vmatprep.subr.bf16.mxu1 %v13529_v24 }
 0x497   : > { %v11076_v51 = vpop.f32.mrb[40].mxu1 }
 0x498   : > { %v11077_v5 = vpop.f32.mrb[41].mxu1 }
 0x499   : > { %v15895_v37 = vadd.f32 %v11077_v5, %v11076_v51  ;;  %v11079_v14 = vpop.f32.mrb[42].mxu1  ;;  %11253 = vmatpush3.bf16.msra.mxu1 %v13530_v27 }
 0x49a   : > { %v11080_v54 = vpop.f32.mrb[43].mxu1  ;;  %11254 = vmatprep.subr.bf16.mxu1 %v13531_v35 }
 0x49b   : > { %v15900_v13 = vadd.f32 %v11080_v54, %v11079_v14 }
 0x49c   : > { %12439 = vmatmul.mubr.msk.bf16.gmra.mrb[148].mxu1 %vm334_vm2, %v5071_v47 }
 0x49d   : > { %12442 = vmatprep.mubr.msk.bf16.mxu1 %vm334_vm2, %v5076_v52  ;;  %v13532_v52 = vld [vmem:[%s17818_s5 + $0x28] sm:$0xff]  }
 0x49e   : > { %11255 = vmatpush3.bf16.msra.mxu1 %v13532_v52 }
 0x49f   : > { %v11082_v23 = vpop.f32.mrb[44].mxu1  ;;  %11256 = vmatprep.subr.bf16.mxu1 %v13537_v56  ;;  %v13547_v56 = vld [vmem:[%s17818_s5 + $0x168] sm:$0xff]  }
 0x4a0   : > { %v11083_v11 = vpop.f32.mrb[45].mxu1 }
 0x4a1   : > { %v15907_v28 = vadd.f32 %v11083_v11, %v11082_v23  ;;  %v11085_v18 = vpop.f32.mrb[46].mxu1  ;;  %v13534_v23 = vld [vmem:[%s17818_s5 + $0x100] sm:$0xff]   ;;  %v13536_v11 = vld [vmem:[%s17818_s5 + $0x108] sm:$0xff]  }
 0x4a2   : > { %v11086_v4 = vpop.f32.mrb[47].mxu1  ;;  %11469 = vmatpush3.bf16.msra.mxu0 %v13534_v23  ;;  %v13544_v23 = vld [vmem:[%s17818_s5 + $0x38] sm:$0xff]  }
 0x4a3   : > { %v15912_v9 = vadd.f32 %v11086_v4, %v11085_v18  ;;  %11470 = vmatprep.subr.bf16.mxu0 %v13535_v32  ;;  %v13546_v32 = vld [vmem:[%s17818_s5 + $0x120] sm:$0xff]  }
 0x4a4   : > { %12443 = vmatmul.mubr.msk.bf16.gmra.mrb[152].mxu1 %vm334_vm2, %v5081_v30 }
 0x4a5   : > { %12446 = vmatprep.mubr.msk.bf16.mxu1 %vm334_vm2, %v5086_v57  ;;  %v13538_v57 = vld [vmem:[%s17818_s5 + $0x30] sm:$0xff]  }
 0x4a6   : > { %11471 = vmatpush3.bf16.msra.mxu0 %v13536_v11  ;;  %11257 = vmatpush3.bf16.msra.mxu1 %v13538_v57  ;;  %v6016_v11 = vld [vmem:[#allocation3 + $0x9] sm:$0xff] }
 0x4a7   : > { %v11088_v53 = vpop.f32.mrb[48].mxu1  ;;  %11472 = vmatprep.subr.bf16.mxu0 %v13539_v40  ;;  %v13549_v40 = vld [vmem:[%s17818_s5 + $0xc0] sm:$0xff]  }
 0x4a8   : > { %v11089_v38 = vpop.f32.mrb[49].mxu1 }
 0x4a9   : > { %v15919_v41 = vadd.f32 %v11089_v38, %v11088_v53  ;;  %v11091_v0 = vpop.f32.mrb[50].mxu1  ;;  %v15984_v53 = vld [vmem:[%s17817_s4] ss:$0 sm:$0xff] }
 0x4aa   : > { %v11092_v6 = vpop.f32.mrb[51].mxu1  ;;  %11473 = vmatpush3.bf16.msra.mxu0 %v13540_v8 }
 0x4ab   : > { %v15924_v20 = vadd.f32 %v11092_v6, %v11091_v0  ;;  %11474 = vmatprep.subr.bf16.mxu0 %v13541_v46  ;;  %v5470_v0 = vadd.f32 %v15820_v31, %v15984_v53  ;;  %v5481_v31 = vadd.f32 %v15831_v2, %v15984_v53  ;;  %v13545_v2 = vld [vmem:[%s17818_s5 + $0x160] sm:$0xff]  }
 0x4ac   : > { %12447 = vmatmul.mubr.msk.bf16.gmra.mrb[156].mxu1 %vm334_vm2, %v5091_v26  ;;  %v13550_v46 = vld [vmem:[%s17818_s5 + $0x80] sm:$0xff]  }
 0x4af   : > { %v11094_v60 = vpop.f32.mrb[52].mxu1 }
 0x4b0   : > { %v11095_v19 = vpop.f32.mrb[53].mxu1 }
 0x4b1   : > { %v15930_v12 = vadd.f32 %v11095_v19, %v11094_v60  ;;  %v11097_v29 = vpop.f32.mrb[54].mxu1  ;;  %v5473_v60 = vadd.f32 %v15822_v34, %v15984_v53  ;;  %v13542_v34 = vld [vmem:[%s17818_s5 + $0x118] sm:$0xff]  }
 0x4b2   : > { %v11098_v51 = vpop.f32.mrb[55].mxu1  ;;  %11475 = vmatpush3.bf16.msra.mxu0 %v13542_v34 }
 0x4b3   : > { %v15935_v25 = vadd.f32 %v11098_v51, %v11097_v29  ;;  %11476 = vmatprep.subr.bf16.mxu0 %v13545_v2 }
 0x4b6   : > { %11477 = vmatpush3.bf16.msra.mxu0 %v13546_v32 }
 0x4b7   : > { %v11100_v5 = vpop.f32.mrb[56].mxu1  ;;  %11478 = vmatprep.subr.bf16.mxu0 %v13547_v56 }
 0x4b8   : > { %v11101_v16 = vpop.f32.mrb[57].mxu1 }
 0x4b9   : > { %v15940_v43 = vadd.f32 %v11101_v16, %v11100_v5  ;;  %v11103_v14 = vpop.f32.mrb[58].mxu1  ;;  %v5478_v5 = vadd.f32 %v15829_v10, %v15984_v53  ;;  %v13543_v10 = vld [vmem:[%s17818_s5 + $0x78] sm:$0xff]  }
 0x4ba   : > { %v11104_v54 = vpop.f32.mrb[59].mxu1  ;;  %11258 = vmatprep.subr.bf16.mxu1 %v13543_v10  ;;  %v5497_v10 = vadd.f32 %v15850_v45, %v15984_v53  ;;  %v5502_v45 = vadd.f32 %v15854_v3, %v15984_v53 }
 0x4bb   : > { %v15945_v47 = vadd.f32 %v11104_v54, %v11103_v14  ;;  %11259 = vmatpush3.bf16.msra.mxu1 %v13544_v23 }
 0x4bc   : > { %11356 = vmatprep.subr.bf16.mxu1 %v13549_v40 }
 0x4bf   : > { %v11106_v49 = vpop.f32.mrb[60].mxu1 }
 0x4c0   : > { %v11107_v21 = vpop.f32.mrb[61].mxu1 }
 0x4c1   : > { %v15962_v33 = vadd.f32 %v11107_v21, %v11106_v49  ;;  %v11109_v18 = vpop.f32.mrb[62].mxu1  ;;  %v6015_v49 = vld [vmem:[#allocation3 + $0x1] sm:$0xff] }
 0x4c2   : > { %v11110_v4 = vpop.f32.mrb[63].mxu1 }
 0x4c3   : > { %v15967_v30 = vadd.f32 %v11110_v4, %v11109_v18  ;;  %v6273_v18 = vpack.c.bf16 %v6016_v11, %v6015_v49  ;;  %v13792_v4 = vld [vmem:[#allocation3] sm:$0xff]  ;;  %v13556_v11 = vld [vmem:[%s17818_s5 + $0x88] sm:$0xff]  }
 0x4c4   : > { %v6272_v57 = vpack.c.bf16 %v13792_v4, %v13792_v4 }
 0x4c5   : > { %7031 = vmatprep.mubr.bf16.mxu1 %v6273_v18 }
 0x4c6   : > { %7032 = vmatmul.mubr.bf16.vlgmr.msra.gmra.mrb[160].mxu1 %v6272_v57  ;;  %v5505_v57 = vadd.f32 %v15856_v59, %v15984_v53 }
 0x4c7   : > { %v11128_v38 = vpop.f32.mrb[64].mxu1  ;;  %11357 = vmatpush3.bf16.msra.mxu1 %v13550_v46 }
 0x4c8   : > { %v11129_v26 = vpop.f32.mrb[65].mxu1 }
 0x4c9   : > { %v11130_v62 = vadd.f32 %v11129_v26, %v11128_v38  ;;  %v11131_v6 = vpop.f32.mrb[66].mxu1  ;;  %v5486_v38 = vadd.f32 %v15840_v50, %v15984_v53 }
 0x4ca   : > { %v11132_v15 = vpop.f32.mrb[67].mxu1 }
 0x4cb   : > { %v11133_v19 = vadd.f32 %v11132_v15, %v11131_v6  ;;  %v15990_v29 = vadd.f32 %v11130_v62, %v5470_v0  ;;  %v13548_v62 = vld [vmem:[%s17818_s5 + $0x128] sm:$0xff]   ;;  %v13551_v15 = vld [vmem:[%s17818_s5 + $0x170] sm:$0xff]  }
 0x4cc   : > { %11479 = vmatpush3.bf16.msra.mxu0 %v13548_v62 }
 0x4cd   : > { %v15992_v24 = vadd.f32 %v11133_v19, %v5473_v60  ;;  %v5489_v60 = vadd.f32 %v15842_v48, %v15984_v53  ;;  %11480 = vmatprep.subr.bf16.mxu0 %v13551_v15  ;;  %v5494_v48 = vadd.f32 %v15848_v63, %v15984_v53  ;;  %v13555_v63 = vld [vmem:[%s17818_s5 + $0xc8] sm:$0xff]   ;;  %v5513_v15 = vadd.f32 %v15861_v36, %v15984_v53 }
 0x4ce   : > { %11358 = vmatprep.subr.bf16.mxu1 %v13555_v63 }
 0x4cf   : > { %v11134_v51 = vpop.f32.mrb[68].mxu1  ;;  %11359 = vmatpush3.bf16.msra.mxu1 %v13556_v11 }
 0x4d0   : > { %v11135_v27 = vpop.f32.mrb[69].mxu1 }
 0x4d1   : > { %v11136_v16 = vadd.f32 %v11135_v27, %v11134_v51  ;;  %v11137_v14 = vpop.f32.mrb[70].mxu1  ;;  %v13552_v27 = vld [vmem:[%s17818_s5 + $0x130] sm:$0xff]  }
 0x4d2   : > { %v11138_v35 = vpop.f32.mrb[71].mxu1  ;;  %11481 = vmatpush3.bf16.msra.mxu0 %v13552_v27  ;;  %v13557_v27 = vld [vmem:[%s17818_s5 + $0xd0] sm:$0xff]  }
 0x4d3   : > { %v11139_v54 = vadd.f32 %v11138_v35, %v11137_v14  ;;  %v15998_v52 = vadd.f32 %v11136_v16, %v5478_v5  ;;  %v13553_v5 = vld [vmem:[%s17818_s5 + $0x178] sm:$0xff]   ;;  %11360 = vmatprep.subr.bf16.mxu1 %v13557_v27 }
 0x4d4   : > { %11482 = vmatprep.subr.bf16.mxu0 %v13553_v5 }
 0x4d5   : > { %v16003_v22 = vadd.f32 %v11139_v54, %v5481_v31  ;;  %v13554_v54 = vld [vmem:[%s17818_s5 + $0x138] sm:$0xff]  }
 0x4d6   : > { %11483 = vmatpush3.bf16.msra.mxu0 %v13554_v54 }
 0x4d7   : > { %v11140_v21 = vpop.f32.mrb[72].mxu1 }
 0x4d8   : > { %v11141_v8 = vpop.f32.mrb[73].mxu1 }
 0x4d9   : > { %v11142_v26 = vadd.f32 %v11141_v8, %v11140_v21  ;;  %v11143_v0 = vpop.f32.mrb[74].mxu1 }
 0x4da   : > { %v11144_v6 = vpop.f32.mrb[75].mxu1 }
 0x4db   : > { %v11145_v19 = vadd.f32 %v11144_v6, %v11143_v0  ;;  %v16036_v50 = vadd.f32 %v11142_v26, %v5486_v38  ;;  %v5510_v0 = vadd.f32 %v15859_v58, %v15984_v53  ;;  %v13558_v58 = vld [vmem:[%s17818_s5 + $0x90] sm:$0xff]  }
 0x4dc   : > { %11361 = vmatpush3.bf16.msra.mxu1 %v13558_v58 }
 0x4dd   : > { %v16038_v51 = vadd.f32 %v11145_v19, %v5489_v60 }
 0x4df   : > { %v11146_v16 = vpop.f32.mrb[76].mxu1 }
 0x4e0   : > { %v11147_v14 = vpop.f32.mrb[77].mxu1 }
 0x4e1   : > { %v11148_v35 = vadd.f32 %v11147_v14, %v11146_v16  ;;  %v11149_v31 = vpop.f32.mrb[78].mxu1  ;;  %v5518_v14 = vadd.f32 %v15865_v17, %v15984_v53 }
 0x4e2   : > { %v11150_v34 = vpop.f32.mrb[79].mxu1 }
 0x4e3   : > { %v11151_v23 = vadd.f32 %v11150_v34, %v11149_v31  ;;  %v16053_v2 = vadd.f32 %v11148_v35, %v5494_v48  ;;  %v5521_v31 = vadd.f32 %v15867_v42, %v15984_v53 }
 0x4e5   : > { %v16055_v32 = vadd.f32 %v11151_v23, %v5497_v10 }
 0x4e7   : > { %v11152_v49 = vpop.f32.mrb[80].mxu1 }
 0x4e8   : > { %v11153_v21 = vpop.f32.mrb[81].mxu1 }
 0x4e9   : > { %v11154_v18 = vadd.f32 %v11153_v21, %v11152_v49  ;;  %v11155_v56 = vpop.f32.mrb[82].mxu1  ;;  %v5526_v49 = vadd.f32 %v15871_v1, %v15984_v53  ;;  %v13560_v1 = vld [vmem:[%s17818_s5 + $0x98] sm:$0xff]  }
 0x4ea   : > { %v11156_v4 = vpop.f32.mrb[83].mxu1 }
 0x4eb   : > { %v11157_v40 = vadd.f32 %v11156_v4, %v11155_v56  ;;  %v16067_v8 = vadd.f32 %v11154_v18, %v5502_v45  ;;  %v5529_v45 = vadd.f32 %v15873_v55, %v15984_v53  ;;  %v13559_v4 = vld [vmem:[%s17818_s5 + $0xd8] sm:$0xff]  }
 0x4ec   : > { %11362 = vmatprep.subr.bf16.mxu1 %v13559_v4 }
 0x4ed   : > { %v16069_v46 = vadd.f32 %v11157_v40, %v5505_v57  ;;  %11363 = vmatpush3.bf16.msra.mxu1 %v13560_v1 }
 0x4ef   : > { %v11158_v38 = vpop.f32.mrb[84].mxu1 }
 0x4f0   : > { %v11159_v26 = vpop.f32.mrb[85].mxu1 }
 0x4f1   : > { %v11160_v62 = vadd.f32 %v11159_v26, %v11158_v38  ;;  %v11161_v6 = vpop.f32.mrb[86].mxu1  ;;  %v5534_v38 = vadd.f32 %v15877_v61, %v15984_v53  ;;  %v5542_v61 = vadd.f32 %v15883_v39, %v15984_v53  ;;  %v5550_v39 = vadd.f32 %v15895_v37, %v15984_v53 }
 0x4f2   : > { %v11162_v3 = vpop.f32.mrb[87].mxu1  ;;  %v5558_v37 = vadd.f32 %v15907_v28, %v15984_v53  ;;  %v5566_v28 = vadd.f32 %v15919_v41, %v15984_v53  ;;  %v5574_v41 = vadd.f32 %v15930_v12, %v15984_v53  ;;  %v5582_v12 = vadd.f32 %v15940_v43, %v15984_v53 }
 0x4f3   : > { %v11163_v60 = vadd.f32 %v11162_v3, %v11161_v6  ;;  %v16075_v19 = vadd.f32 %v11160_v62, %v5510_v0  ;;  %v5537_v62 = vadd.f32 %v15879_v7, %v15984_v53  ;;  %v13562_v7 = vld [vmem:[%s17818_s5 + $0xa0] sm:$0xff]  }
 0x4f5   : > { %v16077_v59 = vadd.f32 %v11163_v60, %v5513_v15  ;;  %v13561_v15 = vld [vmem:[%s17818_s5 + $0xe0] sm:$0xff]  }
 0x4f6   : > { %11364 = vmatprep.subr.bf16.mxu1 %v13561_v15 }
 0x4f7   : > { %v11164_v5 = vpop.f32.mrb[88].mxu1  ;;  %11365 = vmatpush3.bf16.msra.mxu1 %v13562_v7 }
 0x4f8   : > { %v11165_v16 = vpop.f32.mrb[89].mxu1 }
 0x4f9   : > { %v11166_v36 = vadd.f32 %v11165_v16, %v11164_v5  ;;  %v11167_v48 = vpop.f32.mrb[90].mxu1 }
 0x4fa   : > { %v11168_v35 = vpop.f32.mrb[91].mxu1 }
 0x4fb   : > { %v11169_v54 = vadd.f32 %v11168_v35, %v11167_v48  ;;  %v16089_v34 = vadd.f32 %v11166_v36, %v5518_v14  ;;  %v5545_v36 = vadd.f32 %v15888_v44, %v15984_v53  ;;  %v13563_v44 = vld [vmem:[%s17818_s5 + $0xe8] sm:$0xff]  }
 0x4fc   : > { %11366 = vmatprep.subr.bf16.mxu1 %v13563_v44 }
 0x4fd   : > { %v16091_v10 = vadd.f32 %v11169_v54, %v5521_v31 }
 0x4ff   : > { %v11170_v23 = vpop.f32.mrb[92].mxu1 }
 0x500   : > { %v11171_v63 = vpop.f32.mrb[93].mxu1 }
 0x501   : > { %v11172_v11 = vadd.f32 %v11171_v63, %v11170_v23  ;;  %v11173_v21 = vpop.f32.mrb[94].mxu1 }
 0x502   : > { %v11174_v17 = vpop.f32.mrb[95].mxu1 }
 0x503   : > { %v11175_v18 = vadd.f32 %v11174_v17, %v11173_v21  ;;  %v16097_v56 = vadd.f32 %v11172_v11, %v5526_v49  ;;  %v5553_v21 = vadd.f32 %v15900_v13, %v15984_v53  ;;  %v13564_v13 = vld [vmem:[%s17818_s5 + $0xa8] sm:$0xff]  }
 0x504   : > { %11367 = vmatpush3.bf16.msra.mxu1 %v13564_v13 }
 0x505   : > { %v16099_v42 = vadd.f32 %v11175_v18, %v5529_v45 }
 0x507   : > { %v11176_v57 = vpop.f32.mrb[96].mxu1 }
 0x508   : > { %v11177_v40 = vpop.f32.mrb[97].mxu1 }
 0x509   : > { %v11178_v55 = vadd.f32 %v11177_v40, %v11176_v57  ;;  %v11179_v26 = vpop.f32.mrb[98].mxu1 }
 0x50a   : > { %v11180_v0 = vpop.f32.mrb[99].mxu1 }
 0x50b   : > { %v11181_v6 = vadd.f32 %v11180_v0, %v11179_v26  ;;  %v16111_v3 = vadd.f32 %v11178_v55, %v5534_v38  ;;  %v5561_v55 = vadd.f32 %v15912_v9, %v15984_v53  ;;  %v13565_v9 = vld [vmem:[%s17818_s5 + $0xf0] sm:$0xff]  }
 0x50c   : > { %11368 = vmatprep.subr.bf16.mxu1 %v13565_v9 }
 0x50d   : > { %v16116_v60 = vadd.f32 %v11181_v6, %v5537_v62 }
 0x50f   : > { %v11182_v27 = vpop.f32.mrb[100].mxu1 }
 0x510   : > { %v11183_v5 = vpop.f32.mrb[101].mxu1 }
 0x511   : > { %v11184_v58 = vadd.f32 %v11183_v5, %v11182_v27  ;;  %v11185_v16 = vpop.f32.mrb[102].mxu1 }
 0x512   : > { %v11186_v14 = vpop.f32.mrb[103].mxu1 }
 0x513   : > { %v11187_v48 = vadd.f32 %v11186_v14, %v11185_v16  ;;  %v16125_v35 = vadd.f32 %v11184_v58, %v5542_v61  ;;  %v5569_v58 = vadd.f32 %v15924_v20, %v15984_v53  ;;  %v13566_v20 = vld [vmem:[%s17818_s5 + $0xb0] sm:$0xff]  }
 0x514   : > { %11369 = vmatpush3.bf16.msra.mxu1 %v13566_v20 }
 0x515   : > { %v16127_v31 = vadd.f32 %v11187_v48, %v5545_v36 }
 0x517   : > { %v11188_v54 = vpop.f32.mrb[104].mxu1 }
 0x518   : > { %v11189_v23 = vpop.f32.mrb[105].mxu1 }
 0x519   : > { %v11190_v63 = vadd.f32 %v11189_v23, %v11188_v54  ;;  %v11191_v49 = vpop.f32.mrb[106].mxu1 }
 0x51a   : > { %v11192_v11 = vpop.f32.mrb[107].mxu1 }
 0x51b   : > { %v11193_v17 = vadd.f32 %v11192_v11, %v11191_v49  ;;  %v16133_v45 = vadd.f32 %v11190_v63, %v5550_v39  ;;  %v5577_v63 = vadd.f32 %v15935_v25, %v15984_v53  ;;  %v5585_v25 = vadd.f32 %v15945_v47, %v15984_v53  ;;  %v13570_v47 = vld [vmem:[%s17818_s5 + $0xb8] sm:$0xff]  }
 0x51d   : > { %v16138_v18 = vadd.f32 %v11193_v17, %v5553_v21 }
 0x51f   : > { %v11194_v4 = vpop.f32.mrb[108].mxu1 }
 0x520   : > { %v11195_v57 = vpop.f32.mrb[109].mxu1 }
 0x521   : > { %v11196_v1 = vadd.f32 %v11195_v57, %v11194_v4  ;;  %v11197_v40 = vpop.f32.mrb[110].mxu1 }
 0x522   : > { %v11198_v38 = vpop.f32.mrb[111].mxu1 }
 0x523   : > { %v11199_v26 = vadd.f32 %v11198_v38, %v11197_v40  ;;  %v16147_v0 = vadd.f32 %v11196_v1, %v5558_v37  ;;  %v16178_v1 = vld [vmem:[%s17818_s5 + $0x200] sm:$0xff]   ;;  %v13569_v38 = vld [vmem:[%s17818_s5 + $0xf8] sm:$0xff]  }
 0x524   : > { %12450 = vmatprep.subr.bf16.mxu0 %v16178_v1  ;;  %11370 = vmatprep.subr.bf16.mxu1 %v13569_v38 }
 0x525   : > { %v16149_v62 = vadd.f32 %v11199_v26, %v5561_v55  ;;  %11371 = vmatpush3.bf16.msra.mxu1 %v13570_v47 }
 0x527   : > { %v11200_v6 = vpop.f32.mrb[112].mxu1 }
 0x528   : > { %v11201_v15 = vpop.f32.mrb[113].mxu1 }
 0x529   : > { %v11202_v27 = vadd.f32 %v11201_v15, %v11200_v6  ;;  %v11203_v5 = vpop.f32.mrb[114].mxu1  ;;  %v5590_v6 = vadd.f32 %v15962_v33, %v15984_v53 }
 0x52a   : > { %v11204_v61 = vpop.f32.mrb[115].mxu1 }
 0x52b   : > { %v11205_v16 = vadd.f32 %v11204_v61, %v11203_v5  ;;  %v16155_v7 = vadd.f32 %v11202_v27, %v5566_v28  ;;  %v5593_v5 = vadd.f32 %v15967_v30, %v15984_v53  ;;  %v13575_v53 = vld [vmem:[%s17818_s5 + $0x1c0] sm:$0xff]  }
 0x52c   : > { %11580 = vmatprep.subr.bf16.mxu1 %v13575_v53 }
 0x52d   : > { %v16160_v14 = vadd.f32 %v11205_v16, %v5569_v58 }
 0x52f   : > { %v11206_v36 = vpop.f32.mrb[116].mxu1 }
 0x530   : > { %v11207_v48 = vpop.f32.mrb[117].mxu1 }
 0x531   : > { %v11208_v54 = vadd.f32 %v11207_v48, %v11206_v36  ;;  %v11209_v23 = vpop.f32.mrb[118].mxu1 }
 0x532   : > { %v11210_v39 = vpop.f32.mrb[119].mxu1 }
 0x533   : > { %v11211_v49 = vadd.f32 %v11210_v39, %v11209_v23  ;;  %v16169_v11 = vadd.f32 %v11208_v54, %v5574_v41 }
 0x535   : > { %v16171_v21 = vadd.f32 %v11211_v49, %v5577_v63 }
 0x537   : > { %v11212_v17 = vpop.f32.mrb[120].mxu1 }
 0x538   : > { %v11213_v44 = vpop.f32.mrb[121].mxu1 }
 0x539   : > { %v11214_v4 = vadd.f32 %v11213_v44, %v11212_v17  ;;  %v11215_v57 = vpop.f32.mrb[122].mxu1 }
 0x53a   : > { %v11216_v37 = vpop.f32.mrb[123].mxu1 }
 0x53b   : > { %v11217_v40 = vadd.f32 %v11216_v37, %v11215_v57  ;;  %v16182_v13 = vadd.f32 %v11214_v4, %v5582_v12 }
 0x53d   : > { %v16188_v43 = vadd.f32 %v11217_v40, %v5585_v25 }
 0x53f   : > { %v11218_v55 = vpop.f32.mrb[124].mxu1 }
 0x540   : > { %v11219_v26 = vpop.f32.mrb[125].mxu1 }
 0x541   : > { %v11220_v15 = vadd.f32 %v11219_v26, %v11218_v55  ;;  %v11221_v28 = vpop.f32.mrb[126].mxu1 }
 0x542   : > { %v11222_v27 = vpop.f32.mrb[127].mxu1 }
 0x543   : > { %v11223_v61 = vadd.f32 %v11222_v27, %v11221_v28  ;;  %v16197_v58 = vadd.f32 %v11220_v15, %v5590_v6 }
 0x545   : > { %v16199_v16 = vadd.f32 %v11223_v61, %v5593_v5 }
 0x547   : > { %v12420_v9 = vpop.f32.mrb[128].mxu1 }
 0x548   : > { %v5800_v36 = vadd.f32 %v12420_v9, %v15998_v52  ;;  %v5791_v33 = vpop.f32.mrb[129].mxu1 }
 0x549   : > { %v5792_v48 = vadd.f32 %v5791_v33, %v15990_v29  ;;  %v12421_v41 = vpop.f32.mrb[130].mxu1 }
 0x54a   : > { %v5920_v54 = vmax.f32 %v5800_v36, 0.0  ;;  %v5803_v23 = vadd.f32 %v12421_v41, %v16003_v22  ;;  %v5794_v20 = vpop.f32.mrb[131].mxu1  ;;  %v13568_v41 = vld [vmem:[%s17818_s5 + $0x208] sm:$0xff]  }
 0x54b   : > { %v5918_v39 = vmax.f32 %v5792_v48, 0.0  ;;  %v5795_v30 = vadd.f32 %v5794_v20, %v15992_v24 }
 0x54c   : > { %5953 = vst [vmem:[#allocation3 + $0x31] sm:$0xff] %v5920_v54  ;;  %v5921_v63 = vmax.f32 %v5803_v23, 0.0 }
 0x54d   : > { %5951 = vst [vmem:[#allocation3 + $0x19] sm:$0xff] %v5918_v39  ;;  %v5919_v49 = vmax.f32 %v5795_v30, 0.0 }
 0x54e   : > { %5954 = vst [vmem:[#allocation3 + $0x39] sm:$0xff] %v5921_v63  ;;  %v16208_v52 = vpack.c.bf16 %v5921_v63, %v5920_v54 }
 0x54f   : > { %5952 = vst [vmem:[#allocation3 + $0x21] sm:$0xff] %v5919_v49  ;;  %v12424_v29 = vpop.f32.mrb[132].mxu1  ;;  %v6282_v17 = vpack.c.bf16 %v5919_v49, %v5918_v39  ;;  %v13571_v49 = vld [vmem:[%s17818_s5 + $0x210] sm:$0xff]  }
 0x550   : > { %v5816_v22 = vadd.f32 %v12424_v29, %v16053_v2  ;;  %v5807_v44 = vpop.f32.mrb[133].mxu1 }
 0x551   : > { %v5808_v24 = vadd.f32 %v5807_v44, %v16036_v50  ;;  %v12425_v12 = vpop.f32.mrb[134].mxu1  ;;  %7039 = vmatprep.mubr.bf16.mxu1 %v6282_v17 }
 0x552   : > { %v5924_v4 = vmax.f32 %v5816_v22, 0.0  ;;  %v5819_v57 = vadd.f32 %v12425_v12, %v16055_v32  ;;  %v5810_v37 = vpop.f32.mrb[135].mxu1  ;;  %v13572_v12 = vld [vmem:[%s17818_s5 + $0x218] sm:$0xff]  }
 0x553   : > { %v5922_v25 = vmax.f32 %v5808_v24, 0.0  ;;  %v5811_v40 = vadd.f32 %v5810_v37, %v16038_v51  ;;  %v6176_v38 = vld [vmem:[#allocation3 + $0x30] sm:$0xff] }
 0x554   : > { %5957 = vst [vmem:[#allocation3 + $0x61] sm:$0xff] %v5924_v4  ;;  %v5925_v55 = vmax.f32 %v5819_v57, 0.0  ;;  %v5985_v26 = vld [vmem:[#allocation3 + $0x18] sm:$0xff] }
 0x555   : > { %v6177_v6 = vld [vmem:[#allocation3 + $0x38] sm:$0xff]  ;;  %5955 = vst [vmem:[#allocation3 + $0x49] sm:$0xff] %v5922_v25  ;;  %v5923_v15 = vmax.f32 %v5811_v40, 0.0 }
 0x556   : > { %v6145_v2 = vld [vmem:[#allocation3 + $0x32] sm:$0xff]  ;;  %v6146_v28 = vld [vmem:[#allocation3 + $0x3a] sm:$0xff]  ;;  %5958 = vst [vmem:[#allocation3 + $0x69] sm:$0xff] %v5925_v55  ;;  %v6144_v47 = vld [vmem:[#allocation3 + $0x22] sm:$0xff]  ;;  %v16214_v5 = vpack.c.bf16 %v5925_v55, %v5924_v4  ;;  %v16216_v32 = vpack.c.bf16 %v6177_v6, %v6176_v38 }
 0x557   : > { %v6143_v50 = vld [vmem:[#allocation3 + $0x1a] sm:$0xff]  ;;  %5956 = vst [vmem:[#allocation3 + $0x51] sm:$0xff] %v5923_v15  ;;  %v12428_v61 = vpop.f32.mrb[136].mxu1  ;;  %v16222_v36 = vpack.c.bf16 %v5923_v15, %v5922_v25  ;;  %v16231_v20 = vpack.c.bf16 %v6146_v28, %v6145_v2  ;;  %v13573_v6 = vld [vmem:[%s17818_s5 + $0x220] sm:$0xff]  }
 0x558   : > { %v5986_v27 = vld [vmem:[#allocation3 + $0x20] sm:$0xff]  ;;  %v16218_v51 = vpack.c.bf16 %v6144_v47, %v6143_v50  ;;  %v5832_v33 = vadd.f32 %v12428_v61, %v16075_v19  ;;  %v5823_v48 = vpop.f32.mrb[137].mxu1 }
 0x559   : > { %v16220_v9 = vpack.c.bf16 %v5986_v27, %v5985_v26  ;;  %v5824_v54 = vadd.f32 %v5823_v48, %v16067_v8  ;;  %v12429_v23 = vpop.f32.mrb[138].mxu1 }
 0x55a   : > { %7353 = vmatprep.mubr.bf16.mxu0 %v16218_v51  ;;  %v5928_v39 = vmax.f32 %v5832_v33, 0.0  ;;  %v5835_v30 = vadd.f32 %v12429_v23, %v16077_v59  ;;  %v5826_v53 = vpop.f32.mrb[139].mxu1  ;;  %v13574_v33 = vld [vmem:[%s17818_s5 + $0x228] sm:$0xff]  }
 0x55b   : > { %7040 = vmatmul.mubr.bf16.gmra.mrb[164].mxu1 %v16220_v9  ;;  %7354 = vmatmul.mubr.bf16.vlgmr.msra.gmra.mrb[32].mxu0 %v6282_v17  ;;  %v5926_v19 = vmax.f32 %v5824_v54, 0.0  ;;  %v5827_v63 = vadd.f32 %v5826_v53, %v16069_v46 }
 0x55c   : > { %7047 = vmatprep.mubr.bf16.mxu1 %v16208_v52  ;;  %7361 = vmatprep.mubr.bf16.mxu0 %v16231_v20  ;;  %5961 = vst [vmem:[#allocation3 + $0x91] sm:$0xff] %v5928_v39  ;;  %v5929_v8 = vmax.f32 %v5835_v30, 0.0 }
 0x55d   : > { %12451 = vmatpush3.bf16.msra.mxu0 %v16178_v1  ;;  %5959 = vst [vmem:[#allocation3 + $0x79] sm:$0xff] %v5926_v19  ;;  %v5927_v59 = vmax.f32 %v5827_v63, 0.0  ;;  %v6149_v15 = vld [vmem:[#allocation3 + $0x62] sm:$0xff]  ;;  %v6150_v2 = vld [vmem:[#allocation3 + $0x6a] sm:$0xff] }
 0x55e   : > { %12452 = vmatprep.subr.bf16.mxu0 %v13568_v41  ;;  %5962 = vst [vmem:[#allocation3 + $0x99] sm:$0xff] %v5929_v8  ;;  %v6147_v29 = vld [vmem:[#allocation3 + $0x4a] sm:$0xff]  ;;  %v6148_v17 = vld [vmem:[#allocation3 + $0x52] sm:$0xff]  ;;  %v16241_v22 = vpack.c.bf16 %v5929_v8, %v5928_v39  ;;  %v16273_v54 = vpack.c.bf16 %v6150_v2, %v6149_v15  ;;  %v13577_v63 = vld [vmem:[%s17818_s5 + $0x230] sm:$0xff]  }
 0x55f   : > { %5960 = vst [vmem:[#allocation3 + $0x81] sm:$0xff] %v5927_v59  ;;  %v12432_v46 = vpop.f32.mrb[140].mxu1  ;;  %v16243_v44 = vpack.c.bf16 %v5927_v59, %v5926_v19  ;;  %v16251_v37 = vpack.c.bf16 %v6148_v17, %v6147_v29  ;;  %v5990_v26 = vld [vmem:[#allocation3 + $0x50] sm:$0xff]  ;;  %v5992_v19 = vld [vmem:[#allocation3 + $0x68] sm:$0xff] }
 0x560   : > { %v5848_v1 = vadd.f32 %v12432_v46, %v16097_v56  ;;  %v5839_v24 = vpop.f32.mrb[141].mxu1 }
 0x561   : > { %12453 = vmatpush3.bf16.msra.mxu0 %v13568_v41  ;;  %v5840_v4 = vadd.f32 %v5839_v24, %v16089_v34  ;;  %v12433_v57 = vpop.f32.mrb[142].mxu1  ;;  %v13578_v24 = vld [vmem:[%s17818_s5 + $0x238] sm:$0xff]  }
 0x562   : > { %12454 = vmatprep.subr.bf16.mxu0 %v13571_v49  ;;  %v5932_v25 = vmax.f32 %v5848_v1, 0.0  ;;  %v5851_v40 = vadd.f32 %v12433_v57, %v16099_v42  ;;  %v5842_v38 = vpop.f32.mrb[143].mxu1 }
 0x563   : > { %7048 = vmatmul.mubr.bf16.gmra.mrb[168].mxu1 %v16216_v32  ;;  %7362 = vmatmul.mubr.bf16.gmra.mrb[36].mxu0 %v16208_v52  ;;  %v5930_v56 = vmax.f32 %v5840_v4, 0.0  ;;  %v5843_v55 = vadd.f32 %v5842_v38, %v16091_v10  ;;  %v5989_v52 = vld [vmem:[#allocation3 + $0x48] sm:$0xff] }
 0x564   : > { %7055 = vmatprep.mubr.bf16.mxu1 %v16222_v36  ;;  %7369 = vmatprep.mubr.bf16.mxu0 %v16251_v37  ;;  %5965 = vst [vmem:[#allocation3 + $0xc1] sm:$0xff] %v5932_v25  ;;  %v5933_v34 = vmax.f32 %v5851_v40, 0.0  ;;  %v16263_v50 = vpack.c.bf16 %v5990_v26, %v5989_v52  ;;  %v5993_v26 = vld [vmem:[#allocation3 + $0x78] sm:$0xff] }
 0x565   : > { %12455 = vmatpush3.bf16.msra.mxu0 %v13571_v49  ;;  %5963 = vst [vmem:[#allocation3 + $0xa9] sm:$0xff] %v5930_v56  ;;  %v5931_v42 = vmax.f32 %v5843_v55, 0.0 }
 0x566   : > { %12456 = vmatprep.subr.bf16.mxu0 %v13572_v12  ;;  %5966 = vst [vmem:[#allocation3 + $0xc9] sm:$0xff] %v5933_v34  ;;  %v16261_v28 = vpack.c.bf16 %v5933_v34, %v5932_v25  ;;  %v6151_v8 = vld [vmem:[#allocation3 + $0x7a] sm:$0xff]  ;;  %v6152_v49 = vld [vmem:[#allocation3 + $0x82] sm:$0xff] }
 0x567   : > { %5964 = vst [vmem:[#allocation3 + $0xb1] sm:$0xff] %v5931_v42  ;;  %v12436_v10 = vpop.f32.mrb[144].mxu1  ;;  %v16265_v47 = vpack.c.bf16 %v5931_v42, %v5930_v56  ;;  %v16295_v57 = vpack.c.bf16 %v6152_v49, %v6151_v8  ;;  %v5994_v55 = vld [vmem:[#allocation3 + $0x80] sm:$0xff] }
 0x568   : > { %v5864_v27 = vadd.f32 %v12436_v10, %v16125_v35  ;;  %v5855_v61 = vpop.f32.mrb[145].mxu1  ;;  %v16304_v52 = vpack.c.bf16 %v5994_v55, %v5993_v26 }
 0x569   : > { %12457 = vmatpush3.bf16.msra.mxu0 %v13572_v12  ;;  %v5856_v48 = vadd.f32 %v5855_v61, %v16111_v3  ;;  %v12437_v41 = vpop.f32.mrb[146].mxu1 }
 0x56a   : > { %12458 = vmatprep.subr.bf16.mxu0 %v13573_v6  ;;  %v5936_v23 = vmax.f32 %v5864_v27, 0.0  ;;  %v5867_v39 = vadd.f32 %v12437_v41, %v16127_v31  ;;  %v5858_v30 = vpop.f32.mrb[147].mxu1 }
 0x56b   : > { %7056 = vmatmul.mubr.bf16.gmra.mrb[172].mxu1 %v16263_v50  ;;  %7370 = vmatmul.mubr.bf16.gmra.mrb[40].mxu0 %v16222_v36  ;;  %v5934_v35 = vmax.f32 %v5856_v48, 0.0  ;;  %v5859_v53 = vadd.f32 %v5858_v30, %v16116_v60  ;;  %v5991_v36 = vld [vmem:[#allocation3 + $0x60] sm:$0xff] }
 0x56c   : > { %7063 = vmatprep.mubr.bf16.mxu1 %v16214_v5  ;;  %7377 = vmatprep.mubr.bf16.mxu0 %v16273_v54  ;;  %5969 = vst [vmem:[#allocation3 + $0xf1] sm:$0xff] %v5936_v23  ;;  %v5937_v3 = vmax.f32 %v5867_v39, 0.0  ;;  %v16285_v29 = vpack.c.bf16 %v5992_v19, %v5991_v36 }
 0x56d   : > { %12459 = vmatpush3.bf16.msra.mxu0 %v13573_v6  ;;  %5967 = vst [vmem:[#allocation3 + $0xd9] sm:$0xff] %v5934_v35  ;;  %v5935_v31 = vmax.f32 %v5859_v53, 0.0  ;;  %v6154_v6 = vld [vmem:[#allocation3 + $0x9a] sm:$0xff] }
 0x56e   : > { %12460 = vmatprep.subr.bf16.mxu0 %v13574_v33  ;;  %5970 = vst [vmem:[#allocation3 + $0xf9] sm:$0xff] %v5937_v3  ;;  %v16283_v59 = vpack.c.bf16 %v5937_v3, %v5936_v23  ;;  %v6155_v53 = vld [vmem:[#allocation3 + $0xaa] sm:$0xff]  ;;  %v6156_v3 = vld [vmem:[#allocation3 + $0xb2] sm:$0xff] }
 0x56f   : > { %5968 = vst [vmem:[#allocation3 + $0xe1] sm:$0xff] %v5935_v31  ;;  %v12440_v60 = vpop.f32.mrb[148].mxu1  ;;  %v16287_v17 = vpack.c.bf16 %v5935_v31, %v5934_v35  ;;  %v5995_v35 = vld [vmem:[#allocation3 + $0x90] sm:$0xff]  ;;  %v16327_v49 = vpack.c.bf16 %v6156_v3, %v6155_v53 }
 0x570   : > { %v5880_v46 = vadd.f32 %v12440_v60, %v16147_v0  ;;  %v5871_v1 = vpop.f32.mrb[149].mxu1 }
 0x571   : > { %12461 = vmatpush3.bf16.msra.mxu0 %v13574_v33  ;;  %v5872_v12 = vadd.f32 %v5871_v1, %v16133_v45  ;;  %v12441_v4 = vpop.f32.mrb[150].mxu1 }
 0x572   : > { %12462 = vmatprep.subr.bf16.mxu0 %v13577_v63  ;;  %v5940_v25 = vmax.f32 %v5880_v46, 0.0  ;;  %v5883_v40 = vadd.f32 %v12441_v4, %v16149_v62  ;;  %v5874_v38 = vpop.f32.mrb[151].mxu1  ;;  %v6153_v62 = vld [vmem:[#allocation3 + $0x92] sm:$0xff] }
 0x573   : > { %7064 = vmatmul.mubr.bf16.gmra.mrb[176].mxu1 %v16285_v29  ;;  %7378 = vmatmul.mubr.bf16.gmra.mrb[44].mxu0 %v16214_v5  ;;  %v5938_v0 = vmax.f32 %v5872_v12, 0.0  ;;  %v5875_v56 = vadd.f32 %v5874_v38, %v16138_v18  ;;  %v16311_v61 = vpack.c.bf16 %v6154_v6, %v6153_v62  ;;  %v6158_v38 = vld [vmem:[#allocation3 + $0xca] sm:$0xff] }
 0x574   : > { %7071 = vmatprep.mubr.bf16.mxu1 %v16243_v44  ;;  %7385 = vmatprep.mubr.bf16.mxu0 %v16295_v57  ;;  %5973 = vst [vmem:[#allocation3 + $0x121] sm:$0xff] %v5940_v25  ;;  %v5941_v45 = vmax.f32 %v5883_v40, 0.0  ;;  %v6157_v40 = vld [vmem:[#allocation3 + $0xc2] sm:$0xff]  ;;  %v6001_v6 = vld [vmem:[#allocation3 + $0xd8] sm:$0xff] }
 0x575   : > { %12463 = vmatpush3.bf16.msra.mxu0 %v13577_v63  ;;  %5971 = vst [vmem:[#allocation3 + $0x109] sm:$0xff] %v5938_v0  ;;  %v5939_v34 = vmax.f32 %v5875_v56, 0.0  ;;  %v6000_v56 = vld [vmem:[#allocation3 + $0xc8] sm:$0xff] }
 0x576   : > { %12464 = vmatprep.subr.bf16.mxu0 %v13578_v24  ;;  %5974 = vst [vmem:[#allocation3 + $0x129] sm:$0xff] %v5941_v45  ;;  %v16302_v42 = vpack.c.bf16 %v5941_v45, %v5940_v25  ;;  %v5997_v25 = vld [vmem:[#allocation3 + $0xa8] sm:$0xff]  ;;  %v5999_v45 = vld [vmem:[#allocation3 + $0xc0] sm:$0xff] }
 0x577   : > { %5972 = vst [vmem:[#allocation3 + $0x111] sm:$0xff] %v5939_v34  ;;  %v12444_v5 = vpop.f32.mrb[152].mxu1  ;;  %v16306_v18 = vpack.c.bf16 %v5939_v34, %v5938_v0  ;;  %v6159_v55 = vld [vmem:[#allocation3 + $0xda] sm:$0xff]  ;;  %v6160_v34 = vld [vmem:[#allocation3 + $0xe2] sm:$0xff]  ;;  %v16346_v26 = vpack.c.bf16 %v6000_v56, %v5999_v45 }
 0x578   : > { %v5896_v15 = vadd.f32 %v12444_v5, %v16169_v11  ;;  %v5887_v2 = vpop.f32.mrb[153].mxu1  ;;  %v5996_v11 = vld [vmem:[#allocation3 + $0x98] sm:$0xff]  ;;  %v16349_v62 = vpack.c.bf16 %v6160_v34, %v6159_v55 }
 0x579   : > { %12465 = vmatpush3.bf16.msra.mxu0 %v13578_v24  ;;  %v5888_v10 = vadd.f32 %v5887_v2, %v16155_v7  ;;  %v12445_v27 = vpop.f32.mrb[154].mxu1  ;;  %v16320_v19 = vpack.c.bf16 %v5996_v11, %v5995_v35  ;;  %v6161_v5 = vld [vmem:[#allocation3 + $0xf2] sm:$0xff] }
 0x57a   : > { %v5944_v33 = vmax.f32 %v5896_v15, 0.0  ;;  %v5899_v48 = vadd.f32 %v12445_v27, %v16171_v21  ;;  %v5890_v41 = vpop.f32.mrb[155].mxu1  ;;  %v6162_v15 = vld [vmem:[#allocation3 + $0xfa] sm:$0xff]  ;;  %v6003_v27 = vld [vmem:[#allocation3 + $0xf0] sm:$0xff] }
 0x57b   : > { %7072 = vmatmul.mubr.bf16.gmra.mrb[180].mxu1 %v16304_v52  ;;  %7386 = vmatmul.mubr.bf16.gmra.mrb[48].mxu0 %v16243_v44  ;;  %v5942_v23 = vmax.f32 %v5888_v10, 0.0  ;;  %v5891_v39 = vadd.f32 %v5890_v41, %v16160_v14  ;;  %v16357_v10 = vpack.c.bf16 %v6162_v15, %v6161_v5  ;;  %v6007_v53 = vld [vmem:[#allocation3 + $0x120] sm:$0xff] }
 0x57c   : > { %7079 = vmatprep.mubr.bf16.mxu1 %v16241_v22  ;;  %7393 = vmatprep.mubr.bf16.mxu0 %v16311_v61  ;;  %5977 = vst [vmem:[#allocation3 + $0x151] sm:$0xff] %v5944_v33  ;;  %v5945_v7 = vmax.f32 %v5899_v48, 0.0 }
 0x57d   : > { %5975 = vst [vmem:[#allocation3 + $0x139] sm:$0xff] %v5942_v23  ;;  %v5943_v30 = vmax.f32 %v5891_v39, 0.0  ;;  %v6005_v39 = vld [vmem:[#allocation3 + $0x108] sm:$0xff] }
 0x57e   : > { %5978 = vst [vmem:[#allocation3 + $0x159] sm:$0xff] %v5945_v7  ;;  %v16318_v21 = vpack.c.bf16 %v5945_v7, %v5944_v33  ;;  %v6163_v33 = vld [vmem:[#allocation3 + $0x10a] sm:$0xff]  ;;  %v6164_v48 = vld [vmem:[#allocation3 + $0x112] sm:$0xff]  ;;  %v6165_v7 = vld [vmem:[#allocation3 + $0x122] sm:$0xff] }
 0x57f   : > { %5976 = vst [vmem:[#allocation3 + $0x141] sm:$0xff] %v5943_v30  ;;  %v12448_v44 = vpop.f32.mrb[156].mxu1  ;;  %v16322_v63 = vpack.c.bf16 %v5943_v30, %v5942_v23  ;;  %v16365_v23 = vpack.c.bf16 %v6164_v48, %v6163_v33  ;;  %v6166_v11 = vld [vmem:[#allocation3 + $0x12a] sm:$0xff]  ;;  %v6082_v48 = vld [vmem:[#allocation3 + $0x38] sm:$0xff] }
 0x580   : > { %v5912_v14 = vadd.f32 %v12448_v44, %v16197_v58  ;;  %v5903_v31 = vpop.f32.mrb[157].mxu1  ;;  %v5998_v58 = vld [vmem:[#allocation3 + $0xb0] sm:$0xff]  ;;  %v16373_v35 = vpack.c.bf16 %v6166_v11, %v6165_v7  ;;  %v13582_v11 = vld [vmem:[%s17818_s5 + $0x190] sm:$0xff]  }
 0x581   : > { %v5904_v36 = vadd.f32 %v5903_v31, %v16182_v13  ;;  %v12449_v8 = vpop.f32.mrb[158].mxu1  ;;  %v13576_v33 = vld [vmem:[%s17818_s5 + $0x180] sm:$0xff]  }
 0x582   : > { %v5948_v60 = vmax.f32 %v5912_v14, 0.0  ;;  %v5915_v46 = vadd.f32 %v12449_v8, %v16199_v16  ;;  %v5906_v1 = vpop.f32.mrb[159].mxu1 }
 0x583   : > { %7080 = vmatmul.mubr.bf16.gmra.mrb[184].mxu1 %v16320_v19  ;;  %7394 = vmatmul.mubr.bf16.gmra.mrb[52].mxu0 %v16241_v22  ;;  %v5946_v24 = vmax.f32 %v5904_v36, 0.0  ;;  %v5907_v12 = vadd.f32 %v5906_v1, %v16188_v43  ;;  %v16336_v22 = vpack.c.bf16 %v5998_v58, %v5997_v25  ;;  %v16341_v43 = vpack.c.bf16 %v6158_v38, %v6157_v40  ;;  %v6011_v40 = vld [vmem:[#allocation3 + $0x150] sm:$0xff] }
 0x584   : > { %7087 = vmatprep.mubr.bf16.mxu1 %v16265_v47  ;;  %7401 = vmatprep.mubr.bf16.mxu0 %v16327_v49  ;;  %5981 = vst [vmem:[#allocation3 + $0x181] sm:$0xff] %v5948_v60  ;;  %v5949_v13 = vmax.f32 %v5915_v46, 0.0 }
 0x585   : > { %5979 = vst [vmem:[#allocation3 + $0x169] sm:$0xff] %v5946_v24  ;;  %v5947_v4 = vmax.f32 %v5907_v12, 0.0  ;;  %v6009_v12 = vld [vmem:[#allocation3 + $0x138] sm:$0xff] }
 0x586   : > { %5982 = vst [vmem:[#allocation3 + $0x189] sm:$0xff] %v5949_v13  ;;  %v16334_v16 = vpack.c.bf16 %v5949_v13, %v5948_v60  ;;  %v6167_v3 = vld [vmem:[#allocation3 + $0x13a] sm:$0xff]  ;;  %v6168_v44 = vld [vmem:[#allocation3 + $0x142] sm:$0xff]  ;;  %v6169_v13 = vld [vmem:[#allocation3 + $0x152] sm:$0xff] }
 0x587   : > { %5980 = vst [vmem:[#allocation3 + $0x171] sm:$0xff] %v5947_v4  ;;  %v16338_v0 = vpack.c.bf16 %v5947_v4, %v5946_v24  ;;  %v16383_v46 = vpack.c.bf16 %v6168_v44, %v6167_v3  ;;  %v6010_v24 = vld [vmem:[#allocation3 + $0x140] sm:$0xff]  ;;  %v13588_v3 = vld [vmem:[%s17818_s5 + $0x1a8] sm:$0xff]  }
 0x588   : > { %v6170_v58 = vld [vmem:[#allocation3 + $0x15a] sm:$0xff]  ;;  %v16390_v4 = vpack.c.bf16 %v6010_v24, %v6009_v12 }
 0x589   : > { %v16393_v25 = vpack.c.bf16 %v6170_v58, %v6169_v13  ;;  %v13589_v44 = vld [vmem:[%s17818_s5 + $0x1f0] sm:$0xff]  }
 0x58b   : > { %7088 = vmatmul.mubr.bf16.gmra.mrb[188].mxu1 %v16336_v22  ;;  %7402 = vmatmul.mubr.bf16.gmra.mrb[56].mxu0 %v16265_v47  ;;  %v6002_v47 = vld [vmem:[#allocation3 + $0xe0] sm:$0xff] }
 0x58c   : > { %7095 = vmatprep.mubr.bf16.mxu1 %v16261_v28  ;;  %7409 = vmatprep.mubr.bf16.mxu0 %v16341_v43  ;;  %v16354_v2 = vpack.c.bf16 %v6002_v47, %v6001_v6  ;;  %v6013_v34 = vld [vmem:[#allocation3 + $0x168] sm:$0xff] }
 0x58d   : > { %v6173_v47 = vld [vmem:[#allocation3 + $0x182] sm:$0xff]  ;;  %v6174_v6 = vld [vmem:[#allocation3 + $0x18a] sm:$0xff] }
 0x58e   : > { %v6171_v38 = vld [vmem:[#allocation3 + $0x16a] sm:$0xff]  ;;  %v6172_v56 = vld [vmem:[#allocation3 + $0x172] sm:$0xff]  ;;  %v16409_v15 = vpack.c.bf16 %v6174_v6, %v6173_v47  ;;  %v6109_v6 = vld [vmem:[#allocation3 + $0x180] sm:$0xff] }
 0x58f   : > { %v16401_v55 = vpack.c.bf16 %v6172_v56, %v6171_v38 }
 0x593   : > { %7096 = vmatmul.mubr.bf16.gmra.mrb[192].mxu1 %v16346_v26  ;;  %7410 = vmatmul.mubr.bf16.gmra.mrb[60].mxu0 %v16261_v28  ;;  %v6004_v28 = vld [vmem:[#allocation3 + $0xf8] sm:$0xff] }
 0x594   : > { %7103 = vmatprep.mubr.bf16.mxu1 %v16287_v17  ;;  %7417 = vmatprep.mubr.bf16.mxu0 %v16349_v62  ;;  %v16362_v41 = vpack.c.bf16 %v6004_v28, %v6003_v27  ;;  %v6047_v28 = vld [vmem:[#allocation3 + $0x2] sm:$0xff] }
 0x599   : > { %v11260_v14 = vpop.f32.mrb[160].mxu1 }
 0x59a   : > { %v11261_v36 = vpop.f32.mrb[161].mxu1 }
 0x59b   : > { %7104 = vmatmul.mubr.bf16.gmra.mrb[196].mxu1 %v16354_v2  ;;  %7418 = vmatmul.mubr.bf16.gmra.mrb[64].mxu0 %v16287_v17  ;;  %v6006_v17 = vld [vmem:[#allocation3 + $0x110] sm:$0xff]  ;;  %v16380_v8 = vadd.f32 %v11261_v36, %v11260_v14  ;;  %v11263_v60 = vpop.f32.mrb[162].mxu1  ;;  %v13592_v14 = vld [vmem:[%s17818_s5 + $0x1b8] sm:$0xff]  }
 0x59c   : > { %7111 = vmatprep.mubr.bf16.mxu1 %v16283_v59  ;;  %7425 = vmatprep.mubr.bf16.mxu0 %v16357_v10  ;;  %v16370_v30 = vpack.c.bf16 %v6006_v17, %v6005_v39  ;;  %v6081_v17 = vld [vmem:[#allocation3 + $0x30] sm:$0xff]  ;;  %v13579_v39 = vld [vmem:[%s17818_s5 + $0x1c8] sm:$0xff]  }
 0x59d   : > { %v6284_v7 = vpack.c.bf16 %v6082_v48, %v6081_v17 }
 0x5a3   : > { %7112 = vmatmul.mubr.bf16.gmra.mrb[200].mxu1 %v16362_v41  ;;  %7426 = vmatmul.mubr.bf16.gmra.mrb[68].mxu0 %v16283_v59  ;;  %v6008_v59 = vld [vmem:[#allocation3 + $0x128] sm:$0xff] }
 0x5a4   : > { %7119 = vmatprep.mubr.bf16.mxu1 %v16306_v18  ;;  %7433 = vmatprep.mubr.bf16.mxu0 %v16365_v23  ;;  %v16378_v31 = vpack.c.bf16 %v6008_v59, %v6007_v53  ;;  %v13584_v59 = vld [vmem:[%s17818_s5 + $0x198] sm:$0xff]   ;;  %v13585_v53 = vld [vmem:[%s17818_s5 + $0x1e0] sm:$0xff]  }
 0x5ab   : > { %7120 = vmatmul.mubr.bf16.gmra.mrb[204].mxu1 %v16370_v30  ;;  %7434 = vmatmul.mubr.bf16.gmra.mrb[72].mxu0 %v16306_v18  ;;  %v11264_v18 = vpop.f32.mrb[163].mxu1 }
 0x5ac   : > { %7127 = vmatprep.mubr.bf16.mxu1 %v16302_v42  ;;  %7441 = vmatprep.mubr.bf16.mxu0 %v16373_v35  ;;  %v16387_v1 = vadd.f32 %v11264_v18, %v11263_v60 }
 0x5b3   : > { %7128 = vmatmul.mubr.bf16.gmra.mrb[208].mxu1 %v16378_v31  ;;  %7442 = vmatmul.mubr.bf16.gmra.mrb[76].mxu0 %v16302_v42  ;;  %v6012_v42 = vld [vmem:[#allocation3 + $0x158] sm:$0xff] }
 0x5b4   : > { %7135 = vmatprep.mubr.bf16.mxu1 %v16322_v63  ;;  %7449 = vmatprep.mubr.bf16.mxu0 %v16383_v46  ;;  %v16398_v45 = vpack.c.bf16 %v6012_v42, %v6011_v40  ;;  %v6110_v40 = vld [vmem:[#allocation3 + $0x188] sm:$0xff] }
 0x5bb   : > { %7136 = vmatmul.mubr.bf16.gmra.mrb[212].mxu1 %v16390_v4  ;;  %7450 = vmatmul.mubr.bf16.gmra.mrb[80].mxu0 %v16322_v63  ;;  %v6014_v63 = vld [vmem:[#allocation3 + $0x170] sm:$0xff] }
 0x5bc   : > { %7143 = vmatprep.mubr.bf16.mxu1 %v16318_v21  ;;  %7457 = vmatprep.mubr.bf16.mxu0 %v16393_v25  ;;  %v16406_v5 = vpack.c.bf16 %v6014_v63, %v6013_v34 }
 0x5c3   : > { %7144 = vmatmul.mubr.bf16.gmra.mrb[216].mxu1 %v16398_v45  ;;  %7458 = vmatmul.mubr.bf16.gmra.mrb[84].mxu0 %v16318_v21  ;;  %v6048_v21 = vld [vmem:[#allocation3 + $0xa] sm:$0xff] }
 0x5c4   : > { %7151 = vmatprep.mubr.bf16.mxu1 %v16338_v0  ;;  %7465 = vmatprep.mubr.bf16.mxu0 %v16401_v55  ;;  %v6274_v27 = vpack.c.bf16 %v6048_v21, %v6047_v28  ;;  %v16523_v21 = vpack.c.bf16 %v6110_v40, %v6109_v6  ;;  %v6178_v40 = vld [vmem:[#allocation3 + $0x48] sm:$0xff] }
 0x5c5   : > { %v6212_v6 = vld [vmem:[#allocation3 + $0x61] sm:$0xff] }
 0x5cb   : > { %7152 = vmatmul.mubr.bf16.gmra.mrb[220].mxu1 %v16406_v5  ;;  %7466 = vmatmul.mubr.bf16.gmra.mrb[88].mxu0 %v16338_v0  ;;  %v13581_v0 = vld [vmem:[%s17818_s5 + $0x1d0] sm:$0xff]  }
 0x5cc   : > { %7192 = vmatprep.mubr.bf16.mxu1 %v16220_v9  ;;  %7473 = vmatprep.mubr.bf16.mxu0 %v16409_v15  ;;  %v13580_v9 = vld [vmem:[%s17818_s5 + $0x188] sm:$0xff]  }
 0x5d3   : > { %7193 = vmatmul.mubr.bf16.vlgmr.msra.gmra.mrb[224].mxu1 %v6274_v27  ;;  %7474 = vmatmul.mubr.bf16.gmra.mrb[92].mxu0 %v16334_v16  ;;  %v13583_v16 = vld [vmem:[%s17818_s5 + $0x1d8] sm:$0xff]  }
 0x5d4   : > { %11581 = vmatpush3.bf16.msra.mxu1 %v13576_v33  ;;  %7200 = vmatprep.mubr.bf16.mxu1 %v6284_v7  ;;  %v6271_v27 = vld [vmem:[#allocation3 + $0x1a2] sm:$0xff]  ;;  %v6209_v7 = vld [vmem:[#allocation3 + $0x39] sm:$0xff] }
 0x5d5   : > { %12466 = vmatprep.mubr.bf16.mxu0 %v16231_v20  ;;  %11582 = vmatprep.subr.bf16.mxu1 %v13579_v39 }
 0x5d8   : > { %11583 = vmatpush3.bf16.msra.mxu1 %v13580_v9 }
 0x5d9   : > { %11584 = vmatprep.subr.bf16.mxu1 %v13581_v0 }
 0x5db   : > { %7201 = vmatmul.mubr.bf16.gmra.mrb[228].mxu1 %v16218_v51  ;;  %12467 = vmatmul.mubr.bf16.vlgmr.msra.gmra.mrb[96].mxu0 %v16251_v37  ;;  %v13586_v51 = vld [vmem:[%s17818_s5 + $0x1a0] sm:$0xff]  }
 0x5dc   : > { %7208 = vmatprep.mubr.bf16.mxu1 %v16263_v50  ;;  %12470 = vmatprep.mubr.bf16.mxu0 %v16273_v54  ;;  %v13587_v50 = vld [vmem:[%s17818_s5 + $0x1e8] sm:$0xff]  }
 0x5dd   : > { %11585 = vmatpush3.bf16.msra.mxu1 %v13582_v11 }
 0x5de   : > { %11586 = vmatprep.subr.bf16.mxu1 %v13583_v16 }
 0x5e1   : > { %11587 = vmatpush3.bf16.msra.mxu1 %v13584_v59 }
 0x5e2   : > { %11588 = vmatprep.subr.bf16.mxu1 %v13585_v53 }
 0x5e3   : > { %7209 = vmatmul.mubr.bf16.gmra.mrb[232].mxu1 %v16231_v20  ;;  %12471 = vmatmul.mubr.bf16.gmra.mrb[100].mxu0 %v16295_v57  ;;  %v13590_v20 = vld [vmem:[%s17818_s5 + $0x1b0] sm:$0xff]  }
 0x5e4   : > { %7216 = vmatprep.mubr.bf16.mxu1 %v16285_v29  ;;  %12474 = vmatprep.mubr.bf16.mxu0 %v16311_v61  ;;  %v13591_v29 = vld [vmem:[%s17818_s5 + $0x1f8] sm:$0xff]  }
 0x5e5   : > { %11589 = vmatpush3.bf16.msra.mxu1 %v13586_v51  ;;  %v6208_v51 = vld [vmem:[#allocation3 + $0x31] sm:$0xff] }
 0x5e6   : > { %11590 = vmatprep.subr.bf16.mxu1 %v13587_v50 }
 0x5e9   : > { %11591 = vmatpush3.bf16.msra.mxu1 %v13588_v3  ;;  %v6279_v3 = vpack.c.bf16 %v6209_v7, %v6208_v51  ;;  %v6215_v7 = vld [vmem:[#allocation3 + $0x81] sm:$0xff] }
 0x5ea   : > { %11592 = vmatprep.subr.bf16.mxu1 %v13589_v44 }
 0x5eb   : > { %7217 = vmatmul.mubr.bf16.gmra.mrb[236].mxu1 %v16251_v37  ;;  %12475 = vmatmul.mubr.bf16.gmra.mrb[104].mxu0 %v16327_v49 }
 0x5ec   : > { %7224 = vmatprep.mubr.bf16.mxu1 %v16304_v52  ;;  %12478 = vmatprep.mubr.bf16.mxu0 %v16341_v43 }
 0x5ed   : > { %11593 = vmatpush3.bf16.msra.mxu1 %v13590_v20 }
 0x5ee   : > { %11594 = vmatprep.subr.bf16.mxu1 %v13591_v29 }
 0x5f1   : > { %11595 = vmatpush3.bf16.msra.mxu1 %v13592_v14 }
 0x5f3   : > { %7225 = vmatmul.mubr.bf16.gmra.mrb[240].mxu1 %v16273_v54  ;;  %12479 = vmatmul.mubr.bf16.gmra.mrb[108].mxu0 %v16349_v62 }
 0x5f4   : > { %7232 = vmatprep.mubr.bf16.mxu1 %v16320_v19  ;;  %12482 = vmatprep.mubr.bf16.mxu0 %v16357_v10 }
 0x5fb   : > { %7233 = vmatmul.mubr.bf16.gmra.mrb[244].mxu1 %v16295_v57  ;;  %12483 = vmatmul.mubr.bf16.gmra.mrb[112].mxu0 %v16365_v23 }
 0x5fc   : > { %7240 = vmatprep.mubr.bf16.mxu1 %v16336_v22  ;;  %12486 = vmatprep.mubr.bf16.mxu0 %v16373_v35 }
 0x603   : > { %7241 = vmatmul.mubr.bf16.gmra.mrb[248].mxu1 %v16311_v61  ;;  %12487 = vmatmul.mubr.bf16.gmra.mrb[116].mxu0 %v16383_v46 }
 0x604   : > { %7248 = vmatprep.mubr.bf16.mxu1 %v16346_v26  ;;  %12490 = vmatprep.mubr.bf16.mxu0 %v16393_v25 }
 0x60b   : > { %7249 = vmatmul.mubr.bf16.gmra.mrb[252].mxu1 %v16327_v49  ;;  %12491 = vmatmul.mubr.bf16.gmra.mrb[120].mxu0 %v16401_v55 }
 0x60c   : > { %7256 = vmatprep.mubr.bf16.mxu1 %v16354_v2  ;;  %12494 = vmatprep.mubr.bf16.mxu0 %v16409_v15 }
 0x613   : > { %7257 = vmatmul.mubr.bf16.gmra.mrb[0].mxu1 %v16341_v43 }
 0x614   : > { %7264 = vmatprep.mubr.bf16.mxu1 %v16362_v41 }
 0x61b   : > { %7265 = vmatmul.mubr.bf16.gmra.mrb[4].mxu1 %v16349_v62 }
 0x61c   : > { %7272 = vmatprep.mubr.bf16.mxu1 %v16370_v30 }
 0x623   : > { %7273 = vmatmul.mubr.bf16.gmra.mrb[8].mxu1 %v16357_v10 }
 0x624   : > { %7280 = vmatprep.mubr.bf16.mxu1 %v16378_v31 }
 0x62b   : > { %7281 = vmatmul.mubr.bf16.gmra.mrb[12].mxu1 %v16365_v23 }
 0x62c   : > { %7288 = vmatprep.mubr.bf16.mxu1 %v16390_v4 }
 0x62e   : > { %v11266_v37 = vpop.f32.mrb[164].mxu1  ;;  %v11484_v54 = vpop.f32.mrb[32].mxu0 }
 0x62f   : > { %v11267_v57 = vpop.f32.mrb[165].mxu1  ;;  %v11485_v61 = vpop.f32.mrb[33].mxu0 }
 0x630   : > { %v16497_v52 = vadd.f32 %v11267_v57, %v11266_v37  ;;  %v11269_v19 = vpop.f32.mrb[166].mxu1  ;;  %v16499_v49 = vadd.f32 %v11485_v61, %v11484_v54  ;;  %v11487_v22 = vpop.f32.mrb[34].mxu0  ;;  %v6211_v37 = vld [vmem:[#allocation3 + $0x51] sm:$0xff] }
 0x631   : > { %v11270_v43 = vpop.f32.mrb[167].mxu1  ;;  %v11488_v62 = vpop.f32.mrb[35].mxu0 }
 0x632   : > { %v16501_v26 = vadd.f32 %v11270_v43, %v11269_v19  ;;  %v16503_v2 = vadd.f32 %v11488_v62, %v11487_v22  ;;  %v6210_v62 = vld [vmem:[#allocation3 + $0x49] sm:$0xff] }
 0x633   : > { %7289 = vmatmul.mubr.bf16.gmra.mrb[16].mxu1 %v16373_v35 }
 0x634   : > { %7296 = vmatprep.mubr.bf16.mxu1 %v16398_v45 }
 0x636   : > { %v11272_v10 = vpop.f32.mrb[168].mxu1  ;;  %v11490_v41 = vpop.f32.mrb[36].mxu0 }
 0x637   : > { %v11273_v23 = vpop.f32.mrb[169].mxu1  ;;  %v11491_v31 = vpop.f32.mrb[37].mxu0 }
 0x638   : > { %v16507_v30 = vadd.f32 %v11273_v23, %v11272_v10  ;;  %v11275_v36 = vpop.f32.mrb[170].mxu1  ;;  %v16509_v60 = vadd.f32 %v11491_v31, %v11490_v41  ;;  %v11493_v18 = vpop.f32.mrb[38].mxu0  ;;  %v6288_v23 = vpack.c.bf16 %v6211_v37, %v6210_v62 }
 0x639   : > { %v11276_v24 = vpop.f32.mrb[171].mxu1  ;;  %v11494_v13 = vpop.f32.mrb[39].mxu0 }
 0x63a   : > { %v16511_v12 = vadd.f32 %v11276_v24, %v11275_v36  ;;  %v16513_v58 = vadd.f32 %v11494_v13, %v11493_v18  ;;  %v6179_v36 = vld [vmem:[#allocation3 + $0x50] sm:$0xff] }
 0x63b   : > { %7297 = vmatmul.mubr.bf16.gmra.mrb[20].mxu1 %v16383_v46  ;;  %v6213_v13 = vld [vmem:[#allocation3 + $0x69] sm:$0xff] }
 0x63c   : > { %7304 = vmatprep.mubr.bf16.mxu1 %v16406_v5  ;;  %v6270_v5 = vld [vmem:[#allocation3 + $0x19a] sm:$0xff] }
 0x63d   : > { %v6415_v33 = vpack.c.bf16 %v6271_v27, %v6270_v5  ;;  %v6297_v5 = vpack.c.bf16 %v6213_v13, %v6212_v6 }
 0x63e   : > { %v11278_v35 = vpop.f32.mrb[172].mxu1  ;;  %v11496_v4 = vpop.f32.mrb[40].mxu0 }
 0x63f   : > { %v11279_v42 = vpop.f32.mrb[173].mxu1  ;;  %v11497_v56 = vpop.f32.mrb[41].mxu0  ;;  %12495 = vmatmul.mubr.bf16.gmra.mrb[124].mxu0 %v6415_v33 }
 0x640   : > { %v16517_v38 = vadd.f32 %v11279_v42, %v11278_v35  ;;  %v11281_v45 = vpop.f32.mrb[174].mxu1  ;;  %v16519_v63 = vadd.f32 %v11497_v56, %v11496_v4  ;;  %v11499_v34 = vpop.f32.mrb[42].mxu0 }
 0x641   : > { %v11282_v47 = vpop.f32.mrb[175].mxu1  ;;  %v11500_v28 = vpop.f32.mrb[43].mxu0 }
 0x642   : > { %v16521_v15 = vadd.f32 %v11282_v47, %v11281_v45  ;;  %v16525_v46 = vadd.f32 %v11500_v28, %v11499_v34  ;;  %v6287_v47 = vpack.c.bf16 %v6179_v36, %v6178_v40 }
 0x643   : > { %7305 = vmatmul.mubr.bf16.gmra.mrb[24].mxu1 %v16393_v25 }
 0x644   : > { %7312 = vmatprep.mubr.bf16.mxu1 %v16523_v21 }
 0x646   : > { %v11284_v48 = vpop.f32.mrb[176].mxu1  ;;  %v11502_v17 = vpop.f32.mrb[44].mxu0 }
 0x647   : > { %v11285_v39 = vpop.f32.mrb[177].mxu1  ;;  %v11503_v0 = vpop.f32.mrb[45].mxu0 }
 0x648   : > { %v16529_v9 = vadd.f32 %v11285_v39, %v11284_v48  ;;  %v11287_v11 = vpop.f32.mrb[178].mxu1  ;;  %v16531_v16 = vadd.f32 %v11503_v0, %v11502_v17  ;;  %v11505_v59 = vpop.f32.mrb[46].mxu0  ;;  %v6181_v48 = vld [vmem:[#allocation3 + $0x68] sm:$0xff] }
 0x649   : > { %v11288_v53 = vpop.f32.mrb[179].mxu1  ;;  %v11506_v50 = vpop.f32.mrb[47].mxu0 }
 0x64a   : > { %v16533_v25 = vadd.f32 %v11288_v53, %v11287_v11  ;;  %v16535_v44 = vadd.f32 %v11506_v50, %v11505_v59  ;;  %v6180_v53 = vld [vmem:[#allocation3 + $0x60] sm:$0xff] }
 0x64b   : > { %7313 = vmatmul.mubr.bf16.gmra.mrb[28].mxu1 %v16401_v55 }
 0x64c   : > { %7514 = vmatprep.mubr.bf16.mxu1 %v6279_v3 }
 0x64e   : > { %v11290_v20 = vpop.f32.mrb[180].mxu1  ;;  %v11508_v29 = vpop.f32.mrb[48].mxu0 }
 0x64f   : > { %v11291_v14 = vpop.f32.mrb[181].mxu1  ;;  %v11509_v57 = vpop.f32.mrb[49].mxu0 }
 0x650   : > { %v16538_v54 = vadd.f32 %v11291_v14, %v11290_v20  ;;  %v11293_v61 = vpop.f32.mrb[182].mxu1  ;;  %v16540_v19 = vadd.f32 %v11509_v57, %v11508_v29  ;;  %v11511_v22 = vpop.f32.mrb[50].mxu0  ;;  %v6296_v20 = vpack.c.bf16 %v6181_v48, %v6180_v53  ;;  %v6214_v29 = vld [vmem:[#allocation3 + $0x79] sm:$0xff]  ;;  %v6184_v53 = vld [vmem:[#allocation3 + $0x90] sm:$0xff] }
 0x651   : > { %v11294_v43 = vpop.f32.mrb[183].mxu1  ;;  %v11512_v41 = vpop.f32.mrb[51].mxu0  ;;  %v6306_v57 = vpack.c.bf16 %v6215_v7, %v6214_v29 }
 0x652   : > { %v16542_v10 = vadd.f32 %v11294_v43, %v11293_v61  ;;  %v16544_v31 = vadd.f32 %v11512_v41, %v11511_v22  ;;  %v6183_v43 = vld [vmem:[#allocation3 + $0x80] sm:$0xff] }
 0x653   : > { %7515 = vmatmul.mubr.bf16.vlgmr.msra.gmra.mrb[32].mxu1 %v16216_v32 }
 0x654   : > { %7522 = vmatprep.mubr.bf16.mxu1 %v6288_v23  ;;  %v6217_v23 = vld [vmem:[#allocation3 + $0x99] sm:$0xff] }
 0x656   : > { %v11296_v55 = vpop.f32.mrb[184].mxu1  ;;  %v11514_v18 = vpop.f32.mrb[52].mxu0 }
 0x657   : > { %v11297_v24 = vpop.f32.mrb[185].mxu1  ;;  %v11515_v4 = vpop.f32.mrb[53].mxu0 }
 0x658   : > { %v16547_v35 = vadd.f32 %v11297_v24, %v11296_v55  ;;  %v11299_v42 = vpop.f32.mrb[186].mxu1  ;;  %v16549_v56 = vadd.f32 %v11515_v4, %v11514_v18  ;;  %v11517_v45 = vpop.f32.mrb[54].mxu0  ;;  %v6182_v24 = vld [vmem:[#allocation3 + $0x78] sm:$0xff] }
 0x659   : > { %v11300_v34 = vpop.f32.mrb[187].mxu1  ;;  %v11518_v32 = vpop.f32.mrb[55].mxu0  ;;  %v6305_v40 = vpack.c.bf16 %v6183_v43, %v6182_v24  ;;  %v6221_v24 = vld [vmem:[#allocation3 + $0xc9] sm:$0xff] }
 0x65a   : > { %v16551_v28 = vadd.f32 %v11300_v34, %v11299_v42  ;;  %v16553_v27 = vadd.f32 %v11518_v32, %v11517_v45  ;;  %v6216_v45 = vld [vmem:[#allocation3 + $0x91] sm:$0xff] }
 0x65b   : > { %7523 = vmatmul.mubr.bf16.gmra.mrb[36].mxu1 %v6287_v47  ;;  %v6315_v6 = vpack.c.bf16 %v6217_v23, %v6216_v45  ;;  %v6187_v23 = vld [vmem:[#allocation3 + $0xb0] sm:$0xff]  ;;  %v6186_v45 = vld [vmem:[#allocation3 + $0xa8] sm:$0xff] }
 0x65c   : > { %7530 = vmatprep.mubr.bf16.mxu1 %v6297_v5 }
 0x65e   : > { %v11302_v33 = vpop.f32.mrb[188].mxu1  ;;  %v11520_v17 = vpop.f32.mrb[56].mxu0 }
 0x65f   : > { %v11303_v39 = vpop.f32.mrb[189].mxu1  ;;  %v11521_v11 = vpop.f32.mrb[57].mxu0 }
 0x660   : > { %v16555_v0 = vadd.f32 %v11303_v39, %v11302_v33  ;;  %v11305_v59 = vpop.f32.mrb[190].mxu1  ;;  %v16557_v51 = vadd.f32 %v11521_v11, %v11520_v17  ;;  %v11523_v50 = vpop.f32.mrb[58].mxu0  ;;  %v6185_v33 = vld [vmem:[#allocation3 + $0x98] sm:$0xff] }
 0x661   : > { %v11306_v3 = vpop.f32.mrb[191].mxu1  ;;  %v11524_v37 = vpop.f32.mrb[59].mxu0  ;;  %v6219_v39 = vld [vmem:[#allocation3 + $0xb1] sm:$0xff]  ;;  %v6314_v29 = vpack.c.bf16 %v6185_v33, %v6184_v53  ;;  %v6323_v33 = vpack.c.bf16 %v6187_v23, %v6186_v45 }
 0x662   : > { %v16559_v14 = vadd.f32 %v11306_v3, %v11305_v59  ;;  %v16561_v61 = vadd.f32 %v11524_v37, %v11523_v50  ;;  %v6218_v37 = vld [vmem:[#allocation3 + $0xa9] sm:$0xff] }
 0x663   : > { %7531 = vmatmul.mubr.bf16.gmra.mrb[40].mxu1 %v6296_v20  ;;  %v6324_v43 = vpack.c.bf16 %v6219_v39, %v6218_v37  ;;  %v6223_v37 = vld [vmem:[#allocation3 + $0xe1] sm:$0xff] }
 0x664   : > { %7538 = vmatprep.mubr.bf16.mxu1 %v6306_v57 }
 0x666   : > { %v11308_v22 = vpop.f32.mrb[192].mxu1  ;;  %v11526_v62 = vpop.f32.mrb[60].mxu0 }
 0x667   : > { %v11309_v41 = vpop.f32.mrb[193].mxu1  ;;  %v11527_v36 = vpop.f32.mrb[61].mxu0 }
 0x668   : > { %v16563_v55 = vadd.f32 %v11309_v41, %v11308_v22  ;;  %v11311_v18 = vpop.f32.mrb[194].mxu1  ;;  %v16565_v13 = vadd.f32 %v11527_v36, %v11526_v62  ;;  %v11529_v4 = vpop.f32.mrb[62].mxu0 }
 0x669   : > { %v11312_v42 = vpop.f32.mrb[195].mxu1  ;;  %v11530_v47 = vpop.f32.mrb[63].mxu0 }
 0x66a   : > { %v16567_v34 = vadd.f32 %v11312_v42, %v11311_v18  ;;  %v16569_v32 = vadd.f32 %v11530_v47, %v11529_v4 }
 0x66b   : > { %7539 = vmatmul.mubr.bf16.gmra.mrb[44].mxu1 %v6305_v40 }
 0x66c   : > { %7546 = vmatprep.mubr.bf16.mxu1 %v6315_v6 }
 0x66e   : > { %v11314_v5 = vpop.f32.mrb[196].mxu1  ;;  %v11532_v48 = vpop.f32.mrb[64].mxu0 }
 0x66f   : > { %v11315_v17 = vpop.f32.mrb[197].mxu1  ;;  %v11533_v11 = vpop.f32.mrb[65].mxu0 }
 0x670   : > { %v16571_v7 = vadd.f32 %v11315_v17, %v11314_v5  ;;  %v11317_v59 = vpop.f32.mrb[198].mxu1  ;;  %v16573_v50 = vadd.f32 %v11533_v11, %v11532_v48  ;;  %v11535_v3 = vpop.f32.mrb[66].mxu0  ;;  %v6220_v48 = vld [vmem:[#allocation3 + $0xc1] sm:$0xff] }
 0x671   : > { %v11318_v20 = vpop.f32.mrb[199].mxu1  ;;  %v11536_v22 = vpop.f32.mrb[67].mxu0  ;;  %v6333_v11 = vpack.c.bf16 %v6221_v24, %v6220_v48  ;;  %v6222_v24 = vld [vmem:[#allocation3 + $0xd9] sm:$0xff] }
 0x672   : > { %v16575_v57 = vadd.f32 %v11318_v20, %v11317_v59  ;;  %v16577_v62 = vadd.f32 %v11536_v22, %v11535_v3  ;;  %v6189_v3 = vld [vmem:[#allocation3 + $0xc8] sm:$0xff] }
 0x673   : > { %7547 = vmatmul.mubr.bf16.gmra.mrb[48].mxu1 %v6314_v29 }
 0x674   : > { %7554 = vmatprep.mubr.bf16.mxu1 %v6324_v43 }
 0x676   : > { %v11320_v41 = vpop.f32.mrb[200].mxu1  ;;  %v11538_v36 = vpop.f32.mrb[68].mxu0 }
 0x677   : > { %v11321_v18 = vpop.f32.mrb[201].mxu1  ;;  %v11539_v42 = vpop.f32.mrb[69].mxu0 }
 0x678   : > { %v16579_v4 = vadd.f32 %v11321_v18, %v11320_v41  ;;  %v11323_v40 = vpop.f32.mrb[202].mxu1  ;;  %v16581_v47 = vadd.f32 %v11539_v42, %v11538_v36  ;;  %v11541_v6 = vpop.f32.mrb[70].mxu0  ;;  %v6188_v36 = vld [vmem:[#allocation3 + $0xc0] sm:$0xff] }
 0x679   : > { %v11324_v5 = vpop.f32.mrb[203].mxu1  ;;  %v11542_v39 = vpop.f32.mrb[71].mxu0 }
 0x67a   : > { %v16583_v17 = vadd.f32 %v11324_v5, %v11323_v40  ;;  %v16585_v59 = vadd.f32 %v11542_v39, %v11541_v6  ;;  %v6332_v40 = vpack.c.bf16 %v6189_v3, %v6188_v36  ;;  %v6342_v5 = vpack.c.bf16 %v6223_v37, %v6222_v24  ;;  %v6191_v39 = vld [vmem:[#allocation3 + $0xe0] sm:$0xff]  ;;  %v6224_v37 = vld [vmem:[#allocation3 + $0xf1] sm:$0xff] }
 0x67b   : > { %7555 = vmatmul.mubr.bf16.gmra.mrb[52].mxu1 %v6323_v33 }
 0x67c   : > { %17933 = vst [vmem:[#allocation5_spill] sm:$0xff] %v16583_v17  ;;  %7562 = vmatprep.mubr.bf16.mxu1 %v6333_v11 }
 0x67e   : > { %v11326_v53 = vpop.f32.mrb[204].mxu1  ;;  %v11544_v20 = vpop.f32.mrb[72].mxu0 }
 0x67f   : > { %v11327_v29 = vpop.f32.mrb[205].mxu1  ;;  %v11545_v43 = vpop.f32.mrb[73].mxu0 }
 0x680   : > { %v16587_v22 = vadd.f32 %v11327_v29, %v11326_v53  ;;  %v11329_v41 = vpop.f32.mrb[206].mxu1  ;;  %v16589_v23 = vadd.f32 %v11545_v43, %v11544_v20  ;;  %v11547_v18 = vpop.f32.mrb[74].mxu0  ;;  %v6225_v29 = vld [vmem:[#allocation3 + $0xf9] sm:$0xff] }
 0x681   : > { %v11330_v42 = vpop.f32.mrb[207].mxu1  ;;  %v11548_v6 = vpop.f32.mrb[75].mxu0  ;;  %v6351_v24 = vpack.c.bf16 %v6225_v29, %v6224_v37  ;;  %v6226_v29 = vld [vmem:[#allocation3 + $0x109] sm:$0xff] }
 0x682   : > { %17934 = vst [vmem:[#allocation6_spill] sm:$0xff] %v16587_v22  ;;  %17935 = vst [vmem:[#allocation7_spill] sm:$0xff] %v16589_v23  ;;  %v16591_v45 = vadd.f32 %v11330_v42, %v11329_v41  ;;  %v16593_v33 = vadd.f32 %v11548_v6, %v11547_v18  ;;  %v6190_v23 = vld [vmem:[#allocation3 + $0xd8] sm:$0xff] }
 0x683   : > { %7563 = vmatmul.mubr.bf16.gmra.mrb[56].mxu1 %v6332_v40  ;;  %v6341_v42 = vpack.c.bf16 %v6191_v39, %v6190_v23 }
 0x684   : > { %17936 = vst [vmem:[#allocation8_spill] sm:$0xff] %v16591_v45  ;;  %17937 = vst [vmem:[#allocation9_spill] sm:$0xff] %v16593_v33  ;;  %7570 = vmatprep.mubr.bf16.mxu1 %v6342_v5  ;;  %v6227_v45 = vld [vmem:[#allocation3 + $0x111] sm:$0xff] }
 0x685   : > { %v6360_v37 = vpack.c.bf16 %v6227_v45, %v6226_v29  ;;  %v6228_v45 = vld [vmem:[#allocation3 + $0x121] sm:$0xff] }
 0x686   : > { %v11332_v48 = vpop.f32.mrb[208].mxu1  ;;  %v11550_v11 = vpop.f32.mrb[76].mxu0 }
 0x687   : > { %v11333_v53 = vpop.f32.mrb[209].mxu1  ;;  %v11551_v20 = vpop.f32.mrb[77].mxu0 }
 0x688   : > { %v16595_v22 = vadd.f32 %v11333_v53, %v11332_v48  ;;  %v11335_v43 = vpop.f32.mrb[210].mxu1  ;;  %v16597_v3 = vadd.f32 %v11551_v20, %v11550_v11  ;;  %v11553_v41 = vpop.f32.mrb[78].mxu0  ;;  %v6193_v48 = vld [vmem:[#allocation3 + $0xf8] sm:$0xff] }
 0x689   : > { %v11336_v36 = vpop.f32.mrb[211].mxu1  ;;  %v11554_v40 = vpop.f32.mrb[79].mxu0 }
 0x68a   : > { %17938 = vst [vmem:[#allocation10_spill] sm:$0xff] %v16595_v22  ;;  %17939 = vst [vmem:[#allocation11_spill] sm:$0xff] %v16597_v3  ;;  %v16599_v18 = vadd.f32 %v11336_v36, %v11335_v43  ;;  %v16601_v6 = vadd.f32 %v11554_v40, %v11553_v41  ;;  %v6192_v3 = vld [vmem:[#allocation3 + $0xf0] sm:$0xff] }
 0x68b   : > { %7571 = vmatmul.mubr.bf16.gmra.mrb[60].mxu1 %v6341_v42  ;;  %v6350_v36 = vpack.c.bf16 %v6193_v48, %v6192_v3 }
 0x68c   : > { %17940 = vst [vmem:[#allocation12_spill] sm:$0xff] %v16599_v18  ;;  %17941 = vst [vmem:[#allocation13_spill] sm:$0xff] %v16601_v6  ;;  %7578 = vmatprep.mubr.bf16.mxu1 %v6351_v24  ;;  %v6229_v18 = vld [vmem:[#allocation3 + $0x129] sm:$0xff] }
 0x68d   : > { %v6369_v29 = vpack.c.bf16 %v6229_v18, %v6228_v45  ;;  %v6230_v18 = vld [vmem:[#allocation3 + $0x139] sm:$0xff] }
 0x68e   : > { %v11338_v5 = vpop.f32.mrb[212].mxu1  ;;  %v11556_v53 = vpop.f32.mrb[80].mxu0 }
 0x68f   : > { %v11339_v22 = vpop.f32.mrb[213].mxu1  ;;  %v11557_v11 = vpop.f32.mrb[81].mxu0 }
 0x690   : > { %v16603_v33 = vadd.f32 %v11339_v22, %v11338_v5  ;;  %v11341_v20 = vpop.f32.mrb[214].mxu1  ;;  %v16605_v23 = vadd.f32 %v11557_v11, %v11556_v53  ;;  %v11559_v39 = vpop.f32.mrb[82].mxu0  ;;  %v6195_v22 = vld [vmem:[#allocation3 + $0x110] sm:$0xff] }
 0x691   : > { %v11342_v43 = vpop.f32.mrb[215].mxu1  ;;  %v11560_v42 = vpop.f32.mrb[83].mxu0 }
 0x692   : > { %17942 = vst [vmem:[#allocation14_spill] sm:$0xff] %v16603_v33  ;;  %17943 = vst [vmem:[#allocation15_spill] sm:$0xff] %v16605_v23  ;;  %v16607_v41 = vadd.f32 %v11342_v43, %v11341_v20  ;;  %v16609_v40 = vadd.f32 %v11560_v42, %v11559_v39  ;;  %v6194_v23 = vld [vmem:[#allocation3 + $0x108] sm:$0xff] }
 0x693   : > { %7579 = vmatmul.mubr.bf16.gmra.mrb[64].mxu1 %v6350_v36  ;;  %v6359_v43 = vpack.c.bf16 %v6195_v22, %v6194_v23 }
 0x694   : > { %17944 = vst [vmem:[#allocation16_spill] sm:$0xff] %v16607_v41  ;;  %17945 = vst [vmem:[#allocation17_spill] sm:$0xff] %v16609_v40  ;;  %7586 = vmatprep.mubr.bf16.mxu1 %v6360_v37  ;;  %v6231_v41 = vld [vmem:[#allocation3 + $0x141] sm:$0xff] }
 0x695   : > { %v6378_v45 = vpack.c.bf16 %v6231_v41, %v6230_v18 }
 0x696   : > { %v11344_v24 = vpop.f32.mrb[216].mxu1  ;;  %v11562_v5 = vpop.f32.mrb[84].mxu0 }
 0x697   : > { %v11345_v33 = vpop.f32.mrb[217].mxu1  ;;  %v11563_v53 = vpop.f32.mrb[85].mxu0 }
 0x698   : > { %v16611_v6 = vadd.f32 %v11345_v33, %v11344_v24  ;;  %v11347_v11 = vpop.f32.mrb[218].mxu1  ;;  %v16613_v3 = vadd.f32 %v11563_v53, %v11562_v5  ;;  %v11565_v48 = vpop.f32.mrb[86].mxu0  ;;  %v6197_v33 = vld [vmem:[#allocation3 + $0x128] sm:$0xff] }
 0x699   : > { %v11348_v20 = vpop.f32.mrb[219].mxu1  ;;  %v11566_v36 = vpop.f32.mrb[87].mxu0 }
 0x69a   : > { %17946 = vst [vmem:[#allocation18_spill] sm:$0xff] %v16611_v6  ;;  %17947 = vst [vmem:[#allocation19_spill] sm:$0xff] %v16613_v3  ;;  %v16615_v39 = vadd.f32 %v11348_v20, %v11347_v11  ;;  %v16617_v42 = vadd.f32 %v11566_v36, %v11565_v48  ;;  %v6196_v3 = vld [vmem:[#allocation3 + $0x120] sm:$0xff] }
 0x69b   : > { %7587 = vmatmul.mubr.bf16.gmra.mrb[68].mxu1 %v6359_v43  ;;  %v6368_v20 = vpack.c.bf16 %v6197_v33, %v6196_v3 }
 0x69c   : > { %17948 = vst [vmem:[#allocation20_spill] sm:$0xff] %v16615_v39  ;;  %17949 = vst [vmem:[#allocation21_spill] sm:$0xff] %v16617_v42  ;;  %7594 = vmatprep.mubr.bf16.mxu1 %v6369_v29 }
 0x69e   : > { %v11350_v37 = vpop.f32.mrb[220].mxu1  ;;  %v11568_v24 = vpop.f32.mrb[88].mxu0 }
 0x69f   : > { %v11351_v6 = vpop.f32.mrb[221].mxu1  ;;  %v11569_v5 = vpop.f32.mrb[89].mxu0 }
 0x6a0   : > { %v16619_v40 = vadd.f32 %v11351_v6, %v11350_v37  ;;  %v11353_v53 = vpop.f32.mrb[222].mxu1  ;;  %v16621_v23 = vadd.f32 %v11569_v5, %v11568_v24  ;;  %v11571_v22 = vpop.f32.mrb[90].mxu0  ;;  %v16630_v6 = vld [vmem:[%s17819_s6] ss:$0 sm:$0xff]  ;;  %v6199_v37 = vld [vmem:[#allocation3 + $0x140] sm:$0xff] }
 0x6a1   : > { %v11354_v11 = vpop.f32.mrb[223].mxu1  ;;  %v11572_v43 = vpop.f32.mrb[91].mxu0  ;;  %v7034_v3 = vadd.f32 %v16380_v8, %v16630_v6 }
 0x6a2   : > { %17950 = vst [vmem:[#allocation22_spill] sm:$0xff] %v16619_v40  ;;  %17951 = vst [vmem:[#allocation23_spill] sm:$0xff] %v16621_v23  ;;  %v16623_v48 = vadd.f32 %v11354_v11, %v11353_v53  ;;  %v16625_v36 = vadd.f32 %v11572_v43, %v11571_v22  ;;  %v6233_v40 = vld [vmem:[#allocation3 + $0x159] sm:$0xff] }
 0x6a3   : > { %7595 = vmatmul.mubr.bf16.gmra.mrb[72].mxu1 %v6368_v20  ;;  %v6198_v22 = vld [vmem:[#allocation3 + $0x138] sm:$0xff] }
 0x6a4   : > { %17952 = vst [vmem:[#allocation24_spill] sm:$0xff] %v16623_v48  ;;  %17953 = vst [vmem:[#allocation25_spill] sm:$0xff] %v16625_v36  ;;  %7602 = vmatprep.mubr.bf16.mxu1 %v6378_v45  ;;  %v6377_v43 = vpack.c.bf16 %v6199_v37, %v6198_v22  ;;  %v6232_v45 = vld [vmem:[#allocation3 + $0x151] sm:$0xff]  ;;  %v7037_v36 = vadd.f32 %v16387_v1, %v16630_v6 }
 0x6a5   : > { %v6387_v42 = vpack.c.bf16 %v6233_v40, %v6232_v45  ;;  %v6235_v1 = vld [vmem:[#allocation3 + $0x171] sm:$0xff]  ;;  %v7042_v40 = vadd.f32 %v16497_v52, %v16630_v6 }
 0x6a6   : > { %v11372_v29 = vpop.f32.mrb[224].mxu1  ;;  %v11574_v24 = vpop.f32.mrb[92].mxu0 }
 0x6a7   : > { %v11373_v5 = vpop.f32.mrb[225].mxu1  ;;  %v11575_v53 = vpop.f32.mrb[93].mxu0 }
 0x6a8   : > { %v11374_v33 = vadd.f32 %v11373_v5, %v11372_v29  ;;  %v11375_v41 = vpop.f32.mrb[226].mxu1  ;;  %v16634_v11 = vadd.f32 %v11575_v53, %v11574_v24  ;;  %v11577_v20 = vpop.f32.mrb[94].mxu0  ;;  %v6201_v5 = vld [vmem:[#allocation3 + $0x158] sm:$0xff] }
 0x6a9   : > { %v11376_v18 = vpop.f32.mrb[227].mxu1  ;;  %v11578_v39 = vpop.f32.mrb[95].mxu0 }
 0x6aa   : > { %v7195_v48 = vadd.f32 %v11374_v33, %v7034_v3  ;;  %v11377_v23 = vadd.f32 %v11376_v18, %v11375_v41  ;;  %v16638_v17 = vadd.f32 %v11578_v39, %v11577_v20  ;;  %v6234_v41 = vld [vmem:[#allocation3 + $0x169] sm:$0xff] }
 0x6ab   : > { %7603 = vmatmul.mubr.bf16.gmra.mrb[76].mxu1 %v6377_v43  ;;  %v6396_v43 = vpack.c.bf16 %v6235_v1, %v6234_v41 }
 0x6ac   : > { %v7198_v8 = vadd.f32 %v11377_v23, %v7037_v36  ;;  %7610 = vmatprep.mubr.bf16.mxu1 %v6387_v42  ;;  %v16641_v29 = vadd.f32 %v16499_v49, %v7195_v48  ;;  %v6200_v42 = vld [vmem:[#allocation3 + $0x150] sm:$0xff] }
 0x6ad   : > { %v6386_v48 = vpack.c.bf16 %v6201_v5, %v6200_v42 }
 0x6ae   : > { %v11378_v24 = vpop.f32.mrb[228].mxu1  ;;  %v16644_v37 = vadd.f32 %v16503_v2, %v7198_v8  ;;  %v16646_v3 = vpop.f32.mrb[96].mxu0  ;;  %v7045_v2 = vadd.f32 %v16501_v26, %v16630_v6  ;;  %v7050_v26 = vadd.f32 %v16507_v30, %v16630_v6 }
 0x6af   : > { %v11379_v33 = vpop.f32.mrb[229].mxu1  ;;  %v16650_v53 = vpop.f32.mrb[97].mxu0 }
 0x6b0   : > { %v11380_v39 = vadd.f32 %v11379_v33, %v11378_v24  ;;  %v11381_v23 = vpop.f32.mrb[230].mxu1  ;;  %v16652_v36 = vpop.f32.mrb[98].mxu0  ;;  %v6203_v24 = vld [vmem:[#allocation3 + $0x170] sm:$0xff] }
 0x6b1   : > { %v11382_v49 = vpop.f32.mrb[231].mxu1  ;;  %v16656_v18 = vpop.f32.mrb[99].mxu0 }
 0x6b2   : > { %v7203_v22 = vadd.f32 %v11380_v39, %v7042_v40  ;;  %v11383_v20 = vadd.f32 %v11382_v49, %v11381_v23  ;;  %v6237_v39 = vld [vmem:[#allocation3 + $0x189] sm:$0xff] }
 0x6b3   : > { %7611 = vmatmul.mubr.bf16.gmra.mrb[80].mxu1 %v6386_v48  ;;  %v6202_v49 = vld [vmem:[#allocation3 + $0x168] sm:$0xff] }
 0x6b4   : > { %v7206_v52 = vadd.f32 %v11383_v20, %v7045_v2  ;;  %7618 = vmatprep.mubr.bf16.mxu1 %v6396_v43  ;;  %v16659_v45 = vadd.f32 %v16509_v60, %v7203_v22  ;;  %v6395_v41 = vpack.c.bf16 %v6203_v24, %v6202_v49  ;;  %v6236_v22 = vld [vmem:[#allocation3 + $0x181] sm:$0xff] }
 0x6b6   : > { %v11384_v8 = vpop.f32.mrb[232].mxu1  ;;  %v16662_v33 = vadd.f32 %v16513_v58, %v7206_v52  ;;  %v16664_v5 = vpop.f32.mrb[100].mxu0  ;;  %v7053_v58 = vadd.f32 %v16511_v12, %v16630_v6  ;;  %v6405_v52 = vpack.c.bf16 %v6237_v39, %v6236_v22  ;;  %v7058_v12 = vadd.f32 %v16517_v38, %v16630_v6  ;;  %v7902_v22 = vld [vmem:[#allocation4 + $0x9] sm:$0xff] }
 0x6b7   : > { %17954 = vst [vmem:[#allocation26_spill] sm:$0xff] %v16664_v5  ;;  %v11385_v40 = vpop.f32.mrb[233].mxu1  ;;  %v16668_v1 = vpop.f32.mrb[101].mxu0  ;;  %v6239_v5 = vld [vmem:[#allocation3 + $0x1a1] sm:$0xff] }
 0x6b8   : > { %v11386_v23 = vadd.f32 %v11385_v40, %v11384_v8  ;;  %v11387_v42 = vpop.f32.mrb[234].mxu1  ;;  %v16670_v48 = vpop.f32.mrb[102].mxu0  ;;  %v6238_v40 = vld [vmem:[#allocation3 + $0x199] sm:$0xff] }
 0x6b9   : > { %17955 = vst [vmem:[#allocation27_spill] sm:$0xff] %v16670_v48  ;;  %v11388_v60 = vpop.f32.mrb[235].mxu1  ;;  %v16674_v43 = vpop.f32.mrb[103].mxu0 }
 0x6ba   : > { %v7211_v2 = vadd.f32 %v11386_v23, %v7050_v26  ;;  %v11389_v20 = vadd.f32 %v11388_v60, %v11387_v42  ;;  %v6414_v60 = vpack.c.bf16 %v6239_v5, %v6238_v40 }
 0x6bb   : > { %7619 = vmatmul.mubr.bf16.gmra.mrb[84].mxu1 %v6395_v41  ;;  %v7901_v41 = vld [vmem:[#allocation4 + $0x1] sm:$0xff] }
 0x6bc   : > { %v7214_v30 = vadd.f32 %v11389_v20, %v7053_v58  ;;  %7626 = vmatprep.mubr.bf16.mxu1 %v6405_v52  ;;  %v16677_v8 = vadd.f32 %v16519_v63, %v7211_v2  ;;  %v13593_v63 = vld [vmem:[%s17820_s7 + $0x40] sm:$0xff]   ;;  %v13170_v58 = vpack.i.bf16 %v7902_v22, %v7901_v41 }
 0x6bd   : > { %v13594_v20 = vld [vmem:[%s17820_s7] sm:$0xff]   ;;  %11716 = vmatprep.subr.bf16.mxu1 %v13593_v63 }
 0x6be   : > { %v11390_v48 = vpop.f32.mrb[236].mxu1  ;;  %v16680_v24 = vadd.f32 %v16525_v46, %v7214_v30  ;;  %v16682_v26 = vpop.f32.mrb[104].mxu0  ;;  %13171 = vrot.lane.b32.xlu1 %v13170_v58, %s13804_s12  ;;  %11717 = vmatpush3.bf16.msra.mxu1 %v13594_v20 }
 0x6bf   : > { %v11391_v23 = vpop.f32.mrb[237].mxu1  ;;  %v16686_v39 = vpop.f32.mrb[105].mxu0 }
 0x6c0   : > { %v11392_v42 = vadd.f32 %v11391_v23, %v11390_v48  ;;  %v11393_v49 = vpop.f32.mrb[238].mxu1  ;;  %v16691_v2 = vpop.f32.mrb[106].mxu0  ;;  %v7061_v48 = vadd.f32 %v16521_v15, %v16630_v6 }
 0x6c1   : > { %v11394_v46 = vpop.f32.mrb[239].mxu1  ;;  %v16698_v5 = vpop.f32.mrb[107].mxu0 }
 0x6c2   : > { %v7219_v38 = vadd.f32 %v11392_v42, %v7058_v12  ;;  %v11395_v52 = vadd.f32 %v11394_v46, %v11393_v49  ;;  %v13793_v49 = vld [vmem:[#allocation3] sm:$0xff] }
 0x6c3   : > { %7627 = vmatmul.mubr.bf16.gmra.mrb[88].mxu1 %v16523_v21  ;;  %v6413_v41 = vpack.c.bf16 %v13793_v49, %v13793_v49  ;;  %v7066_v21 = vadd.f32 %v16529_v9, %v16630_v6  ;;  %v7074_v49 = vadd.f32 %v16538_v54, %v16630_v6 }
 0x6c4   : > { %v7222_v30 = vadd.f32 %v11395_v52, %v7061_v48  ;;  %7634 = vmatprep.mubr.bf16.mxu1 %v6414_v60  ;;  %v16703_v40 = vadd.f32 %v16531_v16, %v7219_v38 }
 0x6c6   : > { %v11396_v23 = vpop.f32.mrb[240].mxu1  ;;  %v16706_v12 = vadd.f32 %v16535_v44, %v7222_v30  ;;  %v16708_v42 = vpop.f32.mrb[108].mxu0  ;;  %v7069_v44 = vadd.f32 %v16533_v25, %v16630_v6 }
 0x6c7   : > { %v11397_v15 = vpop.f32.mrb[241].mxu1  ;;  %v16712_v22 = vpop.f32.mrb[109].mxu0 }
 0x6c8   : > { %v11398_v63 = vadd.f32 %v11397_v15, %v11396_v23  ;;  %v11399_v60 = vpop.f32.mrb[242].mxu1  ;;  %v16714_v46 = vpop.f32.mrb[110].mxu0 }
 0x6c9   : > { %v11400_v16 = vpop.f32.mrb[243].mxu1  ;;  %v16718_v38 = vpop.f32.mrb[111].mxu0 }
 0x6ca   : > { %v7227_v58 = vadd.f32 %v11398_v63, %v7066_v21  ;;  %v11401_v20 = vadd.f32 %v11400_v16, %v11399_v60 }
 0x6cb   : > { %7635 = vmatmul.mubr.bf16.gmra.mrb[92].mxu1 %v6413_v41  ;;  %v13595_v41 = vld [vmem:[%s17820_s7 + $0x48] sm:$0xff]  }
 0x6cc   : > { %v7230_v48 = vadd.f32 %v11401_v20, %v7069_v44  ;;  %v16721_v52 = vadd.f32 %v16540_v19, %v7227_v58  ;;  %v13596_v19 = vld [vmem:[%s17820_s7 + $0x8] sm:$0xff]   ;;  %v7077_v58 = vadd.f32 %v16542_v10, %v16630_v6  ;;  %11718 = vmatprep.subr.bf16.mxu1 %v13595_v41 }
 0x6cd   : > { %11719 = vmatpush3.bf16.msra.mxu1 %v13596_v19 }
 0x6ce   : > { %v11402_v9 = vpop.f32.mrb[244].mxu1  ;;  %v16724_v30 = vadd.f32 %v16544_v31, %v7230_v48  ;;  %v16726_v23 = vpop.f32.mrb[112].mxu0 }
 0x6cf   : > { %17956 = vst [vmem:[#allocation28_spill] sm:$0xff] %v16726_v23  ;;  %v11403_v15 = vpop.f32.mrb[245].mxu1  ;;  %v16730_v25 = vpop.f32.mrb[113].mxu0 }
 0x6d0   : > { %v11404_v21 = vadd.f32 %v11403_v15, %v11402_v9  ;;  %v11405_v63 = vpop.f32.mrb[246].mxu1  ;;  %v16738_v31 = vpop.f32.mrb[114].mxu0 }
 0x6d1   : > { %17957 = vst [vmem:[#allocation29_spill] sm:$0xff] %v16738_v31  ;;  %v11406_v60 = vpop.f32.mrb[247].mxu1  ;;  %v16742_v44 = vpop.f32.mrb[115].mxu0 }
 0x6d2   : > { %v7235_v16 = vadd.f32 %v11404_v21, %v7074_v49  ;;  %v11407_v54 = vadd.f32 %v11406_v60, %v11405_v63  ;;  %v7082_v49 = vadd.f32 %v16547_v35, %v16630_v6 }
 0x6d4   : > { %v7238_v20 = vadd.f32 %v11407_v54, %v7077_v58  ;;  %v16745_v48 = vadd.f32 %v16549_v56, %v7235_v16  ;;  %v7085_v56 = vadd.f32 %v16551_v28, %v16630_v6 }
 0x6d6   : > { %v11408_v9 = vpop.f32.mrb[248].mxu1  ;;  %v16748_v15 = vadd.f32 %v16553_v27, %v7238_v20  ;;  %v16750_v23 = vpop.f32.mrb[116].mxu0 }
 0x6d7   : > { %17958 = vst [vmem:[#allocation30_spill] sm:$0xff] %v16750_v23  ;;  %v11409_v31 = vpop.f32.mrb[249].mxu1  ;;  %v16754_v21 = vpop.f32.mrb[117].mxu0 }
 0x6d8   : > { %v11410_v10 = vadd.f32 %v11409_v31, %v11408_v9  ;;  %v11411_v63 = vpop.f32.mrb[250].mxu1  ;;  %v16756_v41 = vpop.f32.mrb[118].mxu0 }
 0x6d9   : > { %17959 = vst [vmem:[#allocation31_spill] sm:$0xff] %v16756_v41  ;;  %v11412_v19 = vpop.f32.mrb[251].mxu1  ;;  %v16760_v27 = vpop.f32.mrb[119].mxu0 }
 0x6da   : > { %v7243_v60 = vadd.f32 %v11410_v10, %v7082_v49  ;;  %v11413_v16 = vadd.f32 %v11412_v19, %v11411_v63  ;;  %17960 = vst [vmem:[#allocation32_spill] sm:$0xff] %v16760_v27  ;;  %v7090_v49 = vadd.f32 %v16555_v0, %v16630_v6  ;;  %v13597_v63 = vld [vmem:[%s17820_s7 + $0x50] sm:$0xff]  }
 0x6db   : > { %11720 = vmatprep.subr.bf16.mxu1 %v13597_v63 }
 0x6dc   : > { %v7246_v58 = vadd.f32 %v11413_v16, %v7085_v56  ;;  %v16763_v54 = vadd.f32 %v16557_v51, %v7243_v60  ;;  %v13598_v51 = vld [vmem:[%s17820_s7 + $0x10] sm:$0xff]   ;;  %v7093_v60 = vadd.f32 %v16559_v14, %v16630_v6 }
 0x6dd   : > { %11721 = vmatpush3.bf16.msra.mxu1 %v13598_v51 }
 0x6de   : > { %v11414_v20 = vpop.f32.mrb[252].mxu1  ;;  %v16766_v35 = vadd.f32 %v16561_v61, %v7246_v58  ;;  %v16768_v31 = vpop.f32.mrb[120].mxu0 }
 0x6df   : > { %17961 = vst [vmem:[#allocation33_spill] sm:$0xff] %v16768_v31  ;;  %v11415_v9 = vpop.f32.mrb[253].mxu1  ;;  %v16772_v41 = vpop.f32.mrb[121].mxu0 }
 0x6e0   : > { %v11416_v10 = vadd.f32 %v11415_v9, %v11414_v20  ;;  %17962 = vst [vmem:[#allocation34_spill] sm:$0xff] %v16772_v41  ;;  %v11417_v28 = vpop.f32.mrb[254].mxu1  ;;  %v16780_v61 = vpop.f32.mrb[122].mxu0 }
 0x6e1   : > { %17963 = vst [vmem:[#allocation35_spill] sm:$0xff] %v16780_v61  ;;  %v11418_v19 = vpop.f32.mrb[255].mxu1  ;;  %v16784_v16 = vpop.f32.mrb[123].mxu0  ;;  %v7098_v61 = vadd.f32 %v16563_v55, %v16630_v6  ;;  %v7106_v55 = vadd.f32 %v16571_v7, %v16630_v6 }
 0x6e2   : > { %v7251_v56 = vadd.f32 %v11416_v10, %v7090_v49  ;;  %v11419_v0 = vadd.f32 %v11418_v19, %v11417_v28  ;;  %17964 = vst [vmem:[#allocation36_spill] sm:$0xff] %v16784_v16  ;;  %v7101_v10 = vadd.f32 %v16567_v34, %v16630_v6  ;;  %v13599_v34 = vld [vmem:[%s17820_s7 + $0x58] sm:$0xff]  }
 0x6e3   : > { %11722 = vmatprep.subr.bf16.mxu1 %v13599_v34 }
 0x6e4   : > { %v7254_v58 = vadd.f32 %v11419_v0, %v7093_v60  ;;  %v16787_v20 = vadd.f32 %v16565_v13, %v7251_v56 }
 0x6e6   : > { %v11420_v9 = vpop.f32.mrb[0].mxu1  ;;  %v16790_v31 = vadd.f32 %v16569_v32, %v7254_v58 }
 0x6e7   : > { %v11421_v41 = vpop.f32.mrb[1].mxu1 }
 0x6e8   : > { %v11422_v23 = vadd.f32 %v11421_v41, %v11420_v9  ;;  %v11423_v14 = vpop.f32.mrb[2].mxu1 }
 0x6e9   : > { %v11424_v49 = vpop.f32.mrb[3].mxu1 }
 0x6ea   : > { %v7259_v28 = vadd.f32 %v11422_v23, %v7098_v61  ;;  %v11425_v63 = vadd.f32 %v11424_v49, %v11423_v14  ;;  %v13600_v23 = vld [vmem:[%s17820_s7 + $0x18] sm:$0xff]   ;;  %v7109_v61 = vadd.f32 %v16575_v57, %v16630_v6  ;;  %v17965_v57 = vld [vmem:[#allocation5_spill] sm:$0xff] }
 0x6eb   : > { %11723 = vmatpush3.bf16.msra.mxu1 %v13600_v23  ;;  %v17967_v23 = vld [vmem:[#allocation9_spill] sm:$0xff] }
 0x6ec   : > { %v7262_v51 = vadd.f32 %v11425_v63, %v7101_v10  ;;  %v16797_v13 = vadd.f32 %v16573_v50, %v7259_v28  ;;  %v7114_v10 = vadd.f32 %v16579_v4, %v16630_v6 }
 0x6ee   : > { %v11426_v19 = vpop.f32.mrb[4].mxu1  ;;  %v16800_v32 = vadd.f32 %v16577_v62, %v7262_v51 }
 0x6ef   : > { %v11427_v60 = vpop.f32.mrb[5].mxu1 }
 0x6f0   : > { %v11428_v41 = vadd.f32 %v11427_v60, %v11426_v19  ;;  %v11429_v56 = vpop.f32.mrb[6].mxu1  ;;  %v7117_v19 = vadd.f32 %v17965_v57, %v16630_v6 }
 0x6f1   : > { %v11430_v50 = vpop.f32.mrb[7].mxu1 }
 0x6f2   : > { %v7267_v62 = vadd.f32 %v11428_v41, %v7106_v55  ;;  %v11431_v0 = vadd.f32 %v11430_v50, %v11429_v56  ;;  %v17966_v56 = vld [vmem:[#allocation7_spill] sm:$0xff] }
 0x6f4   : > { %v7270_v58 = vadd.f32 %v11431_v0, %v7109_v61  ;;  %v16813_v7 = vadd.f32 %v16581_v47, %v7267_v62  ;;  %v17968_v61 = vld [vmem:[#allocation6_spill] sm:$0xff] }
 0x6f5   : > { %v7122_v4 = vadd.f32 %v17968_v61, %v16630_v6 }
 0x6f6   : > { %v11432_v9 = vpop.f32.mrb[8].mxu1  ;;  %v16816_v14 = vadd.f32 %v16585_v59, %v7270_v58  ;;  %v13601_v58 = vld [vmem:[%s17820_s7 + $0x60] sm:$0xff]  }
 0x6f7   : > { %v11433_v49 = vpop.f32.mrb[9].mxu1  ;;  %11724 = vmatprep.subr.bf16.mxu1 %v13601_v58 }
 0x6f8   : > { %v11434_v28 = vadd.f32 %v11433_v49, %v11432_v9  ;;  %v11435_v63 = vpop.f32.mrb[10].mxu1  ;;  %v13602_v9 = vld [vmem:[%s17820_s7 + $0x20] sm:$0xff]  }
 0x6f9   : > { %v11436_v51 = vpop.f32.mrb[11].mxu1  ;;  %11725 = vmatpush3.bf16.msra.mxu1 %v13602_v9 }
 0x6fa   : > { %v7275_v60 = vadd.f32 %v11434_v28, %v7114_v10  ;;  %v11437_v55 = vadd.f32 %v11436_v51, %v11435_v63  ;;  %v17969_v10 = vld [vmem:[#allocation8_spill] sm:$0xff] }
 0x6fb   : > { %v7125_v28 = vadd.f32 %v17969_v10, %v16630_v6 }
 0x6fc   : > { %v7278_v41 = vadd.f32 %v11437_v55, %v7117_v19  ;;  %v16823_v47 = vadd.f32 %v17966_v56, %v7275_v60  ;;  %v17970_v19 = vld [vmem:[#allocation11_spill] sm:$0xff] }
 0x6fe   : > { %v11438_v34 = vpop.f32.mrb[12].mxu1  ;;  %v16826_v59 = vadd.f32 %v17967_v23, %v7278_v41  ;;  %v17972_v41 = vld [vmem:[#allocation13_spill] sm:$0xff]  ;;  %v17974_v23 = vld [vmem:[#allocation10_spill] sm:$0xff] }
 0x6ff   : > { %v11439_v50 = vpop.f32.mrb[13].mxu1 }
 0x700   : > { %v11440_v62 = vadd.f32 %v11439_v50, %v11438_v34  ;;  %v11441_v0 = vpop.f32.mrb[14].mxu1  ;;  %v7130_v50 = vadd.f32 %v17974_v23, %v16630_v6  ;;  %v13603_v23 = vld [vmem:[%s17820_s7 + $0x68] sm:$0xff]  }
 0x701   : > { %v11442_v49 = vpop.f32.mrb[15].mxu1  ;;  %11726 = vmatprep.subr.bf16.mxu1 %v13603_v23 }
 0x702   : > { %v7283_v63 = vadd.f32 %v11440_v62, %v7122_v4  ;;  %v11443_v51 = vadd.f32 %v11442_v49, %v11441_v0  ;;  %v17975_v4 = vld [vmem:[#allocation12_spill] sm:$0xff]  ;;  %v17976_v49 = vld [vmem:[#allocation15_spill] sm:$0xff] }
 0x703   : > { %v7133_v62 = vadd.f32 %v17975_v4, %v16630_v6 }
 0x704   : > { %v7286_v57 = vadd.f32 %v11443_v51, %v7125_v28  ;;  %v16839_v60 = vadd.f32 %v17970_v19, %v7283_v63  ;;  %v17978_v63 = vld [vmem:[#allocation17_spill] sm:$0xff]  ;;  %v17980_v19 = vld [vmem:[#allocation14_spill] sm:$0xff] }
 0x706   : > { %17971 = vst [vmem:[#allocation5_spill] sm:$0xff] %v16839_v60  ;;  %v11444_v55 = vpop.f32.mrb[16].mxu1  ;;  %v16842_v56 = vadd.f32 %v17972_v41, %v7286_v57  ;;  %v7138_v41 = vadd.f32 %v17980_v19, %v16630_v6  ;;  %v17984_v19 = vld [vmem:[#allocation18_spill] sm:$0xff] }
 0x707   : > { %v11445_v34 = vpop.f32.mrb[17].mxu1 }
 0x708   : > { %17973 = vst [vmem:[#allocation7_spill] sm:$0xff] %v16842_v56  ;;  %v11446_v61 = vadd.f32 %v11445_v34, %v11444_v55  ;;  %v11447_v16 = vpop.f32.mrb[18].mxu1 }
 0x709   : > { %v11448_v27 = vpop.f32.mrb[19].mxu1 }
 0x70a   : > { %v7291_v0 = vadd.f32 %v11446_v61, %v7130_v50  ;;  %v11449_v58 = vadd.f32 %v11448_v27, %v11447_v16  ;;  %v13604_v27 = vld [vmem:[%s17820_s7 + $0x28] sm:$0xff]  }
 0x70b   : > { %v17981_v50 = vld [vmem:[#allocation16_spill] sm:$0xff]  ;;  %11727 = vmatpush3.bf16.msra.mxu1 %v13604_v27 }
 0x70c   : > { %v7294_v9 = vadd.f32 %v11449_v58, %v7133_v62  ;;  %v16849_v10 = vadd.f32 %v17976_v49, %v7291_v0  ;;  %v7141_v61 = vadd.f32 %v17981_v50, %v16630_v6  ;;  %v17982_v58 = vld [vmem:[#allocation19_spill] sm:$0xff] }
 0x70e   : > { %17977 = vst [vmem:[#allocation9_spill] sm:$0xff] %v16849_v10  ;;  %v11450_v28 = vpop.f32.mrb[20].mxu1  ;;  %v16852_v51 = vadd.f32 %v17978_v63, %v7294_v9 }
 0x70f   : > { %v11451_v57 = vpop.f32.mrb[21].mxu1 }
 0x710   : > { %17979 = vst [vmem:[#allocation6_spill] sm:$0xff] %v16852_v51  ;;  %v11452_v55 = vadd.f32 %v11451_v57, %v11450_v28  ;;  %v11453_v34 = vpop.f32.mrb[22].mxu1  ;;  %v17983_v28 = vld [vmem:[#allocation21_spill] sm:$0xff]  ;;  %v7146_v51 = vadd.f32 %v17984_v19, %v16630_v6 }
 0x711   : > { %v11454_v16 = vpop.f32.mrb[23].mxu1 }
 0x712   : > { %v7299_v4 = vadd.f32 %v11452_v55, %v7138_v41  ;;  %v11455_v62 = vadd.f32 %v11454_v16, %v11453_v34  ;;  %v17985_v41 = vld [vmem:[#allocation20_spill] sm:$0xff]  ;;  %v16874_v27 = vpop.f32.mrb[124].mxu0  ;;  %v13605_v16 = vld [vmem:[%s17820_s7 + $0x70] sm:$0xff]  }
 0x713   : > { %v7149_v55 = vadd.f32 %v17985_v41, %v16630_v6  ;;  %17986 = vst [vmem:[#allocation8_spill] sm:$0xff] %v16874_v27  ;;  %v16879_v50 = vpop.f32.mrb[125].mxu0  ;;  %11728 = vmatprep.subr.bf16.mxu1 %v13605_v16 }
 0x714   : > { %v7302_v0 = vadd.f32 %v11455_v62, %v7141_v61  ;;  %v16865_v9 = vadd.f32 %v17982_v58, %v7299_v4  ;;  %17987 = vst [vmem:[#allocation11_spill] sm:$0xff] %v16879_v50  ;;  %v17988_v4 = vld [vmem:[#allocation23_spill] sm:$0xff]  ;;  %v17989_v58 = vld [vmem:[#allocation25_spill] sm:$0xff]  ;;  %v16892_v19 = vpop.f32.mrb[126].mxu0 }
 0x715   : > { %17992 = vst [vmem:[#allocation10_spill] sm:$0xff] %v16892_v19 }
 0x716   : > { %v11456_v49 = vpop.f32.mrb[24].mxu1  ;;  %v16868_v63 = vadd.f32 %v17983_v28, %v7302_v0 }
 0x717   : > { %v11457_v57 = vpop.f32.mrb[25].mxu1 }
 0x718   : > { %v11458_v10 = vadd.f32 %v11457_v57, %v11456_v49  ;;  %v11459_v56 = vpop.f32.mrb[26].mxu1  ;;  %v13606_v57 = vld [vmem:[%s17820_s7 + $0x30] sm:$0xff]  }
 0x719   : > { %v11460_v60 = vpop.f32.mrb[27].mxu1  ;;  %11729 = vmatpush3.bf16.msra.mxu1 %v13606_v57 }
 0x71a   : > { %v7307_v34 = vadd.f32 %v11458_v10, %v7146_v51  ;;  %v11461_v23 = vadd.f32 %v11460_v60, %v11459_v56  ;;  %v17991_v60 = vld [vmem:[#allocation22_spill] sm:$0xff] }
 0x71b   : > { %v7154_v56 = vadd.f32 %v17991_v60, %v16630_v6 }
 0x71c   : > { %v7310_v61 = vadd.f32 %v11461_v23, %v7149_v55  ;;  %v16882_v62 = vadd.f32 %v17988_v4, %v7307_v34  ;;  %v16894_v55 = vpop.f32.mrb[127].mxu0  ;;  %v17994_v34 = vld [vmem:[#allocation24_spill] sm:$0xff] }
 0x71d   : > { %17993 = vst [vmem:[#allocation12_spill] sm:$0xff] %v16894_v55  ;;  %v7157_v23 = vadd.f32 %v17994_v34, %v16630_v6  ;;  %v13607_v6 = vld [vmem:[%s17820_s7 + $0x78] sm:$0xff]  }
 0x71e   : > { %v11462_v0 = vpop.f32.mrb[28].mxu1  ;;  %v16885_v49 = vadd.f32 %v17989_v58, %v7310_v61  ;;  %11730 = vmatprep.subr.bf16.mxu1 %v13607_v6 }
 0x71f   : > { %v11463_v28 = vpop.f32.mrb[29].mxu1 }
 0x720   : > { %17990 = vst [vmem:[#allocation13_spill] sm:$0xff] %v16885_v49  ;;  %v11464_v10 = vadd.f32 %v11463_v28, %v11462_v0  ;;  %v11465_v51 = vpop.f32.mrb[30].mxu1 }
 0x721   : > { %v11466_v41 = vpop.f32.mrb[31].mxu1 }
 0x722   : > { %v7315_v16 = vadd.f32 %v11464_v10, %v7154_v56  ;;  %v11467_v61 = vadd.f32 %v11466_v41, %v11465_v51  ;;  %v13610_v56 = vld [vmem:[%s17820_s7 + $0x80] sm:$0xff]  }
 0x724   : > { %v7318_v4 = vadd.f32 %v11467_v61, %v7157_v23  ;;  %v16899_v58 = vadd.f32 %v16634_v11, %v7315_v16  ;;  %v13608_v11 = vld [vmem:[%s17820_s7 + $0xc0] sm:$0xff]  }
 0x725   : > { %11828 = vmatprep.subr.bf16.mxu0 %v13608_v11 }
 0x726   : > { %v11596_v0 = vpop.f32.mrb[32].mxu1  ;;  %v16902_v28 = vadd.f32 %v16638_v17, %v7318_v4  ;;  %v13609_v17 = vld [vmem:[%s17820_s7 + $0x38] sm:$0xff]   ;;  %11829 = vmatpush3.bf16.msra.mxu0 %v13610_v56 }
 0x727   : > { %v11597_v60 = vpop.f32.mrb[33].mxu1  ;;  %11731 = vmatpush3.bf16.msra.mxu1 %v13609_v17 }
 0x728   : > { %v11598_v27 = vadd.f32 %v11597_v60, %v11596_v0  ;;  %v11599_v19 = vpop.f32.mrb[34].mxu1 }
 0x729   : > { %v11600_v49 = vpop.f32.mrb[35].mxu1 }
 0x72a   : > { %v7517_v55 = vadd.f32 %v11598_v27, %v16641_v29  ;;  %v11601_v50 = vadd.f32 %v11600_v49, %v11599_v19 }
 0x72c   : > { %v7678_v10 = vadd.f32 %v16650_v53, %v7517_v55  ;;  %v7520_v29 = vadd.f32 %v11601_v50, %v16644_v37  ;;  %v13611_v50 = vld [vmem:[%s17820_s7 + $0xc8] sm:$0xff]  }
 0x72d   : > { %11830 = vmatprep.subr.bf16.mxu0 %v13611_v50 }
 0x72e   : > { %v7804_v27 = vmax.f32 %v7678_v10, 0.0  ;;  %v7681_v49 = vadd.f32 %v16656_v18, %v7520_v29  ;;  %v11602_v51 = vpop.f32.mrb[36].mxu1  ;;  %v13612_v18 = vld [vmem:[%s17820_s7 + $0x88] sm:$0xff]  }
 0x72f   : > { %v11603_v57 = vpop.f32.mrb[37].mxu1  ;;  %11831 = vmatpush3.bf16.msra.mxu0 %v13612_v18 }
 0x730   : > { %7837 = vst.msk [vmem:[#allocation4 + $0x19] sm:$0xff] %vm334_vm2, %v7804_v27  ;;  %v7805_v19 = vmax.f32 %v7681_v49, 0.0  ;;  %v11604_v41 = vadd.f32 %v11603_v57, %v11602_v51  ;;  %v11605_v34 = vpop.f32.mrb[38].mxu1  ;;  %v13613_v51 = vld [vmem:[%s17820_s7 + $0xd0] sm:$0xff]   ;;  %v16947_v57 = vld [vmem:[%s17820_s7 + $0x100] sm:$0xff]  }
 0x731   : > { %v11606_v23 = vpop.f32.mrb[39].mxu1  ;;  %11832 = vmatprep.subr.bf16.mxu0 %v13613_v51  ;;  %12538 = vmatprep.subr.bf16.mxu1 %v16947_v57 }
 0x732   : > { %7838 = vst.msk [vmem:[#allocation4 + $0x21] sm:$0xff] %vm334_vm2, %v7805_v19  ;;  %v7525_v53 = vadd.f32 %v11604_v41, %v16659_v45  ;;  %v11607_v37 = vadd.f32 %v11606_v23, %v11605_v34  ;;  %v13615_v19 = vld [vmem:[%s17820_s7 + $0x90] sm:$0xff]  }
 0x733   : > { %11833 = vmatpush3.bf16.msra.mxu0 %v13615_v19 }
 0x734   : > { %v7686_v55 = vadd.f32 %v16646_v3, %v7525_v53  ;;  %v7528_v16 = vadd.f32 %v11607_v37, %v16662_v33 }
 0x736   : > { %v7806_v61 = vmax.f32 %v7686_v55, 0.0  ;;  %v7689_v4 = vadd.f32 %v16652_v36, %v7528_v16  ;;  %v11608_v0 = vpop.f32.mrb[40].mxu1 }
 0x737   : > { %v11609_v45 = vpop.f32.mrb[41].mxu1  ;;  %v16933_v17 = vld [vmem:[#allocation4 + $0x18] sm:$0xff] }
 0x738   : > { %7839 = vst.msk [vmem:[#allocation4 + $0x31] sm:$0xff] %vm334_vm2, %v7806_v61  ;;  %v7807_v60 = vmax.f32 %v7689_v4, 0.0  ;;  %v11610_v6 = vadd.f32 %v11609_v45, %v11608_v0  ;;  %v11611_v11 = vpop.f32.mrb[42].mxu1  ;;  %v7903_v3 = vld [vmem:[#allocation4 + $0x19] sm:$0xff] }
 0x739   : > { %v11612_v56 = vpop.f32.mrb[43].mxu1  ;;  %v16935_v10 = vld [vmem:[#allocation4 + $0x20] sm:$0xff] }
 0x73a   : > { %v7904_v29 = vld [vmem:[#allocation4 + $0x21] sm:$0xff]  ;;  %7840 = vst.msk [vmem:[#allocation4 + $0x39] sm:$0xff] %vm334_vm2, %v7807_v60  ;;  %v7533_v33 = vadd.f32 %v11610_v6, %v16677_v8  ;;  %v11613_v27 = vadd.f32 %v11612_v56, %v11611_v11  ;;  %v13165_v36 = vpack.i.bf16 %v16935_v10, %v16933_v17  ;;  %v13616_v6 = vld [vmem:[%s17820_s7 + $0xd8] sm:$0xff]  }
 0x73b   : > { %v13180_v49 = vpack.i.bf16 %v7904_v29, %v7903_v3  ;;  %v13617_v11 = vld [vmem:[%s17820_s7 + $0x98] sm:$0xff]   ;;  %11834 = vmatprep.subr.bf16.mxu0 %v13616_v6 }
 0x73c   : > { %v7694_v8 = vadd.f32 %v16668_v1, %v7533_v33  ;;  %v7536_v41 = vadd.f32 %v11613_v27, %v16680_v24  ;;  %13166 = vrot.lane.b32.xlu0 %v13165_v36, %s13804_s12  ;;  %v17995_v56 = vld [vmem:[#allocation26_spill] sm:$0xff]  ;;  %v17996_v33 = vld [vmem:[#allocation27_spill] sm:$0xff]  ;;  %11835 = vmatpush3.bf16.msra.mxu0 %v13617_v11 }
 0x73d   : > { %13181 = vrot.lane.b32.xlu1 %v13180_v49, %s13804_s12 }
 0x73e   : > { %v7808_v34 = vmax.f32 %v7694_v8, 0.0  ;;  %v7697_v23 = vadd.f32 %v16674_v43, %v7536_v41  ;;  %v11614_v53 = vpop.f32.mrb[44].mxu1 }
 0x73f   : > { %v11615_v37 = vpop.f32.mrb[45].mxu1  ;;  %v16959_v55 = vld [vmem:[#allocation4 + $0x30] sm:$0xff] }
 0x740   : > { %7841 = vst.msk [vmem:[#allocation4 + $0x49] sm:$0xff] %vm334_vm2, %v7808_v34  ;;  %v7809_v50 = vmax.f32 %v7697_v23, 0.0  ;;  %v11616_v18 = vadd.f32 %v11615_v37, %v11614_v53  ;;  %v11617_v1 = vpop.f32.mrb[46].mxu1  ;;  %v7905_v61 = vld [vmem:[#allocation4 + $0x31] sm:$0xff] }
 0x741   : > { %v11618_v24 = vpop.f32.mrb[47].mxu1  ;;  %v16961_v16 = vld [vmem:[#allocation4 + $0x38] sm:$0xff] }
 0x742   : > { %v7906_v4 = vld [vmem:[#allocation4 + $0x39] sm:$0xff]  ;;  %7842 = vst.msk [vmem:[#allocation4 + $0x51] sm:$0xff] %vm334_vm2, %v7809_v50  ;;  %v7541_v0 = vadd.f32 %v11616_v18, %v16703_v40  ;;  %v11619_v43 = vadd.f32 %v11618_v24, %v11617_v1  ;;  %v13175_v45 = vpack.i.bf16 %v16961_v16, %v16959_v55 }
 0x743   : > { %v16967_v60 = vpack.i.bf16 %v7906_v4, %v7905_v61  ;;  %v13618_v24 = vld [vmem:[%s17820_s7 + $0xe0] sm:$0xff]  }
 0x744   : > { %v7702_v3 = vadd.f32 %v17995_v56, %v7541_v0  ;;  %v7544_v29 = vadd.f32 %v11619_v43, %v16706_v12  ;;  %13176 = vrot.lane.b32.xlu0 %v13175_v45, %s13804_s12  ;;  %v13619_v61 = vld [vmem:[%s17820_s7 + $0xa0] sm:$0xff]   ;;  %11836 = vmatprep.subr.bf16.mxu0 %v13618_v24 }
 0x745   : > { %13191 = vrot.lane.b32.xlu1 %v16967_v60, %s13804_s12  ;;  %11837 = vmatpush3.bf16.msra.mxu0 %v13619_v61 }
 0x746   : > { %v7810_v40 = vmax.f32 %v7702_v3, 0.0  ;;  %v7705_v27 = vadd.f32 %v17996_v33, %v7544_v29  ;;  %v11620_v36 = vpop.f32.mrb[48].mxu1 }
 0x747   : > { %v11621_v49 = vpop.f32.mrb[49].mxu1  ;;  %v16982_v41 = vld [vmem:[#allocation4 + $0x48] sm:$0xff] }
 0x748   : > { %7843 = vst.msk [vmem:[#allocation4 + $0x61] sm:$0xff] %vm334_vm2, %v7810_v40  ;;  %v7811_v51 = vmax.f32 %v7705_v27, 0.0  ;;  %v11622_v19 = vadd.f32 %v11621_v49, %v11620_v36  ;;  %v11623_v8 = vpop.f32.mrb[50].mxu1  ;;  %v7907_v23 = vld [vmem:[#allocation4 + $0x49] sm:$0xff] }
 0x749   : > { %v11624_v12 = vpop.f32.mrb[51].mxu1  ;;  %v16984_v34 = vld [vmem:[#allocation4 + $0x50] sm:$0xff] }
 0x74a   : > { %v7908_v53 = vld [vmem:[#allocation4 + $0x51] sm:$0xff]  ;;  %7844 = vst.msk [vmem:[#allocation4 + $0x69] sm:$0xff] %vm334_vm2, %v7811_v51  ;;  %v7549_v37 = vadd.f32 %v11622_v19, %v16721_v52  ;;  %v11625_v50 = vadd.f32 %v11624_v12, %v11623_v8  ;;  %v13185_v18 = vpack.i.bf16 %v16984_v34, %v16982_v41  ;;  %v13620_v51 = vld [vmem:[%s17820_s7 + $0xe8] sm:$0xff]  }
 0x74b   : > { %v16990_v1 = vpack.i.bf16 %v7908_v53, %v7907_v23  ;;  %v13621_v19 = vld [vmem:[%s17820_s7 + $0xa8] sm:$0xff]   ;;  %11838 = vmatprep.subr.bf16.mxu0 %v13620_v51 }
 0x74c   : > { %v7710_v4 = vadd.f32 %v16686_v39, %v7549_v37  ;;  %v7552_v0 = vadd.f32 %v11625_v50, %v16724_v30  ;;  %13186 = vrot.lane.b32.xlu0 %v13185_v18, %s13804_s12  ;;  %11839 = vmatpush3.bf16.msra.mxu0 %v13621_v19 }
 0x74d   : > { %13201 = vrot.lane.b32.xlu1 %v16990_v1, %s13804_s12 }
 0x74e   : > { %v7812_v52 = vmax.f32 %v7710_v4, 0.0  ;;  %v7713_v43 = vadd.f32 %v16698_v5, %v7552_v0  ;;  %v11626_v45 = vpop.f32.mrb[52].mxu1 }
 0x74f   : > { %v11627_v6 = vpop.f32.mrb[53].mxu1  ;;  %v7971_v39 = vld [vmem:[#allocation4 + $0x60] sm:$0xff] }
 0x750   : > { %7845 = vst.msk [vmem:[#allocation4 + $0x79] sm:$0xff] %vm334_vm2, %v7812_v52  ;;  %v7813_v11 = vmax.f32 %v7713_v43, 0.0  ;;  %v11628_v56 = vadd.f32 %v11627_v6, %v11626_v45  ;;  %v11629_v3 = vpop.f32.mrb[54].mxu1  ;;  %v7909_v40 = vld [vmem:[#allocation4 + $0x61] sm:$0xff] }
 0x751   : > { %v11630_v29 = vpop.f32.mrb[55].mxu1  ;;  %v7972_v30 = vld [vmem:[#allocation4 + $0x68] sm:$0xff] }
 0x752   : > { %v7910_v33 = vld [vmem:[#allocation4 + $0x69] sm:$0xff]  ;;  %7846 = vst.msk [vmem:[#allocation4 + $0x81] sm:$0xff] %vm334_vm2, %v7813_v11  ;;  %v7557_v27 = vadd.f32 %v11628_v56, %v16745_v48  ;;  %v11631_v36 = vadd.f32 %v11630_v29, %v11629_v3  ;;  %v13195_v49 = vpack.i.bf16 %v7972_v30, %v7971_v39  ;;  %v13625_v29 = vld [vmem:[%s17820_s7 + $0xf8] sm:$0xff]  }
 0x753   : > { %v17007_v5 = vpack.i.bf16 %v7910_v33, %v7909_v40  ;;  %v13622_v48 = vld [vmem:[%s17820_s7 + $0xf0] sm:$0xff]   ;;  %v13626_v30 = vld [vmem:[%s17820_s7 + $0xb8] sm:$0xff]  }
 0x754   : > { %v7718_v8 = vadd.f32 %v16682_v26, %v7557_v27  ;;  %v7560_v12 = vadd.f32 %v11631_v36, %v16748_v15  ;;  %13196 = vrot.lane.b32.xlu0 %v13195_v49, %s13804_s12  ;;  %v13623_v26 = vld [vmem:[%s17820_s7 + $0xb0] sm:$0xff]   ;;  %11840 = vmatprep.subr.bf16.mxu0 %v13622_v48 }
 0x755   : > { %13211 = vrot.lane.b32.xlu1 %v17007_v5, %s13804_s12  ;;  %11841 = vmatpush3.bf16.msra.mxu0 %v13623_v26 }
 0x756   : > { %v7814_v23 = vmax.f32 %v7718_v8, 0.0  ;;  %v7721_v53 = vadd.f32 %v16691_v2, %v7560_v12  ;;  %v11632_v37 = vpop.f32.mrb[56].mxu1  ;;  %11842 = vmatprep.subr.bf16.mxu0 %v13625_v29  ;;  %v17054_v8 = vld [vmem:[#allocation4 + $0x22] sm:$0xff] }
 0x757   : > { %v11633_v15 = vpop.f32.mrb[57].mxu1  ;;  %v7973_v61 = vld [vmem:[#allocation4 + $0x78] sm:$0xff] }
 0x758   : > { %7847 = vst.msk [vmem:[#allocation4 + $0x91] sm:$0xff] %vm334_vm2, %v7814_v23  ;;  %v7815_v50 = vmax.f32 %v7721_v53, 0.0  ;;  %v11634_v18 = vadd.f32 %v11633_v15, %v11632_v37  ;;  %v11635_v24 = vpop.f32.mrb[58].mxu1  ;;  %v7911_v56 = vld [vmem:[#allocation4 + $0x79] sm:$0xff] }
 0x759   : > { %v17028_v4 = vld [vmem:[#allocation4 + $0x7a] sm:$0xff]  ;;  %v17030_v0 = vld [vmem:[#allocation4 + $0x82] sm:$0xff]  ;;  %v11636_v52 = vpop.f32.mrb[59].mxu1  ;;  %11843 = vmatpush3.bf16.msra.mxu0 %v13626_v30 }
 0x75a   : > { %v7974_v2 = vld [vmem:[#allocation4 + $0x80] sm:$0xff]  ;;  %v8817_v43 = vpack.c.bf16 %v17030_v0, %v17028_v4  ;;  %7848 = vst.msk [vmem:[#allocation4 + $0x99] sm:$0xff] %vm334_vm2, %v7815_v50  ;;  %v7565_v45 = vadd.f32 %v11634_v18, %v16763_v54  ;;  %v11637_v6 = vadd.f32 %v11636_v52, %v11635_v24  ;;  %12498 = vmatprep.subr.bf16.mxu0 %v16947_v57 }
 0x75b   : > { %v13205_v11 = vpack.i.bf16 %v7974_v2, %v7973_v61  ;;  %v7912_v3 = vld [vmem:[#allocation4 + $0x81] sm:$0xff] }
 0x75c   : > { %v17036_v39 = vpack.i.bf16 %v7912_v3, %v7911_v56  ;;  %v7726_v40 = vadd.f32 %v16712_v22, %v7565_v45  ;;  %v7568_v33 = vadd.f32 %v11637_v6, %v16766_v35  ;;  %v17052_v35 = vld [vmem:[#allocation4 + $0x1a] sm:$0xff]  ;;  %v17068_v45 = vld [vmem:[#allocation4 + $0x32] sm:$0xff] }
 0x75d   : > { %13206 = vrot.lane.b32.xlu0 %v13205_v11, %s13804_s12  ;;  %v13240_v26 = vpack.i.bf16 %v17054_v8, %v17052_v35  ;;  %v17070_v6 = vld [vmem:[#allocation4 + $0x3a] sm:$0xff] }
 0x75e   : > { %13221 = vrot.lane.b32.xlu1 %v17036_v39, %s13804_s12  ;;  %v7816_v54 = vmax.f32 %v7726_v40, 0.0  ;;  %v7729_v27 = vadd.f32 %v16718_v38, %v7568_v33  ;;  %v11638_v36 = vpop.f32.mrb[60].mxu1  ;;  %v13260_v29 = vpack.i.bf16 %v17070_v6, %v17068_v45 }
 0x75f   : > { %v11639_v49 = vpop.f32.mrb[61].mxu1  ;;  %v7975_v48 = vld [vmem:[#allocation4 + $0x90] sm:$0xff] }
 0x760   : > { %7849 = vst.msk [vmem:[#allocation4 + $0xa9] sm:$0xff] %vm334_vm2, %v7816_v54  ;;  %v7817_v51 = vmax.f32 %v7729_v27, 0.0  ;;  %v11640_v22 = vadd.f32 %v11639_v49, %v11638_v36  ;;  %v11641_v19 = vpop.f32.mrb[62].mxu1 }
 0x761   : > { %v11642_v12 = vpop.f32.mrb[63].mxu1  ;;  %v7976_v38 = vld [vmem:[#allocation4 + $0x98] sm:$0xff] }
 0x762   : > { %13226 = vrot.lane.b32.xlu1 %v16967_v60, %s13804_s12  ;;  %7850 = vst.msk [vmem:[#allocation4 + $0xb1] sm:$0xff] %vm334_vm2, %v7817_v51  ;;  %v7573_v23 = vadd.f32 %v11640_v22, %v16787_v20  ;;  %v11643_v53 = vadd.f32 %v11642_v12, %v11641_v19  ;;  %v13215_v37 = vpack.i.bf16 %v7976_v38, %v7975_v48  ;;  %v7914_v30 = vld [vmem:[#allocation4 + $0x99] sm:$0xff] }
 0x764   : > { %v7734_v15 = vadd.f32 %v16708_v42, %v7573_v23  ;;  %v7576_v50 = vadd.f32 %v11643_v53, %v16790_v31  ;;  %13216 = vrot.lane.b32.xlu0 %v13215_v37, %s13804_s12 }
 0x766   : > { %13241 = vrot.lane.b32.xlu1 %v13240_v26, %s13804_s12  ;;  %v7818_v60 = vmax.f32 %v7734_v15, 0.0  ;;  %v7737_v18 = vadd.f32 %v16714_v46, %v7576_v50  ;;  %v11644_v24 = vpop.f32.mrb[64].mxu1  ;;  %v17997_v15 = vld [vmem:[#allocation28_spill] sm:$0xff] }
 0x767   : > { %v11645_v61 = vpop.f32.mrb[65].mxu1  ;;  %v7977_v31 = vld [vmem:[#allocation4 + $0xa8] sm:$0xff] }
 0x768   : > { %7851 = vst.msk [vmem:[#allocation4 + $0xc1] sm:$0xff] %vm334_vm2, %v7818_v60  ;;  %v7819_v20 = vmax.f32 %v7737_v18, 0.0  ;;  %v11646_v52 = vadd.f32 %v11645_v61, %v11644_v24  ;;  %v11647_v2 = vpop.f32.mrb[66].mxu1  ;;  %v17998_v24 = vld [vmem:[#allocation29_spill] sm:$0xff] }
 0x769   : > { %v11648_v42 = vpop.f32.mrb[67].mxu1  ;;  %v7978_v11 = vld [vmem:[#allocation4 + $0xb0] sm:$0xff] }
 0x76a   : > { %13246 = vrot.lane.b32.xlu1 %v16990_v1, %s13804_s12  ;;  %7852 = vst.msk [vmem:[#allocation4 + $0xc9] sm:$0xff] %vm334_vm2, %v7819_v20  ;;  %v7581_v46 = vadd.f32 %v11646_v52, %v16797_v13  ;;  %v11649_v56 = vadd.f32 %v11648_v42, %v11647_v2  ;;  %v13230_v3 = vpack.i.bf16 %v7978_v11, %v7977_v31  ;;  %v7913_v1 = vld [vmem:[#allocation4 + $0x91] sm:$0xff]  ;;  %v17102_v11 = vld [vmem:[#allocation4 + $0x62] sm:$0xff] }
 0x76b   : > { %v13235_v13 = vpack.i.bf16 %v7914_v30, %v7913_v1  ;;  %v7916_v26 = vld [vmem:[#allocation4 + $0xb1] sm:$0xff] }
 0x76c   : > { %v7742_v40 = vadd.f32 %v16730_v25, %v7581_v46  ;;  %v7584_v33 = vadd.f32 %v11649_v56, %v16800_v32  ;;  %13231 = vrot.lane.b32.xlu0 %v13230_v3, %s13804_s12  ;;  %v17085_v25 = vld [vmem:[#allocation4 + $0x4a] sm:$0xff]  ;;  %v17087_v32 = vld [vmem:[#allocation4 + $0x52] sm:$0xff] }
 0x76d   : > { %v13280_v37 = vpack.i.bf16 %v17087_v32, %v17085_v25 }
 0x76e   : > { %13261 = vrot.lane.b32.xlu1 %v13260_v29, %s13804_s12  ;;  %v7820_v54 = vmax.f32 %v7742_v40, 0.0  ;;  %v7745_v27 = vadd.f32 %v16742_v44, %v7584_v33  ;;  %v11650_v36 = vpop.f32.mrb[68].mxu1 }
 0x76f   : > { %v11651_v49 = vpop.f32.mrb[69].mxu1  ;;  %v7979_v48 = vld [vmem:[#allocation4 + $0xc0] sm:$0xff] }
 0x770   : > { %7853 = vst.msk [vmem:[#allocation4 + $0xd9] sm:$0xff] %vm334_vm2, %v7820_v54  ;;  %v7821_v51 = vmax.f32 %v7745_v27, 0.0  ;;  %v11652_v22 = vadd.f32 %v11651_v49, %v11650_v36  ;;  %v11653_v19 = vpop.f32.mrb[70].mxu1  ;;  %13236 = vrot.lane.b32.xlu0 %v13235_v13, %s13804_s12  ;;  %v17999_v49 = vld [vmem:[#allocation32_spill] sm:$0xff] }
 0x771   : > { %v11654_v12 = vpop.f32.mrb[71].mxu1  ;;  %v7980_v44 = vld [vmem:[#allocation4 + $0xc8] sm:$0xff] }
 0x772   : > { %13266 = vrot.lane.b32.xlu1 %v17007_v5, %s13804_s12  ;;  %7854 = vst.msk [vmem:[#allocation4 + $0xe1] sm:$0xff] %vm334_vm2, %v7821_v51  ;;  %v7589_v38 = vadd.f32 %v11652_v22, %v16813_v7  ;;  %v11655_v23 = vadd.f32 %v11654_v12, %v11653_v19  ;;  %v13250_v53 = vpack.i.bf16 %v7980_v44, %v7979_v48  ;;  %v7915_v5 = vld [vmem:[#allocation4 + $0xa9] sm:$0xff] }
 0x773   : > { %v13255_v7 = vpack.i.bf16 %v7916_v26, %v7915_v5  ;;  %v7918_v1 = vld [vmem:[#allocation4 + $0xc9] sm:$0xff] }
 0x774   : > { %v7750_v50 = vadd.f32 %v17997_v15, %v7589_v38  ;;  %v7592_v60 = vadd.f32 %v11655_v23, %v16816_v14  ;;  %13251 = vrot.lane.b32.xlu0 %v13250_v53, %s13804_s12  ;;  %v17104_v14 = vld [vmem:[#allocation4 + $0x6a] sm:$0xff]  ;;  %v13320_v15 = vpack.i.bf16 %v17030_v0, %v17028_v4 }
 0x775   : > { %v13300_v33 = vpack.i.bf16 %v17104_v14, %v17102_v11  ;;  %v18000_v23 = vld [vmem:[#allocation5_spill] sm:$0xff] }
 0x776   : > { %13281 = vrot.lane.b32.xlu1 %v13280_v37, %s13804_s12  ;;  %v7822_v18 = vmax.f32 %v7750_v50, 0.0  ;;  %v7753_v61 = vadd.f32 %v17998_v24, %v7592_v60  ;;  %v11656_v20 = vpop.f32.mrb[72].mxu1  ;;  %v18001_v60 = vld [vmem:[#allocation30_spill] sm:$0xff] }
 0x777   : > { %v11657_v52 = vpop.f32.mrb[73].mxu1  ;;  %v7981_v56 = vld [vmem:[#allocation4 + $0xd8] sm:$0xff] }
 0x778   : > { %7855 = vst.msk [vmem:[#allocation4 + $0xf1] sm:$0xff] %vm334_vm2, %v7822_v18  ;;  %v7823_v2 = vmax.f32 %v7753_v61, 0.0  ;;  %v11658_v42 = vadd.f32 %v11657_v52, %v11656_v20  ;;  %v11659_v31 = vpop.f32.mrb[74].mxu1  ;;  %13256 = vrot.lane.b32.xlu0 %v13255_v7, %s13804_s12  ;;  %v18002_v18 = vld [vmem:[#allocation7_spill] sm:$0xff] }
 0x779   : > { %v11660_v46 = vpop.f32.mrb[75].mxu1  ;;  %v7982_v3 = vld [vmem:[#allocation4 + $0xe0] sm:$0xff] }
 0x77a   : > { %13286 = vrot.lane.b32.xlu1 %v17036_v39, %s13804_s12  ;;  %7856 = vst.msk [vmem:[#allocation4 + $0xf9] sm:$0xff] %vm334_vm2, %v7823_v2  ;;  %v7597_v29 = vadd.f32 %v11658_v42, %v16823_v47  ;;  %v11661_v30 = vadd.f32 %v11660_v46, %v11659_v31  ;;  %v13270_v40 = vpack.i.bf16 %v7982_v3, %v7981_v56  ;;  %v7917_v39 = vld [vmem:[#allocation4 + $0xc1] sm:$0xff] }
 0x77b   : > { %v13275_v47 = vpack.i.bf16 %v7918_v1, %v7917_v39  ;;  %v7920_v50 = vld [vmem:[#allocation4 + $0xe1] sm:$0xff] }
 0x77c   : > { %v7758_v54 = vadd.f32 %v16754_v21, %v7597_v29  ;;  %v7600_v27 = vadd.f32 %v11661_v30, %v16826_v59  ;;  %13271 = vrot.lane.b32.xlu0 %v13270_v40, %s13804_s12  ;;  %v18003_v20 = vld [vmem:[#allocation31_spill] sm:$0xff]  ;;  %v17131_v29 = vld [vmem:[#allocation4 + $0x92] sm:$0xff] }
 0x77d   : > { %v17133_v30 = vld [vmem:[#allocation4 + $0x9a] sm:$0xff] }
 0x77e   : > { %13301 = vrot.lane.b32.xlu1 %v13300_v33, %s13804_s12  ;;  %v7824_v36 = vmax.f32 %v7758_v54, 0.0  ;;  %v7761_v51 = vadd.f32 %v17999_v49, %v7600_v27  ;;  %v11662_v22 = vpop.f32.mrb[76].mxu1  ;;  %v18004_v54 = vld [vmem:[#allocation9_spill] sm:$0xff]  ;;  %v13340_v49 = vpack.i.bf16 %v17133_v30, %v17131_v29 }
 0x77f   : > { %v11663_v19 = vpop.f32.mrb[77].mxu1  ;;  %v7983_v59 = vld [vmem:[#allocation4 + $0xf0] sm:$0xff] }
 0x780   : > { %7857 = vst.msk [vmem:[#allocation4 + $0x109] sm:$0xff] %vm334_vm2, %v7824_v36  ;;  %v7825_v12 = vmax.f32 %v7761_v51, 0.0  ;;  %v11664_v48 = vadd.f32 %v11663_v19, %v11662_v22  ;;  %v11665_v44 = vpop.f32.mrb[78].mxu1  ;;  %13276 = vrot.lane.b32.xlu0 %v13275_v47, %s13804_s12  ;;  %v18005_v22 = vld [vmem:[#allocation34_spill] sm:$0xff] }
 0x781   : > { %v11666_v21 = vpop.f32.mrb[79].mxu1  ;;  %v7984_v38 = vld [vmem:[#allocation4 + $0xf8] sm:$0xff] }
 0x782   : > { %13306 = vrot.lane.b32.xlu1 %v13235_v13, %s13804_s12  ;;  %7858 = vst.msk [vmem:[#allocation4 + $0x111] sm:$0xff] %vm334_vm2, %v7825_v12  ;;  %v7605_v53 = vadd.f32 %v11664_v48, %v18000_v23  ;;  %v11667_v37 = vadd.f32 %v11666_v21, %v11665_v44  ;;  %v13290_v26 = vpack.i.bf16 %v7984_v38, %v7983_v59  ;;  %v7919_v13 = vld [vmem:[#allocation4 + $0xd9] sm:$0xff]  ;;  %v18007_v21 = vld [vmem:[#allocation36_spill] sm:$0xff] }
 0x783   : > { %v13295_v42 = vpack.i.bf16 %v7920_v50, %v7919_v13  ;;  %v7922_v51 = vld [vmem:[#allocation4 + $0xf9] sm:$0xff]  ;;  %v17147_v50 = vld [vmem:[#allocation4 + $0xaa] sm:$0xff] }
 0x784   : > { %v7766_v5 = vadd.f32 %v18001_v60, %v7605_v53  ;;  %v7608_v24 = vadd.f32 %v11667_v37, %v18002_v18  ;;  %13291 = vrot.lane.b32.xlu0 %v13290_v26, %s13804_s12  ;;  %v18006_v12 = vld [vmem:[#allocation6_spill] sm:$0xff] }
 0x785   : > { %v17149_v60 = vld [vmem:[#allocation4 + $0xb2] sm:$0xff] }
 0x786   : > { %13321 = vrot.lane.b32.xlu1 %v13320_v15, %s13804_s12  ;;  %v7826_v61 = vmax.f32 %v7766_v5, 0.0  ;;  %v7769_v52 = vadd.f32 %v18003_v20, %v7608_v24  ;;  %v11668_v2 = vpop.f32.mrb[80].mxu1 }
 0x787   : > { %v11669_v31 = vpop.f32.mrb[81].mxu1  ;;  %v7985_v33 = vld [vmem:[#allocation4 + $0x108] sm:$0xff] }
 0x788   : > { %7859 = vst.msk [vmem:[#allocation4 + $0x121] sm:$0xff] %vm334_vm2, %v7826_v61  ;;  %v7827_v46 = vmax.f32 %v7769_v52, 0.0  ;;  %v11670_v56 = vadd.f32 %v11669_v31, %v11668_v2  ;;  %v11671_v3 = vpop.f32.mrb[82].mxu1  ;;  %13296 = vrot.lane.b32.xlu0 %v13295_v42, %s13804_s12  ;;  %v13360_v52 = vpack.i.bf16 %v17149_v60, %v17147_v50  ;;  %v18008_v31 = vld [vmem:[#allocation33_spill] sm:$0xff] }
 0x789   : > { %v11672_v40 = vpop.f32.mrb[83].mxu1  ;;  %v7986_v1 = vld [vmem:[#allocation4 + $0x110] sm:$0xff] }
 0x78a   : > { %13326 = vrot.lane.b32.xlu1 %v13255_v7, %s13804_s12  ;;  %7860 = vst.msk [vmem:[#allocation4 + $0x129] sm:$0xff] %vm334_vm2, %v7827_v46  ;;  %v7613_v27 = vadd.f32 %v11670_v56, %v18004_v54  ;;  %v11673_v39 = vadd.f32 %v11672_v40, %v11671_v3  ;;  %v13310_v36 = vpack.i.bf16 %v7986_v1, %v7985_v33  ;;  %v7921_v7 = vld [vmem:[#allocation4 + $0xf1] sm:$0xff]  ;;  %v18009_v40 = vld [vmem:[#allocation35_spill] sm:$0xff] }
 0x78b   : > { %v13315_v23 = vpack.i.bf16 %v7922_v51, %v7921_v7  ;;  %v7924_v2 = vld [vmem:[#allocation4 + $0x111] sm:$0xff] }
 0x78c   : > { %v7774_v19 = vadd.f32 %v18005_v22, %v7613_v27  ;;  %v7616_v48 = vadd.f32 %v11673_v39, %v18006_v12  ;;  %13311 = vrot.lane.b32.xlu0 %v13310_v36, %s13804_s12 }
 0x78e   : > { %13341 = vrot.lane.b32.xlu1 %v13340_v49, %s13804_s12  ;;  %v7828_v44 = vmax.f32 %v7774_v19, 0.0  ;;  %v7777_v59 = vadd.f32 %v18007_v21, %v7616_v48  ;;  %v11674_v38 = vpop.f32.mrb[84].mxu1  ;;  %v17163_v49 = vld [vmem:[#allocation4 + $0xc2] sm:$0xff] }
 0x78f   : > { %v11675_v53 = vpop.f32.mrb[85].mxu1  ;;  %v7987_v18 = vld [vmem:[#allocation4 + $0x120] sm:$0xff] }
 0x790   : > { %7861 = vst.msk [vmem:[#allocation4 + $0x139] sm:$0xff] %vm334_vm2, %v7828_v44  ;;  %v7829_v37 = vmax.f32 %v7777_v59, 0.0  ;;  %v11676_v26 = vadd.f32 %v11675_v53, %v11674_v38  ;;  %v11677_v15 = vpop.f32.mrb[86].mxu1  ;;  %13316 = vrot.lane.b32.xlu0 %v13315_v23, %s13804_s12  ;;  %v18010_v59 = vld [vmem:[#allocation11_spill] sm:$0xff]  ;;  %v18011_v53 = vld [vmem:[#allocation13_spill] sm:$0xff] }
 0x791   : > { %v11678_v5 = vpop.f32.mrb[87].mxu1  ;;  %v7988_v24 = vld [vmem:[#allocation4 + $0x128] sm:$0xff] }
 0x792   : > { %13346 = vrot.lane.b32.xlu1 %v13275_v47, %s13804_s12  ;;  %7862 = vst.msk [vmem:[#allocation4 + $0x141] sm:$0xff] %vm334_vm2, %v7829_v37  ;;  %v7621_v13 = vadd.f32 %v11676_v26, %v16865_v9  ;;  %v11679_v61 = vadd.f32 %v11678_v5, %v11677_v15  ;;  %v13330_v20 = vpack.i.bf16 %v7988_v24, %v7987_v18  ;;  %v7923_v47 = vld [vmem:[#allocation4 + $0x109] sm:$0xff] }
 0x793   : > { %v13335_v9 = vpack.i.bf16 %v7924_v2, %v7923_v47  ;;  %v7926_v21 = vld [vmem:[#allocation4 + $0x129] sm:$0xff] }
 0x794   : > { %v7782_v46 = vadd.f32 %v18008_v31, %v7621_v13  ;;  %v7624_v56 = vadd.f32 %v11679_v61, %v16868_v63  ;;  %13331 = vrot.lane.b32.xlu0 %v13330_v20, %s13804_s12  ;;  %v17165_v63 = vld [vmem:[#allocation4 + $0xca] sm:$0xff]  ;;  %v17184_v2 = vld [vmem:[#allocation4 + $0xe2] sm:$0xff] }
 0x795   : > { %v13380_v44 = vpack.i.bf16 %v17165_v63, %v17163_v49  ;;  %v18012_v15 = vld [vmem:[#allocation12_spill] sm:$0xff] }
 0x796   : > { %13361 = vrot.lane.b32.xlu1 %v13360_v52, %s13804_s12  ;;  %v7830_v3 = vmax.f32 %v7782_v46, 0.0  ;;  %v7785_v33 = vadd.f32 %v18009_v40, %v7624_v56  ;;  %v11680_v1 = vpop.f32.mrb[88].mxu1  ;;  %v17182_v52 = vld [vmem:[#allocation4 + $0xda] sm:$0xff] }
 0x797   : > { %v11681_v54 = vpop.f32.mrb[89].mxu1  ;;  %v7989_v22 = vld [vmem:[#allocation4 + $0x138] sm:$0xff] }
 0x798   : > { %7863 = vst.msk [vmem:[#allocation4 + $0x151] sm:$0xff] %vm334_vm2, %v7830_v3  ;;  %v7831_v27 = vmax.f32 %v7785_v33, 0.0  ;;  %v11682_v39 = vadd.f32 %v11681_v54, %v11680_v1  ;;  %v11683_v36 = vpop.f32.mrb[90].mxu1  ;;  %13336 = vrot.lane.b32.xlu0 %v13335_v9, %s13804_s12  ;;  %v13400_v33 = vpack.i.bf16 %v17184_v2, %v17182_v52  ;;  %v18013_v54 = vld [vmem:[#allocation8_spill] sm:$0xff] }
 0x799   : > { %v11684_v51 = vpop.f32.mrb[91].mxu1  ;;  %v7990_v19 = vld [vmem:[#allocation4 + $0x140] sm:$0xff] }
 0x79a   : > { %13366 = vrot.lane.b32.xlu1 %v13295_v42, %s13804_s12  ;;  %7864 = vst.msk [vmem:[#allocation4 + $0x159] sm:$0xff] %vm334_vm2, %v7831_v27  ;;  %v7629_v12 = vadd.f32 %v11682_v39, %v16882_v62  ;;  %v11685_v48 = vadd.f32 %v11684_v51, %v11683_v36  ;;  %v13350_v7 = vpack.i.bf16 %v7990_v19, %v7989_v22  ;;  %v7925_v42 = vld [vmem:[#allocation4 + $0x121] sm:$0xff]  ;;  %v18014_v51 = vld [vmem:[#allocation10_spill] sm:$0xff] }
 0x79b   : > { %v17177_v62 = vpack.i.bf16 %v7926_v21, %v7925_v42  ;;  %v7928_v1 = vld [vmem:[#allocation4 + $0x141] sm:$0xff] }
 0x79c   : > { %v7790_v38 = vadd.f32 %v18010_v59, %v7629_v12  ;;  %v7632_v37 = vadd.f32 %v11685_v48, %v18011_v53  ;;  %13351 = vrot.lane.b32.xlu0 %v13350_v7, %s13804_s12  ;;  %v17201_v12 = vld [vmem:[#allocation4 + $0xf2] sm:$0xff]  ;;  %v17203_v48 = vld [vmem:[#allocation4 + $0xfa] sm:$0xff] }
 0x79d   : > { %v7869_v53 = vld [vmem:[#allocation4] sm:$0xff]  ;;  %v13420_v42 = vpack.i.bf16 %v17203_v48, %v17201_v12 }
 0x79e   : > { %13381 = vrot.lane.b32.xlu1 %v13380_v44, %s13804_s12  ;;  %v7832_v26 = vmax.f32 %v7790_v38, 0.0  ;;  %v7793_v5 = vadd.f32 %v18012_v15, %v7632_v37  ;;  %v11686_v18 = vpop.f32.mrb[92].mxu1  ;;  %v7870_v37 = vld [vmem:[#allocation4 + $0x8] sm:$0xff] }
 0x79f   : > { %v11687_v24 = vpop.f32.mrb[93].mxu1  ;;  %v7991_v46 = vld [vmem:[#allocation4 + $0x150] sm:$0xff] }
 0x7a0   : > { %7865 = vst.msk [vmem:[#allocation4 + $0x169] sm:$0xff] %vm334_vm2, %v7832_v26  ;;  %v7833_v13 = vmax.f32 %v7793_v5, 0.0  ;;  %v11688_v61 = vadd.f32 %v11687_v24, %v11686_v18  ;;  %v11689_v20 = vpop.f32.mrb[94].mxu1  ;;  %13356 = vrot.lane.b32.xlu0 %v17177_v62, %s13804_s12  ;;  %v17210_v15 = vld [vmem:[#allocation4 + $0x10a] sm:$0xff]  ;;  %v17212_v5 = vld [vmem:[#allocation4 + $0x112] sm:$0xff] }
 0x7a1   : > { %v11690_v31 = vpop.f32.mrb[95].mxu1  ;;  %v7992_v56 = vld [vmem:[#allocation4 + $0x158] sm:$0xff] }
 0x7a2   : > { %13386 = vrot.lane.b32.xlu1 %v13315_v23, %s13804_s12  ;;  %7866 = vst.msk [vmem:[#allocation4 + $0x171] sm:$0xff] %vm334_vm2, %v7833_v13  ;;  %v7637_v47 = vadd.f32 %v11688_v61, %v16899_v58  ;;  %v11691_v3 = vadd.f32 %v11690_v31, %v11689_v20  ;;  %v13370_v40 = vpack.i.bf16 %v7992_v56, %v7991_v46  ;;  %v7927_v23 = vld [vmem:[#allocation4 + $0x139] sm:$0xff]  ;;  %v7933_v20 = vld [vmem:[#allocation4 + $0x2] sm:$0xff]  ;;  %v7934_v31 = vld [vmem:[#allocation4 + $0xa] sm:$0xff] }
 0x7a3   : > { %v17196_v19 = vpack.i.bf16 %v7928_v1, %v7927_v23  ;;  %v7930_v26 = vld [vmem:[#allocation4 + $0x159] sm:$0xff] }
 0x7a4   : > { %v7798_v27 = vadd.f32 %v18013_v54, %v7637_v47  ;;  %v7640_v39 = vadd.f32 %v11691_v3, %v16902_v28  ;;  %13371 = vrot.lane.b32.xlu0 %v13370_v40, %s13804_s12  ;;  %v13172_v28 = vpop.permute.xlu1 %13171  ;;  %v13430_v47 = vpack.i.bf16 %v17212_v5, %v17210_v15  ;;  %v17223_v3 = vld [vmem:[#allocation4 + $0x122] sm:$0xff]  ;;  %v17225_v40 = vld [vmem:[#allocation4 + $0x12a] sm:$0xff] }
 0x7a5   : > { %v13174_v21 = vunpack.i.h.bf16 %v13172_v28  ;;  %v13173_v59 = vunpack.i.l.bf16 %v13172_v28  ;;  %v17235_v28 = vld [vmem:[%s17820_s7 + $0x108] sm:$0xff]  }
 0x7a6   : > { %13401 = vrot.lane.b32.xlu1 %v13400_v33, %s13804_s12  ;;  %v7834_v36 = vmax.f32 %v7798_v27, 0.0  ;;  %v7801_v22 = vadd.f32 %v18014_v51, %v7640_v39 }
 0x7a7   : > { %v7993_v7 = vld [vmem:[#allocation4 + $0x168] sm:$0xff]  ;;  %v8671_v18 = vsel %vm334_vm2, %v7870_v37, %v13174_v21  ;;  %v8670_v24 = vsel %vm334_vm2, %v7869_v53, %v13173_v59  ;;  %v17238_v21 = vld [vmem:[#allocation4 + $0x13a] sm:$0xff] }
 0x7a8   : > { %7867 = vst.msk [vmem:[#allocation4 + $0x181] sm:$0xff] %vm334_vm2, %v7834_v36  ;;  %v7835_v58 = vmax.f32 %v7801_v22, 0.0  ;;  %13376 = vrot.lane.b32.xlu0 %v17196_v19, %s13804_s12  ;;  %v8798_v33 = vpack.c.bf16 %v8671_v18, %v8670_v24  ;;  %v13440_v22 = vpack.i.bf16 %v17225_v40, %v17223_v3  ;;  %v17240_v59 = vld [vmem:[#allocation4 + $0x142] sm:$0xff]  ;;  %v17250_v18 = vld [vmem:[%s17820_s7 + $0x110] sm:$0xff]  }
 0x7a9   : > { %v7994_v44 = vld [vmem:[#allocation4 + $0x170] sm:$0xff] }
 0x7aa   : > { %13406 = vrot.lane.b32.xlu1 %v13335_v9, %s13804_s12  ;;  %7868 = vst.msk [vmem:[#allocation4 + $0x189] sm:$0xff] %vm334_vm2, %v7835_v58  ;;  %v13390_v38 = vpack.i.bf16 %v7994_v44, %v7993_v7  ;;  %v7929_v9 = vld [vmem:[#allocation4 + $0x151] sm:$0xff] }
 0x7ab   : > { %v17217_v61 = vpack.i.bf16 %v7930_v26, %v7929_v9  ;;  %v7932_v58 = vld [vmem:[#allocation4 + $0x171] sm:$0xff]  ;;  %v13450_v9 = vpack.i.bf16 %v17240_v59, %v17238_v21 }
 0x7ac   : > { %13391 = vrot.lane.b32.xlu0 %v13390_v38, %s13804_s12  ;;  %v7931_v38 = vld [vmem:[#allocation4 + $0x169] sm:$0xff] }
 0x7ad   : > { %v13415_v37 = vpack.i.bf16 %v7932_v58, %v7931_v38 }
 0x7ae   : > { %13421 = vrot.lane.b32.xlu1 %v13420_v42, %s13804_s12  ;;  %v13167_v13 = vpop.permute.xlu0 %13166 }
 0x7af   : > { %v13169_v46 = vunpack.i.h.bf16 %v13167_v13  ;;  %v13168_v56 = vunpack.i.l.bf16 %v13167_v13  ;;  %v13182_v1 = vpop.permute.xlu1 %13181  ;;  %v7995_v39 = vld [vmem:[#allocation4 + $0x180] sm:$0xff] }
 0x7b0   : > { %13396 = vrot.lane.b32.xlu0 %v17217_v61, %s13804_s12  ;;  %v13184_v7 = vunpack.i.h.bf16 %v13182_v1  ;;  %v13183_v44 = vunpack.i.l.bf16 %v13182_v1 }
 0x7b1   : > { %v8702_v54 = vsel %vm334_vm2, %v7933_v20, %v13168_v56  ;;  %v8703_v27 = vsel %vm334_vm2, %v7934_v31, %v13169_v46  ;;  %v7996_v23 = vld [vmem:[#allocation4 + $0x188] sm:$0xff]  ;;  %v17259_v20 = vld [vmem:[#allocation4 + $0x15a] sm:$0xff] }
 0x7b2   : > { %13431 = vrot.lane.b32.xlu1 %v13430_v47, %s13804_s12  ;;  %v8799_v36 = vpack.c.bf16 %v8703_v27, %v8702_v54  ;;  %v13410_v51 = vpack.i.bf16 %v7996_v23, %v7995_v39  ;;  %v8672_v24 = vsel %vm334_vm2, %v16933_v17, %v13183_v44  ;;  %v8673_v13 = vsel %vm334_vm2, %v16935_v10, %v13184_v7  ;;  %v8060_v58 = vld [vmem:[#allocation4 + $0x18a] sm:$0xff] }
 0x7b3   : > { %v8803_v17 = vpack.c.bf16 %v8673_v13, %v8672_v24  ;;  %v8123_v24 = vld [vmem:[#allocation4 + $0x189] sm:$0xff] }
 0x7b4   : > { %9253 = vmatprep.mubr.bf16.mxu1 %v8799_v36  ;;  %13411 = vrot.lane.b32.xlu0 %v13410_v51, %s13804_s12 }
 0x7b5   : > { %9254 = vmatmul.mubr.bf16.vlgmr.msra.gmra.mrb[96].mxu1 %v8798_v33  ;;  %v17273_v33 = vld [vmem:[%s17820_s7 + $0x118] sm:$0xff]  }
 0x7b6   : > { %13441 = vrot.lane.b32.xlu1 %v13440_v22, %s13804_s12  ;;  %v13177_v53 = vpop.permute.xlu0 %13176  ;;  %12542 = vmatpush3.bf16.msra.mxu1 %v16947_v57  ;;  %v17257_v57 = vld [vmem:[#allocation4 + $0x152] sm:$0xff]  ;;  %v8059_v22 = vld [vmem:[#allocation4 + $0x182] sm:$0xff] }
 0x7b7   : > { %v13179_v42 = vunpack.i.h.bf16 %v13177_v53  ;;  %v13178_v26 = vunpack.i.l.bf16 %v13177_v53  ;;  %12539 = vmatprep.subr.bf16.mxu1 %v17235_v28  ;;  %v13192_v31 = vpop.permute.xlu1 %13191  ;;  %v13460_v10 = vpack.i.bf16 %v17259_v20, %v17257_v57 }
 0x7b8   : > { %13416 = vrot.lane.b32.xlu0 %v13415_v37, %s13804_s12  ;;  %v13194_v1 = vunpack.i.h.bf16 %v13192_v31  ;;  %v13193_v54 = vunpack.i.l.bf16 %v13192_v31 }
 0x7b9   : > { %v8704_v46 = vsel %vm334_vm2, %v17052_v35, %v13178_v26  ;;  %v8705_v56 = vsel %vm334_vm2, %v17054_v8, %v13179_v42  ;;  %v17277_v35 = vld [vmem:[#allocation4 + $0x16a] sm:$0xff]  ;;  %v17279_v8 = vld [vmem:[#allocation4 + $0x172] sm:$0xff]  ;;  %v13480_v42 = vpack.i.bf16 %v8060_v58, %v8059_v22 }
 0x7ba   : > { %13451 = vrot.lane.b32.xlu1 %v13450_v9, %s13804_s12  ;;  %v8804_v47 = vpack.c.bf16 %v8705_v56, %v8704_v46  ;;  %12543 = vmatpush3.bf16.msra.mxu1 %v17235_v28  ;;  %v13470_v36 = vpack.i.bf16 %v17279_v8, %v17277_v35  ;;  %v8674_v51 = vsel %vm334_vm2, %v16959_v55, %v13193_v54  ;;  %v8122_v56 = vld [vmem:[#allocation4 + $0x181] sm:$0xff] }
 0x7bb   : > { %12540 = vmatprep.subr.bf16.mxu1 %v17250_v18 }
 0x7bc   : > { %9261 = vmatprep.mubr.bf16.mxu1 %v8804_v47  ;;  %13426 = vrot.lane.b32.xlu0 %v17177_v62, %s13804_s12  ;;  %v8675_v62 = vsel %vm334_vm2, %v16961_v16, %v13194_v1  ;;  %v8124_v47 = vld [vmem:[#allocation4 + $0x199] sm:$0xff]  ;;  %v13465_v1 = vpack.i.bf16 %v8123_v24, %v8122_v56 }
 0x7bd   : > { %9262 = vmatmul.mubr.bf16.gmra.mrb[100].mxu1 %v8803_v17  ;;  %v8808_v16 = vpack.c.bf16 %v8675_v62, %v8674_v51  ;;  %v8125_v17 = vld [vmem:[#allocation4 + $0x1a1] sm:$0xff] }
 0x7be   : > { %13461 = vrot.lane.b32.xlu1 %v13460_v10, %s13804_s12  ;;  %v13187_v27 = vpop.permute.xlu0 %13186  ;;  %12544 = vmatpush3.bf16.msra.mxu1 %v17250_v18 }
 0x7bf   : > { %v13189_v39 = vunpack.i.h.bf16 %v13187_v27  ;;  %v13188_v23 = vunpack.i.l.bf16 %v13187_v27  ;;  %12541 = vmatprep.subr.bf16.mxu1 %v17273_v33  ;;  %v13202_v7 = vpop.permute.xlu1 %13201 }
 0x7c0   : > { %13436 = vrot.lane.b32.xlu0 %v17196_v19, %s13804_s12  ;;  %v13204_v55 = vunpack.i.h.bf16 %v13202_v7  ;;  %v13203_v26 = vunpack.i.l.bf16 %v13202_v7 }
 0x7c1   : > { %v8706_v44 = vsel %vm334_vm2, %v17068_v45, %v13188_v23  ;;  %v8707_v38 = vsel %vm334_vm2, %v17070_v6, %v13189_v39  ;;  %v17311_v39 = vld [vmem:[#allocation4 + $0x60] sm:$0xff] }
 0x7c2   : > { %13471 = vrot.lane.b32.xlu1 %v13470_v36, %s13804_s12  ;;  %v8809_v53 = vpack.c.bf16 %v8707_v38, %v8706_v44  ;;  %12545 = vmatpush3.bf16.msra.mxu1 %v17273_v33  ;;  %v8677_v6 = vsel %vm334_vm2, %v16984_v34, %v13204_v55  ;;  %v8676_v13 = vsel %vm334_vm2, %v16982_v41, %v13203_v26  ;;  %v8062_v26 = vld [vmem:[#allocation4 + $0x30] sm:$0xff] }
 0x7c3   : > { %v8813_v54 = vpack.c.bf16 %v8677_v6, %v8676_v13  ;;  %v13475_v41 = vpack.i.bf16 %v8125_v17, %v8124_v47  ;;  %v17328_v6 = vld [vmem:[#allocation4 + $0x80] sm:$0xff] }
 0x7c4   : > { %9269 = vmatprep.mubr.bf16.mxu1 %v8809_v53  ;;  %13446 = vrot.lane.b32.xlu0 %v17217_v61, %s13804_s12 }
 0x7c5   : > { %9270 = vmatmul.mubr.bf16.gmra.mrb[104].mxu1 %v8808_v16 }
 0x7c6   : > { %13481 = vrot.lane.b32.xlu1 %v13480_v42, %s13804_s12  ;;  %v13197_v19 = vpop.permute.xlu0 %13196 }
 0x7c7   : > { %v13199_v9 = vunpack.i.h.bf16 %v13197_v19  ;;  %v13198_v45 = vunpack.i.l.bf16 %v13197_v19  ;;  %v13212_v31 = vpop.permute.xlu1 %13211  ;;  %v8063_v19 = vld [vmem:[#allocation4 + $0x38] sm:$0xff] }
 0x7c8   : > { %13456 = vrot.lane.b32.xlu0 %v13415_v37, %s13804_s12  ;;  %v13214_v27 = vunpack.i.h.bf16 %v13212_v31  ;;  %v13213_v34 = vunpack.i.l.bf16 %v13212_v31 }
 0x7c9   : > { %v8708_v46 = vsel %vm334_vm2, %v17085_v25, %v13198_v45  ;;  %v8709_v61 = vsel %vm334_vm2, %v17087_v32, %v13199_v9  ;;  %v17313_v25 = vld [vmem:[#allocation4 + $0x68] sm:$0xff] }
 0x7ca   : > { %v8814_v10 = vpack.c.bf16 %v8709_v61, %v8708_v46  ;;  %v8679_v62 = vsel %vm334_vm2, %v17313_v25, %v13214_v27  ;;  %v8678_v51 = vsel %vm334_vm2, %v17311_v39, %v13213_v34  ;;  %v7998_v27 = vld [vmem:[#allocation4 + $0x21] sm:$0xff] }
 0x7cb   : > { %v8818_v44 = vpack.c.bf16 %v8679_v62, %v8678_v51 }
 0x7cc   : > { %9277 = vmatprep.mubr.bf16.mxu1 %v8814_v10  ;;  %13466 = vrot.lane.b32.xlu0 %v13465_v1, %s13804_s12  ;;  %v7943_v10 = vld [vmem:[#allocation4 + $0x7a] sm:$0xff]  ;;  %v7944_v1 = vld [vmem:[#allocation4 + $0x82] sm:$0xff] }
 0x7cd   : > { %9278 = vmatmul.mubr.bf16.gmra.mrb[108].mxu1 %v8813_v54  ;;  %v7997_v54 = vld [vmem:[#allocation4 + $0x19] sm:$0xff] }
 0x7cf   : > { %v13207_v37 = vpop.permute.xlu0 %13206 }
 0x7d0   : > { %v13209_v23 = vunpack.i.h.bf16 %v13207_v37  ;;  %v13208_v32 = vunpack.i.l.bf16 %v13207_v37  ;;  %v13222_v36 = vpop.permute.xlu1 %13221  ;;  %13476 = vrot.lane.b32.xlu0 %v13475_v41, %s13804_s12 }
 0x7d1   : > { %v13224_v53 = vunpack.i.h.bf16 %v13222_v36  ;;  %v13223_v16 = vunpack.i.l.bf16 %v13222_v36 }
 0x7d2   : > { %v8710_v22 = vsel %vm334_vm2, %v17102_v11, %v13208_v32  ;;  %v8711_v58 = vsel %vm334_vm2, %v17104_v14, %v13209_v23  ;;  %v17326_v11 = vld [vmem:[#allocation4 + $0x78] sm:$0xff] }
 0x7d3   : > { %v8819_v7 = vpack.c.bf16 %v8711_v58, %v8710_v22  ;;  %v8681_v61 = vsel %vm334_vm2, %v17328_v6, %v13224_v53  ;;  %v8680_v56 = vsel %vm334_vm2, %v17326_v11, %v13223_v16 }
 0x7d4   : > { %v13227_v38 = vpop.permute.xlu1 %13226  ;;  %v8823_v36 = vpack.c.bf16 %v8681_v61, %v8680_v56 }
 0x7d5   : > { %v13229_v42 = vunpack.i.h.bf16 %v13227_v38  ;;  %v13228_v55 = vunpack.i.l.bf16 %v13227_v38  ;;  %9285 = vmatprep.mubr.bf16.mxu1 %v8819_v7  ;;  %v8064_v7 = vld [vmem:[#allocation4 + $0x48] sm:$0xff] }
 0x7d6   : > { %9286 = vmatmul.mubr.bf16.gmra.mrb[112].mxu1 %v8818_v44  ;;  %v13217_v9 = vpop.permute.xlu0 %13216  ;;  %v8065_v44 = vld [vmem:[#allocation4 + $0x50] sm:$0xff] }
 0x7d7   : > { %v8766_v45 = vsel %vm334_vm2, %v8062_v26, %v13228_v55  ;;  %v8767_v24 = vsel %vm334_vm2, %v8063_v19, %v13229_v42  ;;  %v13219_v14 = vunpack.i.h.bf16 %v13217_v9  ;;  %v13218_v13 = vunpack.i.l.bf16 %v13217_v9  ;;  %v13794_v42 = vld [vmem:[%s17820_s7 + $0x100] sm:$0xff]  }
 0x7d8   : > { %v13242_v31 = vpop.permute.xlu1 %13241  ;;  %v8801_v46 = vpack.c.bf16 %v8767_v24, %v8766_v45 }
 0x7d9   : > { %v13244_v47 = vunpack.i.h.bf16 %v13242_v31  ;;  %v13243_v17 = vunpack.i.l.bf16 %v13242_v31  ;;  %v8712_v34 = vsel %vm334_vm2, %v7943_v10, %v13218_v13  ;;  %v8713_v41 = vsel %vm334_vm2, %v7944_v1, %v13219_v14  ;;  %v7999_v31 = vld [vmem:[#allocation4 + $0x31] sm:$0xff] }
 0x7da   : > { %9414 = vmatprep.mubr.bf16.mxu0 %v8801_v46  ;;  %v8824_v32 = vpack.c.bf16 %v8713_v41, %v8712_v34  ;;  %v8000_v46 = vld [vmem:[#allocation4 + $0x39] sm:$0xff] }
 0x7db   : > { %v8735_v37 = vsel %vm334_vm2, %v7998_v27, %v13244_v47  ;;  %v8734_v23 = vsel %vm334_vm2, %v7997_v54, %v13243_v17  ;;  %v17354_v34 = vld [vmem:[#allocation4 + $0x98] sm:$0xff] }
 0x7dc   : > { %v8800_v62 = vpack.c.bf16 %v8735_v37, %v8734_v23  ;;  %v13247_v51 = vpop.permute.xlu1 %13246  ;;  %9293 = vmatprep.mubr.bf16.mxu1 %v8824_v32 }
 0x7dd   : > { %v13249_v22 = vunpack.i.h.bf16 %v13247_v51  ;;  %v13248_v58 = vunpack.i.l.bf16 %v13247_v51 }
 0x7de   : > { %9415 = vmatmul.mubr.bf16.vlgmr.msra.gmra.mrb[128].mxu0 %v8800_v62  ;;  %9294 = vmatmul.mubr.bf16.gmra.mrb[116].mxu1 %v8823_v36  ;;  %v13232_v38 = vpop.permute.xlu0 %13231 }
 0x7df   : > { %v8768_v53 = vsel %vm334_vm2, %v8064_v7, %v13248_v58  ;;  %v8769_v16 = vsel %vm334_vm2, %v8065_v44, %v13249_v22  ;;  %12499 = vmatpush3.bf16.msra.mxu0 %v13794_v42  ;;  %v13234_v55 = vunpack.i.h.bf16 %v13232_v38  ;;  %v13233_v26 = vunpack.i.l.bf16 %v13232_v38 }
 0x7e0   : > { %v13262_v19 = vpop.permute.xlu1 %13261  ;;  %v8806_v9 = vpack.c.bf16 %v8769_v16, %v8768_v53  ;;  %12500 = vmatprep.subr.bf16.mxu0 %v17235_v28  ;;  %v8001_v16 = vld [vmem:[#allocation4 + $0x49] sm:$0xff] }
 0x7e1   : > { %v13264_v45 = vunpack.i.h.bf16 %v13262_v19  ;;  %v13263_v24 = vunpack.i.l.bf16 %v13262_v19  ;;  %v8714_v14 = vsel %vm334_vm2, %v17131_v29, %v13233_v26  ;;  %v8715_v13 = vsel %vm334_vm2, %v17133_v30, %v13234_v55  ;;  %v17352_v29 = vld [vmem:[#allocation4 + $0x90] sm:$0xff] }
 0x7e2   : > { %9422 = vmatprep.mubr.bf16.mxu0 %v8806_v9  ;;  %v13237_v61 = vpop.permute.xlu0 %13236  ;;  %v8829_v56 = vpack.c.bf16 %v8715_v13, %v8714_v14  ;;  %v17373_v14 = vld [vmem:[#allocation4 + $0xa8] sm:$0xff] }
 0x7e3   : > { %v8736_v47 = vsel %vm334_vm2, %v7999_v31, %v13263_v24  ;;  %v8737_v17 = vsel %vm334_vm2, %v8000_v46, %v13264_v45  ;;  %12501 = vmatpush3.bf16.msra.mxu0 %v17235_v28  ;;  %v13239_v10 = vunpack.i.h.bf16 %v13237_v61  ;;  %v13238_v1 = vunpack.i.l.bf16 %v13237_v61 }
 0x7e4   : > { %v13267_v54 = vpop.permute.xlu1 %13266  ;;  %v8805_v27 = vpack.c.bf16 %v8737_v17, %v8736_v47  ;;  %12502 = vmatprep.subr.bf16.mxu0 %v17250_v18  ;;  %9301 = vmatprep.mubr.bf16.mxu1 %v8829_v56 }
 0x7e5   : > { %v13269_v30 = vunpack.i.h.bf16 %v13267_v54  ;;  %v13268_v41 = vunpack.i.l.bf16 %v13267_v54  ;;  %v8683_v37 = vsel %vm334_vm2, %v17354_v34, %v13239_v10  ;;  %v8682_v23 = vsel %vm334_vm2, %v17352_v29, %v13238_v1 }
 0x7e6   : > { %9423 = vmatmul.mubr.bf16.gmra.mrb[132].mxu0 %v8805_v27  ;;  %v8828_v28 = vpack.c.bf16 %v8683_v37, %v8682_v23  ;;  %v13252_v32 = vpop.permute.xlu0 %13251  ;;  %v8003_v23 = vld [vmem:[#allocation4 + $0x61] sm:$0xff] }
 0x7e7   : > { %v8770_v36 = vsel %vm334_vm2, %v17311_v39, %v13268_v41  ;;  %v8771_v62 = vsel %vm334_vm2, %v17313_v25, %v13269_v30  ;;  %12503 = vmatpush3.bf16.msra.mxu0 %v17250_v18  ;;  %v13254_v51 = vunpack.i.h.bf16 %v13252_v32  ;;  %v13253_v22 = vunpack.i.l.bf16 %v13252_v32  ;;  %v8002_v25 = vld [vmem:[#allocation4 + $0x51] sm:$0xff] }
 0x7e8   : > { %v13282_v58 = vpop.permute.xlu1 %13281  ;;  %v8811_v7 = vpack.c.bf16 %v8771_v62, %v8770_v36  ;;  %12504 = vmatprep.subr.bf16.mxu0 %v17273_v33  ;;  %9302 = vmatmul.mubr.bf16.gmra.mrb[120].mxu1 %v8828_v28  ;;  %v8004_v28 = vld [vmem:[#allocation4 + $0x69] sm:$0xff] }
 0x7e9   : > { %v13284_v44 = vunpack.i.h.bf16 %v13282_v58  ;;  %v13283_v38 = vunpack.i.l.bf16 %v13282_v58  ;;  %v8716_v53 = vsel %vm334_vm2, %v17147_v50, %v13253_v22  ;;  %v8717_v39 = vsel %vm334_vm2, %v17149_v60, %v13254_v51  ;;  %v17375_v50 = vld [vmem:[#allocation4 + $0xb0] sm:$0xff] }
 0x7ea   : > { %9430 = vmatprep.mubr.bf16.mxu0 %v8811_v7  ;;  %v13257_v42 = vpop.permute.xlu0 %13256  ;;  %v8834_v18 = vpack.c.bf16 %v8717_v39, %v8716_v53  ;;  %v17391_v7 = vld [vmem:[#allocation4 + $0xc0] sm:$0xff] }
 0x7eb   : > { %v8738_v55 = vsel %vm334_vm2, %v8001_v16, %v13283_v38  ;;  %v8739_v26 = vsel %vm334_vm2, %v8002_v25, %v13284_v44  ;;  %12505 = vmatpush3.bf16.msra.mxu0 %v17273_v33  ;;  %v13259_v19 = vunpack.i.h.bf16 %v13257_v42  ;;  %v13258_v9 = vunpack.i.l.bf16 %v13257_v42  ;;  %v17393_v44 = vld [vmem:[#allocation4 + $0xc8] sm:$0xff] }
 0x7ec   : > { %v13287_v45 = vpop.permute.xlu1 %13286  ;;  %v8810_v24 = vpack.c.bf16 %v8739_v26, %v8738_v55  ;;  %9309 = vmatprep.mubr.bf16.mxu1 %v8834_v18 }
 0x7ed   : > { %v13289_v13 = vunpack.i.h.bf16 %v13287_v45  ;;  %v13288_v60 = vunpack.i.l.bf16 %v13287_v45  ;;  %v8685_v31 = vsel %vm334_vm2, %v17375_v50, %v13259_v19  ;;  %v8684_v46 = vsel %vm334_vm2, %v17373_v14, %v13258_v9 }
 0x7ee   : > { %9431 = vmatmul.mubr.bf16.gmra.mrb[136].mxu0 %v8810_v24  ;;  %v8833_v61 = vpack.c.bf16 %v8685_v31, %v8684_v46  ;;  %v13272_v33 = vpop.permute.xlu0 %13271  ;;  %v8006_v31 = vld [vmem:[#allocation4 + $0x81] sm:$0xff] }
 0x7ef   : > { %v8772_v56 = vsel %vm334_vm2, %v17326_v11, %v13288_v60  ;;  %v8773_v47 = vsel %vm334_vm2, %v17328_v6, %v13289_v13  ;;  %v13274_v17 = vunpack.i.h.bf16 %v13272_v33  ;;  %v13273_v10 = vunpack.i.l.bf16 %v13272_v33  ;;  %v8005_v60 = vld [vmem:[#allocation4 + $0x79] sm:$0xff] }
 0x7f0   : > { %v13302_v1 = vpop.permute.xlu1 %13301  ;;  %v8816_v54 = vpack.c.bf16 %v8773_v47, %v8772_v56  ;;  %9310 = vmatmul.mubr.bf16.gmra.mrb[124].mxu1 %v8833_v61 }
 0x7f1   : > { %v13304_v27 = vunpack.i.h.bf16 %v13302_v1  ;;  %v13303_v30 = vunpack.i.l.bf16 %v13302_v1  ;;  %v8718_v41 = vsel %vm334_vm2, %v17163_v49, %v13273_v10  ;;  %v8719_v37 = vsel %vm334_vm2, %v17165_v63, %v13274_v17  ;;  %v17409_v10 = vld [vmem:[#allocation4 + $0xd8] sm:$0xff]  ;;  %v17411_v1 = vld [vmem:[#allocation4 + $0xe0] sm:$0xff] }
 0x7f2   : > { %9438 = vmatprep.mubr.bf16.mxu0 %v8816_v54  ;;  %v13277_v11 = vpop.permute.xlu0 %13276  ;;  %v8839_v32 = vpack.c.bf16 %v8719_v37, %v8718_v41 }
 0x7f3   : > { %v8740_v6 = vsel %vm334_vm2, %v8003_v23, %v13303_v30  ;;  %v8741_v36 = vsel %vm334_vm2, %v8004_v28, %v13304_v27  ;;  %v13279_v62 = vunpack.i.h.bf16 %v13277_v11  ;;  %v13278_v51 = vunpack.i.l.bf16 %v13277_v11 }
 0x7f4   : > { %v13307_v22 = vpop.permute.xlu1 %13306  ;;  %v8815_v58 = vpack.c.bf16 %v8741_v36, %v8740_v6  ;;  %9317 = vmatprep.mubr.bf16.mxu1 %v8839_v32 }
 0x7f5   : > { %v13309_v49 = vunpack.i.h.bf16 %v13307_v22  ;;  %v13308_v38 = vunpack.i.l.bf16 %v13307_v22  ;;  %v8687_v63 = vsel %vm334_vm2, %v17393_v44, %v13279_v62  ;;  %v8686_v53 = vsel %vm334_vm2, %v17391_v7, %v13278_v51 }
 0x7f6   : > { %9439 = vmatmul.mubr.bf16.gmra.mrb[140].mxu0 %v8815_v58  ;;  %v8838_v39 = vpack.c.bf16 %v8687_v63, %v8686_v53  ;;  %v13292_v16 = vpop.permute.xlu0 %13291  ;;  %v8007_v58 = vld [vmem:[#allocation4 + $0x91] sm:$0xff] }
 0x7f7   : > { %v8774_v25 = vsel %vm334_vm2, %v17352_v29, %v13308_v38  ;;  %v8775_v42 = vsel %vm334_vm2, %v17354_v34, %v13309_v49  ;;  %v13294_v18 = vunpack.i.h.bf16 %v13292_v16  ;;  %v13293_v55 = vunpack.i.l.bf16 %v13292_v16  ;;  %v8008_v49 = vld [vmem:[#allocation4 + $0x99] sm:$0xff] }
 0x7f8   : > { %v13322_v26 = vpop.permute.xlu1 %13321  ;;  %v8821_v19 = vpack.c.bf16 %v8775_v42, %v8774_v25  ;;  %9318 = vmatmul.mubr.bf16.gmra.mrb[128].mxu1 %v8838_v39  ;;  %v17427_v42 = vld [vmem:[#allocation4 + $0xf0] sm:$0xff] }
 0x7f9   : > { %v13324_v9 = vunpack.i.h.bf16 %v13322_v26  ;;  %v13323_v45 = vunpack.i.l.bf16 %v13322_v26  ;;  %v8720_v24 = vsel %vm334_vm2, %v17182_v52, %v13293_v55  ;;  %v8721_v13 = vsel %vm334_vm2, %v17184_v2, %v13294_v18  ;;  %v17429_v18 = vld [vmem:[#allocation4 + $0xf8] sm:$0xff] }
 0x7fa   : > { %9446 = vmatprep.mubr.bf16.mxu0 %v8821_v19  ;;  %v13297_v29 = vpop.permute.xlu0 %13296  ;;  %v8844_v46 = vpack.c.bf16 %v8721_v13, %v8720_v24 }
 0x7fb   : > { %v8742_v34 = vsel %vm334_vm2, %v8005_v60, %v13323_v45  ;;  %v8743_v61 = vsel %vm334_vm2, %v8006_v31, %v13324_v9  ;;  %v13299_v33 = vunpack.i.h.bf16 %v13297_v29  ;;  %v13298_v56 = vunpack.i.l.bf16 %v13297_v29 }
 0x7fc   : > { %v13327_v47 = vpop.permute.xlu1 %13326  ;;  %v8820_v17 = vpack.c.bf16 %v8743_v61, %v8742_v34  ;;  %9325 = vmatprep.mubr.bf16.mxu1 %v8844_v46 }
 0x7fd   : > { %v13329_v52 = vunpack.i.h.bf16 %v13327_v47  ;;  %v13328_v54 = vunpack.i.l.bf16 %v13327_v47  ;;  %v8689_v2 = vsel %vm334_vm2, %v17411_v1, %v13299_v33  ;;  %v8688_v27 = vsel %vm334_vm2, %v17409_v10, %v13298_v56  ;;  %v8009_v56 = vld [vmem:[#allocation4 + $0xa9] sm:$0xff]  ;;  %v8010_v47 = vld [vmem:[#allocation4 + $0xb1] sm:$0xff] }
 0x7fe   : > { %9447 = vmatmul.mubr.bf16.gmra.mrb[144].mxu0 %v8820_v17  ;;  %v8843_v30 = vpack.c.bf16 %v8689_v2, %v8688_v27  ;;  %v13312_v41 = vpop.permute.xlu0 %13311 }
 0x7ff   : > { %v8776_v37 = vsel %vm334_vm2, %v17373_v14, %v13328_v54  ;;  %v8777_v23 = vsel %vm334_vm2, %v17375_v50, %v13329_v52  ;;  %v13314_v28 = vunpack.i.h.bf16 %v13312_v41  ;;  %v13313_v11 = vunpack.i.l.bf16 %v13312_v41  ;;  %v17445_v41 = vld [vmem:[#allocation4 + $0x108] sm:$0xff] }
 0x800   : > { %v13342_v32 = vpop.permute.xlu1 %13341  ;;  %v8826_v6 = vpack.c.bf16 %v8777_v23, %v8776_v37  ;;  %9326 = vmatmul.mubr.bf16.gmra.mrb[132].mxu1 %v8843_v30  ;;  %v17447_v37 = vld [vmem:[#allocation4 + $0x110] sm:$0xff] }
 0x801   : > { %v13344_v36 = vunpack.i.h.bf16 %v13342_v32  ;;  %v13343_v62 = vunpack.i.l.bf16 %v13342_v32  ;;  %v8722_v51 = vsel %vm334_vm2, %v17201_v12, %v13313_v11  ;;  %v8723_v22 = vsel %vm334_vm2, %v17203_v48, %v13314_v28 }
 0x802   : > { %9454 = vmatprep.mubr.bf16.mxu0 %v8826_v6  ;;  %v13317_v14 = vpop.permute.xlu0 %13316  ;;  %v8849_v38 = vpack.c.bf16 %v8723_v22, %v8722_v51 }
 0x803   : > { %v8744_v50 = vsel %vm334_vm2, %v8007_v58, %v13343_v62  ;;  %v8745_v63 = vsel %vm334_vm2, %v8008_v49, %v13344_v36  ;;  %v13319_v53 = vunpack.i.h.bf16 %v13317_v14  ;;  %v13318_v39 = vunpack.i.l.bf16 %v13317_v14 }
 0x804   : > { %v13347_v16 = vpop.permute.xlu1 %13346  ;;  %v8825_v25 = vpack.c.bf16 %v8745_v63, %v8744_v50  ;;  %9333 = vmatprep.mubr.bf16.mxu1 %v8849_v38  ;;  %v8011_v63 = vld [vmem:[#allocation4 + $0xc1] sm:$0xff] }
 0x805   : > { %v13349_v12 = vunpack.i.h.bf16 %v13347_v16  ;;  %v13348_v55 = vunpack.i.l.bf16 %v13347_v16  ;;  %v8691_v48 = vsel %vm334_vm2, %v17429_v18, %v13319_v53  ;;  %v8690_v26 = vsel %vm334_vm2, %v17427_v42, %v13318_v39  ;;  %v8012_v53 = vld [vmem:[#allocation4 + $0xc9] sm:$0xff] }
 0x806   : > { %9455 = vmatmul.mubr.bf16.gmra.mrb[148].mxu0 %v8825_v25  ;;  %v8848_v19 = vpack.c.bf16 %v8691_v48, %v8690_v26  ;;  %v13332_v9 = vpop.permute.xlu0 %13331  ;;  %v17463_v26 = vld [vmem:[#allocation4 + $0x120] sm:$0xff] }
 0x807   : > { %v8778_v45 = vsel %vm334_vm2, %v17391_v7, %v13348_v55  ;;  %v8779_v24 = vsel %vm334_vm2, %v17393_v44, %v13349_v12  ;;  %v13334_v13 = vunpack.i.h.bf16 %v13332_v9  ;;  %v13333_v60 = vunpack.i.l.bf16 %v13332_v9 }
 0x808   : > { %v13362_v31 = vpop.permute.xlu1 %13361  ;;  %v8831_v29 = vpack.c.bf16 %v8779_v24, %v8778_v45  ;;  %9334 = vmatmul.mubr.bf16.gmra.mrb[136].mxu1 %v8848_v19  ;;  %v17465_v19 = vld [vmem:[#allocation4 + $0x128] sm:$0xff] }
 0x809   : > { %v13364_v46 = vunpack.i.h.bf16 %v13362_v31  ;;  %v13363_v34 = vunpack.i.l.bf16 %v13362_v31  ;;  %v8724_v61 = vsel %vm334_vm2, %v17210_v15, %v13333_v60  ;;  %v8725_v33 = vsel %vm334_vm2, %v17212_v5, %v13334_v13 }
 0x80a   : > { %9462 = vmatprep.mubr.bf16.mxu0 %v8831_v29  ;;  %v13337_v7 = vpop.permute.xlu0 %13336  ;;  %v8854_v17 = vpack.c.bf16 %v8725_v33, %v8724_v61 }
 0x80b   : > { %v8746_v44 = vsel %vm334_vm2, %v8009_v56, %v13363_v34  ;;  %v8747_v52 = vsel %vm334_vm2, %v8010_v47, %v13364_v46  ;;  %v13339_v54 = vunpack.i.h.bf16 %v13337_v7  ;;  %v13338_v2 = vunpack.i.l.bf16 %v13337_v7 }
 0x80c   : > { %v13367_v27 = vpop.permute.xlu1 %13366  ;;  %v8830_v30 = vpack.c.bf16 %v8747_v52, %v8746_v44  ;;  %9341 = vmatprep.mubr.bf16.mxu1 %v8854_v17  ;;  %v8013_v17 = vld [vmem:[#allocation4 + $0xd9] sm:$0xff]  ;;  %v8014_v44 = vld [vmem:[#allocation4 + $0xe1] sm:$0xff] }
 0x80d   : > { %v13369_v15 = vunpack.i.h.bf16 %v13367_v27  ;;  %v13368_v23 = vunpack.i.l.bf16 %v13367_v27  ;;  %v8693_v5 = vsel %vm334_vm2, %v17447_v37, %v13339_v54  ;;  %v8692_v28 = vsel %vm334_vm2, %v17445_v41, %v13338_v2 }
 0x80e   : > { %9463 = vmatmul.mubr.bf16.gmra.mrb[152].mxu0 %v8830_v30  ;;  %v8853_v11 = vpack.c.bf16 %v8693_v5, %v8692_v28  ;;  %v13352_v32 = vpop.permute.xlu0 %13351  ;;  %v17483_v5 = vld [vmem:[#allocation4 + $0x140] sm:$0xff] }
 0x80f   : > { %v8780_v6 = vsel %vm334_vm2, %v17409_v10, %v13368_v23  ;;  %v8781_v36 = vsel %vm334_vm2, %v17411_v1, %v13369_v15  ;;  %v13354_v62 = vunpack.i.h.bf16 %v13352_v32  ;;  %v13353_v51 = vunpack.i.l.bf16 %v13352_v32  ;;  %v17481_v23 = vld [vmem:[#allocation4 + $0x138] sm:$0xff] }
 0x810   : > { %v13382_v22 = vpop.permute.xlu1 %13381  ;;  %v8836_v58 = vpack.c.bf16 %v8781_v36, %v8780_v6  ;;  %9342 = vmatmul.mubr.bf16.gmra.mrb[140].mxu1 %v8853_v11 }
 0x811   : > { %v13384_v49 = vunpack.i.h.bf16 %v13382_v22  ;;  %v13383_v14 = vunpack.i.l.bf16 %v13382_v22  ;;  %v8726_v38 = vsel %vm334_vm2, %v17223_v3, %v13353_v51  ;;  %v8727_v50 = vsel %vm334_vm2, %v17225_v40, %v13354_v62 }
 0x812   : > { %9470 = vmatprep.mubr.bf16.mxu0 %v8836_v58  ;;  %v13357_v10 = vpop.permute.xlu0 %13356  ;;  %v8859_v39 = vpack.c.bf16 %v8727_v50, %v8726_v38 }
 0x813   : > { %v8748_v1 = vsel %vm334_vm2, %v8011_v63, %v13383_v14  ;;  %v8749_v16 = vsel %vm334_vm2, %v8012_v53, %v13384_v49  ;;  %v13359_v25 = vunpack.i.h.bf16 %v13357_v10  ;;  %v13358_v12 = vunpack.i.l.bf16 %v13357_v10  ;;  %v8015_v53 = vld [vmem:[#allocation4 + $0xf1] sm:$0xff]  ;;  %v8016_v10 = vld [vmem:[#allocation4 + $0xf9] sm:$0xff] }
 0x814   : > { %v13387_v55 = vpop.permute.xlu1 %13386  ;;  %v8835_v48 = vpack.c.bf16 %v8749_v16, %v8748_v1  ;;  %9349 = vmatprep.mubr.bf16.mxu1 %v8859_v39 }
 0x815   : > { %v13389_v3 = vunpack.i.h.bf16 %v13387_v55  ;;  %v13388_v9 = vunpack.i.l.bf16 %v13387_v55  ;;  %v8695_v40 = vsel %vm334_vm2, %v17465_v19, %v13359_v25  ;;  %v8694_v45 = vsel %vm334_vm2, %v17463_v26, %v13358_v12  ;;  %v17499_v55 = vld [vmem:[#allocation4 + $0x150] sm:$0xff] }
 0x816   : > { %9471 = vmatmul.mubr.bf16.gmra.mrb[156].mxu0 %v8835_v48  ;;  %v8858_v24 = vpack.c.bf16 %v8695_v40, %v8694_v45  ;;  %v13372_v13 = vpop.permute.xlu0 %13371  ;;  %v17501_v48 = vld [vmem:[#allocation4 + $0x158] sm:$0xff] }
 0x817   : > { %v8782_v60 = vsel %vm334_vm2, %v17427_v42, %v13388_v9  ;;  %v8783_v31 = vsel %vm334_vm2, %v17429_v18, %v13389_v3  ;;  %v13374_v29 = vunpack.i.h.bf16 %v13372_v13  ;;  %v13373_v46 = vunpack.i.l.bf16 %v13372_v13 }
 0x818   : > { %v13402_v34 = vpop.permute.xlu1 %13401  ;;  %v8841_v61 = vpack.c.bf16 %v8783_v31, %v8782_v60  ;;  %9350 = vmatmul.mubr.bf16.gmra.mrb[144].mxu1 %v8858_v24 }
 0x819   : > { %v13404_v33 = vunpack.i.h.bf16 %v13402_v34  ;;  %v13403_v56 = vunpack.i.l.bf16 %v13402_v34  ;;  %v8728_v47 = vsel %vm334_vm2, %v17238_v21, %v13373_v46  ;;  %v8729_v7 = vsel %vm334_vm2, %v17240_v59, %v13374_v29 }
 0x81a   : > { %9478 = vmatprep.mubr.bf16.mxu0 %v8841_v61  ;;  %v13377_v42 = vpop.permute.xlu0 %13376  ;;  %v8864_v52 = vpack.c.bf16 %v8729_v7, %v8728_v47  ;;  %v8130_v61 = vld [vmem:[#allocation4 + $0x62] sm:$0xff]  ;;  %v17513_v7 = vld [vmem:[#allocation4 + $0x170] sm:$0xff] }
 0x81b   : > { %v8750_v18 = vsel %vm334_vm2, %v8013_v17, %v13403_v56  ;;  %v8751_v54 = vsel %vm334_vm2, %v8014_v44, %v13404_v33  ;;  %v13379_v2 = vunpack.i.h.bf16 %v13377_v42  ;;  %v13378_v27 = vunpack.i.l.bf16 %v13377_v42  ;;  %v17511_v47 = vld [vmem:[#allocation4 + $0x168] sm:$0xff] }
 0x81c   : > { %v13407_v30 = vpop.permute.xlu1 %13406  ;;  %v8840_v15 = vpack.c.bf16 %v8751_v54, %v8750_v18  ;;  %9357 = vmatprep.mubr.bf16.mxu1 %v8864_v52  ;;  %v8131_v17 = vld [vmem:[#allocation4 + $0x6a] sm:$0xff] }
 0x81d   : > { %v13409_v21 = vunpack.i.h.bf16 %v13407_v30  ;;  %v13408_v28 = vunpack.i.l.bf16 %v13407_v30  ;;  %v8697_v59 = vsel %vm334_vm2, %v17483_v5, %v13379_v2  ;;  %v8696_v11 = vsel %vm334_vm2, %v17481_v23, %v13378_v27  ;;  %v8017_v2 = vld [vmem:[#allocation4 + $0x109] sm:$0xff]  ;;  %v8018_v27 = vld [vmem:[#allocation4 + $0x111] sm:$0xff] }
 0x81e   : > { %9479 = vmatmul.mubr.bf16.gmra.mrb[160].mxu0 %v8840_v15  ;;  %v8863_v32 = vpack.c.bf16 %v8697_v59, %v8696_v11  ;;  %v13392_v6 = vpop.permute.xlu0 %13391  ;;  %v8812_v54 = vpack.c.bf16 %v8131_v17, %v8130_v61 }
 0x81f   : > { %v8784_v36 = vsel %vm334_vm2, %v17445_v41, %v13408_v28  ;;  %v8785_v62 = vsel %vm334_vm2, %v17447_v37, %v13409_v21  ;;  %v13394_v51 = vunpack.i.h.bf16 %v13392_v6  ;;  %v13393_v22 = vunpack.i.l.bf16 %v13392_v6 }
 0x820   : > { %v13422_v58 = vpop.permute.xlu1 %13421  ;;  %v8846_v49 = vpack.c.bf16 %v8785_v62, %v8784_v36  ;;  %9358 = vmatmul.mubr.bf16.gmra.mrb[148].mxu1 %v8863_v32 }
 0x821   : > { %v13424_v14 = vunpack.i.h.bf16 %v13422_v58  ;;  %v13423_v38 = vunpack.i.l.bf16 %v13422_v58  ;;  %v8730_v50 = vsel %vm334_vm2, %v17257_v57, %v13393_v22  ;;  %v8731_v63 = vsel %vm334_vm2, %v17259_v20, %v13394_v51  ;;  %v8134_v58 = vld [vmem:[#allocation4 + $0x92] sm:$0xff] }
 0x822   : > { %9486 = vmatprep.mubr.bf16.mxu0 %v8846_v49  ;;  %v13397_v41 = vpop.permute.xlu0 %13396  ;;  %v8869_v39 = vpack.c.bf16 %v8731_v63, %v8730_v50  ;;  %v8135_v49 = vld [vmem:[#allocation4 + $0x9a] sm:$0xff] }
 0x823   : > { %v8752_v37 = vsel %vm334_vm2, %v8015_v53, %v13423_v38  ;;  %v8753_v1 = vsel %vm334_vm2, %v8016_v10, %v13424_v14  ;;  %v13399_v16 = vunpack.i.h.bf16 %v13397_v41  ;;  %v13398_v25 = vunpack.i.l.bf16 %v13397_v41  ;;  %v8019_v10 = vld [vmem:[#allocation4 + $0x121] sm:$0xff]  ;;  %v8020_v41 = vld [vmem:[#allocation4 + $0x129] sm:$0xff] }
 0x824   : > { %v8845_v12 = vpack.c.bf16 %v8753_v1, %v8752_v37  ;;  %9365 = vmatprep.mubr.bf16.mxu1 %v8869_v39  ;;  %v13432_v24 = vpop.permute.xlu1 %13431  ;;  %v8822_v53 = vpack.c.bf16 %v8135_v49, %v8134_v58 }
 0x825   : > { %v8699_v57 = vsel %vm334_vm2, %v17501_v48, %v13399_v16  ;;  %v8698_v20 = vsel %vm334_vm2, %v17499_v55, %v13398_v25  ;;  %v13434_v33 = vunpack.i.h.bf16 %v13432_v24  ;;  %v13433_v56 = vunpack.i.l.bf16 %v13432_v24 }
 0x826   : > { %9487 = vmatmul.mubr.bf16.gmra.mrb[164].mxu0 %v8845_v12  ;;  %v8868_v3 = vpack.c.bf16 %v8699_v57, %v8698_v20  ;;  %v13412_v9 = vpop.permute.xlu0 %13411  ;;  %v8136_v12 = vld [vmem:[#allocation4 + $0xaa] sm:$0xff]  ;;  %v8137_v57 = vld [vmem:[#allocation4 + $0xb2] sm:$0xff]  ;;  %v8138_v20 = vld [vmem:[#allocation4 + $0xc2] sm:$0xff] }
 0x827   : > { %v13414_v40 = vunpack.i.h.bf16 %v13412_v9  ;;  %v13413_v45 = vunpack.i.l.bf16 %v13412_v9  ;;  %v8754_v30 = vsel %vm334_vm2, %v8017_v2, %v13433_v56  ;;  %v8755_v15 = vsel %vm334_vm2, %v8018_v27, %v13434_v33  ;;  %v8140_v33 = vld [vmem:[#allocation4 + $0xda] sm:$0xff]  ;;  %v8141_v56 = vld [vmem:[#allocation4 + $0xe2] sm:$0xff]  ;;  %v8023_v27 = vld [vmem:[#allocation4 + $0x151] sm:$0xff] }
 0x828   : > { %9366 = vmatmul.mubr.bf16.gmra.mrb[152].mxu1 %v8868_v3  ;;  %v13442_v21 = vpop.permute.xlu1 %13441  ;;  %v8850_v62 = vpack.c.bf16 %v8755_v15, %v8754_v30  ;;  %v8139_v3 = vld [vmem:[#allocation4 + $0xca] sm:$0xff]  ;;  %v8090_v15 = vld [vmem:[#allocation4 + $0x180] sm:$0xff] }
 0x829   : > { %v8732_v13 = vsel %vm334_vm2, %v17277_v35, %v13413_v45  ;;  %v8733_v60 = vsel %vm334_vm2, %v17279_v8, %v13414_v40  ;;  %v13444_v51 = vunpack.i.h.bf16 %v13442_v21  ;;  %v13443_v22 = vunpack.i.l.bf16 %v13442_v21  ;;  %v8091_v21 = vld [vmem:[#allocation4 + $0x188] sm:$0xff] }
 0x82a   : > { %v13417_v31 = vpop.permute.xlu0 %13416  ;;  %v8874_v29 = vpack.c.bf16 %v8733_v60, %v8732_v13  ;;  %v8827_v45 = vpack.c.bf16 %v8137_v57, %v8136_v12  ;;  %v8832_v24 = vpack.c.bf16 %v8139_v3, %v8138_v20  ;;  %v8021_v13 = vld [vmem:[#allocation4 + $0x139] sm:$0xff]  ;;  %v8149_v57 = vld [vmem:[#allocation4 + $0x142] sm:$0xff] }
 0x82b   : > { %v13419_v46 = vunpack.i.h.bf16 %v13417_v31  ;;  %v13418_v34 = vunpack.i.l.bf16 %v13417_v31  ;;  %v8756_v39 = vsel %vm334_vm2, %v8019_v10, %v13443_v22  ;;  %v8025_v10 = vld [vmem:[#allocation4 + $0x169] sm:$0xff]  ;;  %v8148_v12 = vld [vmem:[#allocation4 + $0x13a] sm:$0xff] }
 0x82c   : > { %9373 = vmatprep.mubr.bf16.mxu1 %v8874_v29  ;;  %v13452_v37 = vpop.permute.xlu1 %13451  ;;  %v8151_v20 = vld [vmem:[#allocation4 + $0x15a] sm:$0xff]  ;;  %v8857_v3 = vpack.c.bf16 %v8149_v57, %v8148_v12 }
 0x82d   : > { %v8701_v44 = vsel %vm334_vm2, %v17513_v7, %v13419_v46  ;;  %v8700_v35 = vsel %vm334_vm2, %v17511_v47, %v13418_v34  ;;  %v13454_v4 = vunpack.i.h.bf16 %v13452_v37  ;;  %v13453_v0 = vunpack.i.l.bf16 %v13452_v37 }
 0x82e   : > { %v8873_v8 = vpack.c.bf16 %v8701_v44, %v8700_v35  ;;  %v13427_v42 = vpop.permute.xlu0 %13426 }
 0x82f   : > { %v13429_v52 = vunpack.i.h.bf16 %v13427_v42  ;;  %v13428_v18 = vunpack.i.l.bf16 %v13427_v42  ;;  %v8143_v42 = vld [vmem:[#allocation4 + $0xfa] sm:$0xff] }
 0x830   : > { %9374 = vmatmul.mubr.bf16.gmra.mrb[156].mxu1 %v8873_v8  ;;  %v13462_v31 = vpop.permute.xlu1 %13461  ;;  %v8142_v8 = vld [vmem:[#allocation4 + $0xf2] sm:$0xff] }
 0x831   : > { %12510 = vmatprep.mubr.msk.bf16.mxu1 %vm334_vm2, %v8812_v54  ;;  %v8786_v28 = vsel %vm334_vm2, %v17463_v26, %v13428_v18  ;;  %v8787_v59 = vsel %vm334_vm2, %v17465_v19, %v13429_v52  ;;  %v13464_v17 = vunpack.i.h.bf16 %v13462_v31  ;;  %v13463_v44 = vunpack.i.l.bf16 %v13462_v31  ;;  %v8152_v31 = vld [vmem:[#allocation4 + $0x16a] sm:$0xff] }
 0x832   : > { %v13437_v11 = vpop.permute.xlu0 %13436  ;;  %v8851_v32 = vpack.c.bf16 %v8787_v59, %v8786_v28  ;;  %v8837_v54 = vpack.c.bf16 %v8141_v56, %v8140_v33  ;;  %v8842_v2 = vpack.c.bf16 %v8143_v42, %v8142_v8  ;;  %v8157_v8 = vld [vmem:[#allocation4 + $0x1a2] sm:$0xff] }
 0x833   : > { %v13439_v6 = vunpack.i.h.bf16 %v13437_v11  ;;  %v13438_v36 = vunpack.i.l.bf16 %v13437_v11 }
 0x834   : > { %9494 = vmatprep.mubr.bf16.mxu0 %v8851_v32  ;;  %v13472_v59 = vpop.permute.xlu1 %13471 }
 0x835   : > { %9495 = vmatmul.mubr.bf16.gmra.mrb[168].mxu0 %v8850_v62  ;;  %v8788_v14 = vsel %vm334_vm2, %v17481_v23, %v13438_v36  ;;  %v8789_v26 = vsel %vm334_vm2, %v17483_v5, %v13439_v6  ;;  %v8757_v23 = vsel %vm334_vm2, %v8020_v41, %v13444_v51  ;;  %v8144_v36 = vld [vmem:[#allocation4 + $0x10a] sm:$0xff]  ;;  %v8145_v62 = vld [vmem:[#allocation4 + $0x112] sm:$0xff]  ;;  %v8146_v51 = vld [vmem:[#allocation4 + $0x122] sm:$0xff]  ;;  %v13474_v49 = vunpack.i.h.bf16 %v13472_v59 }
 0x836   : > { %v13447_v38 = vpop.permute.xlu0 %13446  ;;  %v8856_v50 = vpack.c.bf16 %v8789_v26, %v8788_v14  ;;  %v8855_v25 = vpack.c.bf16 %v8757_v23, %v8756_v39  ;;  %v13473_v14 = vunpack.i.l.bf16 %v13472_v59  ;;  %v8026_v41 = vld [vmem:[#allocation4 + $0x171] sm:$0xff] }
 0x837   : > { %v13449_v19 = vunpack.i.h.bf16 %v13447_v38  ;;  %v13448_v63 = vunpack.i.l.bf16 %v13447_v38  ;;  %v8147_v38 = vld [vmem:[#allocation4 + $0x12a] sm:$0xff] }
 0x838   : > { %9502 = vmatprep.mubr.bf16.mxu0 %v8856_v50  ;;  %12511 = vmatmul.mubr.msk.bf16.vlgmr.msra.gmra.mrb[160].mxu1 %vm334_vm2, %v8817_v43  ;;  %v8092_v50 = vld [vmem:[#allocation4 + $0x198] sm:$0xff]  ;;  %v8762_v37 = vsel %vm334_vm2, %v8025_v10, %v13473_v14 }
 0x839   : > { %12514 = vmatprep.mubr.msk.bf16.mxu1 %vm334_vm2, %v8822_v53  ;;  %v8790_v5 = vsel %vm334_vm2, %v17499_v55, %v13448_v63  ;;  %v8791_v1 = vsel %vm334_vm2, %v17501_v48, %v13449_v19  ;;  %v8022_v55 = vld [vmem:[#allocation4 + $0x141] sm:$0xff]  ;;  %v8758_v48 = vsel %vm334_vm2, %v8021_v13, %v13453_v0  ;;  %v8847_v63 = vpack.c.bf16 %v8145_v62, %v8144_v36 }
 0x83a   : > { %v13457_v16 = vpop.permute.xlu0 %13456  ;;  %v8861_v43 = vpack.c.bf16 %v8791_v1, %v8790_v5  ;;  %v8759_v60 = vsel %vm334_vm2, %v8022_v55, %v13454_v4  ;;  %v8093_v19 = vld [vmem:[#allocation4 + $0x1a0] sm:$0xff]  ;;  %v8852_v53 = vpack.c.bf16 %v8147_v38, %v8146_v51  ;;  %v8763_v5 = vsel %vm334_vm2, %v8026_v41, %v13474_v49  ;;  %v13482_v1 = vpop.permute.xlu1 %13481  ;;  %v8126_v55 = vld [vmem:[#allocation4 + $0x32] sm:$0xff] }
 0x83b   : > { %v13459_v9 = vunpack.i.h.bf16 %v13457_v16  ;;  %v13458_v40 = vunpack.i.l.bf16 %v13457_v16  ;;  %v8860_v61 = vpack.c.bf16 %v8759_v60, %v8758_v48  ;;  %v13484_v4 = vunpack.i.h.bf16 %v13482_v1  ;;  %v8127_v48 = vld [vmem:[#allocation4 + $0x3a] sm:$0xff] }
 0x83c   : > { %v13483_v0 = vunpack.i.l.bf16 %v13482_v1 }
 0x83d   : > { %9503 = vmatmul.mubr.bf16.gmra.mrb[172].mxu0 %v8855_v25  ;;  %v8792_v29 = vsel %vm334_vm2, %v17511_v47, %v13458_v40  ;;  %v8793_v46 = vsel %vm334_vm2, %v17513_v7, %v13459_v9  ;;  %v8024_v47 = vld [vmem:[#allocation4 + $0x159] sm:$0xff]  ;;  %v8760_v7 = vsel %vm334_vm2, %v8023_v27, %v13463_v44  ;;  %v8870_v25 = vpack.c.bf16 %v8763_v5, %v8762_v37  ;;  %v8027_v40 = vld [vmem:[#allocation4 + $0x181] sm:$0xff] }
 0x83e   : > { %9510 = vmatprep.mubr.bf16.mxu0 %v8861_v43  ;;  %v13467_v34 = vpop.permute.xlu0 %13466  ;;  %v8866_v35 = vpack.c.bf16 %v8793_v46, %v8792_v29  ;;  %v8761_v30 = vsel %vm334_vm2, %v8024_v47, %v13464_v17  ;;  %v8150_v43 = vld [vmem:[#allocation4 + $0x152] sm:$0xff]  ;;  %v8802_v46 = vpack.c.bf16 %v8127_v48, %v8126_v55  ;;  %v8128_v17 = vld [vmem:[#allocation4 + $0x4a] sm:$0xff] }
 0x83f   : > { %v13469_v52 = vunpack.i.h.bf16 %v13467_v34  ;;  %v13468_v18 = vunpack.i.l.bf16 %v13467_v34  ;;  %v8865_v6 = vpack.c.bf16 %v8761_v30, %v8760_v7  ;;  %v8862_v9 = vpack.c.bf16 %v8151_v20, %v8150_v43  ;;  %v8153_v29 = vld [vmem:[#allocation4 + $0x172] sm:$0xff]  ;;  %v8154_v34 = vld [vmem:[#allocation4 + $0x182] sm:$0xff] }
 0x840   : > { %12515 = vmatmul.mubr.msk.bf16.gmra.mrb[164].mxu1 %vm334_vm2, %v8827_v45  ;;  %v8028_v45 = vld [vmem:[#allocation4 + $0x189] sm:$0xff]  ;;  %v8867_v33 = vpack.c.bf16 %v8153_v29, %v8152_v31  ;;  %v8129_v44 = vld [vmem:[#allocation4 + $0x52] sm:$0xff] }
 0x841   : > { %12518 = vmatprep.mubr.msk.bf16.mxu1 %vm334_vm2, %v8832_v24  ;;  %v8794_v11 = vsel %vm334_vm2, %v8090_v15, %v13468_v18  ;;  %v8795_v32 = vsel %vm334_vm2, %v8091_v21, %v13469_v52  ;;  %v8764_v24 = vsel %vm334_vm2, %v8027_v40, %v13483_v0  ;;  %v8765_v13 = vsel %vm334_vm2, %v8028_v45, %v13484_v4 }
 0x842   : > { %v13477_v28 = vpop.permute.xlu0 %13476  ;;  %v8871_v26 = vpack.c.bf16 %v8795_v32, %v8794_v11  ;;  %v8875_v60 = vpack.c.bf16 %v8765_v13, %v8764_v24  ;;  %v8807_v42 = vpack.c.bf16 %v8129_v44, %v8128_v17 }
 0x843   : > { %v13479_v22 = vunpack.i.h.bf16 %v13477_v28  ;;  %v13478_v58 = vunpack.i.l.bf16 %v13477_v28 }
 0x845   : > { %9511 = vmatmul.mubr.bf16.gmra.mrb[176].mxu0 %v8860_v61  ;;  %v8796_v39 = vsel %vm334_vm2, %v8092_v50, %v13478_v58  ;;  %v8797_v23 = vsel %vm334_vm2, %v8093_v19, %v13479_v22  ;;  %v8155_v61 = vld [vmem:[#allocation4 + $0x18a] sm:$0xff] }
 0x846   : > { %9518 = vmatprep.mubr.bf16.mxu0 %v8866_v35  ;;  %v8876_v16 = vpack.c.bf16 %v8797_v23, %v8796_v39  ;;  %v8872_v56 = vpack.c.bf16 %v8155_v61, %v8154_v34  ;;  %v8156_v35 = vld [vmem:[#allocation4 + $0x19a] sm:$0xff] }
 0x847   : > { %v8877_v52 = vpack.c.bf16 %v8157_v8, %v8156_v35  ;;  %v17579_v23 = vld [vmem:[%s17821_s8] ss:$0 sm:$0xff] }
 0x848   : > { %12519 = vmatmul.mubr.msk.bf16.gmra.mrb[168].mxu1 %vm334_vm2, %v8837_v54 }
 0x849   : > { %12522 = vmatprep.mubr.msk.bf16.mxu1 %vm334_vm2, %v8842_v2 }
 0x84d   : > { %9519 = vmatmul.mubr.bf16.gmra.mrb[180].mxu0 %v8865_v6 }
 0x84e   : > { %9526 = vmatprep.mubr.bf16.mxu0 %v8871_v26 }
 0x850   : > { %12523 = vmatmul.mubr.msk.bf16.gmra.mrb[172].mxu1 %vm334_vm2, %v8847_v63 }
 0x851   : > { %12526 = vmatprep.mubr.msk.bf16.mxu1 %vm334_vm2, %v8852_v53 }
 0x855   : > { %9527 = vmatmul.mubr.bf16.gmra.mrb[184].mxu0 %v8870_v25 }
 0x856   : > { %9534 = vmatprep.mubr.bf16.mxu0 %v8876_v16 }
 0x858   : > { %12527 = vmatmul.mubr.msk.bf16.gmra.mrb[176].mxu1 %vm334_vm2, %v8857_v3 }
 0x859   : > { %12530 = vmatprep.mubr.msk.bf16.mxu1 %vm334_vm2, %v8862_v9 }
 0x85d   : > { %9535 = vmatmul.mubr.bf16.gmra.mrb[188].mxu0 %v8875_v60 }
 0x85e   : > { %12506 = vmatprep.mubr.msk.bf16.mxu0 %vm334_vm2, %v8802_v46 }
 0x860   : > { %12531 = vmatmul.mubr.msk.bf16.gmra.mrb[180].mxu1 %vm334_vm2, %v8867_v33 }
 0x861   : > { %12534 = vmatprep.mubr.msk.bf16.mxu1 %vm334_vm2, %v8872_v56 }
 0x865   : > { %12507 = vmatmul.mubr.msk.bf16.vlgmr.msra.gmra.mrb[192].mxu0 %vm334_vm2, %v8807_v42 }
 0x868   : > { %12535 = vmatmul.mubr.msk.bf16.gmra.mrb[184].mxu1 %vm334_vm2, %v8877_v52 }
 0x888   : > { %v11732_v18 = vpop.f32.mrb[96].mxu1 }
 0x889   : > { %v11733_v54 = vpop.f32.mrb[97].mxu1 }
 0x88a   : > { %v11734_v2 = vadd.f32 %v11733_v54, %v11732_v18  ;;  %v11735_v27 = vpop.f32.mrb[98].mxu1 }
 0x88b   : > { %v11736_v47 = vpop.f32.mrb[99].mxu1 }
 0x88c   : > { %v11737_v7 = vadd.f32 %v11736_v47, %v11735_v27  ;;  %v9256_v25 = vadd.f32 %v11734_v2, %v17579_v23 }
 0x88e   : > { %v9259_v3 = vadd.f32 %v11737_v7, %v17579_v23 }
 0x890   : > { %v11738_v30 = vpop.f32.mrb[100].mxu1 }
 0x891   : > { %v11739_v15 = vpop.f32.mrb[101].mxu1 }
 0x892   : > { %v11740_v21 = vadd.f32 %v11739_v15, %v11738_v30  ;;  %v11741_v28 = vpop.f32.mrb[102].mxu1 }
 0x893   : > { %v11742_v59 = vpop.f32.mrb[103].mxu1 }
 0x894   : > { %v11743_v11 = vadd.f32 %v11742_v59, %v11741_v28  ;;  %v9264_v48 = vadd.f32 %v11740_v21, %v17579_v23 }
 0x896   : > { %v9267_v34 = vadd.f32 %v11743_v11, %v17579_v23 }
 0x898   : > { %v11744_v32 = vpop.f32.mrb[104].mxu1 }
 0x899   : > { %v11745_v6 = vpop.f32.mrb[105].mxu1 }
 0x89a   : > { %v11746_v36 = vadd.f32 %v11745_v6, %v11744_v32  ;;  %v11747_v62 = vpop.f32.mrb[106].mxu1 }
 0x89b   : > { %v11748_v51 = vpop.f32.mrb[107].mxu1 }
 0x89c   : > { %v11749_v22 = vadd.f32 %v11748_v51, %v11747_v62  ;;  %v9272_v54 = vadd.f32 %v11746_v36, %v17579_v23 }
 0x89e   : > { %v9275_v30 = vadd.f32 %v11749_v22, %v17579_v23 }
 0x8a0   : > { %v11750_v58 = vpop.f32.mrb[108].mxu1 }
 0x8a1   : > { %v11751_v49 = vpop.f32.mrb[109].mxu1 }
 0x8a2   : > { %v11752_v14 = vadd.f32 %v11751_v49, %v11750_v58  ;;  %v11753_v26 = vpop.f32.mrb[110].mxu1 }
 0x8a3   : > { %v11754_v38 = vpop.f32.mrb[111].mxu1 }
 0x8a4   : > { %v17570_v50 = vadd.f32 %v11754_v38, %v11753_v26  ;;  %v9280_v58 = vadd.f32 %v11752_v14, %v17579_v23 }
 0x8a9   : > { %v11756_v19 = vpop.f32.mrb[112].mxu1 }
 0x8aa   : > { %v11757_v63 = vpop.f32.mrb[113].mxu1 }
 0x8ab   : > { %v17572_v53 = vadd.f32 %v11757_v63, %v11756_v19  ;;  %v11759_v10 = vpop.f32.mrb[114].mxu1  ;;  %v9283_v19 = vadd.f32 %v17570_v50, %v17579_v23 }
 0x8ac   : > { %v11760_v41 = vpop.f32.mrb[115].mxu1 }
 0x8ad   : > { %v17574_v39 = vadd.f32 %v11760_v41, %v11759_v10 }
 0x8b1   : > { %v11844_v37 = vpop.f32.mrb[128].mxu0  ;;  %v11762_v5 = vpop.f32.mrb[116].mxu1 }
 0x8b2   : > { %v11845_v1 = vpop.f32.mrb[129].mxu0  ;;  %v11763_v16 = vpop.f32.mrb[117].mxu1 }
 0x8b3   : > { %v11846_v12 = vadd.f32 %v11845_v1, %v11844_v37  ;;  %v17582_v57 = vadd.f32 %v11763_v16, %v11762_v5  ;;  %v11847_v4 = vpop.f32.mrb[130].mxu0  ;;  %v11765_v0 = vpop.f32.mrb[118].mxu1 }
 0x8b4   : > { %v11848_v43 = vpop.f32.mrb[131].mxu0  ;;  %v11766_v20 = vpop.f32.mrb[119].mxu1 }
 0x8b5   : > { %v11849_v9 = vadd.f32 %v11848_v43, %v11847_v4  ;;  %v17585_v40 = vadd.f32 %v11766_v20, %v11765_v0  ;;  %v17587_v45 = vadd.f32 %v11846_v12, %v9256_v25  ;;  %v9288_v4 = vadd.f32 %v17572_v53, %v17579_v23 }
 0x8b7   : > { %v17589_v24 = vadd.f32 %v11849_v9, %v9259_v3  ;;  %v9291_v3 = vadd.f32 %v17574_v39, %v17579_v23 }
 0x8b9   : > { %v11850_v13 = vpop.f32.mrb[132].mxu0 }
 0x8ba   : > { %v11851_v55 = vpop.f32.mrb[133].mxu0 }
 0x8bb   : > { %v11852_v60 = vadd.f32 %v11851_v55, %v11850_v13  ;;  %v11853_v31 = vpop.f32.mrb[134].mxu0  ;;  %v11768_v46 = vpop.f32.mrb[120].mxu1 }
 0x8bc   : > { %v11854_v29 = vpop.f32.mrb[135].mxu0  ;;  %v11769_v33 = vpop.f32.mrb[121].mxu1 }
 0x8bd   : > { %v11855_v61 = vadd.f32 %v11854_v29, %v11853_v31  ;;  %v17593_v56 = vadd.f32 %v11852_v60, %v9264_v48  ;;  %v17595_v17 = vadd.f32 %v11769_v33, %v11768_v46  ;;  %v11771_v44 = vpop.f32.mrb[122].mxu1 }
 0x8be   : > { %v11772_v35 = vpop.f32.mrb[123].mxu1 }
 0x8bf   : > { %v17597_v8 = vadd.f32 %v11855_v61, %v9267_v34  ;;  %v17599_v42 = vadd.f32 %v11772_v35, %v11771_v44  ;;  %v9296_v61 = vadd.f32 %v17582_v57, %v17579_v23 }
 0x8c1   : > { %v11856_v52 = vpop.f32.mrb[136].mxu0 }
 0x8c2   : > { %v11857_v18 = vpop.f32.mrb[137].mxu0 }
 0x8c3   : > { %v11858_v2 = vadd.f32 %v11857_v18, %v11856_v52  ;;  %v11859_v27 = vpop.f32.mrb[138].mxu0  ;;  %v11774_v7 = vpop.f32.mrb[124].mxu1  ;;  %v9299_v52 = vadd.f32 %v17585_v40, %v17579_v23 }
 0x8c4   : > { %v11860_v47 = vpop.f32.mrb[139].mxu0  ;;  %v11775_v21 = vpop.f32.mrb[125].mxu1 }
 0x8c5   : > { %v11861_v15 = vadd.f32 %v11860_v47, %v11859_v27  ;;  %v17603_v28 = vadd.f32 %v11858_v2, %v9272_v54  ;;  %v17605_v59 = vadd.f32 %v11775_v21, %v11774_v7  ;;  %v11777_v11 = vpop.f32.mrb[126].mxu1 }
 0x8c6   : > { %v11778_v32 = vpop.f32.mrb[127].mxu1 }
 0x8c7   : > { %v17607_v6 = vadd.f32 %v11861_v15, %v9275_v30  ;;  %v17609_v62 = vadd.f32 %v11778_v32, %v11777_v11  ;;  %v9304_v11 = vadd.f32 %v17595_v17, %v17579_v23 }
 0x8c9   : > { %v11862_v51 = vpop.f32.mrb[140].mxu0 }
 0x8ca   : > { %v11863_v36 = vpop.f32.mrb[141].mxu0 }
 0x8cb   : > { %v11864_v49 = vadd.f32 %v11863_v36, %v11862_v51  ;;  %v11865_v26 = vpop.f32.mrb[142].mxu0  ;;  %v11780_v22 = vpop.f32.mrb[128].mxu1 }
 0x8cc   : > { %v11866_v38 = vpop.f32.mrb[143].mxu0  ;;  %v11781_v10 = vpop.f32.mrb[129].mxu1 }
 0x8cd   : > { %v11867_v63 = vadd.f32 %v11866_v38, %v11865_v26  ;;  %v17614_v41 = vadd.f32 %v11864_v49, %v9280_v58  ;;  %v17616_v37 = vadd.f32 %v11781_v10, %v11780_v22  ;;  %v11783_v5 = vpop.f32.mrb[130].mxu1  ;;  %v9307_v58 = vadd.f32 %v17599_v42, %v17579_v23 }
 0x8ce   : > { %v11784_v1 = vpop.f32.mrb[131].mxu1 }
 0x8cf   : > { %v17618_v16 = vadd.f32 %v11867_v63, %v9283_v19  ;;  %v17620_v25 = vadd.f32 %v11784_v1, %v11783_v5 }
 0x8d1   : > { %v11868_v14 = vpop.f32.mrb[144].mxu0 }
 0x8d2   : > { %v11869_v12 = vpop.f32.mrb[145].mxu0 }
 0x8d3   : > { %v11870_v0 = vadd.f32 %v11869_v12, %v11868_v14  ;;  %v11871_v43 = vpop.f32.mrb[146].mxu0  ;;  %v11786_v20 = vpop.f32.mrb[132].mxu1  ;;  %v9312_v14 = vadd.f32 %v17605_v59, %v17579_v23 }
 0x8d4   : > { %v11872_v50 = vpop.f32.mrb[147].mxu0  ;;  %v11787_v13 = vpop.f32.mrb[133].mxu1 }
 0x8d5   : > { %v11873_v9 = vadd.f32 %v11872_v50, %v11871_v43  ;;  %v17626_v55 = vadd.f32 %v11870_v0, %v9288_v4  ;;  %v17628_v48 = vadd.f32 %v11787_v13, %v11786_v20  ;;  %v11789_v60 = vpop.f32.mrb[134].mxu1  ;;  %v9315_v43 = vadd.f32 %v17609_v62, %v17579_v23 }
 0x8d6   : > { %v11790_v31 = vpop.f32.mrb[135].mxu1 }
 0x8d7   : > { %v17630_v29 = vadd.f32 %v11873_v9, %v9291_v3  ;;  %v17632_v46 = vadd.f32 %v11790_v31, %v11789_v60 }
 0x8d9   : > { %v11874_v53 = vpop.f32.mrb[148].mxu0 }
 0x8da   : > { %v11875_v34 = vpop.f32.mrb[149].mxu0 }
 0x8db   : > { %v11876_v33 = vadd.f32 %v11875_v34, %v11874_v53  ;;  %v11877_v44 = vpop.f32.mrb[150].mxu0  ;;  %v11792_v35 = vpop.f32.mrb[136].mxu1 }
 0x8dc   : > { %v11878_v39 = vpop.f32.mrb[151].mxu0  ;;  %v11793_v54 = vpop.f32.mrb[137].mxu1 }
 0x8dd   : > { %v11879_v18 = vadd.f32 %v11878_v39, %v11877_v44  ;;  %v17638_v2 = vadd.f32 %v11876_v33, %v9296_v61  ;;  %v17640_v27 = vadd.f32 %v11793_v54, %v11792_v35  ;;  %v11795_v47 = vpop.f32.mrb[138].mxu1  ;;  %v9320_v61 = vadd.f32 %v17616_v37, %v17579_v23 }
 0x8de   : > { %v11796_v7 = vpop.f32.mrb[139].mxu1  ;;  %v9323_v35 = vadd.f32 %v17620_v25, %v17579_v23 }
 0x8df   : > { %v17642_v30 = vadd.f32 %v11879_v18, %v9299_v52  ;;  %v17644_v15 = vadd.f32 %v11796_v7, %v11795_v47 }
 0x8e1   : > { %v11880_v57 = vpop.f32.mrb[152].mxu0 }
 0x8e2   : > { %v11881_v21 = vpop.f32.mrb[153].mxu0 }
 0x8e3   : > { %v11882_v32 = vadd.f32 %v11881_v21, %v11880_v57  ;;  %v11883_v51 = vpop.f32.mrb[154].mxu0  ;;  %v11798_v36 = vpop.f32.mrb[140].mxu1 }
 0x8e4   : > { %v11884_v40 = vpop.f32.mrb[155].mxu0  ;;  %v11799_v26 = vpop.f32.mrb[141].mxu1 }
 0x8e5   : > { %v11885_v49 = vadd.f32 %v11884_v40, %v11883_v51  ;;  %v17650_v38 = vadd.f32 %v11882_v32, %v9304_v11  ;;  %v17652_v22 = vadd.f32 %v11799_v26, %v11798_v36  ;;  %v11801_v19 = vpop.f32.mrb[142].mxu1  ;;  %v9328_v51 = vadd.f32 %v17628_v48, %v17579_v23 }
 0x8e6   : > { %v11802_v63 = vpop.f32.mrb[143].mxu1 }
 0x8e7   : > { %v17654_v10 = vadd.f32 %v11885_v49, %v9307_v58  ;;  %v17656_v5 = vadd.f32 %v11802_v63, %v11801_v19  ;;  %v9331_v49 = vadd.f32 %v17632_v46, %v17579_v23 }
 0x8e9   : > { %v11886_v17 = vpop.f32.mrb[156].mxu0 }
 0x8ea   : > { %v11887_v1 = vpop.f32.mrb[157].mxu0 }
 0x8eb   : > { %v11888_v12 = vadd.f32 %v11887_v1, %v11886_v17  ;;  %v11889_v4 = vpop.f32.mrb[158].mxu0  ;;  %v11804_v0 = vpop.f32.mrb[144].mxu1 }
 0x8ec   : > { %v11890_v42 = vpop.f32.mrb[159].mxu0  ;;  %v11805_v20 = vpop.f32.mrb[145].mxu1 }
 0x8ed   : > { %v11891_v50 = vadd.f32 %v11890_v42, %v11889_v4  ;;  %v17662_v3 = vadd.f32 %v11888_v12, %v9312_v14  ;;  %v17664_v9 = vadd.f32 %v11805_v20, %v11804_v0  ;;  %v11807_v13 = vpop.f32.mrb[146].mxu1 }
 0x8ee   : > { %v11808_v60 = vpop.f32.mrb[147].mxu1 }
 0x8ef   : > { %v17666_v31 = vadd.f32 %v11891_v50, %v9315_v43  ;;  %v17668_v53 = vadd.f32 %v11808_v60, %v11807_v13  ;;  %v9336_v60 = vadd.f32 %v17640_v27, %v17579_v23 }
 0x8f1   : > { %v11892_v59 = vpop.f32.mrb[160].mxu0 }
 0x8f2   : > { %v11893_v34 = vpop.f32.mrb[161].mxu0 }
 0x8f3   : > { %v11894_v33 = vadd.f32 %v11893_v34, %v11892_v59  ;;  %v11895_v44 = vpop.f32.mrb[162].mxu0  ;;  %v11810_v39 = vpop.f32.mrb[148].mxu1 }
 0x8f4   : > { %v11896_v62 = vpop.f32.mrb[163].mxu0  ;;  %v11811_v18 = vpop.f32.mrb[149].mxu1 }
 0x8f5   : > { %v11897_v52 = vadd.f32 %v11896_v62, %v11895_v44  ;;  %v17674_v54 = vadd.f32 %v11894_v33, %v9320_v61  ;;  %v17676_v47 = vadd.f32 %v11811_v18, %v11810_v39  ;;  %v11813_v7 = vpop.f32.mrb[150].mxu1  ;;  %v9339_v44 = vadd.f32 %v17644_v15, %v17579_v23 }
 0x8f6   : > { %v11814_v57 = vpop.f32.mrb[151].mxu1 }
 0x8f7   : > { %v17678_v21 = vadd.f32 %v11897_v52, %v9323_v35  ;;  %v17680_v11 = vadd.f32 %v11814_v57, %v11813_v7 }
 0x8f9   : > { %v11898_v37 = vpop.f32.mrb[164].mxu0 }
 0x8fa   : > { %v11899_v32 = vpop.f32.mrb[165].mxu0 }
 0x8fb   : > { %v11900_v40 = vadd.f32 %v11899_v32, %v11898_v37  ;;  %v11901_v36 = vpop.f32.mrb[166].mxu0  ;;  %v11816_v58 = vpop.f32.mrb[152].mxu1 }
 0x8fc   : > { %v11902_v25 = vpop.f32.mrb[167].mxu0  ;;  %v11817_v19 = vpop.f32.mrb[153].mxu1 }
 0x8fd   : > { %v11903_v26 = vadd.f32 %v11902_v25, %v11901_v36  ;;  %v17686_v63 = vadd.f32 %v11900_v40, %v9328_v51  ;;  %v17688_v17 = vadd.f32 %v11817_v19, %v11816_v58  ;;  %v11819_v1 = vpop.f32.mrb[154].mxu1  ;;  %v9344_v58 = vadd.f32 %v17652_v22, %v17579_v23 }
 0x8fe   : > { %v11820_v14 = vpop.f32.mrb[155].mxu1  ;;  %v9347_v19 = vadd.f32 %v17656_v5, %v17579_v23 }
 0x8ff   : > { %v17690_v12 = vadd.f32 %v11903_v26, %v9331_v49  ;;  %v17692_v4 = vadd.f32 %v11820_v14, %v11819_v1 }
 0x903   : > { %v11822_v48 = vpop.f32.mrb[156].mxu1 }
 0x904   : > { %v11823_v42 = vpop.f32.mrb[157].mxu1 }
 0x905   : > { %v17694_v0 = vadd.f32 %v11823_v42, %v11822_v48  ;;  %v11825_v43 = vpop.f32.mrb[158].mxu1 }
 0x906   : > { %v11826_v50 = vpop.f32.mrb[159].mxu1 }
 0x907   : > { %v17696_v20 = vadd.f32 %v11826_v50, %v11825_v43 }
 0x908   : > { %v11904_v46 = vpop.f32.mrb[168].mxu0 }
 0x909   : > { %v11905_v13 = vpop.f32.mrb[169].mxu0 }
 0x90a   : > { %v11906_v59 = vadd.f32 %v11905_v13, %v11904_v46  ;;  %v11907_v34 = vpop.f32.mrb[170].mxu0 }
 0x90b   : > { %v11908_v61 = vpop.f32.mrb[171].mxu0  ;;  %v12512_v33 = vpop.f32.mrb[160].mxu1 }
 0x90c   : > { %v11909_v62 = vadd.f32 %v11908_v61, %v11907_v34  ;;  %v9602_v39 = vadd.f32 %v12512_v33, %v17614_v41  ;;  %v9593_v35 = vpop.f32.mrb[161].mxu1  ;;  %v17703_v52 = vadd.f32 %v11906_v59, %v9336_v60 }
 0x90d   : > { %v9594_v18 = vadd.f32 %v9593_v35, %v17603_v28  ;;  %v12513_v7 = vpop.f32.mrb[162].mxu1 }
 0x90e   : > { %v10674_v57 = vmul.f32 -1.442695, %v9602_v39  ;;  %v9605_v37 = vadd.f32 %v12513_v7, %v17618_v16  ;;  %v9596_v27 = vpop.f32.mrb[163].mxu1  ;;  %v17707_v32 = vadd.f32 %v11909_v62, %v9339_v44 }
 0x90f   : > { %v10672_v51 = vmul.f32 -1.442695, %v9594_v18  ;;  %v9597_v40 = vadd.f32 %v9596_v27, %v17607_v6 }
 0x910   : > { %13629 = vpow2.f32 %v10674_v57  ;;  %v10675_v15 = vmul.f32 -1.442695, %v9605_v37  ;;  %v11910_v36 = vpop.f32.mrb[172].mxu0 }
 0x911   : > { %13631 = vpow2.f32 %v10672_v51  ;;  %v10673_v41 = vmul.f32 -1.442695, %v9597_v40  ;;  %v11911_v25 = vpop.f32.mrb[173].mxu0 }
 0x912   : > { %13633 = vpow2.f32 %v10675_v15  ;;  %v11912_v28 = vadd.f32 %v11911_v25, %v11910_v36  ;;  %v11913_v49 = vpop.f32.mrb[174].mxu0 }
 0x913   : > { %13635 = vpow2.f32 %v10673_v41  ;;  %v11914_v16 = vpop.f32.mrb[175].mxu0  ;;  %v12516_v26 = vpop.f32.mrb[164].mxu1 }
 0x914   : > { %v11915_v1 = vadd.f32 %v11914_v16, %v11913_v49  ;;  %v9618_v6 = vadd.f32 %v12516_v26, %v17638_v2  ;;  %v9609_v14 = vpop.f32.mrb[165].mxu1  ;;  %v17715_v48 = vadd.f32 %v11912_v28, %v9344_v58 }
 0x915   : > { %v9610_v42 = vadd.f32 %v9609_v14, %v17626_v55  ;;  %v12517_v43 = vpop.f32.mrb[166].mxu1  ;;  %v9352_v55 = vadd.f32 %v17664_v9, %v17579_v23  ;;  %v9355_v9 = vadd.f32 %v17668_v53, %v17579_v23 }
 0x916   : > { %v10678_v50 = vmul.f32 -1.442695, %v9618_v6  ;;  %v9621_v22 = vadd.f32 %v12517_v43, %v17642_v30  ;;  %v9612_v46 = vpop.f32.mrb[167].mxu1  ;;  %v17719_v13 = vadd.f32 %v11915_v1, %v9347_v19 }
 0x917   : > { %v10676_v60 = vmul.f32 -1.442695, %v9610_v42  ;;  %v9613_v59 = vadd.f32 %v9612_v46, %v17630_v29 }
 0x918   : > { %13637 = vpow2.f32 %v10678_v50  ;;  %v10679_v5 = vmul.f32 -1.442695, %v9621_v22  ;;  %v11916_v34 = vpop.f32.mrb[176].mxu0 }
 0x919   : > { %13639 = vpow2.f32 %v10676_v60  ;;  %v10677_v2 = vmul.f32 -1.442695, %v9613_v59  ;;  %v11917_v61 = vpop.f32.mrb[177].mxu0 }
 0x91a   : > { %v13630_v33 = vpop.eup %13629  ;;  %13641 = vpow2.f32 %v10679_v5  ;;  %v11918_v44 = vadd.f32 %v11917_v61, %v11916_v34  ;;  %v11919_v62 = vpop.f32.mrb[178].mxu0 }
 0x91b   : > { %v13632_v30 = vpop.eup %13631  ;;  %v9806_v39 = vadd.f32 1.0, %v13630_v33  ;;  %13643 = vpow2.f32 %v10677_v2  ;;  %v11920_v35 = vpop.f32.mrb[179].mxu0 }
 0x91c   : > { %v12520_v18 = vpop.f32.mrb[168].mxu1  ;;  %v13634_v7 = vpop.eup %13633  ;;  %v9804_v29 = vadd.f32 1.0, %v13632_v30  ;;  %v11921_v57 = vadd.f32 %v11920_v35, %v11919_v62  ;;  %v17725_v51 = vadd.f32 %v11918_v44, %v9352_v55 }
 0x91d   : > { %v9634_v37 = vadd.f32 %v12520_v18, %v17662_v3  ;;  %v9625_v27 = vpop.f32.mrb[169].mxu1  ;;  %v13636_v40 = vpop.eup %13635  ;;  %13645 = vrcp.f32 %v9806_v39  ;;  %v9807_v15 = vadd.f32 1.0, %v13634_v7 }
 0x91e   : > { %v9626_v36 = vadd.f32 %v9625_v27, %v17650_v38  ;;  %v12521_v41 = vpop.f32.mrb[170].mxu1  ;;  %13647 = vrcp.f32 %v9804_v29  ;;  %v9805_v25 = vadd.f32 1.0, %v13636_v40  ;;  %v17732_v26 = vadd.f32 %v11921_v57, %v9355_v9 }
 0x91f   : > { %v10682_v58 = vmul.f32 -1.442695, %v9634_v37  ;;  %v9637_v28 = vadd.f32 %v12521_v41, %v17666_v31  ;;  %v9628_v49 = vpop.f32.mrb[171].mxu1  ;;  %13649 = vrcp.f32 %v9807_v15  ;;  %v9360_v31 = vadd.f32 %v17676_v47, %v17579_v23 }
 0x920   : > { %v10680_v3 = vmul.f32 -1.442695, %v9626_v36  ;;  %v9629_v16 = vadd.f32 %v9628_v49, %v17654_v10  ;;  %13651 = vrcp.f32 %v9805_v25  ;;  %v11922_v19 = vpop.f32.mrb[180].mxu0  ;;  %v9363_v10 = vadd.f32 %v17680_v11, %v17579_v23 }
 0x921   : > { %v10683_v53 = vmul.f32 -1.442695, %v9637_v28  ;;  %13653 = vpow2.f32 %v10682_v58  ;;  %v11923_v38 = vpop.f32.mrb[181].mxu0 }
 0x922   : > { %v10681_v1 = vmul.f32 -1.442695, %v9629_v16  ;;  %v13638_v6 = vpop.eup %13637  ;;  %13655 = vpow2.f32 %v10680_v3  ;;  %v11924_v14 = vadd.f32 %v11923_v38, %v11922_v19  ;;  %v11925_v42 = vpop.f32.mrb[182].mxu0  ;;  %v9371_v19 = vadd.f32 %v17692_v4, %v17579_v23 }
 0x923   : > { %v13640_v43 = vpop.eup %13639  ;;  %v9810_v50 = vadd.f32 1.0, %v13638_v6  ;;  %13657 = vpow2.f32 %v10683_v53  ;;  %v11926_v22 = vpop.f32.mrb[183].mxu0 }
 0x924   : > { %v12524_v46 = vpop.f32.mrb[172].mxu1  ;;  %v13642_v60 = vpop.eup %13641  ;;  %v9808_v59 = vadd.f32 1.0, %v13640_v43  ;;  %13659 = vpow2.f32 %v10681_v1  ;;  %v11927_v5 = vadd.f32 %v11926_v22, %v11925_v42  ;;  %v17746_v55 = vadd.f32 %v11924_v14, %v9360_v31 }
 0x925   : > { %v9650_v34 = vadd.f32 %v12524_v46, %v17686_v63  ;;  %v9641_v2 = vpop.f32.mrb[173].mxu1  ;;  %v13644_v61 = vpop.eup %13643  ;;  %13661 = vrcp.f32 %v9810_v50  ;;  %v9811_v47 = vadd.f32 1.0, %v13642_v60 }
 0x926   : > { %v9642_v11 = vadd.f32 %v9641_v2, %v17674_v54  ;;  %v12525_v33 = vpop.f32.mrb[174].mxu1  ;;  %13663 = vrcp.f32 %v9808_v59  ;;  %v9809_v44 = vadd.f32 1.0, %v13644_v61  ;;  %v17750_v7 = vadd.f32 %v11927_v5, %v9363_v10 }
 0x927   : > { %v10686_v62 = vmul.f32 -1.442695, %v9650_v34  ;;  %v9653_v63 = vadd.f32 %v12525_v33, %v17690_v12  ;;  %v9644_v30 = vpop.f32.mrb[175].mxu1  ;;  %v13646_v39 = vpop.eup %13645  ;;  %13665 = vrcp.f32 %v9811_v47  ;;  %v9379_v33 = vadd.f32 %v17696_v20, %v17579_v23 }
 0x928   : > { %v10684_v35 = vmul.f32 -1.442695, %v9642_v11  ;;  %v9645_v18 = vadd.f32 %v9644_v30, %v17678_v21  ;;  %v13648_v29 = vpop.eup %13647  ;;  %9902 = vst [vmem:[%s17743_s24 + $0x30] sm:$0xff] %v13646_v39  ;;  %13667 = vrcp.f32 %v9809_v44  ;;  %v11928_v57 = vpop.f32.mrb[184].mxu0  ;;  %v9368_v21 = vadd.f32 %v17688_v17, %v17579_v23 }
 0x929   : > { %v10687_v54 = vmul.f32 -1.442695, %v9653_v63  ;;  %v13650_v37 = vpop.eup %13649  ;;  %9900 = vst [vmem:[%s17743_s24 + $0x20] sm:$0xff] %v13648_v29  ;;  %13669 = vpow2.f32 %v10686_v62  ;;  %v11929_v12 = vpop.f32.mrb[185].mxu0 }
 0x92a   : > { %v10685_v27 = vmul.f32 -1.442695, %v9645_v18  ;;  %v13652_v40 = vpop.eup %13651  ;;  %9903 = vst [vmem:[%s17743_s24 + $0x38] sm:$0xff] %v13650_v37  ;;  %13671 = vpow2.f32 %v10684_v35  ;;  %v11930_v9 = vadd.f32 %v11929_v12, %v11928_v57  ;;  %v11931_v15 = vpop.f32.mrb[186].mxu0 }
 0x92b   : > { %v13654_v36 = vpop.eup %13653  ;;  %9901 = vst [vmem:[%s17743_s24 + $0x28] sm:$0xff] %v13652_v40  ;;  %13673 = vpow2.f32 %v10687_v54  ;;  %v11932_v41 = vpop.f32.mrb[187].mxu0 }
 0x92c   : > { %v12528_v25 = vpop.f32.mrb[176].mxu1  ;;  %v13656_v58 = vpop.eup %13655  ;;  %v9814_v28 = vadd.f32 1.0, %v13654_v36  ;;  %13675 = vpow2.f32 %v10685_v27  ;;  %v11933_v49 = vadd.f32 %v11932_v41, %v11931_v15  ;;  %v17762_v6 = vadd.f32 %v11930_v9, %v9368_v21 }
 0x92d   : > { %v9666_v3 = vadd.f32 %v12528_v25, %v17715_v48  ;;  %v9657_v16 = vpop.f32.mrb[177].mxu1  ;;  %v13658_v53 = vpop.eup %13657  ;;  %v9812_v1 = vadd.f32 1.0, %v13656_v58 }
 0x92e   : > { %v9658_v38 = vadd.f32 %v9657_v16, %v17703_v52  ;;  %v12529_v17 = vpop.f32.mrb[178].mxu1  ;;  %v13660_v14 = vpop.eup %13659  ;;  %13677 = vrcp.f32 %v9814_v28  ;;  %v9815_v42 = vadd.f32 1.0, %v13658_v53  ;;  %v17767_v59 = vadd.f32 %v11933_v49, %v9371_v19 }
 0x92f   : > { %v10690_v43 = vmul.f32 -1.442695, %v9666_v3  ;;  %v9669_v31 = vadd.f32 %v12529_v17, %v17719_v13  ;;  %v9660_v48 = vpop.f32.mrb[179].mxu1  ;;  %v13662_v10 = vpop.eup %13661  ;;  %13679 = vrcp.f32 %v9812_v1  ;;  %v9813_v50 = vadd.f32 1.0, %v13660_v14 }
 0x930   : > { %v10688_v4 = vmul.f32 -1.442695, %v9658_v38  ;;  %v9661_v22 = vadd.f32 %v9660_v48, %v17707_v32  ;;  %v13664_v46 = vpop.eup %13663  ;;  %9906 = vst [vmem:[%s17743_s24 + $0x50] sm:$0xff] %v13662_v10  ;;  %13681 = vrcp.f32 %v9815_v42  ;;  %v11934_v60 = vpop.f32.mrb[188].mxu0  ;;  %v9376_v32 = vadd.f32 %v17694_v0, %v17579_v23 }
 0x931   : > { %v10691_v52 = vmul.f32 -1.442695, %v9669_v31  ;;  %v13666_v5 = vpop.eup %13665  ;;  %9904 = vst [vmem:[%s17743_s24 + $0x40] sm:$0xff] %v13664_v46  ;;  %13683 = vrcp.f32 %v9813_v50  ;;  %v11935_v34 = vpop.f32.mrb[189].mxu0 }
 0x932   : > { %v10689_v13 = vmul.f32 -1.442695, %v9661_v22  ;;  %v13668_v2 = vpop.eup %13667  ;;  %9907 = vst [vmem:[%s17743_s24 + $0x58] sm:$0xff] %v13666_v5  ;;  %13685 = vpow2.f32 %v10690_v43  ;;  %v11936_v61 = vadd.f32 %v11935_v34, %v11934_v60  ;;  %v11937_v47 = vpop.f32.mrb[190].mxu0 }
 0x933   : > { %v13670_v11 = vpop.eup %13669  ;;  %9905 = vst [vmem:[%s17743_s24 + $0x48] sm:$0xff] %v13668_v2  ;;  %13687 = vpow2.f32 %v10688_v4  ;;  %v11938_v44 = vpop.f32.mrb[191].mxu0 }
 0x934   : > { %v12532_v62 = vpop.f32.mrb[180].mxu1  ;;  %v13672_v63 = vpop.eup %13671  ;;  %v9818_v30 = vadd.f32 1.0, %v13670_v11  ;;  %13689 = vpow2.f32 %v10691_v52  ;;  %v11939_v39 = vadd.f32 %v11938_v44, %v11937_v47  ;;  %v9537_v37 = vadd.f32 %v11936_v61, %v9376_v32 }
 0x935   : > { %v9682_v35 = vadd.f32 %v12532_v62, %v17746_v55  ;;  %v9673_v18 = vpop.f32.mrb[181].mxu1  ;;  %v13674_v29 = vpop.eup %13673  ;;  %v9816_v54 = vadd.f32 1.0, %v13672_v63  ;;  %13691 = vpow2.f32 %v10689_v13 }
 0x936   : > { %v9674_v57 = vadd.f32 %v9673_v18, %v17725_v51  ;;  %v12533_v0 = vpop.f32.mrb[182].mxu1  ;;  %v13676_v27 = vpop.eup %13675  ;;  %13693 = vrcp.f32 %v9818_v30  ;;  %v9819_v23 = vadd.f32 1.0, %v13674_v29  ;;  %v9540_v41 = vadd.f32 %v11939_v39, %v9379_v33 }
 0x937   : > { %v10694_v20 = vmul.f32 -1.442695, %v9682_v35  ;;  %v9685_v12 = vadd.f32 %v12533_v0, %v17750_v7  ;;  %v9676_v40 = vpop.f32.mrb[183].mxu1  ;;  %13695 = vrcp.f32 %v9816_v54  ;;  %v9817_v9 = vadd.f32 1.0, %v13676_v27 }
 0x938   : > { %v10692_v55 = vmul.f32 -1.442695, %v9674_v57  ;;  %v9677_v15 = vadd.f32 %v9676_v40, %v17732_v26  ;;  %v13678_v36 = vpop.eup %13677  ;;  %13697 = vrcp.f32 %v9819_v23  ;;  %v12508_v21 = vpop.f32.mrb[192].mxu0 }
 0x939   : > { %v10695_v51 = vmul.f32 -1.442695, %v9685_v12  ;;  %v13680_v25 = vpop.eup %13679  ;;  %9910 = vst [vmem:[%s17743_s24 + $0x70] sm:$0xff] %v13678_v36  ;;  %13699 = vrcp.f32 %v9817_v9  ;;  %v9586_v7 = vadd.f32 %v12508_v21, %v17593_v56  ;;  %v9577_v28 = vpop.f32.mrb[193].mxu0 }
 0x93a   : > { %v10693_v58 = vmul.f32 -1.442695, %v9677_v15  ;;  %v13682_v49 = vpop.eup %13681  ;;  %9908 = vst [vmem:[%s17743_s24 + $0x60] sm:$0xff] %v13680_v25  ;;  %13701 = vpow2.f32 %v10694_v20  ;;  %v9578_v3 = vadd.f32 %v9577_v28, %v17587_v45  ;;  %v12509_v26 = vpop.f32.mrb[194].mxu0 }
 0x93b   : > { %v13684_v16 = vpop.eup %13683  ;;  %9911 = vst [vmem:[%s17743_s24 + $0x78] sm:$0xff] %v13682_v49  ;;  %13703 = vpow2.f32 %v10692_v55  ;;  %v10670_v53 = vmul.f32 -1.442695, %v9586_v7  ;;  %v9589_v19 = vadd.f32 %v12509_v26, %v17597_v8  ;;  %v9580_v1 = vpop.f32.mrb[195].mxu0 }
 0x93c   : > { %v12536_v38 = vpop.f32.mrb[184].mxu1  ;;  %v13686_v17 = vpop.eup %13685  ;;  %9909 = vst [vmem:[%s17743_s24 + $0x68] sm:$0xff] %v13684_v16  ;;  %13705 = vpow2.f32 %v10695_v51  ;;  %v9581_v56 = vadd.f32 %v9580_v1, %v17589_v24  ;;  %v10668_v46 = vmul.f32 -1.442695, %v9578_v3 }
 0x93d   : > { %v9698_v14 = vadd.f32 %v12536_v38, %v9537_v37  ;;  %v9689_v42 = vpop.f32.mrb[185].mxu1  ;;  %v13688_v43 = vpop.eup %13687  ;;  %v9822_v31 = vadd.f32 1.0, %v13686_v17  ;;  %13707 = vpow2.f32 %v10693_v58  ;;  %v10671_v5 = vmul.f32 -1.442695, %v9589_v19 }
 0x93e   : > { %v9690_v45 = vadd.f32 %v9689_v42, %v17762_v6  ;;  %v12537_v48 = vpop.f32.mrb[186].mxu1  ;;  %v13690_v10 = vpop.eup %13689  ;;  %v9820_v50 = vadd.f32 1.0, %v13688_v43  ;;  %13709 = vpow2.f32 %v10670_v53  ;;  %v10669_v34 = vmul.f32 -1.442695, %v9581_v56 }
 0x93f   : > { %v9692_v8 = vpop.f32.mrb[187].mxu1  ;;  %v13692_v4 = vpop.eup %13691  ;;  %13711 = vrcp.f32 %v9822_v31  ;;  %v9823_v22 = vadd.f32 1.0, %v13690_v10  ;;  %v9701_v24 = vadd.f32 %v12537_v48, %v9540_v41  ;;  %v10698_v61 = vmul.f32 -1.442695, %v9698_v14 }
 0x940   : > { %v13694_v52 = vpop.eup %13693  ;;  %13713 = vrcp.f32 %v9820_v50  ;;  %v9821_v60 = vadd.f32 1.0, %v13692_v4  ;;  %v9693_v6 = vadd.f32 %v9692_v8, %v17767_v59  ;;  %v10696_v35 = vmul.f32 -1.442695, %v9690_v45 }
 0x941   : > { %v13696_v13 = vpop.eup %13695  ;;  %9914 = vst [vmem:[%s17743_s24 + $0x90] sm:$0xff] %v13694_v52  ;;  %13715 = vrcp.f32 %v9823_v22  ;;  %v10699_v54 = vmul.f32 -1.442695, %v9701_v24 }
 0x942   : > { %v13698_v2 = vpop.eup %13697  ;;  %9912 = vst [vmem:[%s17743_s24 + $0x80] sm:$0xff] %v13696_v13  ;;  %13717 = vrcp.f32 %v9821_v60  ;;  %v10697_v0 = vmul.f32 -1.442695, %v9693_v6 }
 0x943   : > { %v13700_v47 = vpop.eup %13699  ;;  %9915 = vst [vmem:[%s17743_s24 + $0x98] sm:$0xff] %v13698_v2  ;;  %13719 = vpow2.f32 %v10668_v46 }
 0x944   : > { %v13702_v11 = vpop.eup %13701  ;;  %9913 = vst [vmem:[%s17743_s24 + $0x88] sm:$0xff] %v13700_v47  ;;  %13721 = vpow2.f32 %v10671_v5 }
 0x945   : > { %v13704_v32 = vpop.eup %13703  ;;  %v9826_v33 = vadd.f32 1.0, %v13702_v11  ;;  %13723 = vpow2.f32 %v10669_v34 }
 0x946   : > { %v13706_v44 = vpop.eup %13705  ;;  %v9824_v59 = vadd.f32 1.0, %v13704_v32  ;;  %13725 = vpow2.f32 %v10698_v61 }
 0x947   : > { %v13708_v62 = vpop.eup %13707  ;;  %13727 = vrcp.f32 %v9826_v33  ;;  %v9827_v63 = vadd.f32 1.0, %v13706_v44 }
 0x948   : > { %v13710_v30 = vpop.eup %13709  ;;  %13729 = vrcp.f32 %v9824_v59  ;;  %v9825_v39 = vadd.f32 1.0, %v13708_v62 }
 0x949   : > { %v13712_v18 = vpop.eup %13711  ;;  %13731 = vrcp.f32 %v9827_v63  ;;  %v9802_v29 = vadd.f32 1.0, %v13710_v30 }
 0x94a   : > { %v13714_v57 = vpop.eup %13713  ;;  %9918 = vst [vmem:[%s17743_s24 + $0xb0] sm:$0xff] %v13712_v18  ;;  %13733 = vrcp.f32 %v9825_v39 }
 0x94b   : > { %v13716_v37 = vpop.eup %13715  ;;  %9916 = vst [vmem:[%s17743_s24 + $0xa0] sm:$0xff] %v13714_v57  ;;  %13735 = vrcp.f32 %v9802_v29 }
 0x94c   : > { %v13718_v27 = vpop.eup %13717  ;;  %9919 = vst [vmem:[%s17743_s24 + $0xb8] sm:$0xff] %v13716_v37  ;;  %13737 = vpow2.f32 %v10696_v35 }
 0x94d   : > { %v13720_v23 = vpop.eup %13719  ;;  %9917 = vst [vmem:[%s17743_s24 + $0xa8] sm:$0xff] %v13718_v27  ;;  %13739 = vpow2.f32 %v10699_v54 }
 0x94e   : > { %v13722_v20 = vpop.eup %13721  ;;  %v9800_v12 = vadd.f32 1.0, %v13720_v23  ;;  %13741 = vpow2.f32 %v10697_v0 }
 0x94f   : > { %v13724_v40 = vpop.eup %13723  ;;  %v9803_v9 = vadd.f32 1.0, %v13722_v20 }
 0x950   : > { %v13726_v55 = vpop.eup %13725  ;;  %13743 = vrcp.f32 %v9800_v12  ;;  %v9801_v15 = vadd.f32 1.0, %v13724_v40 }
 0x951   : > { %v13728_v36 = vpop.eup %13727  ;;  %13745 = vrcp.f32 %v9803_v9  ;;  %v9830_v51 = vadd.f32 1.0, %v13726_v55 }
 0x952   : > { %v13730_v21 = vpop.eup %13729  ;;  %9922 = vst [vmem:[%s17743_s24 + $0xd0] sm:$0xff] %v13728_v36  ;;  %13747 = vrcp.f32 %v9801_v15 }
 0x953   : > { %v13732_v41 = vpop.eup %13731  ;;  %9920 = vst [vmem:[%s17743_s24 + $0xc0] sm:$0xff] %v13730_v21  ;;  %13749 = vrcp.f32 %v9830_v51 }
 0x954   : > { %v13734_v25 = vpop.eup %13733  ;;  %9923 = vst [vmem:[%s17743_s24 + $0xd8] sm:$0xff] %v13732_v41 }
 0x955   : > { %v13736_v58 = vpop.eup %13735  ;;  %9921 = vst [vmem:[%s17743_s24 + $0xc8] sm:$0xff] %v13734_v25 }
 0x956   : > { %v13738_v7 = vpop.eup %13737  ;;  %9898 = vst [vmem:[%s17743_s24 + $0x10] sm:$0xff] %v13736_v58 }
 0x957   : > { %v13740_v28 = vpop.eup %13739  ;;  %v9828_v49 = vadd.f32 1.0, %v13738_v7 }
 0x958   : > { %v13742_v3 = vpop.eup %13741  ;;  %v9831_v26 = vadd.f32 1.0, %v13740_v28 }
 0x959   : > { %13751 = vrcp.f32 %v9828_v49  ;;  %v9829_v16 = vadd.f32 1.0, %v13742_v3 }
 0x95a   : > { %v13744_v53 = vpop.eup %13743  ;;  %13753 = vrcp.f32 %v9831_v26 }
 0x95b   : > { %v13746_v19 = vpop.eup %13745  ;;  %9896 = vst [vmem:[%s17743_s24] sm:$0xff] %v13744_v53  ;;  %13755 = vrcp.f32 %v9829_v16 }
 0x95c   : > { %v13748_v1 = vpop.eup %13747  ;;  %9899 = vst [vmem:[%s17743_s24 + $0x18] sm:$0xff] %v13746_v19 }
 0x95d   : > { %v13750_v38 = vpop.eup %13749  ;;  %9897 = vst [vmem:[%s17743_s24 + $0x8] sm:$0xff] %v13748_v1 }
 0x95e   : > { %9926 = vst [vmem:[%s17743_s24 + $0xf0] sm:$0xff] %v13750_v38 }
 0x963   : > { %v13752_v17 = vpop.eup %13751 }
 0x964   : > { %v13754_v56 = vpop.eup %13753  ;;  %9924 = vst [vmem:[%s17743_s24 + $0xe0] sm:$0xff] %v13752_v17 }
 0x965   : > { %v13756_v14 = vpop.eup %13755  ;;  %9927 = vst [vmem:[%s17743_s24 + $0xf8] sm:$0xff] %v13754_v56 }
 0x966   : > { %9925 = vst [vmem:[%s17743_s24 + $0xe8] sm:$0xff] %v13756_v14 }
 0x967 PF: > { %s19_s30 = sadd.s32 1, %s13801_s30  }
 0x968   : > { %p16_p4 = scmp.ge.s32.totalorder %s19_s30, 4  }
 0x96a   :  { %18 = sbr.rel (!%p16_p4) target bundleno = 1 (0x1), region = 102 }

</bundles_post_ra>
